<compile_context>
chip_gen: v7x
topology: tpu7x:2x2x1
jax: 0.10.0
libtpu: 0.0.40
codegen_flags: <defaults>
</compile_context>

<pallas_src>
import functools

import jax
import jax.numpy as jnp
from jax.experimental import pallas as pl
from jax.experimental.pallas import tpu as pltpu

LINE_NUM = 186
EMB_DIM = 256
LINE_VOCAB = 400
CONT_DIM = 1219 - 3 * EMB_DIM            # 451 continuous features
HEAD_DIM = CONT_DIM + 2 * EMB_DIM        # 963 = [cont | hour_emb | month_emb]
OBS_DIM = CONT_DIM + LINE_NUM + 2        # 639 total observation width
LAYER_DIMS = [1219, 1024, 900, 800, 700, 512, 1000]
OUT_DIM = LAYER_DIMS[-1]                 # 1000
OUT_PAD = 1024                           # lane-dense padded output width
XHEAD_PAD = 1024                         # head features padded 963 -> 1024
CNT_PAD = 512                            # line-vocab counts padded 400 -> 512
XIN_PAD = XHEAD_PAD + CNT_PAD            # 1536 = kernel activation width

QUANTIZE_WEIGHTS_INT8 = True             # weight-only int8 (dequant->bf16 in-kernel)


# ----------------------------------------------------------------------------
# Pallas kernel: 6 x (Linear + ReLU) with int8 weights, per-column scales in
# the f32 epilogue, bf16 MXU matmuls, f32 accumulation.  fc1 is K-split over
# [padded head | padded line-status counts] (each block has its own scales so
# the folded line block's larger magnitudes don't crush the head quantization).
# ----------------------------------------------------------------------------
def _powernet_kernel(x_ref,
                     w1h_ref, s1h_ref, w1f_ref, s1f_ref, b1_ref,
                     w2_ref, s2_ref, b2_ref,
                     w3_ref, s3_ref, b3_ref,
                     w4_ref, s4_ref, b4_ref,
                     w5_ref, s5_ref, b5_ref,
                     w6_ref, s6_ref, b6_ref,
                     o_ref):
    f32, bf16 = jnp.float32, jnp.bfloat16

    def deq(w_ref):
        # int8 -> f32 -> bf16 (exact: |int8| <= 127 is representable in bf16).
        # For the bf16 fallback weights this is an exact round-trip cast.
        return w_ref[...].astype(f32).astype(bf16)

    xh = x_ref[:, :XHEAD_PAD]            # (TB, 1024) bf16 — 128-aligned slice
    cnt = x_ref[:, XHEAD_PAD:]           # (TB, 512)  bf16

    # fc1: K-split (== concat-then-matmul); per-K-block column scales in f32.
    acc = (jnp.dot(xh, deq(w1h_ref), preferred_element_type=f32) * s1h_ref[...]
           + jnp.dot(cnt, deq(w1f_ref), preferred_element_type=f32) * s1f_ref[...])
    h = jnp.maximum(acc + b1_ref[...], 0.0)

    # fc2 .. fc6 — ReLU after every layer, including fc6 (matches the torch
    # module's nn.Sequential(Linear, ReLU) for fc6).
    for w_ref, s_ref, b_ref in ((w2_ref, s2_ref, b2_ref),
                                (w3_ref, s3_ref, b3_ref),
                                (w4_ref, s4_ref, b4_ref),
                                (w5_ref, s5_ref, b5_ref),
                                (w6_ref, s6_ref, b6_ref)):
        acc = jnp.dot(h.astype(bf16), deq(w_ref), preferred_element_type=f32)
        h = jnp.maximum(acc * s_ref[...] + b_ref[...], 0.0)

    o_ref[...] = h                       # (TB, 1024) f32, lane-dense store


def _pick_batch_tile(b_padded):
    # 256 is MXU-M friendly on v6e/v7x (256x256 MXU); 128 suits v5e.  Small
    # batches run as a single tile (grid of 1).
    for tb in (256, 128):
        if b_padded % tb == 0:
            return tb
    return b_padded


def powernet_mlp_pallas(x, kp):
    """x: (B, 1536) bf16 assembled activation slab (see _build_kernel_input)."""
    B = x.shape[0]
    b_padded = ((B + 7) // 8) * 8
    tb = _pick_batch_tile(b_padded)
    if b_padded != B:
        x = jnp.pad(x, ((0, b_padded - B), (0, 0)))
    nb = b_padded // tb

    args = [x, kp["w1h"], kp["s1h"], kp["w1f"], kp["s1f"], kp["b1"]]
    for wq, s, b in kp["layers"]:
        args += [wq, s, b]

    # Activations/output are batch-tiled; weights/scales/biases use a constant
    # index_map so they are DMA'd once and stay VMEM-resident across the grid.
    def resident(a):
        return pl.BlockSpec(a.shape, lambda i, _nd=a.ndim: (0,) * _nd)

    in_specs = ([pl.BlockSpec((tb, XIN_PAD), lambda i: (i, 0))]
                + [resident(a) for a in args[1:]])
    out_spec = pl.BlockSpec((tb, OUT_PAD), lambda i: (i, 0))

    # Follow-ups (perf review), not implemented here:
    #  * P10 cross-call prefetch of the weight stream behind the wrapper glue.
    #  * Per-layer manual double buffering (memory_space=pl.ANY + 2-slot VMEM
    #    scratch + DMA sems) once per-layer compute ~ per-layer weight DMA.
    out = pl.pallas_call(
        _powernet_kernel,
        out_shape=jax.ShapeDtypeStruct((b_padded, OUT_PAD), jnp.float32),
        grid_spec=pltpu.PrefetchScalarGridSpec(
            num_scalar_prefetch=0,
            grid=(nb,),
            in_specs=in_specs,
            out_specs=out_spec),
        compiler_params=pltpu.CompilerParams(
            # Megacore only when there are multiple batch tiles: with a single
            # tile each extra core would just re-stream the full weight set.
            dimension_semantics=("parallel",) if nb > 1 else ("arbitrary",),
            vmem_limit_bytes=32 * 1024 * 1024),
    )(*args)
    return out[:B, :OUT_DIM]


# ----------------------------------------------------------------------------
# Parameter init (deterministic, synthetic).  Canonical f32, torch-equivalent:
#   Linear(in, out) -> W stored here as (in, out);  Embedding(n, d) -> (n, d)
# ----------------------------------------------------------------------------
def init_params(key):
    params = {"weights": [], "biases": []}
    keys = jax.random.split(key, 2 * (len(LAYER_DIMS) - 1) + 3)
    k_iter = iter(keys)
    for i in range(len(LAYER_DIMS) - 1):
        fan_in, fan_out = LAYER_DIMS[i], LAYER_DIMS[i + 1]
        bound = 1.0 / jnp.sqrt(float(fan_in))
        w = jax.random.uniform(next(k_iter), (fan_in, fan_out),
                               jnp.float32, -bound, bound)
        b = jax.random.uniform(next(k_iter), (fan_out,),
                               jnp.float32, -bound, bound)
        params["weights"].append(w)
        params["biases"].append(b)
    params["month_table"] = jax.random.normal(next(k_iter), (13, EMB_DIM), jnp.float32)
    params["hour_table"] = jax.random.normal(next(k_iter), (24, EMB_DIM), jnp.float32)
    params["line_table"] = jax.random.normal(next(k_iter), (LINE_VOCAB, EMB_DIM),
                                             jnp.float32)
    return params


def _quantize_per_col(w):
    """Symmetric per-output-channel int8 quantization; zero columns -> scale 1."""
    amax = jnp.max(jnp.abs(w), axis=0, keepdims=True)           # (1, N)
    scale = jnp.where(amax > 0.0, amax / 127.0, 1.0).astype(jnp.float32)
    wq = jnp.clip(jnp.round(w / scale), -127.0, 127.0).astype(jnp.int8)
    return wq, scale


def _prep_weight(w):
    if QUANTIZE_WEIGHTS_INT8:
        return _quantize_per_col(w)
    return w.astype(jnp.bfloat16), jnp.ones((1, w.shape[1]), jnp.float32)


def prepare_kernel_params(params):
    """One-time prep: fold line table into fc1, pad to lane widths, quantize."""
    kp = {}
    w1 = params["weights"][0]                        # (1219, 1024) f32
    w1_head = w1[:HEAD_DIM]                          # (963, 1024)
    w1_line = w1[HEAD_DIM:]                          # (256, 1024)
    # Pad head K 963 -> 1024 (zero rows; x_head is zero-padded to match).
    w1_head = jnp.pad(w1_head, ((0, XHEAD_PAD - HEAD_DIM), (0, 0)))
    # Fold the line-status embedding table through fc1 (exact in f32):
    #   sum_i table[ls_i] @ w1_line  ==  counts @ (table @ w1_line)
    folded = params["line_table"] @ w1_line          # (400, 1024) f32
    folded = jnp.pad(folded, ((0, CNT_PAD - LINE_VOCAB), (0, 0)))  # (512, 1024)
    kp["w1h"], kp["s1h"] = _prep_weight(w1_head)
    kp["w1f"], kp["s1f"] = _prep_weight(folded)
    kp["b1"] = params["biases"][0].reshape(1, -1).astype(jnp.float32)

    layers = []
    n_layers = len(LAYER_DIMS) - 1
    for i in range(1, n_layers):
        w = params["weights"][i]
        b = params["biases"][i]
        if i == n_layers - 1:                        # fc6: pad 1000 -> 1024 cols
            w = jnp.pad(w, ((0, 0), (0, OUT_PAD - OUT_DIM)))
            b = jnp.pad(b, (0, OUT_PAD - OUT_DIM))
        wq, s = _prep_weight(w)
        layers.append((wq, s, b.reshape(1, -1).astype(jnp.float32)))
    kp["layers"] = layers
    # Hour/month embedding gathers stay in the XLA wrapper (data-dependent).
    kp["month_table"] = params["month_table"]
    kp["hour_table"] = params["hour_table"]
    return kp


# ----------------------------------------------------------------------------
# Forward pass (tiny embedding/scatter glue in JAX, everything else in Pallas).
# ----------------------------------------------------------------------------
def _build_kernel_input(obs, kp):
    # obs: (B, 639) f32 — layout [continuous(451) | line_status(186) | hour | month]
    B = obs.shape[0]
    cont = obs[:, :CONT_DIM]                                              # (B, 451)
    line_status = obs[:, CONT_DIM:CONT_DIM + LINE_NUM].astype(jnp.int32)  # (B, 186)
    hour = obs[:, -2].astype(jnp.int32)                                   # (B,)
    month = obs[:, -1].astype(jnp.int32)                                  # (B,)

    hour_emb = jnp.take(kp["hour_table"], hour, axis=0)                   # (B, 256)
    month_emb = jnp.take(kp["month_table"], month, axis=0)                # (B, 256)

    # Multi-hot line-status counts via scatter-add (no (B,186,400) one_hot).
    counts = jnp.zeros((B, LINE_VOCAB), jnp.float32)
    counts = counts.at[jnp.arange(B)[:, None], line_status].add(1.0)      # (B, 400)

    # Kernel activation slab, lane-dense and 128-aligned at the K split:
    #   [cont(451) | hour(256) | month(256) | 0-pad(61) | counts(400) | 0-pad(112)]
    x = jnp.concatenate(
        [cont, hour_emb, month_emb,
         jnp.zeros((B, XHEAD_PAD - HEAD_DIM), jnp.float32),
         counts,
         jnp.zeros((B, CNT_PAD - LINE_VOCAB), jnp.float32)], axis=1)      # (B, 1536)
    return x.astype(jnp.bfloat16)   # counts <= 186 and embeddings: safe in bf16


def powernet_forward(obs, kp):
    return powernet_mlp_pallas(_build_kernel_input(obs, kp), kp)          # (B, 1000)


def reference_forward(obs, kp):
    """Pure-XLA implementation of the exact same (quantized) math as the kernel."""
    f32, bf16 = jnp.float32, jnp.bfloat16
    x = _build_kernel_input(obs, kp)
    xh, cnt = x[:, :XHEAD_PAD], x[:, XHEAD_PAD:]

    def deq(w):
        return w.astype(f32).astype(bf16)

    acc = (jnp.dot(xh, deq(kp["w1h"]), preferred_element_type=f32) * kp["s1h"]
           + jnp.dot(cnt, deq(kp["w1f"]), preferred_element_type=f32) * kp["s1f"])
    h = jnp.maximum(acc + kp["b1"], 0.0)
    for wq, s, b in kp["layers"]:
        acc = jnp.dot(h.astype(bf16), deq(wq), preferred_element_type=f32)
        h = jnp.maximum(acc * s + b, 0.0)
    return h[:, :OUT_DIM]


if __name__ == "__main__":
    key = jax.random.PRNGKey(0)
    k_param, k_cont, k_line, k_hour, k_month = jax.random.split(key, 5)

    params = init_params(k_param)
    kparams = prepare_kernel_params(params)

    B = 8  # small demo batch; serving should batch 128-256 to amortize weight DMA
    cont = jax.random.normal(k_cont, (B, CONT_DIM), jnp.float32)
    line_status = jax.random.randint(k_line, (B, LINE_NUM), 0, LINE_VOCAB).astype(jnp.float32)
    hour = jax.random.randint(k_hour, (B, 1), 0, 24).astype(jnp.float32)
    month = jax.random.randint(k_month, (B, 1), 0, 13).astype(jnp.float32)
    # obs layout: [continuous(451) | line_status(186) | hour | month]
    obs = jnp.concatenate([cont, line_status, hour, month], axis=1)
    assert obs.shape == (B, OBS_DIM)

    out = jax.jit(powernet_forward)(obs, kparams)
    out = jax.block_until_ready(out)
    assert out.shape == (B, OUT_DIM), out.shape

    ref = reference_forward(obs, kparams)
    max_err = float(jnp.max(jnp.abs(out - ref)))
    assert jnp.allclose(out, ref, atol=2e-2, rtol=2e-2), f"mismatch, max_err={max_err}"

    print("KERNEL_OK")
</pallas_src>

<mosaic_0001>
module attributes {stable_mosaic.version = 11 : i64} {
  func.func private @main(%arg0: i32) attributes {dimension_semantics = [#tpu.dimension_semantics<core_parallel>], iteration_bounds = array<i64: 2>, tpu.core_type = #tpu.core_type<sc_scalar_subcore>, window_params = []} {
    return
  }
}

module attributes {stable_mosaic.version = 11 : i64} {
  func.func private @main(%arg0: i32) attributes {dimension_semantics = [#tpu.dimension_semantics<core_parallel>], iteration_bounds = array<i64: 2>, tpu.core_type = #tpu.core_type<sc_scalar_subcore>, window_params = []} {
    return
  }
}

module attributes {stable_mosaic.version = 11 : i64} {
  func.func @_powernet_kernel(%arg0: i32, %arg1: memref<8x1536xbf16, #tpu.memory_space<vmem>>, %arg2: memref<1024x1024xi8, #tpu.memory_space<vmem>>, %arg3: memref<1x1024xf32, #tpu.memory_space<vmem>>, %arg4: memref<512x1024xi8, #tpu.memory_space<vmem>>, %arg5: memref<1x1024xf32, #tpu.memory_space<vmem>>, %arg6: memref<1x1024xf32, #tpu.memory_space<vmem>>, %arg7: memref<1024x900xi8, #tpu.memory_space<vmem>>, %arg8: memref<1x900xf32, #tpu.memory_space<vmem>>, %arg9: memref<1x900xf32, #tpu.memory_space<vmem>>, %arg10: memref<900x800xi8, #tpu.memory_space<vmem>>, %arg11: memref<1x800xf32, #tpu.memory_space<vmem>>, %arg12: memref<1x800xf32, #tpu.memory_space<vmem>>, %arg13: memref<800x700xi8, #tpu.memory_space<vmem>>, %arg14: memref<1x700xf32, #tpu.memory_space<vmem>>, %arg15: memref<1x700xf32, #tpu.memory_space<vmem>>, %arg16: memref<700x512xi8, #tpu.memory_space<vmem>>, %arg17: memref<1x512xf32, #tpu.memory_space<vmem>>, %arg18: memref<1x512xf32, #tpu.memory_space<vmem>>, %arg19: memref<512x1024xi8, #tpu.memory_space<vmem>>, %arg20: memref<1x1024xf32, #tpu.memory_space<vmem>>, %arg21: memref<1x1024xf32, #tpu.memory_space<vmem>>, %arg22: memref<8x1024xf32, #tpu.memory_space<vmem>>) attributes {dimension_semantics = [#tpu.dimension_semantics<arbitrary>], iteration_bounds = array<i64: 1>, scalar_prefetch = 0 : i64, scratch_operands = 0 : i64, tpu.core_type = #tpu.core_type<tc>, window_params = [{transform_indices = @transform_0, window_bounds = array<i64: 8, 1536>}, {pipeline_mode = #tpu.pipeline_mode<synchronous>, transform_indices = @transform_1, window_bounds = array<i64: 1024, 1024>}, {pipeline_mode = #tpu.pipeline_mode<synchronous>, transform_indices = @transform_2, window_bounds = array<i64: 1, 1024>}, {pipeline_mode = #tpu.pipeline_mode<synchronous>, transform_indices = @transform_3, window_bounds = array<i64: 512, 1024>}, {pipeline_mode = #tpu.pipeline_mode<synchronous>, transform_indices = @transform_4, window_bounds = array<i64: 1, 1024>}, {pipeline_mode = #tpu.pipeline_mode<synchronous>, transform_indices = @transform_5, window_bounds = array<i64: 1, 1024>}, {pipeline_mode = #tpu.pipeline_mode<synchronous>, transform_indices = @transform_6, window_bounds = array<i64: 1024, 900>}, {pipeline_mode = #tpu.pipeline_mode<synchronous>, transform_indices = @transform_7, window_bounds = array<i64: 1, 900>}, {pipeline_mode = #tpu.pipeline_mode<synchronous>, transform_indices = @transform_8, window_bounds = array<i64: 1, 900>}, {pipeline_mode = #tpu.pipeline_mode<synchronous>, transform_indices = @transform_9, window_bounds = array<i64: 900, 800>}, {pipeline_mode = #tpu.pipeline_mode<synchronous>, transform_indices = @transform_10, window_bounds = array<i64: 1, 800>}, {pipeline_mode = #tpu.pipeline_mode<synchronous>, transform_indices = @transform_11, window_bounds = array<i64: 1, 800>}, {pipeline_mode = #tpu.pipeline_mode<synchronous>, transform_indices = @transform_12, window_bounds = array<i64: 800, 700>}, {pipeline_mode = #tpu.pipeline_mode<synchronous>, transform_indices = @transform_13, window_bounds = array<i64: 1, 700>}, {pipeline_mode = #tpu.pipeline_mode<synchronous>, transform_indices = @transform_14, window_bounds = array<i64: 1, 700>}, {pipeline_mode = #tpu.pipeline_mode<synchronous>, transform_indices = @transform_15, window_bounds = array<i64: 700, 512>}, {pipeline_mode = #tpu.pipeline_mode<synchronous>, transform_indices = @transform_16, window_bounds = array<i64: 1, 512>}, {pipeline_mode = #tpu.pipeline_mode<synchronous>, transform_indices = @transform_17, window_bounds = array<i64: 1, 512>}, {pipeline_mode = #tpu.pipeline_mode<synchronous>, transform_indices = @transform_18, window_bounds = array<i64: 512, 1024>}, {pipeline_mode = #tpu.pipeline_mode<synchronous>, transform_indices = @transform_19, window_bounds = array<i64: 1, 1024>}, {pipeline_mode = #tpu.pipeline_mode<synchronous>, transform_indices = @transform_20, window_bounds = array<i64: 1, 1024>}, {transform_indices = @transform_21, window_bounds = array<i64: 8, 1024>}]} {
    %c0 = arith.constant 0 : index
    %c0_0 = arith.constant 0 : index
    %0 = vector.load %arg1[%c0, %c0_0] : memref<8x1536xbf16, #tpu.memory_space<vmem>>, vector<8x1024xbf16>
    %c0_1 = arith.constant 0 : index
    %c1024 = arith.constant 1024 : index
    %1 = vector.load %arg1[%c0_1, %c1024] : memref<8x1536xbf16, #tpu.memory_space<vmem>>, vector<8x512xbf16>
    %c0_2 = arith.constant 0 : index
    %c0_3 = arith.constant 0 : index
    %2 = vector.load %arg2[%c0_2, %c0_3] : memref<1024x1024xi8, #tpu.memory_space<vmem>>, vector<1024x1024xi8>
    %3 = arith.sitofp %2 : vector<1024x1024xi8> to vector<1024x1024xf32>
    %4 = arith.truncf %3 : vector<1024x1024xf32> to vector<1024x1024xbf16>
    %cst = arith.constant dense<0.000000e+00> : vector<8x1024xf32>
    %5 = tpu.matmul %0, %4, %cst {dimension_numbers = #tpu.dot_dimension_numbers<[1], [0], [0], [1], [0, 0, 1, 1], [], []>} : vector<8x1024xbf16>, vector<1024x1024xbf16>, vector<8x1024xf32> -> vector<8x1024xf32>
    %c0_4 = arith.constant 0 : index
    %c0_5 = arith.constant 0 : index
    %6 = vector.load %arg3[%c0_4, %c0_5] : memref<1x1024xf32, #tpu.memory_space<vmem>>, vector<1x1024xf32>
    %7 = vector.broadcast %6 : vector<1x1024xf32> to vector<8x1024xf32>
    %8 = arith.mulf %5, %7 : vector<8x1024xf32>
    %c0_6 = arith.constant 0 : index
    %c0_7 = arith.constant 0 : index
    %9 = vector.load %arg4[%c0_6, %c0_7] : memref<512x1024xi8, #tpu.memory_space<vmem>>, vector<512x1024xi8>
    %10 = arith.sitofp %9 : vector<512x1024xi8> to vector<512x1024xf32>
    %11 = arith.truncf %10 : vector<512x1024xf32> to vector<512x1024xbf16>
    %cst_8 = arith.constant dense<0.000000e+00> : vector<8x1024xf32>
    %12 = tpu.matmul %1, %11, %cst_8 {dimension_numbers = #tpu.dot_dimension_numbers<[1], [0], [0], [1], [0, 0, 1, 1], [], []>} : vector<8x512xbf16>, vector<512x1024xbf16>, vector<8x1024xf32> -> vector<8x1024xf32>
    %c0_9 = arith.constant 0 : index
    %c0_10 = arith.constant 0 : index
    %13 = vector.load %arg5[%c0_9, %c0_10] : memref<1x1024xf32, #tpu.memory_space<vmem>>, vector<1x1024xf32>
    %14 = vector.broadcast %13 : vector<1x1024xf32> to vector<8x1024xf32>
    %15 = arith.mulf %12, %14 : vector<8x1024xf32>
    %16 = arith.addf %8, %15 : vector<8x1024xf32>
    %c0_11 = arith.constant 0 : index
    %c0_12 = arith.constant 0 : index
    %17 = vector.load %arg6[%c0_11, %c0_12] : memref<1x1024xf32, #tpu.memory_space<vmem>>, vector<1x1024xf32>
    %18 = vector.broadcast %17 : vector<1x1024xf32> to vector<8x1024xf32>
    %19 = arith.addf %16, %18 : vector<8x1024xf32>
    %cst_13 = arith.constant 0.000000e+00 : f32
    %20 = vector.broadcast %cst_13 : f32 to vector<8x1024xf32>
    %21 = arith.maximumf %19, %20 : vector<8x1024xf32>
    %22 = arith.truncf %21 : vector<8x1024xf32> to vector<8x1024xbf16>
    %c0_14 = arith.constant 0 : index
    %c0_15 = arith.constant 0 : index
    %23 = vector.load %arg7[%c0_14, %c0_15] : memref<1024x900xi8, #tpu.memory_space<vmem>>, vector<1024x900xi8>
    %24 = arith.sitofp %23 : vector<1024x900xi8> to vector<1024x900xf32>
    %25 = arith.truncf %24 : vector<1024x900xf32> to vector<1024x900xbf16>
    %cst_16 = arith.constant dense<0.000000e+00> : vector<8x900xf32>
    %26 = tpu.matmul %22, %25, %cst_16 {dimension_numbers = #tpu.dot_dimension_numbers<[1], [0], [0], [1], [0, 0, 1, 1], [], []>} : vector<8x1024xbf16>, vector<1024x900xbf16>, vector<8x900xf32> -> vector<8x900xf32>
    %c0_17 = arith.constant 0 : index
    %c0_18 = arith.constant 0 : index
    %27 = vector.load %arg8[%c0_17, %c0_18] : memref<1x900xf32, #tpu.memory_space<vmem>>, vector<1x900xf32>
    %28 = vector.broadcast %27 : vector<1x900xf32> to vector<8x900xf32>
    %29 = arith.mulf %26, %28 : vector<8x900xf32>
    %c0_19 = arith.constant 0 : index
    %c0_20 = arith.constant 0 : index
    %30 = vector.load %arg9[%c0_19, %c0_20] : memref<1x900xf32, #tpu.memory_space<vmem>>, vector<1x900xf32>
    %31 = vector.broadcast %30 : vector<1x900xf32> to vector<8x900xf32>
    %32 = arith.addf %29, %31 : vector<8x900xf32>
    %cst_21 = arith.constant 0.000000e+00 : f32
    %33 = vector.broadcast %cst_21 : f32 to vector<8x900xf32>
    %34 = arith.maximumf %32, %33 : vector<8x900xf32>
    %35 = arith.truncf %34 : vector<8x900xf32> to vector<8x900xbf16>
    %c0_22 = arith.constant 0 : index
    %c0_23 = arith.constant 0 : index
    %36 = vector.load %arg10[%c0_22, %c0_23] : memref<900x800xi8, #tpu.memory_space<vmem>>, vector<900x800xi8>
    %37 = arith.sitofp %36 : vector<900x800xi8> to vector<900x800xf32>
    %38 = arith.truncf %37 : vector<900x800xf32> to vector<900x800xbf16>
    %cst_24 = arith.constant dense<0.000000e+00> : vector<8x800xf32>
    %39 = tpu.matmul %35, %38, %cst_24 {dimension_numbers = #tpu.dot_dimension_numbers<[1], [0], [0], [1], [0, 0, 1, 1], [], []>} : vector<8x900xbf16>, vector<900x800xbf16>, vector<8x800xf32> -> vector<8x800xf32>
    %c0_25 = arith.constant 0 : index
    %c0_26 = arith.constant 0 : index
    %40 = vector.load %arg11[%c0_25, %c0_26] : memref<1x800xf32, #tpu.memory_space<vmem>>, vector<1x800xf32>
    %41 = vector.broadcast %40 : vector<1x800xf32> to vector<8x800xf32>
    %42 = arith.mulf %39, %41 : vector<8x800xf32>
    %c0_27 = arith.constant 0 : index
    %c0_28 = arith.constant 0 : index
    %43 = vector.load %arg12[%c0_27, %c0_28] : memref<1x800xf32, #tpu.memory_space<vmem>>, vector<1x800xf32>
    %44 = vector.broadcast %43 : vector<1x800xf32> to vector<8x800xf32>
    %45 = arith.addf %42, %44 : vector<8x800xf32>
    %cst_29 = arith.constant 0.000000e+00 : f32
    %46 = vector.broadcast %cst_29 : f32 to vector<8x800xf32>
    %47 = arith.maximumf %45, %46 : vector<8x800xf32>
    %48 = arith.truncf %47 : vector<8x800xf32> to vector<8x800xbf16>
    %c0_30 = arith.constant 0 : index
    %c0_31 = arith.constant 0 : index
    %49 = vector.load %arg13[%c0_30, %c0_31] : memref<800x700xi8, #tpu.memory_space<vmem>>, vector<800x700xi8>
    %50 = arith.sitofp %49 : vector<800x700xi8> to vector<800x700xf32>
    %51 = arith.truncf %50 : vector<800x700xf32> to vector<800x700xbf16>
    %cst_32 = arith.constant dense<0.000000e+00> : vector<8x700xf32>
    %52 = tpu.matmul %48, %51, %cst_32 {dimension_numbers = #tpu.dot_dimension_numbers<[1], [0], [0], [1], [0, 0, 1, 1], [], []>} : vector<8x800xbf16>, vector<800x700xbf16>, vector<8x700xf32> -> vector<8x700xf32>
    %c0_33 = arith.constant 0 : index
    %c0_34 = arith.constant 0 : index
    %53 = vector.load %arg14[%c0_33, %c0_34] : memref<1x700xf32, #tpu.memory_space<vmem>>, vector<1x700xf32>
    %54 = vector.broadcast %53 : vector<1x700xf32> to vector<8x700xf32>
    %55 = arith.mulf %52, %54 : vector<8x700xf32>
    %c0_35 = arith.constant 0 : index
    %c0_36 = arith.constant 0 : index
    %56 = vector.load %arg15[%c0_35, %c0_36] : memref<1x700xf32, #tpu.memory_space<vmem>>, vector<1x700xf32>
    %57 = vector.broadcast %56 : vector<1x700xf32> to vector<8x700xf32>
    %58 = arith.addf %55, %57 : vector<8x700xf32>
    %cst_37 = arith.constant 0.000000e+00 : f32
    %59 = vector.broadcast %cst_37 : f32 to vector<8x700xf32>
    %60 = arith.maximumf %58, %59 : vector<8x700xf32>
    %61 = arith.truncf %60 : vector<8x700xf32> to vector<8x700xbf16>
    %c0_38 = arith.constant 0 : index
    %c0_39 = arith.constant 0 : index
    %62 = vector.load %arg16[%c0_38, %c0_39] : memref<700x512xi8, #tpu.memory_space<vmem>>, vector<700x512xi8>
    %63 = arith.sitofp %62 : vector<700x512xi8> to vector<700x512xf32>
    %64 = arith.truncf %63 : vector<700x512xf32> to vector<700x512xbf16>
    %cst_40 = arith.constant dense<0.000000e+00> : vector<8x512xf32>
    %65 = tpu.matmul %61, %64, %cst_40 {dimension_numbers = #tpu.dot_dimension_numbers<[1], [0], [0], [1], [0, 0, 1, 1], [], []>} : vector<8x700xbf16>, vector<700x512xbf16>, vector<8x512xf32> -> vector<8x512xf32>
    %c0_41 = arith.constant 0 : index
    %c0_42 = arith.constant 0 : index
    %66 = vector.load %arg17[%c0_41, %c0_42] : memref<1x512xf32, #tpu.memory_space<vmem>>, vector<1x512xf32>
    %67 = vector.broadcast %66 : vector<1x512xf32> to vector<8x512xf32>
    %68 = arith.mulf %65, %67 : vector<8x512xf32>
    %c0_43 = arith.constant 0 : index
    %c0_44 = arith.constant 0 : index
    %69 = vector.load %arg18[%c0_43, %c0_44] : memref<1x512xf32, #tpu.memory_space<vmem>>, vector<1x512xf32>
    %70 = vector.broadcast %69 : vector<1x512xf32> to vector<8x512xf32>
    %71 = arith.addf %68, %70 : vector<8x512xf32>
    %cst_45 = arith.constant 0.000000e+00 : f32
    %72 = vector.broadcast %cst_45 : f32 to vector<8x512xf32>
    %73 = arith.maximumf %71, %72 : vector<8x512xf32>
    %74 = arith.truncf %73 : vector<8x512xf32> to vector<8x512xbf16>
    %c0_46 = arith.constant 0 : index
    %c0_47 = arith.constant 0 : index
    %75 = vector.load %arg19[%c0_46, %c0_47] : memref<512x1024xi8, #tpu.memory_space<vmem>>, vector<512x1024xi8>
    %76 = arith.sitofp %75 : vector<512x1024xi8> to vector<512x1024xf32>
    %77 = arith.truncf %76 : vector<512x1024xf32> to vector<512x1024xbf16>
    %cst_48 = arith.constant dense<0.000000e+00> : vector<8x1024xf32>
    %78 = tpu.matmul %74, %77, %cst_48 {dimension_numbers = #tpu.dot_dimension_numbers<[1], [0], [0], [1], [0, 0, 1, 1], [], []>} : vector<8x512xbf16>, vector<512x1024xbf16>, vector<8x1024xf32> -> vector<8x1024xf32>
    %c0_49 = arith.constant 0 : index
    %c0_50 = arith.constant 0 : index
    %79 = vector.load %arg20[%c0_49, %c0_50] : memref<1x1024xf32, #tpu.memory_space<vmem>>, vector<1x1024xf32>
    %80 = vector.broadcast %79 : vector<1x1024xf32> to vector<8x1024xf32>
    %81 = arith.mulf %78, %80 : vector<8x1024xf32>
    %c0_51 = arith.constant 0 : index
    %c0_52 = arith.constant 0 : index
    %82 = vector.load %arg21[%c0_51, %c0_52] : memref<1x1024xf32, #tpu.memory_space<vmem>>, vector<1x1024xf32>
    %83 = vector.broadcast %82 : vector<1x1024xf32> to vector<8x1024xf32>
    %84 = arith.addf %81, %83 : vector<8x1024xf32>
    %cst_53 = arith.constant 0.000000e+00 : f32
    %85 = vector.broadcast %cst_53 : f32 to vector<8x1024xf32>
    %86 = arith.maximumf %84, %85 : vector<8x1024xf32>
    %c0_54 = arith.constant 0 : index
    %c0_55 = arith.constant 0 : index
    %87 = vector.load %arg22[%c0_54, %c0_55] : memref<8x1024xf32, #tpu.memory_space<vmem>>, vector<8x1024xf32>
    tpu.vector_store %arg22[%c0_54, %c0_55], %86 {strides = array<i32>} : memref<8x1024xf32, #tpu.memory_space<vmem>>, vector<8x1024xf32>,
    return
  }
  func.func @transform_0(%arg0: i32) -> (i32, i32) {
    %c0_i32 = arith.constant 0 : i32
    %c0_i32_0 = arith.constant 0 : i32
    return %arg0, %c0_i32 : i32, i32
  }
  func.func @transform_1(%arg0: i32) -> (i32, i32) {
    %c0_i32 = arith.constant 0 : i32
    %c0_i32_0 = arith.constant 0 : i32
    %c0_i32_1 = arith.constant 0 : i32
    return %c0_i32, %c0_i32_0 : i32, i32
  }
  func.func @transform_2(%arg0: i32) -> (i32, i32) {
    %c0_i32 = arith.constant 0 : i32
    %c0_i32_0 = arith.constant 0 : i32
    %c0_i32_1 = arith.constant 0 : i32
    return %c0_i32, %c0_i32_0 : i32, i32
  }
  func.func @transform_3(%arg0: i32) -> (i32, i32) {
    %c0_i32 = arith.constant 0 : i32
    %c0_i32_0 = arith.constant 0 : i32
    %c0_i32_1 = arith.constant 0 : i32
    return %c0_i32, %c0_i32_0 : i32, i32
  }
  func.func @transform_4(%arg0: i32) -> (i32, i32) {
    %c0_i32 = arith.constant 0 : i32
    %c0_i32_0 = arith.constant 0 : i32
    %c0_i32_1 = arith.constant 0 : i32
    return %c0_i32, %c0_i32_0 : i32, i32
  }
  func.func @transform_5(%arg0: i32) -> (i32, i32) {
    %c0_i32 = arith.constant 0 : i32
    %c0_i32_0 = arith.constant 0 : i32
    %c0_i32_1 = arith.constant 0 : i32
    return %c0_i32, %c0_i32_0 : i32, i32
  }
  func.func @transform_6(%arg0: i32) -> (i32, i32) {
    %c0_i32 = arith.constant 0 : i32
    %c0_i32_0 = arith.constant 0 : i32
    %c0_i32_1 = arith.constant 0 : i32
    return %c0_i32, %c0_i32_0 : i32, i32
  }
  func.func @transform_7(%arg0: i32) -> (i32, i32) {
    %c0_i32 = arith.constant 0 : i32
    %c0_i32_0 = arith.constant 0 : i32
    %c0_i32_1 = arith.constant 0 : i32
    return %c0_i32, %c0_i32_0 : i32, i32
  }
  func.func @transform_8(%arg0: i32) -> (i32, i32) {
    %c0_i32 = arith.constant 0 : i32
    %c0_i32_0 = arith.constant 0 : i32
    %c0_i32_1 = arith.constant 0 : i32
    return %c0_i32, %c0_i32_0 : i32, i32
  }
  func.func @transform_9(%arg0: i32) -> (i32, i32) {
    %c0_i32 = arith.constant 0 : i32
    %c0_i32_0 = arith.constant 0 : i32
    %c0_i32_1 = arith.constant 0 : i32
    return %c0_i32, %c0_i32_0 : i32, i32
  }
  func.func @transform_10(%arg0: i32) -> (i32, i32) {
    %c0_i32 = arith.constant 0 : i32
    %c0_i32_0 = arith.constant 0 : i32
    %c0_i32_1 = arith.constant 0 : i32
    return %c0_i32, %c0_i32_0 : i32, i32
  }
  func.func @transform_11(%arg0: i32) -> (i32, i32) {
    %c0_i32 = arith.constant 0 : i32
    %c0_i32_0 = arith.constant 0 : i32
    %c0_i32_1 = arith.constant 0 : i32
    return %c0_i32, %c0_i32_0 : i32, i32
  }
  func.func @transform_12(%arg0: i32) -> (i32, i32) {
    %c0_i32 = arith.constant 0 : i32
    %c0_i32_0 = arith.constant 0 : i32
    %c0_i32_1 = arith.constant 0 : i32
    return %c0_i32, %c0_i32_0 : i32, i32
  }
  func.func @transform_13(%arg0: i32) -> (i32, i32) {
    %c0_i32 = arith.constant 0 : i32
    %c0_i32_0 = arith.constant 0 : i32
    %c0_i32_1 = arith.constant 0 : i32
    return %c0_i32, %c0_i32_0 : i32, i32
  }
  func.func @transform_14(%arg0: i32) -> (i32, i32) {
    %c0_i32 = arith.constant 0 : i32
    %c0_i32_0 = arith.constant 0 : i32
    %c0_i32_1 = arith.constant 0 : i32
    return %c0_i32, %c0_i32_0 : i32, i32
  }
  func.func @transform_15(%arg0: i32) -> (i32, i32) {
    %c0_i32 = arith.constant 0 : i32
    %c0_i32_0 = arith.constant 0 : i32
    %c0_i32_1 = arith.constant 0 : i32
    return %c0_i32, %c0_i32_0 : i32, i32
  }
  func.func @transform_16(%arg0: i32) -> (i32, i32) {
    %c0_i32 = arith.constant 0 : i32
    %c0_i32_0 = arith.constant 0 : i32
    %c0_i32_1 = arith.constant 0 : i32
    return %c0_i32, %c0_i32_0 : i32, i32
  }
  func.func @transform_17(%arg0: i32) -> (i32, i32) {
    %c0_i32 = arith.constant 0 : i32
    %c0_i32_0 = arith.constant 0 : i32
    %c0_i32_1 = arith.constant 0 : i32
    return %c0_i32, %c0_i32_0 : i32, i32
  }
  func.func @transform_18(%arg0: i32) -> (i32, i32) {
    %c0_i32 = arith.constant 0 : i32
    %c0_i32_0 = arith.constant 0 : i32
    %c0_i32_1 = arith.constant 0 : i32
    return %c0_i32, %c0_i32_0 : i32, i32
  }
  func.func @transform_19(%arg0: i32) -> (i32, i32) {
    %c0_i32 = arith.constant 0 : i32
    %c0_i32_0 = arith.constant 0 : i32
    %c0_i32_1 = arith.constant 0 : i32
    return %c0_i32, %c0_i32_0 : i32, i32
  }
  func.func @transform_20(%arg0: i32) -> (i32, i32) {
    %c0_i32 = arith.constant 0 : i32
    %c0_i32_0 = arith.constant 0 : i32
    %c0_i32_1 = arith.constant 0 : i32
    return %c0_i32, %c0_i32_0 : i32, i32
  }
  func.func @transform_21(%arg0: i32) -> (i32, i32) {
    %c0_i32 = arith.constant 0 : i32
    %c0_i32_0 = arith.constant 0 : i32
    return %arg0, %c0_i32 : i32, i32
  }
}

</mosaic_0001>

<bundles_post_ra>
// kernel: powernet_forward.1
= control target key start
LH: loop header
LB: loop body
LE: loop exit
PB: predicated region body
PF: predicated region fallthrough
CT: control target
= control target key end

     0   :  { %s17080_s0 = inlined_call_operand.vmem [shape: bf16[8,1536], index: 0, kind: input, shape index: {}]   ;;  %s17081_s1 = inlined_call_operand.vmem [shape: s8[1024,1024], index: 1, kind: input, shape index: {}]   ;;  %s17082_s2 = inlined_call_operand.vmem [shape: f32[1,1024], index: 2, kind: input, shape index: {}]   ;;  %s17083_s3 = inlined_call_operand.vmem [shape: s8[512,1024], index: 3, kind: input, shape index: {}]   ;;  %s17084_s4 = inlined_call_operand.vmem [shape: f32[1,1024], index: 4, kind: input, shape index: {}]   ;;  %s17085_s5 = inlined_call_operand.vmem [shape: f32[1,1024], index: 5, kind: input, shape index: {}]   ;;  %s17086_s6 = inlined_call_operand.vmem [shape: s8[1024,900], index: 6, kind: input, shape index: {}]   ;;  %s17087_s7 = inlined_call_operand.vmem [shape: f32[1,900], index: 7, kind: input, shape index: {}]   ;;  %s17088_s8 = inlined_call_operand.vmem [shape: f32[1,900], index: 8, kind: input, shape index: {}]   ;;  %s17089_s9 = inlined_call_operand.vmem [shape: s8[900,800], index: 9, kind: input, shape index: {}]   ;;  %s17090_s10 = inlined_call_operand.vmem [shape: f32[1,800], index: 10, kind: input, shape index: {}]   ;;  %s17091_s11 = inlined_call_operand.vmem [shape: f32[1,800], index: 11, kind: input, shape index: {}]   ;;  %s17092_s12 = inlined_call_operand.vmem [shape: s8[800,700], index: 12, kind: input, shape index: {}]   ;;  %s17093_s13 = inlined_call_operand.vmem [shape: f32[1,700], index: 13, kind: input, shape index: {}]   ;;  %s17094_s14 = inlined_call_operand.vmem [shape: f32[1,700], index: 14, kind: input, shape index: {}]   ;;  %s17095_s15 = inlined_call_operand.vmem [shape: s8[700,512], index: 15, kind: input, shape index: {}]   ;;  %s17096_s16 = inlined_call_operand.vmem [shape: f32[1,512], index: 16, kind: input, shape index: {}]   ;;  %s17097_s17 = inlined_call_operand.vmem [shape: f32[1,512], index: 17, kind: input, shape index: {}]   ;;  %s17098_s18 = inlined_call_operand.vmem [shape: s8[512,1024], index: 18, kind: input, shape index: {}]   ;;  %s17099_s19 = inlined_call_operand.vmem [shape: f32[1,1024], index: 19, kind: input, shape index: {}]   ;;  %s17100_s20 = inlined_call_operand.vmem [shape: f32[1,1024], index: 20, kind: input, shape index: {}]   ;;  %s17101_s21 = inlined_call_operand.hbm [shape: f32[8,1024], index: 21, kind: output, shape index: {}]  }
   0x1   :  { %17131 = sst [smem:[#allocation22_spill]] %s17080_s0 }
   0x2   :  { %17132 = sst [smem:[#allocation23_spill]] %s17081_s1 }
   0x3   :  { %17133 = sst [smem:[#allocation24_spill]] %s17082_s2 }
   0x4   :  { %17134 = sst [smem:[#allocation25_spill]] %s17083_s3 }
   0x5   :  { %17135 = sst [smem:[#allocation26_spill]] %s17084_s4 }
   0x6   :  { %17136 = sst [smem:[#allocation27_spill]] %s17085_s5 }
   0x7   :  { %s17137_s26 = sld [smem:[#allocation23_spill]]  ;;  %s17138_s1 = sld [smem:[#allocation22_spill]] }
   0xd   :  { %v77_v0 = vld [vmem:[%s17137_s26 + $0x8] sm:$0xff]  ;;  %v79_v1 = vld [vmem:[%s17137_s26 + $0x18] sm:$0xff]  ;;  %v76_v2 = vld [vmem:[%s17137_s26] sm:$0xff] }
   0xe   :  { %v333_v3 = vunpack.c.l.s8.bf16 %v77_v0  ;;  %v341_v4 = vunpack.c.h.s8.bf16 %v77_v0  ;;  %v335_v5 = vunpack.c.l.s8.bf16 %v79_v1  ;;  %v343_v6 = vunpack.c.h.s8.bf16 %v79_v1  ;;  %v78_v7 = vld [vmem:[%s17137_s26 + $0x10] sm:$0xff]  ;;  %v85_v10 = vld [vmem:[%s17137_s26 + $0x48] sm:$0xff]  ;;  %v87_v11 = vld [vmem:[%s17137_s26 + $0x58] sm:$0xff] }
   0xf   :  { %v332_v8 = vunpack.c.l.s8.bf16 %v76_v2  ;;  %v334_v9 = vunpack.c.l.s8.bf16 %v78_v7  ;;  %v340_v12 = vunpack.c.h.s8.bf16 %v76_v2  ;;  %v342_v13 = vunpack.c.h.s8.bf16 %v78_v7  ;;  %v84_v16 = vld [vmem:[%s17137_s26 + $0x40] sm:$0xff]  ;;  %v86_v17 = vld [vmem:[%s17137_s26 + $0x50] sm:$0xff]  ;;  %v93_v22 = vld [vmem:[%s17137_s26 + $0x88] sm:$0xff] }
  0x10   :  { %872 = vmatprep.subr.bf16.mxu0 %v333_v3  ;;  %1036 = vmatprep.subr.bf16.mxu1 %v335_v5  ;;  %v349_v14 = vunpack.c.l.s8.bf16 %v85_v10  ;;  %v351_v15 = vunpack.c.l.s8.bf16 %v87_v11  ;;  %v348_v18 = vunpack.c.l.s8.bf16 %v84_v16  ;;  %v350_v19 = vunpack.c.l.s8.bf16 %v86_v17  ;;  %v95_v23 = vld [vmem:[%s17137_s26 + $0x98] sm:$0xff]  ;;  %v92_v28 = vld [vmem:[%s17137_s26 + $0x80] sm:$0xff]  ;;  %v94_v29 = vld [vmem:[%s17137_s26 + $0x90] sm:$0xff] }
  0x11   :  { %873 = vmatpush1.bf16.msra.mxu0 %v332_v8  ;;  %1037 = vmatpush1.bf16.msra.mxu1 %v334_v9  ;;  %v357_v20 = vunpack.c.h.s8.bf16 %v85_v10  ;;  %v359_v21 = vunpack.c.h.s8.bf16 %v87_v11  ;;  %v356_v24 = vunpack.c.h.s8.bf16 %v84_v16  ;;  %v358_v25 = vunpack.c.h.s8.bf16 %v86_v17  ;;  %v11872_v30 = vld [vmem:[%s17138_s1] sm:$0xff]  ;;  %v101_v36 = vld [vmem:[%s17137_s26 + $0xc8] sm:$0xff]  ;;  %v103_v37 = vld [vmem:[%s17137_s26 + $0xd8] sm:$0xff] }
  0x12   :  { %874 = vmatprep.subr.bf16.mxu0 %v341_v4  ;;  %1038 = vmatprep.subr.bf16.mxu1 %v343_v6  ;;  %v365_v26 = vunpack.c.l.s8.bf16 %v93_v22  ;;  %v367_v27 = vunpack.c.l.s8.bf16 %v95_v23  ;;  %v364_v31 = vunpack.c.l.s8.bf16 %v92_v28  ;;  %v366_v32 = vunpack.c.l.s8.bf16 %v94_v29  ;;  %v100_v42 = vld [vmem:[%s17137_s26 + $0xc0] sm:$0xff]  ;;  %v102_v43 = vld [vmem:[%s17137_s26 + $0xd0] sm:$0xff]  ;;  %v109_v48 = vld [vmem:[%s17137_s26 + $0x108] sm:$0xff] }
  0x13   :  { %v373_v33 = vunpack.c.h.s8.bf16 %v93_v22  ;;  %v375_v34 = vunpack.c.h.s8.bf16 %v95_v23  ;;  %v11876_v35 = vcombine.high %v11872_v30, %v11872_v30  ;;  %v372_v38 = vunpack.c.h.s8.bf16 %v92_v28  ;;  %v111_v49 = vld [vmem:[%s17137_s26 + $0x118] sm:$0xff] }
  0x14   :  { %v374_v39 = vunpack.c.h.s8.bf16 %v94_v29  ;;  %v381_v40 = vunpack.c.l.s8.bf16 %v101_v36  ;;  %v383_v41 = vunpack.c.l.s8.bf16 %v103_v37  ;;  %v380_v44 = vunpack.c.l.s8.bf16 %v100_v42 }
  0x15   :  { %875 = vmatpush1.bf16.msra.mxu0 %v340_v12  ;;  %1039 = vmatpush1.bf16.msra.mxu1 %v342_v13  ;;  %v382_v45 = vunpack.c.l.s8.bf16 %v102_v43  ;;  %v389_v46 = vunpack.c.h.s8.bf16 %v101_v36  ;;  %v391_v47 = vunpack.c.h.s8.bf16 %v103_v37 }
  0x16   :  { %876 = vmatprep.subr.bf16.mxu0 %v349_v14  ;;  %1040 = vmatprep.subr.bf16.mxu1 %v351_v15 }
  0x17   :  { %904 = vmatprep.mubr.bf16.mxu0 %v11876_v35  ;;  %1068 = vmatprep.mubr.bf16.mxu1 %v11876_v35 }
  0x19   :  { %877 = vmatpush1.bf16.msra.mxu0 %v348_v18  ;;  %1041 = vmatpush1.bf16.msra.mxu1 %v350_v19 }
  0x1a   :  { %878 = vmatprep.subr.bf16.mxu0 %v357_v20  ;;  %1042 = vmatprep.subr.bf16.mxu1 %v359_v21 }
  0x1d   :  { %879 = vmatpush1.bf16.msra.mxu0 %v356_v24  ;;  %1043 = vmatpush1.bf16.msra.mxu1 %v358_v25 }
  0x1e   :  { %880 = vmatprep.subr.bf16.mxu0 %v365_v26  ;;  %1044 = vmatprep.subr.bf16.mxu1 %v367_v27 }
  0x21   :  { %881 = vmatpush1.bf16.msra.mxu0 %v364_v31  ;;  %1045 = vmatpush1.bf16.msra.mxu1 %v366_v32 }
  0x22   :  { %882 = vmatprep.subr.bf16.mxu0 %v373_v33  ;;  %1046 = vmatprep.subr.bf16.mxu1 %v375_v34 }
  0x25   :  { %883 = vmatpush1.bf16.msra.mxu0 %v372_v38  ;;  %1047 = vmatpush1.bf16.msra.mxu1 %v374_v39 }
  0x26   :  { %884 = vmatprep.subr.bf16.mxu0 %v381_v40  ;;  %1048 = vmatprep.subr.bf16.mxu1 %v383_v41 }
  0x27   :  { %26 = vsyncpa [#allocation3], 0  ;;  %v388_v50 = vunpack.c.h.s8.bf16 %v100_v42  ;;  %v390_v51 = vunpack.c.h.s8.bf16 %v102_v43  ;;  %v397_v52 = vunpack.c.l.s8.bf16 %v109_v48  ;;  %v399_v53 = vunpack.c.l.s8.bf16 %v111_v49  ;;  %v108_v54 = vld [vmem:[%s17137_s26 + $0x100] sm:$0xff]  ;;  %v110_v55 = vld [vmem:[%s17137_s26 + $0x110] sm:$0xff]  ;;  %s17139_s25 = sld [smem:[#allocation25_spill]]  ;;  %s17143_s4 = sld [smem:[#allocation24_spill]] }
  0x28   :  { %v396_v56 = vunpack.c.l.s8.bf16 %v108_v54  ;;  %v398_v57 = vunpack.c.l.s8.bf16 %v110_v55  ;;  %v405_v58 = vunpack.c.h.s8.bf16 %v109_v48  ;;  %v407_v59 = vunpack.c.h.s8.bf16 %v111_v49  ;;  %v117_v60 = vld [vmem:[%s17137_s26 + $0x148] sm:$0xff]  ;;  %v119_v61 = vld [vmem:[%s17137_s26 + $0x158] sm:$0xff]  ;;  %v116_v2 = vld [vmem:[%s17137_s26 + $0x140] sm:$0xff]  ;;  %s17145_s22 = sld [smem:[#allocation26_spill]]  ;;  %s17146_s2 = sld [smem:[#allocation27_spill]] }
  0x29   :  { %885 = vmatpush1.bf16.msra.mxu0 %v380_v44  ;;  %1049 = vmatpush1.bf16.msra.mxu1 %v382_v45  ;;  %v404_v62 = vunpack.c.h.s8.bf16 %v108_v54  ;;  %v406_v63 = vunpack.c.h.s8.bf16 %v110_v55  ;;  %v413_v0 = vunpack.c.l.s8.bf16 %v117_v60  ;;  %v415_v1 = vunpack.c.l.s8.bf16 %v119_v61  ;;  %v118_v3 = vld [vmem:[%s17137_s26 + $0x150] sm:$0xff]  ;;  %v125_v8 = vld [vmem:[%s17137_s26 + $0x188] sm:$0xff]  ;;  %v127_v9 = vld [vmem:[%s17137_s26 + $0x198] sm:$0xff] }
  0x2a   :  { %886 = vmatprep.subr.bf16.mxu0 %v389_v46  ;;  %1050 = vmatprep.subr.bf16.mxu1 %v391_v47  ;;  %v412_v4 = vunpack.c.l.s8.bf16 %v116_v2  ;;  %v414_v5 = vunpack.c.l.s8.bf16 %v118_v3  ;;  %v421_v6 = vunpack.c.h.s8.bf16 %v117_v60  ;;  %v423_v7 = vunpack.c.h.s8.bf16 %v119_v61  ;;  %v124_v14 = vld [vmem:[%s17137_s26 + $0x180] sm:$0xff]  ;;  %v126_v15 = vld [vmem:[%s17137_s26 + $0x190] sm:$0xff]  ;;  %v133_v20 = vld [vmem:[%s17137_s26 + $0x1c8] sm:$0xff] }
  0x2b   :  { %v420_v10 = vunpack.c.h.s8.bf16 %v116_v2  ;;  %v422_v11 = vunpack.c.h.s8.bf16 %v118_v3  ;;  %v429_v12 = vunpack.c.l.s8.bf16 %v125_v8  ;;  %v431_v13 = vunpack.c.l.s8.bf16 %v127_v9  ;;  %v135_v21 = vld [vmem:[%s17137_s26 + $0x1d8] sm:$0xff]  ;;  %v132_v26 = vld [vmem:[%s17137_s26 + $0x1c0] sm:$0xff]  ;;  %v134_v27 = vld [vmem:[%s17137_s26 + $0x1d0] sm:$0xff] }
  0x2c   :  { %v428_v16 = vunpack.c.l.s8.bf16 %v124_v14  ;;  %v430_v17 = vunpack.c.l.s8.bf16 %v126_v15  ;;  %v437_v18 = vunpack.c.h.s8.bf16 %v125_v8  ;;  %v439_v19 = vunpack.c.h.s8.bf16 %v127_v9  ;;  %v141_v33 = vld [vmem:[%s17137_s26 + $0x208] sm:$0xff]  ;;  %v143_v34 = vld [vmem:[%s17137_s26 + $0x218] sm:$0xff]  ;;  %v140_v40 = vld [vmem:[%s17137_s26 + $0x200] sm:$0xff] }
  0x2d   :  { %887 = vmatpush1.bf16.msra.mxu0 %v388_v50  ;;  %1051 = vmatpush1.bf16.msra.mxu1 %v390_v51  ;;  %v436_v22 = vunpack.c.h.s8.bf16 %v124_v14  ;;  %v438_v23 = vunpack.c.h.s8.bf16 %v126_v15  ;;  %v445_v24 = vunpack.c.l.s8.bf16 %v133_v20  ;;  %v447_v25 = vunpack.c.l.s8.bf16 %v135_v21  ;;  %v142_v41 = vld [vmem:[%s17137_s26 + $0x210] sm:$0xff]  ;;  %v11959_v43 = vld [vmem:[%s17138_s1 + $0x8] sm:$0xff]  ;;  %v148_v54 = vld [vmem:[%s17137_s26 + $0x240] sm:$0xff] }
  0x2e   :  { %888 = vmatprep.subr.bf16.mxu0 %v397_v52  ;;  %1052 = vmatprep.subr.bf16.mxu1 %v399_v53  ;;  %v444_v28 = vunpack.c.l.s8.bf16 %v132_v26  ;;  %v446_v29 = vunpack.c.l.s8.bf16 %v134_v27  ;;  %v453_v31 = vunpack.c.h.s8.bf16 %v133_v20  ;;  %v455_v32 = vunpack.c.h.s8.bf16 %v135_v21  ;;  %v149_v48 = vld [vmem:[%s17137_s26 + $0x248] sm:$0xff]  ;;  %v150_v55 = vld [vmem:[%s17137_s26 + $0x250] sm:$0xff]  ;;  %v159_v61 = vld [vmem:[%s17137_s26 + $0x298] sm:$0xff] }
  0x2f   :  { %v452_v36 = vunpack.c.h.s8.bf16 %v132_v26  ;;  %v454_v37 = vunpack.c.h.s8.bf16 %v134_v27  ;;  %v461_v38 = vunpack.c.l.s8.bf16 %v141_v33  ;;  %v463_v39 = vunpack.c.l.s8.bf16 %v143_v34  ;;  %v157_v60 = vld [vmem:[%s17137_s26 + $0x288] sm:$0xff]  ;;  %v156_v2 = vld [vmem:[%s17137_s26 + $0x280] sm:$0xff]  ;;  %v158_v3 = vld [vmem:[%s17137_s26 + $0x290] sm:$0xff] }
  0x30   :  { %v11954_v42 = vcombine.low %v11872_v30, %v11872_v30  ;;  %v460_v44 = vunpack.c.l.s8.bf16 %v140_v40  ;;  %v462_v45 = vunpack.c.l.s8.bf16 %v142_v41  ;;  %v469_v46 = vunpack.c.h.s8.bf16 %v141_v33  ;;  %v151_v30 = vld [vmem:[%s17137_s26 + $0x258] sm:$0xff]  ;;  %v165_v8 = vld [vmem:[%s17137_s26 + $0x2c8] sm:$0xff]  ;;  %v164_v14 = vld [vmem:[%s17137_s26 + $0x2c0] sm:$0xff] }
  0x31   :  { %889 = vmatpush1.bf16.msra.mxu0 %v396_v56  ;;  %1053 = vmatpush1.bf16.msra.mxu1 %v398_v57  ;;  %v471_v47 = vunpack.c.h.s8.bf16 %v143_v34  ;;  %v11969_v49 = vcombine.high %v11959_v43, %v11959_v43  ;;  %v468_v50 = vunpack.c.h.s8.bf16 %v140_v40  ;;  %v470_v51 = vunpack.c.h.s8.bf16 %v142_v41  ;;  %v167_v9 = vld [vmem:[%s17137_s26 + $0x2d8] sm:$0xff]  ;;  %v166_v15 = vld [vmem:[%s17137_s26 + $0x2d0] sm:$0xff]  ;;  %v173_v20 = vld [vmem:[%s17137_s26 + $0x308] sm:$0xff] }
  0x32   :  { %890 = vmatprep.subr.bf16.mxu0 %v405_v58  ;;  %1054 = vmatprep.subr.bf16.mxu1 %v407_v59  ;;  %v477_v52 = vunpack.c.l.s8.bf16 %v149_v48  ;;  %v479_v53 = vunpack.c.l.s8.bf16 %v151_v30  ;;  %v476_v56 = vunpack.c.l.s8.bf16 %v148_v54  ;;  %v478_v57 = vunpack.c.l.s8.bf16 %v150_v55  ;;  %v175_v21 = vld [vmem:[%s17137_s26 + $0x318] sm:$0xff]  ;;  %v172_v26 = vld [vmem:[%s17137_s26 + $0x300] sm:$0xff]  ;;  %v174_v27 = vld [vmem:[%s17137_s26 + $0x310] sm:$0xff] }
  0x33   :  { %v485_v58 = vunpack.c.h.s8.bf16 %v149_v48  ;;  %v487_v59 = vunpack.c.h.s8.bf16 %v151_v30  ;;  %v181_v33 = vld [vmem:[%s17137_s26 + $0x348] sm:$0xff]  ;;  %v183_v34 = vld [vmem:[%s17137_s26 + $0x358] sm:$0xff]  ;;  %v180_v40 = vld [vmem:[%s17137_s26 + $0x340] sm:$0xff]  ;;  %vm6680_vm0 = vcmask 31744   ;;  %vm6684_vm1 = vcmask 1041408  }
  0x34   :  { %v182_v41 = vld [vmem:[%s17137_s26 + $0x350] sm:$0xff]  ;;  %v189_v48 = vld [vmem:[%s17137_s26 + $0x388] sm:$0xff]  ;;  %v191_v30 = vld [vmem:[%s17137_s26 + $0x398] sm:$0xff]  ;;  %vm7910_vm2 = vcmask 261120   ;;  %vm9638_vm3 = vcmask 1045504   ;;  %vm9634_vm4 = vcmask 490496  }
  0x35   :  { %891 = vmatpush1.bf16.msra.mxu0 %v404_v62  ;;  %1055 = vmatpush1.bf16.msra.mxu1 %v406_v63  ;;  %v484_v62 = vunpack.c.h.s8.bf16 %v148_v54  ;;  %v486_v63 = vunpack.c.h.s8.bf16 %v150_v55  ;;  %v188_v54 = vld [vmem:[%s17137_s26 + $0x380] sm:$0xff]  ;;  %v190_v55 = vld [vmem:[%s17137_s26 + $0x390] sm:$0xff] }
  0x36   :  { %892 = vmatprep.subr.bf16.mxu0 %v413_v0  ;;  %1056 = vmatprep.subr.bf16.mxu1 %v415_v1  ;;  %v493_v0 = vunpack.c.l.s8.bf16 %v157_v60  ;;  %v495_v1 = vunpack.c.l.s8.bf16 %v159_v61 }
  0x39   :  { %893 = vmatpush1.bf16.msra.mxu0 %v412_v4  ;;  %1057 = vmatpush1.bf16.msra.mxu1 %v414_v5  ;;  %v492_v4 = vunpack.c.l.s8.bf16 %v156_v2  ;;  %v494_v5 = vunpack.c.l.s8.bf16 %v158_v3 }
  0x3a   :  { %894 = vmatprep.subr.bf16.mxu0 %v421_v6  ;;  %1058 = vmatprep.subr.bf16.mxu1 %v423_v7  ;;  %v501_v6 = vunpack.c.h.s8.bf16 %v157_v60  ;;  %v503_v7 = vunpack.c.h.s8.bf16 %v159_v61  ;;  %v197_v60 = vld [vmem:[%s17137_s26 + $0x3c8] sm:$0xff]  ;;  %v199_v61 = vld [vmem:[%s17137_s26 + $0x3d8] sm:$0xff] }
  0x3d   :  { %895 = vmatpush1.bf16.msra.mxu0 %v420_v10  ;;  %1059 = vmatpush1.bf16.msra.mxu1 %v422_v11  ;;  %v500_v10 = vunpack.c.h.s8.bf16 %v156_v2  ;;  %v502_v11 = vunpack.c.h.s8.bf16 %v158_v3  ;;  %v196_v2 = vld [vmem:[%s17137_s26 + $0x3c0] sm:$0xff]  ;;  %v198_v3 = vld [vmem:[%s17137_s26 + $0x3d0] sm:$0xff] }
  0x3e   :  { %896 = vmatprep.subr.bf16.mxu0 %v429_v12  ;;  %1060 = vmatprep.subr.bf16.mxu1 %v431_v13  ;;  %v509_v12 = vunpack.c.l.s8.bf16 %v165_v8  ;;  %v511_v13 = vunpack.c.l.s8.bf16 %v167_v9 }
  0x41   :  { %897 = vmatpush1.bf16.msra.mxu0 %v428_v16  ;;  %1061 = vmatpush1.bf16.msra.mxu1 %v430_v17  ;;  %v508_v16 = vunpack.c.l.s8.bf16 %v164_v14  ;;  %v510_v17 = vunpack.c.l.s8.bf16 %v166_v15 }
  0x42   :  { %898 = vmatprep.subr.bf16.mxu0 %v437_v18  ;;  %1062 = vmatprep.subr.bf16.mxu1 %v439_v19  ;;  %v517_v18 = vunpack.c.h.s8.bf16 %v165_v8  ;;  %v519_v19 = vunpack.c.h.s8.bf16 %v167_v9  ;;  %v205_v8 = vld [vmem:[%s17137_s26 + $0x408] sm:$0xff]  ;;  %v207_v9 = vld [vmem:[%s17137_s26 + $0x418] sm:$0xff] }
  0x45   :  { %899 = vmatpush1.bf16.msra.mxu0 %v436_v22  ;;  %1063 = vmatpush1.bf16.msra.mxu1 %v438_v23  ;;  %v516_v22 = vunpack.c.h.s8.bf16 %v164_v14  ;;  %v518_v23 = vunpack.c.h.s8.bf16 %v166_v15  ;;  %v204_v14 = vld [vmem:[%s17137_s26 + $0x400] sm:$0xff]  ;;  %v206_v15 = vld [vmem:[%s17137_s26 + $0x410] sm:$0xff] }
  0x46   :  { %900 = vmatprep.subr.bf16.mxu0 %v445_v24  ;;  %1064 = vmatprep.subr.bf16.mxu1 %v447_v25  ;;  %v525_v24 = vunpack.c.l.s8.bf16 %v173_v20  ;;  %v527_v25 = vunpack.c.l.s8.bf16 %v175_v21 }
  0x49   :  { %901 = vmatpush1.bf16.msra.mxu0 %v444_v28  ;;  %1065 = vmatpush1.bf16.msra.mxu1 %v446_v29  ;;  %v524_v28 = vunpack.c.l.s8.bf16 %v172_v26  ;;  %v526_v29 = vunpack.c.l.s8.bf16 %v174_v27 }
  0x4a   :  { %902 = vmatprep.subr.bf16.mxu0 %v453_v31  ;;  %1066 = vmatprep.subr.bf16.mxu1 %v455_v32  ;;  %v533_v31 = vunpack.c.h.s8.bf16 %v173_v20  ;;  %v535_v32 = vunpack.c.h.s8.bf16 %v175_v21  ;;  %v597_v20 = vunpack.c.h.s8.bf16 %v205_v8  ;;  %v599_v21 = vunpack.c.h.s8.bf16 %v207_v9 }
  0x4d   :  { %903 = vmatpush1.bf16.msra.mxu0 %v452_v36  ;;  %1067 = vmatpush1.bf16.msra.mxu1 %v454_v37  ;;  %v532_v36 = vunpack.c.h.s8.bf16 %v172_v26  ;;  %v534_v37 = vunpack.c.h.s8.bf16 %v174_v27 }
  0x4e   :  { %913 = vmatprep.subr.bf16.mxu0 %v461_v38  ;;  %1077 = vmatprep.subr.bf16.mxu1 %v463_v39  ;;  %v541_v38 = vunpack.c.l.s8.bf16 %v181_v33  ;;  %v543_v39 = vunpack.c.l.s8.bf16 %v183_v34 }
  0x50   :  { %905 = vmatmul.mubr.bf16.vlgmr.msra.gmra.mrb[0].mxu0 %v11954_v42  ;;  %1069 = vmatmul.mubr.bf16.vlgmr.msra.gmra.mrb[0].mxu1 %v11954_v42 }
  0x51   :  { %914 = vmatpush1.bf16.msra.mxu0 %v460_v44  ;;  %1078 = vmatpush1.bf16.msra.mxu1 %v462_v45  ;;  %v540_v44 = vunpack.c.l.s8.bf16 %v180_v40  ;;  %v542_v45 = vunpack.c.l.s8.bf16 %v182_v41 }
  0x52   :  { %915 = vmatprep.subr.bf16.mxu0 %v469_v46  ;;  %1079 = vmatprep.subr.bf16.mxu1 %v471_v47  ;;  %v549_v46 = vunpack.c.h.s8.bf16 %v181_v33  ;;  %v551_v47 = vunpack.c.h.s8.bf16 %v183_v34 }
  0x53   :  { %945 = vmatprep.mubr.bf16.mxu0 %v11969_v49  ;;  %1109 = vmatprep.mubr.bf16.mxu1 %v11969_v49 }
  0x55   :  { %916 = vmatpush1.bf16.msra.mxu0 %v468_v50  ;;  %1080 = vmatpush1.bf16.msra.mxu1 %v470_v51  ;;  %v548_v50 = vunpack.c.h.s8.bf16 %v180_v40  ;;  %v550_v51 = vunpack.c.h.s8.bf16 %v182_v41 }
  0x56   :  { %917 = vmatprep.subr.bf16.mxu0 %v477_v52  ;;  %1081 = vmatprep.subr.bf16.mxu1 %v479_v53  ;;  %v557_v52 = vunpack.c.l.s8.bf16 %v189_v48  ;;  %v559_v53 = vunpack.c.l.s8.bf16 %v191_v30 }
  0x59   :  { %918 = vmatpush1.bf16.msra.mxu0 %v476_v56  ;;  %1082 = vmatpush1.bf16.msra.mxu1 %v478_v57  ;;  %v556_v56 = vunpack.c.l.s8.bf16 %v188_v54  ;;  %v558_v57 = vunpack.c.l.s8.bf16 %v190_v55 }
  0x5a   :  { %919 = vmatprep.subr.bf16.mxu0 %v485_v58  ;;  %1083 = vmatprep.subr.bf16.mxu1 %v487_v59  ;;  %v565_v58 = vunpack.c.h.s8.bf16 %v189_v48  ;;  %v567_v59 = vunpack.c.h.s8.bf16 %v191_v30 }
  0x5d   :  { %920 = vmatpush1.bf16.msra.mxu0 %v484_v62  ;;  %1084 = vmatpush1.bf16.msra.mxu1 %v486_v63  ;;  %v564_v62 = vunpack.c.h.s8.bf16 %v188_v54  ;;  %v566_v63 = vunpack.c.h.s8.bf16 %v190_v55 }
  0x5e   :  { %921 = vmatprep.subr.bf16.mxu0 %v493_v0  ;;  %1085 = vmatprep.subr.bf16.mxu1 %v495_v1  ;;  %v573_v0 = vunpack.c.l.s8.bf16 %v197_v60  ;;  %v575_v1 = vunpack.c.l.s8.bf16 %v199_v61 }
  0x61   :  { %922 = vmatpush1.bf16.msra.mxu0 %v492_v4  ;;  %1086 = vmatpush1.bf16.msra.mxu1 %v494_v5  ;;  %v572_v4 = vunpack.c.l.s8.bf16 %v196_v2  ;;  %v574_v5 = vunpack.c.l.s8.bf16 %v198_v3 }
  0x62   :  { %923 = vmatprep.subr.bf16.mxu0 %v501_v6  ;;  %1087 = vmatprep.subr.bf16.mxu1 %v503_v7  ;;  %v581_v6 = vunpack.c.h.s8.bf16 %v197_v60  ;;  %v583_v7 = vunpack.c.h.s8.bf16 %v199_v61 }
  0x65   :  { %924 = vmatpush1.bf16.msra.mxu0 %v500_v10  ;;  %1088 = vmatpush1.bf16.msra.mxu1 %v502_v11  ;;  %v580_v10 = vunpack.c.h.s8.bf16 %v196_v2  ;;  %v582_v11 = vunpack.c.h.s8.bf16 %v198_v3 }
  0x66   :  { %925 = vmatprep.subr.bf16.mxu0 %v509_v12  ;;  %1089 = vmatprep.subr.bf16.mxu1 %v511_v13  ;;  %v589_v12 = vunpack.c.l.s8.bf16 %v205_v8  ;;  %v591_v13 = vunpack.c.l.s8.bf16 %v207_v9 }
  0x69   :  { %926 = vmatpush1.bf16.msra.mxu0 %v508_v16  ;;  %1090 = vmatpush1.bf16.msra.mxu1 %v510_v17  ;;  %v12067_v16 = vcombine.low %v11959_v43, %v11959_v43  ;;  %v12072_v17 = vld [vmem:[%s17138_s1 + $0x10] sm:$0xff]  ;;  %v215_v43 = vld [vmem:[%s17137_s26 + $0x458] sm:$0xff] }
  0x6a   :  { %927 = vmatprep.subr.bf16.mxu0 %v517_v18  ;;  %1091 = vmatprep.subr.bf16.mxu1 %v519_v19  ;;  %v588_v18 = vunpack.c.l.s8.bf16 %v204_v14  ;;  %v590_v19 = vunpack.c.l.s8.bf16 %v206_v15  ;;  %v607_v27 = vunpack.c.l.s8.bf16 %v215_v43  ;;  %v615_v34 = vunpack.c.h.s8.bf16 %v215_v43 }
  0x6d   :  { %928 = vmatpush1.bf16.msra.mxu0 %v516_v22  ;;  %1092 = vmatpush1.bf16.msra.mxu1 %v518_v23  ;;  %v213_v22 = vld [vmem:[%s17137_s26 + $0x448] sm:$0xff]  ;;  %v12082_v23 = vcombine.high %v12072_v17, %v12072_v17 }
  0x6e   :  { %929 = vmatprep.subr.bf16.mxu0 %v525_v24  ;;  %1093 = vmatprep.subr.bf16.mxu1 %v527_v25  ;;  %v596_v24 = vunpack.c.h.s8.bf16 %v204_v14  ;;  %v598_v25 = vunpack.c.h.s8.bf16 %v206_v15  ;;  %v605_v26 = vunpack.c.l.s8.bf16 %v213_v22  ;;  %v613_v33 = vunpack.c.h.s8.bf16 %v213_v22 }
  0x71   :  { %930 = vmatpush1.bf16.msra.mxu0 %v524_v28  ;;  %1094 = vmatpush1.bf16.msra.mxu1 %v526_v29  ;;  %v212_v28 = vld [vmem:[%s17137_s26 + $0x440] sm:$0xff]  ;;  %v214_v29 = vld [vmem:[%s17137_s26 + $0x450] sm:$0xff] }
  0x72   :  { %931 = vmatprep.subr.bf16.mxu0 %v533_v31  ;;  %1095 = vmatprep.subr.bf16.mxu1 %v535_v32  ;;  %v604_v31 = vunpack.c.l.s8.bf16 %v212_v28  ;;  %v606_v32 = vunpack.c.l.s8.bf16 %v214_v29 }
  0x75   :  { %932 = vmatpush1.bf16.msra.mxu0 %v532_v36  ;;  %1096 = vmatpush1.bf16.msra.mxu1 %v534_v37  ;;  %v221_v36 = vld [vmem:[%s17137_s26 + $0x488] sm:$0xff]  ;;  %v223_v37 = vld [vmem:[%s17137_s26 + $0x498] sm:$0xff] }
  0x76   :  { %933 = vmatprep.subr.bf16.mxu0 %v541_v38  ;;  %1097 = vmatprep.subr.bf16.mxu1 %v543_v39  ;;  %v612_v38 = vunpack.c.h.s8.bf16 %v212_v28  ;;  %v614_v39 = vunpack.c.h.s8.bf16 %v214_v29  ;;  %v621_v40 = vunpack.c.l.s8.bf16 %v221_v36  ;;  %v623_v41 = vunpack.c.l.s8.bf16 %v223_v37 }
  0x77   :  { %v629_v48 = vunpack.c.h.s8.bf16 %v221_v36  ;;  %v631_v30 = vunpack.c.h.s8.bf16 %v223_v37 }
  0x79   :  { %934 = vmatpush1.bf16.msra.mxu0 %v540_v44  ;;  %1098 = vmatpush1.bf16.msra.mxu1 %v542_v45  ;;  %v220_v44 = vld [vmem:[%s17137_s26 + $0x480] sm:$0xff]  ;;  %v222_v45 = vld [vmem:[%s17137_s26 + $0x490] sm:$0xff] }
  0x7a   :  { %935 = vmatprep.subr.bf16.mxu0 %v549_v46  ;;  %1099 = vmatprep.subr.bf16.mxu1 %v551_v47  ;;  %v620_v46 = vunpack.c.l.s8.bf16 %v220_v44  ;;  %v622_v47 = vunpack.c.l.s8.bf16 %v222_v45 }
  0x7d   :  { %936 = vmatpush1.bf16.msra.mxu0 %v548_v50  ;;  %1100 = vmatpush1.bf16.msra.mxu1 %v550_v51  ;;  %v229_v50 = vld [vmem:[%s17137_s26 + $0x4c8] sm:$0xff]  ;;  %v231_v51 = vld [vmem:[%s17137_s26 + $0x4d8] sm:$0xff] }
  0x7e   :  { %937 = vmatprep.subr.bf16.mxu0 %v557_v52  ;;  %1101 = vmatprep.subr.bf16.mxu1 %v559_v53  ;;  %v628_v52 = vunpack.c.h.s8.bf16 %v220_v44  ;;  %v630_v53 = vunpack.c.h.s8.bf16 %v222_v45  ;;  %v637_v54 = vunpack.c.l.s8.bf16 %v229_v50  ;;  %v639_v55 = vunpack.c.l.s8.bf16 %v231_v51 }
  0x7f   :  { %v645_v60 = vunpack.c.h.s8.bf16 %v229_v50  ;;  %v647_v61 = vunpack.c.h.s8.bf16 %v231_v51 }
  0x81   :  { %938 = vmatpush1.bf16.msra.mxu0 %v556_v56  ;;  %1102 = vmatpush1.bf16.msra.mxu1 %v558_v57  ;;  %v228_v56 = vld [vmem:[%s17137_s26 + $0x4c0] sm:$0xff]  ;;  %v230_v57 = vld [vmem:[%s17137_s26 + $0x4d0] sm:$0xff] }
  0x82   :  { %939 = vmatprep.subr.bf16.mxu0 %v565_v58  ;;  %1103 = vmatprep.subr.bf16.mxu1 %v567_v59  ;;  %v636_v58 = vunpack.c.l.s8.bf16 %v228_v56  ;;  %v638_v59 = vunpack.c.l.s8.bf16 %v230_v57 }
  0x85   :  { %940 = vmatpush1.bf16.msra.mxu0 %v564_v62  ;;  %1104 = vmatpush1.bf16.msra.mxu1 %v566_v63  ;;  %v237_v62 = vld [vmem:[%s17137_s26 + $0x508] sm:$0xff]  ;;  %v239_v63 = vld [vmem:[%s17137_s26 + $0x518] sm:$0xff] }
  0x86   :  { %941 = vmatprep.subr.bf16.mxu0 %v573_v0  ;;  %1105 = vmatprep.subr.bf16.mxu1 %v575_v1  ;;  %v644_v0 = vunpack.c.h.s8.bf16 %v228_v56  ;;  %v646_v1 = vunpack.c.h.s8.bf16 %v230_v57  ;;  %v653_v2 = vunpack.c.l.s8.bf16 %v237_v62  ;;  %v655_v3 = vunpack.c.l.s8.bf16 %v239_v63 }
  0x87   :  { %v661_v8 = vunpack.c.h.s8.bf16 %v237_v62  ;;  %v663_v9 = vunpack.c.h.s8.bf16 %v239_v63 }
  0x89   :  { %942 = vmatpush1.bf16.msra.mxu0 %v572_v4  ;;  %1106 = vmatpush1.bf16.msra.mxu1 %v574_v5  ;;  %v236_v4 = vld [vmem:[%s17137_s26 + $0x500] sm:$0xff]  ;;  %v238_v5 = vld [vmem:[%s17137_s26 + $0x510] sm:$0xff] }
  0x8a   :  { %943 = vmatprep.subr.bf16.mxu0 %v581_v6  ;;  %1107 = vmatprep.subr.bf16.mxu1 %v583_v7  ;;  %v652_v6 = vunpack.c.l.s8.bf16 %v236_v4  ;;  %v654_v7 = vunpack.c.l.s8.bf16 %v238_v5 }
  0x8d   :  { %944 = vmatpush1.bf16.msra.mxu0 %v580_v10  ;;  %1108 = vmatpush1.bf16.msra.mxu1 %v582_v11  ;;  %v245_v10 = vld [vmem:[%s17137_s26 + $0x548] sm:$0xff]  ;;  %v247_v11 = vld [vmem:[%s17137_s26 + $0x558] sm:$0xff] }
  0x8e   :  { %954 = vmatprep.subr.bf16.mxu0 %v589_v12  ;;  %1118 = vmatprep.subr.bf16.mxu1 %v591_v13  ;;  %v660_v12 = vunpack.c.h.s8.bf16 %v236_v4  ;;  %v662_v13 = vunpack.c.h.s8.bf16 %v238_v5  ;;  %v669_v14 = vunpack.c.l.s8.bf16 %v245_v10  ;;  %v671_v15 = vunpack.c.l.s8.bf16 %v247_v11 }
  0x8f   :  { %v677_v22 = vunpack.c.h.s8.bf16 %v245_v10  ;;  %v679_v43 = vunpack.c.h.s8.bf16 %v247_v11 }
  0x90   :  { %946 = vmatmul.mubr.bf16.vlgmr.msra.gmra.mrb[0].mxu0 %v12067_v16  ;;  %1110 = vmatmul.mubr.bf16.vlgmr.msra.gmra.mrb[0].mxu1 %v12067_v16 }
  0x91   :  { %955 = vmatpush1.bf16.msra.mxu0 %v588_v18  ;;  %1119 = vmatpush1.bf16.msra.mxu1 %v590_v19  ;;  %v244_v18 = vld [vmem:[%s17137_s26 + $0x540] sm:$0xff]  ;;  %v246_v19 = vld [vmem:[%s17137_s26 + $0x550] sm:$0xff] }
  0x92   :  { %956 = vmatprep.subr.bf16.mxu0 %v597_v20  ;;  %1120 = vmatprep.subr.bf16.mxu1 %v599_v21  ;;  %v668_v20 = vunpack.c.l.s8.bf16 %v244_v18  ;;  %v670_v21 = vunpack.c.l.s8.bf16 %v246_v19 }
  0x93   :  { %986 = vmatprep.mubr.bf16.mxu0 %v12082_v23  ;;  %1150 = vmatprep.mubr.bf16.mxu1 %v12082_v23 }
  0x95   :  { %957 = vmatpush1.bf16.msra.mxu0 %v596_v24  ;;  %1121 = vmatpush1.bf16.msra.mxu1 %v598_v25  ;;  %v253_v24 = vld [vmem:[%s17137_s26 + $0x588] sm:$0xff]  ;;  %v255_v25 = vld [vmem:[%s17137_s26 + $0x598] sm:$0xff] }
  0x96   :  { %958 = vmatprep.subr.bf16.mxu0 %v605_v26  ;;  %1122 = vmatprep.subr.bf16.mxu1 %v607_v27  ;;  %v676_v26 = vunpack.c.h.s8.bf16 %v244_v18  ;;  %v678_v27 = vunpack.c.h.s8.bf16 %v246_v19  ;;  %v685_v28 = vunpack.c.l.s8.bf16 %v253_v24  ;;  %v687_v29 = vunpack.c.l.s8.bf16 %v255_v25 }
  0x97   :  { %v693_v36 = vunpack.c.h.s8.bf16 %v253_v24  ;;  %v695_v37 = vunpack.c.h.s8.bf16 %v255_v25 }
  0x99   :  { %959 = vmatpush1.bf16.msra.mxu0 %v604_v31  ;;  %1123 = vmatpush1.bf16.msra.mxu1 %v606_v32  ;;  %v252_v31 = vld [vmem:[%s17137_s26 + $0x580] sm:$0xff]  ;;  %v254_v32 = vld [vmem:[%s17137_s26 + $0x590] sm:$0xff] }
  0x9a   :  { %960 = vmatprep.subr.bf16.mxu0 %v613_v33  ;;  %1124 = vmatprep.subr.bf16.mxu1 %v615_v34  ;;  %v684_v33 = vunpack.c.l.s8.bf16 %v252_v31  ;;  %v686_v34 = vunpack.c.l.s8.bf16 %v254_v32 }
  0x9d   :  { %961 = vmatpush1.bf16.msra.mxu0 %v612_v38  ;;  %1125 = vmatpush1.bf16.msra.mxu1 %v614_v39  ;;  %v261_v38 = vld [vmem:[%s17137_s26 + $0x5c8] sm:$0xff]  ;;  %v263_v39 = vld [vmem:[%s17137_s26 + $0x5d8] sm:$0xff] }
  0x9e   :  { %962 = vmatprep.subr.bf16.mxu0 %v621_v40  ;;  %1126 = vmatprep.subr.bf16.mxu1 %v623_v41  ;;  %v692_v40 = vunpack.c.h.s8.bf16 %v252_v31  ;;  %v694_v41 = vunpack.c.h.s8.bf16 %v254_v32  ;;  %v701_v44 = vunpack.c.l.s8.bf16 %v261_v38  ;;  %v703_v45 = vunpack.c.l.s8.bf16 %v263_v39 }
  0x9f   :  { %v709_v50 = vunpack.c.h.s8.bf16 %v261_v38  ;;  %v711_v51 = vunpack.c.h.s8.bf16 %v263_v39 }
  0xa1   :  { %963 = vmatpush1.bf16.msra.mxu0 %v620_v46  ;;  %1127 = vmatpush1.bf16.msra.mxu1 %v622_v47  ;;  %v260_v46 = vld [vmem:[%s17137_s26 + $0x5c0] sm:$0xff]  ;;  %v262_v47 = vld [vmem:[%s17137_s26 + $0x5d0] sm:$0xff] }
  0xa2   :  { %964 = vmatprep.subr.bf16.mxu0 %v629_v48  ;;  %1128 = vmatprep.subr.bf16.mxu1 %v631_v30  ;;  %v700_v48 = vunpack.c.l.s8.bf16 %v260_v46  ;;  %v702_v30 = vunpack.c.l.s8.bf16 %v262_v47 }
  0xa5   :  { %965 = vmatpush1.bf16.msra.mxu0 %v628_v52  ;;  %1129 = vmatpush1.bf16.msra.mxu1 %v630_v53  ;;  %v269_v52 = vld [vmem:[%s17137_s26 + $0x608] sm:$0xff]  ;;  %v271_v53 = vld [vmem:[%s17137_s26 + $0x618] sm:$0xff] }
  0xa6   :  { %966 = vmatprep.subr.bf16.mxu0 %v637_v54  ;;  %1130 = vmatprep.subr.bf16.mxu1 %v639_v55  ;;  %v708_v54 = vunpack.c.h.s8.bf16 %v260_v46  ;;  %v710_v55 = vunpack.c.h.s8.bf16 %v262_v47  ;;  %v717_v56 = vunpack.c.l.s8.bf16 %v269_v52  ;;  %v719_v57 = vunpack.c.l.s8.bf16 %v271_v53 }
  0xa9   :  { %967 = vmatpush1.bf16.msra.mxu0 %v636_v58  ;;  %1131 = vmatpush1.bf16.msra.mxu1 %v638_v59  ;;  %v268_v58 = vld [vmem:[%s17137_s26 + $0x600] sm:$0xff]  ;;  %v270_v59 = vld [vmem:[%s17137_s26 + $0x610] sm:$0xff] }
  0xaa   :  { %968 = vmatprep.subr.bf16.mxu0 %v645_v60  ;;  %1132 = vmatprep.subr.bf16.mxu1 %v647_v61  ;;  %v12180_v60 = vcombine.low %v12072_v17, %v12072_v17  ;;  %v12185_v61 = vld [vmem:[%s17138_s1 + $0x18] sm:$0xff]  ;;  %v716_v62 = vunpack.c.l.s8.bf16 %v268_v58  ;;  %v718_v63 = vunpack.c.l.s8.bf16 %v270_v59  ;;  %v724_v4 = vunpack.c.h.s8.bf16 %v268_v58 }
  0xab   :  { %v279_v17 = vld [vmem:[%s17137_s26 + $0x658] sm:$0xff]  ;;  %v726_v5 = vunpack.c.h.s8.bf16 %v270_v59 }
  0xad   :  { %969 = vmatpush1.bf16.msra.mxu0 %v644_v0  ;;  %1133 = vmatpush1.bf16.msra.mxu1 %v646_v1  ;;  %v725_v0 = vunpack.c.h.s8.bf16 %v269_v52  ;;  %v727_v1 = vunpack.c.h.s8.bf16 %v271_v53 }
  0xae   :  { %970 = vmatprep.subr.bf16.mxu0 %v653_v2  ;;  %1134 = vmatprep.subr.bf16.mxu1 %v655_v3  ;;  %v277_v2 = vld [vmem:[%s17137_s26 + $0x648] sm:$0xff]  ;;  %v12195_v3 = vcombine.high %v12185_v61, %v12185_v61 }
  0xb1   :  { %971 = vmatpush1.bf16.msra.mxu0 %v652_v6  ;;  %1135 = vmatpush1.bf16.msra.mxu1 %v654_v7  ;;  %v733_v6 = vunpack.c.l.s8.bf16 %v277_v2  ;;  %v735_v7 = vunpack.c.l.s8.bf16 %v279_v17 }
  0xb2   :  { %972 = vmatprep.subr.bf16.mxu0 %v661_v8  ;;  %1136 = vmatprep.subr.bf16.mxu1 %v663_v9  ;;  %v276_v8 = vld [vmem:[%s17137_s26 + $0x640] sm:$0xff]  ;;  %v278_v9 = vld [vmem:[%s17137_s26 + $0x650] sm:$0xff] }
  0xb3   :  { %v732_v10 = vunpack.c.l.s8.bf16 %v276_v8  ;;  %v734_v11 = vunpack.c.l.s8.bf16 %v278_v9  ;;  %v740_v18 = vunpack.c.h.s8.bf16 %v276_v8  ;;  %v742_v19 = vunpack.c.h.s8.bf16 %v278_v9 }
  0xb5   :  { %973 = vmatpush1.bf16.msra.mxu0 %v660_v12  ;;  %1137 = vmatpush1.bf16.msra.mxu1 %v662_v13  ;;  %v741_v12 = vunpack.c.h.s8.bf16 %v277_v2  ;;  %v743_v13 = vunpack.c.h.s8.bf16 %v279_v17 }
  0xb6   :  { %974 = vmatprep.subr.bf16.mxu0 %v669_v14  ;;  %1138 = vmatprep.subr.bf16.mxu1 %v671_v15  ;;  %v285_v14 = vld [vmem:[%s17137_s26 + $0x688] sm:$0xff]  ;;  %v287_v15 = vld [vmem:[%s17137_s26 + $0x698] sm:$0xff] }
  0xb9   :  { %975 = vmatpush1.bf16.msra.mxu0 %v668_v20  ;;  %1139 = vmatpush1.bf16.msra.mxu1 %v670_v21  ;;  %v749_v20 = vunpack.c.l.s8.bf16 %v285_v14  ;;  %v751_v21 = vunpack.c.l.s8.bf16 %v287_v15 }
  0xba   :  { %976 = vmatprep.subr.bf16.mxu0 %v677_v22  ;;  %1140 = vmatprep.subr.bf16.mxu1 %v679_v43  ;;  %v284_v22 = vld [vmem:[%s17137_s26 + $0x680] sm:$0xff]  ;;  %v286_v43 = vld [vmem:[%s17137_s26 + $0x690] sm:$0xff] }
  0xbb   :  { %v748_v24 = vunpack.c.l.s8.bf16 %v284_v22  ;;  %v750_v25 = vunpack.c.l.s8.bf16 %v286_v43  ;;  %v756_v31 = vunpack.c.h.s8.bf16 %v284_v22  ;;  %v758_v32 = vunpack.c.h.s8.bf16 %v286_v43 }
  0xbd   :  { %977 = vmatpush1.bf16.msra.mxu0 %v676_v26  ;;  %1141 = vmatpush1.bf16.msra.mxu1 %v678_v27  ;;  %v757_v26 = vunpack.c.h.s8.bf16 %v285_v14  ;;  %v759_v27 = vunpack.c.h.s8.bf16 %v287_v15 }
  0xbe   :  { %978 = vmatprep.subr.bf16.mxu0 %v685_v28  ;;  %1142 = vmatprep.subr.bf16.mxu1 %v687_v29  ;;  %v293_v28 = vld [vmem:[%s17137_s26 + $0x6c8] sm:$0xff]  ;;  %v295_v29 = vld [vmem:[%s17137_s26 + $0x6d8] sm:$0xff] }
  0xc1   :  { %979 = vmatpush1.bf16.msra.mxu0 %v684_v33  ;;  %1143 = vmatpush1.bf16.msra.mxu1 %v686_v34  ;;  %v765_v33 = vunpack.c.l.s8.bf16 %v293_v28  ;;  %v767_v34 = vunpack.c.l.s8.bf16 %v295_v29 }
  0xc2   :  { %980 = vmatprep.subr.bf16.mxu0 %v693_v36  ;;  %1144 = vmatprep.subr.bf16.mxu1 %v695_v37  ;;  %v292_v36 = vld [vmem:[%s17137_s26 + $0x6c0] sm:$0xff]  ;;  %v294_v37 = vld [vmem:[%s17137_s26 + $0x6d0] sm:$0xff] }
  0xc3   :  { %v764_v38 = vunpack.c.l.s8.bf16 %v292_v36  ;;  %v766_v39 = vunpack.c.l.s8.bf16 %v294_v37  ;;  %v772_v46 = vunpack.c.h.s8.bf16 %v292_v36  ;;  %v774_v47 = vunpack.c.h.s8.bf16 %v294_v37 }
  0xc5   :  { %981 = vmatpush1.bf16.msra.mxu0 %v692_v40  ;;  %1145 = vmatpush1.bf16.msra.mxu1 %v694_v41  ;;  %v773_v40 = vunpack.c.h.s8.bf16 %v293_v28  ;;  %v775_v41 = vunpack.c.h.s8.bf16 %v295_v29 }
  0xc6   :  { %982 = vmatprep.subr.bf16.mxu0 %v701_v44  ;;  %1146 = vmatprep.subr.bf16.mxu1 %v703_v45  ;;  %v301_v44 = vld [vmem:[%s17137_s26 + $0x708] sm:$0xff]  ;;  %v303_v45 = vld [vmem:[%s17137_s26 + $0x718] sm:$0xff] }
  0xc9   :  { %983 = vmatpush1.bf16.msra.mxu0 %v700_v48  ;;  %1147 = vmatpush1.bf16.msra.mxu1 %v702_v30  ;;  %v781_v48 = vunpack.c.l.s8.bf16 %v301_v44  ;;  %v783_v30 = vunpack.c.l.s8.bf16 %v303_v45 }
  0xca   :  { %984 = vmatprep.subr.bf16.mxu0 %v709_v50  ;;  %1148 = vmatprep.subr.bf16.mxu1 %v711_v51  ;;  %v300_v50 = vld [vmem:[%s17137_s26 + $0x700] sm:$0xff]  ;;  %v302_v51 = vld [vmem:[%s17137_s26 + $0x710] sm:$0xff] }
  0xcb   :  { %v780_v52 = vunpack.c.l.s8.bf16 %v300_v50  ;;  %v782_v53 = vunpack.c.l.s8.bf16 %v302_v51  ;;  %v788_v58 = vunpack.c.h.s8.bf16 %v300_v50  ;;  %v790_v59 = vunpack.c.h.s8.bf16 %v302_v51  ;;  %v91_v50 = vld [vmem:[%s17137_s26 + $0x78] sm:$0xff] }
  0xcd   :  { %985 = vmatpush1.bf16.msra.mxu0 %v708_v54  ;;  %1149 = vmatpush1.bf16.msra.mxu1 %v710_v55  ;;  %v789_v54 = vunpack.c.h.s8.bf16 %v301_v44  ;;  %v791_v55 = vunpack.c.h.s8.bf16 %v303_v45  ;;  %v12293_v44 = vcombine.low %v12185_v61, %v12185_v61 }
  0xce   :  { %995 = vmatprep.subr.bf16.mxu0 %v717_v56  ;;  %1159 = vmatprep.subr.bf16.mxu1 %v719_v57  ;;  %v309_v56 = vld [vmem:[%s17137_s26 + $0x748] sm:$0xff]  ;;  %v311_v57 = vld [vmem:[%s17137_s26 + $0x758] sm:$0xff] }
  0xd0   :  { %987 = vmatmul.mubr.bf16.vlgmr.msra.gmra.mrb[0].mxu0 %v12180_v60  ;;  %1151 = vmatmul.mubr.bf16.vlgmr.msra.gmra.mrb[0].mxu1 %v12180_v60 }
  0xd1   :  { %996 = vmatpush1.bf16.msra.mxu0 %v716_v62  ;;  %1160 = vmatpush1.bf16.msra.mxu1 %v718_v63  ;;  %v797_v62 = vunpack.c.l.s8.bf16 %v309_v56  ;;  %v799_v63 = vunpack.c.l.s8.bf16 %v311_v57 }
  0xd2   :  { %997 = vmatprep.subr.bf16.mxu0 %v725_v0  ;;  %1161 = vmatprep.subr.bf16.mxu1 %v727_v1  ;;  %v308_v0 = vld [vmem:[%s17137_s26 + $0x740] sm:$0xff]  ;;  %v310_v1 = vld [vmem:[%s17137_s26 + $0x750] sm:$0xff] }
  0xd3   :  { %1027 = vmatprep.mubr.bf16.mxu0 %v12195_v3  ;;  %1191 = vmatprep.mubr.bf16.mxu1 %v12195_v3  ;;  %v796_v2 = vunpack.c.l.s8.bf16 %v308_v0  ;;  %v798_v17 = vunpack.c.l.s8.bf16 %v310_v1  ;;  %v804_v8 = vunpack.c.h.s8.bf16 %v308_v0  ;;  %v806_v9 = vunpack.c.h.s8.bf16 %v310_v1 }
  0xd5   :  { %998 = vmatpush1.bf16.msra.mxu0 %v724_v4  ;;  %1162 = vmatpush1.bf16.msra.mxu1 %v726_v5  ;;  %v805_v4 = vunpack.c.h.s8.bf16 %v309_v56  ;;  %v807_v5 = vunpack.c.h.s8.bf16 %v311_v57 }
  0xd6   :  { %999 = vmatprep.subr.bf16.mxu0 %v733_v6  ;;  %1163 = vmatprep.subr.bf16.mxu1 %v735_v7  ;;  %v317_v6 = vld [vmem:[%s17137_s26 + $0x788] sm:$0xff]  ;;  %v319_v7 = vld [vmem:[%s17137_s26 + $0x798] sm:$0xff] }
  0xd9   :  { %1000 = vmatpush1.bf16.msra.mxu0 %v732_v10  ;;  %1164 = vmatpush1.bf16.msra.mxu1 %v734_v11  ;;  %v813_v10 = vunpack.c.l.s8.bf16 %v317_v6  ;;  %v815_v11 = vunpack.c.l.s8.bf16 %v319_v7 }
  0xda   :  { %1001 = vmatprep.subr.bf16.mxu0 %v741_v12  ;;  %1165 = vmatprep.subr.bf16.mxu1 %v743_v13  ;;  %v316_v12 = vld [vmem:[%s17137_s26 + $0x780] sm:$0xff]  ;;  %v318_v13 = vld [vmem:[%s17137_s26 + $0x790] sm:$0xff] }
  0xdb   :  { %v812_v14 = vunpack.c.l.s8.bf16 %v316_v12  ;;  %v814_v15 = vunpack.c.l.s8.bf16 %v318_v13  ;;  %v820_v22 = vunpack.c.h.s8.bf16 %v316_v12  ;;  %v822_v43 = vunpack.c.h.s8.bf16 %v318_v13 }
  0xdd   :  { %1002 = vmatpush1.bf16.msra.mxu0 %v740_v18  ;;  %1166 = vmatpush1.bf16.msra.mxu1 %v742_v19  ;;  %v821_v18 = vunpack.c.h.s8.bf16 %v317_v6  ;;  %v823_v19 = vunpack.c.h.s8.bf16 %v319_v7 }
  0xde   :  { %1003 = vmatprep.subr.bf16.mxu0 %v749_v20  ;;  %1167 = vmatprep.subr.bf16.mxu1 %v751_v21  ;;  %v325_v20 = vld [vmem:[%s17137_s26 + $0x7c8] sm:$0xff]  ;;  %v327_v21 = vld [vmem:[%s17137_s26 + $0x7d8] sm:$0xff] }
  0xe1   :  { %1004 = vmatpush1.bf16.msra.mxu0 %v748_v24  ;;  %1168 = vmatpush1.bf16.msra.mxu1 %v750_v25  ;;  %v829_v24 = vunpack.c.l.s8.bf16 %v325_v20  ;;  %v831_v25 = vunpack.c.l.s8.bf16 %v327_v21 }
  0xe2   :  { %1005 = vmatprep.subr.bf16.mxu0 %v757_v26  ;;  %1169 = vmatprep.subr.bf16.mxu1 %v759_v27  ;;  %v324_v26 = vld [vmem:[%s17137_s26 + $0x7c0] sm:$0xff]  ;;  %v326_v27 = vld [vmem:[%s17137_s26 + $0x7d0] sm:$0xff] }
  0xe3   :  { %v828_v28 = vunpack.c.l.s8.bf16 %v324_v26  ;;  %v830_v29 = vunpack.c.l.s8.bf16 %v326_v27  ;;  %v836_v36 = vunpack.c.h.s8.bf16 %v324_v26  ;;  %v838_v37 = vunpack.c.h.s8.bf16 %v326_v27 }
  0xe5   :  { %1006 = vmatpush1.bf16.msra.mxu0 %v756_v31  ;;  %1170 = vmatpush1.bf16.msra.mxu1 %v758_v32  ;;  %v837_v31 = vunpack.c.h.s8.bf16 %v325_v20  ;;  %v839_v32 = vunpack.c.h.s8.bf16 %v327_v21 }
  0xe6   :  { %1007 = vmatprep.subr.bf16.mxu0 %v765_v33  ;;  %1171 = vmatprep.subr.bf16.mxu1 %v767_v34  ;;  %v81_v33 = vld [vmem:[%s17137_s26 + $0x28] sm:$0xff]  ;;  %v83_v34 = vld [vmem:[%s17137_s26 + $0x38] sm:$0xff] }
  0xe9   :  { %1008 = vmatpush1.bf16.msra.mxu0 %v764_v38  ;;  %1172 = vmatpush1.bf16.msra.mxu1 %v766_v39  ;;  %v337_v38 = vunpack.c.l.s8.bf16 %v81_v33  ;;  %v339_v39 = vunpack.c.l.s8.bf16 %v83_v34 }
  0xea   :  { %1009 = vmatprep.subr.bf16.mxu0 %v773_v40  ;;  %1173 = vmatprep.subr.bf16.mxu1 %v775_v41  ;;  %v80_v40 = vld [vmem:[%s17137_s26 + $0x20] sm:$0xff]  ;;  %v82_v41 = vld [vmem:[%s17137_s26 + $0x30] sm:$0xff] }
  0xeb   :  { %v336_v45 = vunpack.c.l.s8.bf16 %v80_v40  ;;  %v344_v61 = vunpack.c.h.s8.bf16 %v80_v40  ;;  %v346_v51 = vunpack.c.h.s8.bf16 %v82_v41 }
  0xed   :  { %1010 = vmatpush1.bf16.msra.mxu0 %v772_v46  ;;  %1174 = vmatpush1.bf16.msra.mxu1 %v774_v47  ;;  %v338_v46 = vunpack.c.l.s8.bf16 %v82_v41  ;;  %v345_v47 = vunpack.c.h.s8.bf16 %v81_v33 }
  0xee   :  { %1011 = vmatprep.subr.bf16.mxu0 %v781_v48  ;;  %1175 = vmatprep.subr.bf16.mxu1 %v783_v30  ;;  %v347_v48 = vunpack.c.h.s8.bf16 %v83_v34  ;;  %v89_v30 = vld [vmem:[%s17137_s26 + $0x68] sm:$0xff] }
  0xf1   :  { %1012 = vmatpush1.bf16.msra.mxu0 %v780_v52  ;;  %1176 = vmatpush1.bf16.msra.mxu1 %v782_v53  ;;  %v353_v52 = vunpack.c.l.s8.bf16 %v89_v30  ;;  %v355_v53 = vunpack.c.l.s8.bf16 %v91_v50 }
  0xf2   :  { %1013 = vmatprep.subr.bf16.mxu0 %v789_v54  ;;  %1177 = vmatprep.subr.bf16.mxu1 %v791_v55  ;;  %v88_v54 = vld [vmem:[%s17137_s26 + $0x60] sm:$0xff]  ;;  %v90_v55 = vld [vmem:[%s17137_s26 + $0x70] sm:$0xff] }
  0xf3   :  { %v352_v56 = vunpack.c.l.s8.bf16 %v88_v54  ;;  %v354_v57 = vunpack.c.l.s8.bf16 %v90_v55  ;;  %v360_v0 = vunpack.c.h.s8.bf16 %v88_v54 }
  0xf5   :  { %1014 = vmatpush1.bf16.msra.mxu0 %v788_v58  ;;  %1178 = vmatpush1.bf16.msra.mxu1 %v790_v59  ;;  %v361_v58 = vunpack.c.h.s8.bf16 %v89_v30  ;;  %v363_v59 = vunpack.c.h.s8.bf16 %v91_v50 }
  0xf6   :  { %1015 = vmatprep.subr.bf16.mxu0 %v797_v62  ;;  %1179 = vmatprep.subr.bf16.mxu1 %v799_v63  ;;  %v97_v62 = vld [vmem:[%s17137_s26 + $0xa8] sm:$0xff]  ;;  %v99_v63 = vld [vmem:[%s17137_s26 + $0xb8] sm:$0xff] }
  0xf7   :  { %v369_v1 = vunpack.c.l.s8.bf16 %v97_v62  ;;  %v377_v7 = vunpack.c.h.s8.bf16 %v97_v62 }
  0xf9   :  { %1016 = vmatpush1.bf16.msra.mxu0 %v796_v2  ;;  %1180 = vmatpush1.bf16.msra.mxu1 %v798_v17  ;;  %v371_v2 = vunpack.c.l.s8.bf16 %v99_v63  ;;  %v96_v17 = vld [vmem:[%s17137_s26 + $0xa0] sm:$0xff] }
  0xfa   :  { %1017 = vmatprep.subr.bf16.mxu0 %v805_v4  ;;  %1181 = vmatprep.subr.bf16.mxu1 %v807_v5  ;;  %v98_v4 = vld [vmem:[%s17137_s26 + $0xb0] sm:$0xff]  ;;  %v368_v5 = vunpack.c.l.s8.bf16 %v96_v17 }
  0xfb   :  { %v370_v6 = vunpack.c.l.s8.bf16 %v98_v4  ;;  %v378_v12 = vunpack.c.h.s8.bf16 %v98_v4 }
  0xfd   :  { %1018 = vmatpush1.bf16.msra.mxu0 %v804_v8  ;;  %1182 = vmatpush1.bf16.msra.mxu1 %v806_v9  ;;  %v379_v8 = vunpack.c.h.s8.bf16 %v99_v63  ;;  %v105_v9 = vld [vmem:[%s17137_s26 + $0xe8] sm:$0xff] }
  0xfe   :  { %1019 = vmatprep.subr.bf16.mxu0 %v813_v10  ;;  %1183 = vmatprep.subr.bf16.mxu1 %v815_v11  ;;  %v107_v10 = vld [vmem:[%s17137_s26 + $0xf8] sm:$0xff]  ;;  %v376_v11 = vunpack.c.h.s8.bf16 %v96_v17  ;;  %v385_v13 = vunpack.c.l.s8.bf16 %v105_v9  ;;  %v393_v21 = vunpack.c.h.s8.bf16 %v105_v9 }
 0x101   :  { %1020 = vmatpush1.bf16.msra.mxu0 %v812_v14  ;;  %1184 = vmatpush1.bf16.msra.mxu1 %v814_v15  ;;  %v387_v14 = vunpack.c.l.s8.bf16 %v107_v10  ;;  %v104_v15 = vld [vmem:[%s17137_s26 + $0xe0] sm:$0xff] }
 0x102   :  { %1021 = vmatprep.subr.bf16.mxu0 %v821_v18  ;;  %1185 = vmatprep.subr.bf16.mxu1 %v823_v19  ;;  %v106_v18 = vld [vmem:[%s17137_s26 + $0xf0] sm:$0xff]  ;;  %v384_v19 = vunpack.c.l.s8.bf16 %v104_v15 }
 0x103   :  { %v386_v20 = vunpack.c.l.s8.bf16 %v106_v18  ;;  %v394_v26 = vunpack.c.h.s8.bf16 %v106_v18 }
 0x105   :  { %1022 = vmatpush1.bf16.msra.mxu0 %v820_v22  ;;  %1186 = vmatpush1.bf16.msra.mxu1 %v822_v43  ;;  %v395_v22 = vunpack.c.h.s8.bf16 %v107_v10  ;;  %v113_v43 = vld [vmem:[%s17137_s26 + $0x128] sm:$0xff] }
 0x106   :  { %1023 = vmatprep.subr.bf16.mxu0 %v829_v24  ;;  %1187 = vmatprep.subr.bf16.mxu1 %v831_v25  ;;  %v115_v24 = vld [vmem:[%s17137_s26 + $0x138] sm:$0xff]  ;;  %v392_v25 = vunpack.c.h.s8.bf16 %v104_v15  ;;  %v401_v27 = vunpack.c.l.s8.bf16 %v113_v43  ;;  %v409_v34 = vunpack.c.h.s8.bf16 %v113_v43 }
 0x109   :  { %1024 = vmatpush1.bf16.msra.mxu0 %v828_v28  ;;  %1188 = vmatpush1.bf16.msra.mxu1 %v830_v29  ;;  %v403_v28 = vunpack.c.l.s8.bf16 %v115_v24  ;;  %v112_v29 = vld [vmem:[%s17137_s26 + $0x120] sm:$0xff] }
 0x10a   :  { %1025 = vmatprep.subr.bf16.mxu0 %v837_v31  ;;  %1189 = vmatprep.subr.bf16.mxu1 %v839_v32  ;;  %v114_v31 = vld [vmem:[%s17137_s26 + $0x130] sm:$0xff]  ;;  %v400_v32 = vunpack.c.l.s8.bf16 %v112_v29 }
 0x10b   :  { %v402_v33 = vunpack.c.l.s8.bf16 %v114_v31  ;;  %v410_v40 = vunpack.c.h.s8.bf16 %v114_v31 }
 0x10d   :  { %1026 = vmatpush1.bf16.msra.mxu0 %v836_v36  ;;  %1190 = vmatpush1.bf16.msra.mxu1 %v838_v37  ;;  %v411_v36 = vunpack.c.h.s8.bf16 %v115_v24  ;;  %v121_v37 = vld [vmem:[%s17137_s26 + $0x168] sm:$0xff] }
 0x10e   :  { %1200 = vmatprep.subr.bf16.mxu0 %v337_v38  ;;  %1364 = vmatprep.subr.bf16.mxu1 %v339_v39  ;;  %v123_v38 = vld [vmem:[%s17137_s26 + $0x178] sm:$0xff]  ;;  %v408_v39 = vunpack.c.h.s8.bf16 %v112_v29  ;;  %v417_v41 = vunpack.c.l.s8.bf16 %v121_v37  ;;  %v425_v50 = vunpack.c.h.s8.bf16 %v121_v37 }
 0x110   :  { %1028 = vmatmul.mubr.bf16.vlgmr.msra.gmra.mrb[0].mxu0 %v12293_v44  ;;  %1192 = vmatmul.mubr.bf16.vlgmr.msra.gmra.mrb[0].mxu1 %v12293_v44 }
 0x111   :  { %1201 = vmatpush1.bf16.msra.mxu0 %v336_v45  ;;  %1365 = vmatpush1.bf16.msra.mxu1 %v338_v46  ;;  %v419_v45 = vunpack.c.l.s8.bf16 %v123_v38  ;;  %v120_v46 = vld [vmem:[%s17137_s26 + $0x160] sm:$0xff] }
 0x112   :  { %1202 = vmatprep.subr.bf16.mxu0 %v345_v47  ;;  %1366 = vmatprep.subr.bf16.mxu1 %v347_v48  ;;  %v122_v47 = vld [vmem:[%s17137_s26 + $0x170] sm:$0xff]  ;;  %v416_v48 = vunpack.c.l.s8.bf16 %v120_v46 }
 0x113   :  { %1232 = vmatprep.mubr.bf16.mxu0 %v11876_v35  ;;  %1396 = vmatprep.mubr.bf16.mxu1 %v11876_v35  ;;  %v362_v35 = vunpack.c.h.s8.bf16 %v90_v55  ;;  %v418_v30 = vunpack.c.l.s8.bf16 %v122_v47  ;;  %v426_v54 = vunpack.c.h.s8.bf16 %v122_v47  ;;  %v160_v47 = vld [vmem:[%s17137_s26 + $0x2a0] sm:$0xff] }
 0x115   :  { %1203 = vmatpush1.bf16.msra.mxu0 %v344_v61  ;;  %1367 = vmatpush1.bf16.msra.mxu1 %v346_v51  ;;  %v427_v61 = vunpack.c.h.s8.bf16 %v123_v38  ;;  %v129_v51 = vld [vmem:[%s17137_s26 + $0x1a8] sm:$0xff] }
 0x116   :  { %1204 = vmatprep.subr.bf16.mxu0 %v353_v52  ;;  %1368 = vmatprep.subr.bf16.mxu1 %v355_v53  ;;  %v131_v52 = vld [vmem:[%s17137_s26 + $0x1b8] sm:$0xff]  ;;  %v424_v53 = vunpack.c.h.s8.bf16 %v120_v46  ;;  %v433_v55 = vunpack.c.l.s8.bf16 %v129_v51  ;;  %v441_v63 = vunpack.c.h.s8.bf16 %v129_v51 }
 0x119   :  { %1205 = vmatpush1.bf16.msra.mxu0 %v352_v56  ;;  %1369 = vmatpush1.bf16.msra.mxu1 %v354_v57  ;;  %v435_v56 = vunpack.c.l.s8.bf16 %v131_v52  ;;  %v128_v57 = vld [vmem:[%s17137_s26 + $0x1a0] sm:$0xff] }
 0x11a   :  { %1206 = vmatprep.subr.bf16.mxu0 %v361_v58  ;;  %1370 = vmatprep.subr.bf16.mxu1 %v363_v59  ;;  %v130_v58 = vld [vmem:[%s17137_s26 + $0x1b0] sm:$0xff]  ;;  %v432_v59 = vunpack.c.l.s8.bf16 %v128_v57 }
 0x11b   :  { %v434_v62 = vunpack.c.l.s8.bf16 %v130_v58  ;;  %v442_v17 = vunpack.c.h.s8.bf16 %v130_v58  ;;  %v168_v58 = vld [vmem:[%s17137_s26 + $0x2e0] sm:$0xff] }
 0x11d   :  { %1207 = vmatpush1.bf16.msra.mxu0 %v360_v0  ;;  %1371 = vmatpush1.bf16.msra.mxu1 %v362_v35  ;;  %v443_v0 = vunpack.c.h.s8.bf16 %v131_v52  ;;  %v137_v35 = vld [vmem:[%s17137_s26 + $0x1e8] sm:$0xff] }
 0x11e   :  { %1208 = vmatprep.subr.bf16.mxu0 %v369_v1  ;;  %1372 = vmatprep.subr.bf16.mxu1 %v371_v2  ;;  %v139_v1 = vld [vmem:[%s17137_s26 + $0x1f8] sm:$0xff]  ;;  %v440_v2 = vunpack.c.h.s8.bf16 %v128_v57  ;;  %v449_v4 = vunpack.c.l.s8.bf16 %v137_v35  ;;  %v457_v10 = vunpack.c.h.s8.bf16 %v137_v35  ;;  %v169_v52 = vld [vmem:[%s17137_s26 + $0x2e8] sm:$0xff] }
 0x121   :  { %1209 = vmatpush1.bf16.msra.mxu0 %v368_v5  ;;  %1373 = vmatpush1.bf16.msra.mxu1 %v370_v6  ;;  %v451_v5 = vunpack.c.l.s8.bf16 %v139_v1  ;;  %v136_v6 = vld [vmem:[%s17137_s26 + $0x1e0] sm:$0xff] }
 0x122   :  { %1210 = vmatprep.subr.bf16.mxu0 %v377_v7  ;;  %1374 = vmatprep.subr.bf16.mxu1 %v379_v8  ;;  %v138_v7 = vld [vmem:[%s17137_s26 + $0x1f0] sm:$0xff]  ;;  %v448_v8 = vunpack.c.l.s8.bf16 %v136_v6 }
 0x123   :  { %v450_v9 = vunpack.c.l.s8.bf16 %v138_v7  ;;  %v458_v15 = vunpack.c.h.s8.bf16 %v138_v7  ;;  %v176_v7 = vld [vmem:[%s17137_s26 + $0x320] sm:$0xff] }
 0x125   :  { %1211 = vmatpush1.bf16.msra.mxu0 %v376_v11  ;;  %1375 = vmatpush1.bf16.msra.mxu1 %v378_v12  ;;  %v459_v11 = vunpack.c.h.s8.bf16 %v139_v1  ;;  %v145_v12 = vld [vmem:[%s17137_s26 + $0x228] sm:$0xff] }
 0x126   :  { %1212 = vmatprep.subr.bf16.mxu0 %v385_v13  ;;  %1376 = vmatprep.subr.bf16.mxu1 %v387_v14  ;;  %v147_v13 = vld [vmem:[%s17137_s26 + $0x238] sm:$0xff]  ;;  %v456_v14 = vunpack.c.h.s8.bf16 %v136_v6  ;;  %v465_v18 = vunpack.c.l.s8.bf16 %v145_v12  ;;  %v473_v24 = vunpack.c.h.s8.bf16 %v145_v12  ;;  %v177_v1 = vld [vmem:[%s17137_s26 + $0x328] sm:$0xff] }
 0x129   :  { %1213 = vmatpush1.bf16.msra.mxu0 %v384_v19  ;;  %1377 = vmatpush1.bf16.msra.mxu1 %v386_v20  ;;  %v467_v19 = vunpack.c.l.s8.bf16 %v147_v13  ;;  %v144_v20 = vld [vmem:[%s17137_s26 + $0x220] sm:$0xff] }
 0x12a   :  { %1214 = vmatprep.subr.bf16.mxu0 %v393_v21  ;;  %1378 = vmatprep.subr.bf16.mxu1 %v395_v22  ;;  %v146_v21 = vld [vmem:[%s17137_s26 + $0x230] sm:$0xff]  ;;  %v464_v22 = vunpack.c.l.s8.bf16 %v144_v20 }
 0x12b   :  { %v466_v43 = vunpack.c.l.s8.bf16 %v146_v21  ;;  %v474_v29 = vunpack.c.h.s8.bf16 %v146_v21  ;;  %v184_v21 = vld [vmem:[%s17137_s26 + $0x360] sm:$0xff] }
 0x12d   :  { %1215 = vmatpush1.bf16.msra.mxu0 %v392_v25  ;;  %1379 = vmatpush1.bf16.msra.mxu1 %v394_v26  ;;  %v475_v25 = vunpack.c.h.s8.bf16 %v147_v13  ;;  %v153_v26 = vld [vmem:[%s17137_s26 + $0x268] sm:$0xff] }
 0x12e   :  { %1216 = vmatprep.subr.bf16.mxu0 %v401_v27  ;;  %1380 = vmatprep.subr.bf16.mxu1 %v403_v28  ;;  %v155_v27 = vld [vmem:[%s17137_s26 + $0x278] sm:$0xff]  ;;  %v472_v28 = vunpack.c.h.s8.bf16 %v144_v20  ;;  %v481_v31 = vunpack.c.l.s8.bf16 %v153_v26  ;;  %v489_v37 = vunpack.c.h.s8.bf16 %v153_v26  ;;  %v185_v13 = vld [vmem:[%s17137_s26 + $0x368] sm:$0xff] }
 0x12f   :  { %v491_v38 = vunpack.c.h.s8.bf16 %v155_v27 }
 0x131   :  { %1217 = vmatpush1.bf16.msra.mxu0 %v400_v32  ;;  %1381 = vmatpush1.bf16.msra.mxu1 %v402_v33  ;;  %v483_v32 = vunpack.c.l.s8.bf16 %v155_v27  ;;  %v152_v33 = vld [vmem:[%s17137_s26 + $0x260] sm:$0xff]  ;;  %v193_v27 = vld [vmem:[%s17137_s26 + $0x3a8] sm:$0xff] }
 0x132   :  { %1218 = vmatprep.subr.bf16.mxu0 %v409_v34  ;;  %1382 = vmatprep.subr.bf16.mxu1 %v411_v36  ;;  %v154_v34 = vld [vmem:[%s17137_s26 + $0x270] sm:$0xff] }
 0x133   :  { %v482_v36 = vunpack.c.l.s8.bf16 %v154_v34 }
 0x135   :  { %1219 = vmatpush1.bf16.msra.mxu0 %v408_v39  ;;  %1383 = vmatpush1.bf16.msra.mxu1 %v410_v40  ;;  %v161_v39 = vld [vmem:[%s17137_s26 + $0x2a8] sm:$0xff]  ;;  %v163_v40 = vld [vmem:[%s17137_s26 + $0x2b8] sm:$0xff] }
 0x136   :  { %1220 = vmatprep.subr.bf16.mxu0 %v417_v41  ;;  %1384 = vmatprep.subr.bf16.mxu1 %v419_v45  ;;  %v488_v41 = vunpack.c.h.s8.bf16 %v152_v33  ;;  %v497_v45 = vunpack.c.l.s8.bf16 %v161_v39  ;;  %v499_v46 = vunpack.c.l.s8.bf16 %v163_v40  ;;  %v507_v51 = vunpack.c.h.s8.bf16 %v163_v40  ;;  %v201_v40 = vld [vmem:[%s17137_s26 + $0x3e8] sm:$0xff] }
 0x139   :  { %1221 = vmatpush1.bf16.msra.mxu0 %v416_v48  ;;  %1385 = vmatpush1.bf16.msra.mxu1 %v418_v30  ;;  %v162_v48 = vld [vmem:[%s17137_s26 + $0x2b0] sm:$0xff]  ;;  %v496_v30 = vunpack.c.l.s8.bf16 %v160_v47 }
 0x13a   :  { %1222 = vmatprep.subr.bf16.mxu0 %v425_v50  ;;  %1386 = vmatprep.subr.bf16.mxu1 %v427_v61  ;;  %v498_v50 = vunpack.c.l.s8.bf16 %v162_v48  ;;  %v505_v61 = vunpack.c.h.s8.bf16 %v161_v39 }
 0x13d   :  { %1223 = vmatpush1.bf16.msra.mxu0 %v424_v53  ;;  %1387 = vmatpush1.bf16.msra.mxu1 %v426_v54  ;;  %v171_v53 = vld [vmem:[%s17137_s26 + $0x2f8] sm:$0xff]  ;;  %v504_v54 = vunpack.c.h.s8.bf16 %v160_v47 }
 0x13e   :  { %1224 = vmatprep.subr.bf16.mxu0 %v433_v55  ;;  %1388 = vmatprep.subr.bf16.mxu1 %v435_v56  ;;  %v506_v55 = vunpack.c.h.s8.bf16 %v162_v48  ;;  %v513_v56 = vunpack.c.l.s8.bf16 %v169_v52  ;;  %v515_v57 = vunpack.c.l.s8.bf16 %v171_v53  ;;  %v523_v35 = vunpack.c.h.s8.bf16 %v171_v53  ;;  %v200_v48 = vld [vmem:[%s17137_s26 + $0x3e0] sm:$0xff]  ;;  %v209_v53 = vld [vmem:[%s17137_s26 + $0x428] sm:$0xff] }
 0x141   :  { %1225 = vmatpush1.bf16.msra.mxu0 %v432_v59  ;;  %1389 = vmatpush1.bf16.msra.mxu1 %v434_v62  ;;  %v170_v59 = vld [vmem:[%s17137_s26 + $0x2f0] sm:$0xff]  ;;  %v512_v62 = vunpack.c.l.s8.bf16 %v168_v58 }
 0x142   :  { %1226 = vmatprep.subr.bf16.mxu0 %v441_v63  ;;  %1390 = vmatprep.subr.bf16.mxu1 %v443_v0  ;;  %v514_v63 = vunpack.c.l.s8.bf16 %v170_v59  ;;  %v521_v0 = vunpack.c.h.s8.bf16 %v169_v52 }
 0x145   :  { %1227 = vmatpush1.bf16.msra.mxu0 %v440_v2  ;;  %1391 = vmatpush1.bf16.msra.mxu1 %v442_v17  ;;  %v179_v2 = vld [vmem:[%s17137_s26 + $0x338] sm:$0xff]  ;;  %v520_v17 = vunpack.c.h.s8.bf16 %v168_v58 }
 0x146   :  { %1228 = vmatprep.subr.bf16.mxu0 %v449_v4  ;;  %1392 = vmatprep.subr.bf16.mxu1 %v451_v5  ;;  %v522_v4 = vunpack.c.h.s8.bf16 %v170_v59  ;;  %v529_v5 = vunpack.c.l.s8.bf16 %v177_v1  ;;  %v531_v6 = vunpack.c.l.s8.bf16 %v179_v2  ;;  %v539_v12 = vunpack.c.h.s8.bf16 %v179_v2  ;;  %v208_v59 = vld [vmem:[%s17137_s26 + $0x420] sm:$0xff]  ;;  %v217_v2 = vld [vmem:[%s17137_s26 + $0x468] sm:$0xff] }
 0x149   :  { %1229 = vmatpush1.bf16.msra.mxu0 %v448_v8  ;;  %1393 = vmatpush1.bf16.msra.mxu1 %v450_v9  ;;  %v178_v8 = vld [vmem:[%s17137_s26 + $0x330] sm:$0xff]  ;;  %v528_v9 = vunpack.c.l.s8.bf16 %v176_v7 }
 0x14a   :  { %1230 = vmatprep.subr.bf16.mxu0 %v457_v10  ;;  %1394 = vmatprep.subr.bf16.mxu1 %v459_v11  ;;  %v530_v10 = vunpack.c.l.s8.bf16 %v178_v8  ;;  %v537_v11 = vunpack.c.h.s8.bf16 %v177_v1 }
 0x14d   :  { %1231 = vmatpush1.bf16.msra.mxu0 %v456_v14  ;;  %1395 = vmatpush1.bf16.msra.mxu1 %v458_v15  ;;  %v187_v14 = vld [vmem:[%s17137_s26 + $0x378] sm:$0xff]  ;;  %v536_v15 = vunpack.c.h.s8.bf16 %v176_v7 }
 0x14e   :  { %1241 = vmatprep.subr.bf16.mxu0 %v465_v18  ;;  %1405 = vmatprep.subr.bf16.mxu1 %v467_v19  ;;  %v538_v18 = vunpack.c.h.s8.bf16 %v178_v8  ;;  %v545_v19 = vunpack.c.l.s8.bf16 %v185_v13  ;;  %v547_v20 = vunpack.c.l.s8.bf16 %v187_v14  ;;  %v555_v26 = vunpack.c.h.s8.bf16 %v187_v14  ;;  %v216_v8 = vld [vmem:[%s17137_s26 + $0x460] sm:$0xff]  ;;  %v227_v14 = vld [vmem:[%s17137_s26 + $0x4b8] sm:$0xff] }
 0x150   :  { %1233 = vmatmul.mubr.bf16.vlgmr.msra.gmra.mrb[4].mxu0 %v11954_v42  ;;  %1397 = vmatmul.mubr.bf16.vlgmr.msra.gmra.mrb[4].mxu1 %v11954_v42  ;;  %v480_v42 = vunpack.c.l.s8.bf16 %v152_v33 }
 0x151   :  { %1242 = vmatpush1.bf16.msra.mxu0 %v464_v22  ;;  %1406 = vmatpush1.bf16.msra.mxu1 %v466_v43  ;;  %v186_v22 = vld [vmem:[%s17137_s26 + $0x370] sm:$0xff]  ;;  %v544_v43 = vunpack.c.l.s8.bf16 %v184_v21 }
 0x152   :  { %1243 = vmatprep.subr.bf16.mxu0 %v473_v24  ;;  %1407 = vmatprep.subr.bf16.mxu1 %v475_v25  ;;  %v546_v24 = vunpack.c.l.s8.bf16 %v186_v22  ;;  %v553_v25 = vunpack.c.h.s8.bf16 %v185_v13  ;;  %v225_v13 = vld [vmem:[%s17137_s26 + $0x4a8] sm:$0xff] }
 0x153   :  { %1273 = vmatprep.mubr.bf16.mxu0 %v11969_v49  ;;  %1437 = vmatprep.mubr.bf16.mxu1 %v11969_v49  ;;  %v490_v49 = vunpack.c.h.s8.bf16 %v154_v34  ;;  %v192_v34 = vld [vmem:[%s17137_s26 + $0x3a0] sm:$0xff] }
 0x155   :  { %1244 = vmatpush1.bf16.msra.mxu0 %v472_v28  ;;  %1408 = vmatpush1.bf16.msra.mxu1 %v474_v29  ;;  %v195_v28 = vld [vmem:[%s17137_s26 + $0x3b8] sm:$0xff]  ;;  %v552_v29 = vunpack.c.h.s8.bf16 %v184_v21  ;;  %v226_v21 = vld [vmem:[%s17137_s26 + $0x4b0] sm:$0xff] }
 0x156   :  { %1245 = vmatprep.subr.bf16.mxu0 %v481_v31  ;;  %1409 = vmatprep.subr.bf16.mxu1 %v483_v32  ;;  %v554_v31 = vunpack.c.h.s8.bf16 %v186_v22  ;;  %v561_v32 = vunpack.c.l.s8.bf16 %v193_v27  ;;  %v563_v33 = vunpack.c.l.s8.bf16 %v195_v28  ;;  %v571_v39 = vunpack.c.h.s8.bf16 %v195_v28 }
 0x159   :  { %1246 = vmatpush1.bf16.msra.mxu0 %v480_v42  ;;  %1410 = vmatpush1.bf16.msra.mxu1 %v482_v36  ;;  %v194_v42 = vld [vmem:[%s17137_s26 + $0x3b0] sm:$0xff]  ;;  %v560_v36 = vunpack.c.l.s8.bf16 %v192_v34 }
 0x15a   :  { %1247 = vmatprep.subr.bf16.mxu0 %v489_v37  ;;  %1411 = vmatprep.subr.bf16.mxu1 %v491_v38  ;;  %v562_v37 = vunpack.c.l.s8.bf16 %v194_v42  ;;  %v569_v38 = vunpack.c.h.s8.bf16 %v193_v27  ;;  %v235_v27 = vld [vmem:[%s17137_s26 + $0x4f8] sm:$0xff] }
 0x15d   :  { %1248 = vmatpush1.bf16.msra.mxu0 %v488_v41  ;;  %1412 = vmatpush1.bf16.msra.mxu1 %v490_v49  ;;  %v203_v41 = vld [vmem:[%s17137_s26 + $0x3f8] sm:$0xff]  ;;  %v568_v49 = vunpack.c.h.s8.bf16 %v192_v34  ;;  %v234_v34 = vld [vmem:[%s17137_s26 + $0x4f0] sm:$0xff] }
 0x15e   :  { %1249 = vmatprep.subr.bf16.mxu0 %v497_v45  ;;  %1413 = vmatprep.subr.bf16.mxu1 %v499_v46  ;;  %v570_v45 = vunpack.c.h.s8.bf16 %v194_v42  ;;  %v577_v46 = vunpack.c.l.s8.bf16 %v201_v40  ;;  %v579_v47 = vunpack.c.l.s8.bf16 %v203_v41  ;;  %v587_v52 = vunpack.c.h.s8.bf16 %v203_v41 }
 0x161   :  { %1250 = vmatpush1.bf16.msra.mxu0 %v496_v30  ;;  %1414 = vmatpush1.bf16.msra.mxu1 %v498_v50  ;;  %v202_v30 = vld [vmem:[%s17137_s26 + $0x3f0] sm:$0xff]  ;;  %v576_v50 = vunpack.c.l.s8.bf16 %v200_v48 }
 0x162   :  { %1251 = vmatprep.subr.bf16.mxu0 %v505_v61  ;;  %1415 = vmatprep.subr.bf16.mxu1 %v507_v51  ;;  %v578_v61 = vunpack.c.l.s8.bf16 %v202_v30  ;;  %v585_v51 = vunpack.c.h.s8.bf16 %v201_v40  ;;  %v243_v40 = vld [vmem:[%s17137_s26 + $0x538] sm:$0xff] }
 0x165   :  { %1252 = vmatpush1.bf16.msra.mxu0 %v504_v54  ;;  %1416 = vmatpush1.bf16.msra.mxu1 %v506_v55  ;;  %v211_v54 = vld [vmem:[%s17137_s26 + $0x438] sm:$0xff]  ;;  %v584_v55 = vunpack.c.h.s8.bf16 %v200_v48  ;;  %v242_v48 = vld [vmem:[%s17137_s26 + $0x530] sm:$0xff] }
 0x166   :  { %1253 = vmatprep.subr.bf16.mxu0 %v513_v56  ;;  %1417 = vmatprep.subr.bf16.mxu1 %v515_v57  ;;  %v586_v56 = vunpack.c.h.s8.bf16 %v202_v30  ;;  %v593_v57 = vunpack.c.l.s8.bf16 %v209_v53  ;;  %v595_v58 = vunpack.c.l.s8.bf16 %v211_v54  ;;  %v603_v1 = vunpack.c.h.s8.bf16 %v211_v54 }
 0x169   :  { %1254 = vmatpush1.bf16.msra.mxu0 %v512_v62  ;;  %1418 = vmatpush1.bf16.msra.mxu1 %v514_v63  ;;  %v210_v62 = vld [vmem:[%s17137_s26 + $0x430] sm:$0xff]  ;;  %v592_v63 = vunpack.c.l.s8.bf16 %v208_v59 }
 0x16a   :  { %1255 = vmatprep.subr.bf16.mxu0 %v521_v0  ;;  %1419 = vmatprep.subr.bf16.mxu1 %v523_v35  ;;  %v594_v0 = vunpack.c.l.s8.bf16 %v210_v62  ;;  %v601_v35 = vunpack.c.h.s8.bf16 %v209_v53  ;;  %v251_v53 = vld [vmem:[%s17137_s26 + $0x578] sm:$0xff] }
 0x16d   :  { %1256 = vmatpush1.bf16.msra.mxu0 %v520_v17  ;;  %1420 = vmatpush1.bf16.msra.mxu1 %v522_v4  ;;  %v219_v17 = vld [vmem:[%s17137_s26 + $0x478] sm:$0xff]  ;;  %v600_v4 = vunpack.c.h.s8.bf16 %v208_v59  ;;  %v250_v59 = vld [vmem:[%s17137_s26 + $0x570] sm:$0xff] }
 0x16e   :  { %1257 = vmatprep.subr.bf16.mxu0 %v529_v5  ;;  %1421 = vmatprep.subr.bf16.mxu1 %v531_v6  ;;  %v602_v5 = vunpack.c.h.s8.bf16 %v210_v62  ;;  %v609_v6 = vunpack.c.l.s8.bf16 %v217_v2  ;;  %v611_v7 = vunpack.c.l.s8.bf16 %v219_v17 }
 0x171   :  { %1258 = vmatpush1.bf16.msra.mxu0 %v528_v9  ;;  %1422 = vmatpush1.bf16.msra.mxu1 %v530_v10  ;;  %v218_v9 = vld [vmem:[%s17137_s26 + $0x470] sm:$0xff] }
 0x172   :  { %1259 = vmatprep.subr.bf16.mxu0 %v537_v11  ;;  %1423 = vmatprep.subr.bf16.mxu1 %v539_v12  ;;  %v610_v10 = vunpack.c.l.s8.bf16 %v218_v9  ;;  %v617_v11 = vunpack.c.h.s8.bf16 %v217_v2  ;;  %v619_v12 = vunpack.c.h.s8.bf16 %v219_v17  ;;  %v259_v2 = vld [vmem:[%s17137_s26 + $0x5b8] sm:$0xff] }
 0x175   :  { %1260 = vmatpush1.bf16.msra.mxu0 %v536_v15  ;;  %1424 = vmatpush1.bf16.msra.mxu1 %v538_v18  ;;  %v616_v15 = vunpack.c.h.s8.bf16 %v216_v8  ;;  %v625_v18 = vunpack.c.l.s8.bf16 %v225_v13 }
 0x176   :  { %1261 = vmatprep.subr.bf16.mxu0 %v545_v19  ;;  %1425 = vmatprep.subr.bf16.mxu1 %v547_v20  ;;  %v627_v19 = vunpack.c.l.s8.bf16 %v227_v14  ;;  %v224_v20 = vld [vmem:[%s17137_s26 + $0x4a0] sm:$0xff] }
 0x177   :  { %v624_v22 = vunpack.c.l.s8.bf16 %v224_v20  ;;  %v632_v28 = vunpack.c.h.s8.bf16 %v224_v20  ;;  %v266_v20 = vld [vmem:[%s17137_s26 + $0x5f0] sm:$0xff] }
 0x179   :  { %1262 = vmatpush1.bf16.msra.mxu0 %v544_v43  ;;  %1426 = vmatpush1.bf16.msra.mxu1 %v546_v24  ;;  %v626_v43 = vunpack.c.l.s8.bf16 %v226_v21  ;;  %v633_v24 = vunpack.c.h.s8.bf16 %v225_v13  ;;  %v267_v13 = vld [vmem:[%s17137_s26 + $0x5f8] sm:$0xff] }
 0x17a   :  { %1263 = vmatprep.subr.bf16.mxu0 %v553_v25  ;;  %1427 = vmatprep.subr.bf16.mxu1 %v555_v26  ;;  %v635_v25 = vunpack.c.h.s8.bf16 %v227_v14  ;;  %v233_v26 = vld [vmem:[%s17137_s26 + $0x4e8] sm:$0xff] }
 0x17d   :  { %1264 = vmatpush1.bf16.msra.mxu0 %v552_v29  ;;  %1428 = vmatpush1.bf16.msra.mxu1 %v554_v31  ;;  %v634_v29 = vunpack.c.h.s8.bf16 %v226_v21  ;;  %v641_v31 = vunpack.c.l.s8.bf16 %v233_v26 }
 0x17e   :  { %1265 = vmatprep.subr.bf16.mxu0 %v561_v32  ;;  %1429 = vmatprep.subr.bf16.mxu1 %v563_v33  ;;  %v643_v32 = vunpack.c.l.s8.bf16 %v235_v27  ;;  %v232_v33 = vld [vmem:[%s17137_s26 + $0x4e0] sm:$0xff] }
 0x17f   :  { %v640_v42 = vunpack.c.l.s8.bf16 %v232_v33  ;;  %v648_v41 = vunpack.c.h.s8.bf16 %v232_v33  ;;  %v274_v33 = vld [vmem:[%s17137_s26 + $0x630] sm:$0xff] }
 0x181   :  { %1266 = vmatpush1.bf16.msra.mxu0 %v560_v36  ;;  %1430 = vmatpush1.bf16.msra.mxu1 %v562_v37  ;;  %v642_v36 = vunpack.c.l.s8.bf16 %v234_v34  ;;  %v649_v37 = vunpack.c.h.s8.bf16 %v233_v26  ;;  %v275_v26 = vld [vmem:[%s17137_s26 + $0x638] sm:$0xff] }
 0x182   :  { %1267 = vmatprep.subr.bf16.mxu0 %v569_v38  ;;  %1431 = vmatprep.subr.bf16.mxu1 %v571_v39  ;;  %v651_v38 = vunpack.c.h.s8.bf16 %v235_v27  ;;  %v241_v39 = vld [vmem:[%s17137_s26 + $0x528] sm:$0xff] }
 0x185   :  { %1268 = vmatpush1.bf16.msra.mxu0 %v568_v49  ;;  %1432 = vmatpush1.bf16.msra.mxu1 %v570_v45  ;;  %v650_v49 = vunpack.c.h.s8.bf16 %v234_v34  ;;  %v657_v45 = vunpack.c.l.s8.bf16 %v241_v39 }
 0x186   :  { %1269 = vmatprep.subr.bf16.mxu0 %v577_v46  ;;  %1433 = vmatprep.subr.bf16.mxu1 %v579_v47  ;;  %v659_v46 = vunpack.c.l.s8.bf16 %v243_v40  ;;  %v240_v47 = vld [vmem:[%s17137_s26 + $0x520] sm:$0xff] }
 0x187   :  { %v656_v30 = vunpack.c.l.s8.bf16 %v240_v47  ;;  %v664_v54 = vunpack.c.h.s8.bf16 %v240_v47  ;;  %v282_v47 = vld [vmem:[%s17137_s26 + $0x670] sm:$0xff] }
 0x189   :  { %1270 = vmatpush1.bf16.msra.mxu0 %v576_v50  ;;  %1434 = vmatpush1.bf16.msra.mxu1 %v578_v61  ;;  %v658_v50 = vunpack.c.l.s8.bf16 %v242_v48  ;;  %v665_v61 = vunpack.c.h.s8.bf16 %v241_v39  ;;  %v283_v39 = vld [vmem:[%s17137_s26 + $0x678] sm:$0xff] }
 0x18a   :  { %1271 = vmatprep.subr.bf16.mxu0 %v585_v51  ;;  %1435 = vmatprep.subr.bf16.mxu1 %v587_v52  ;;  %v667_v51 = vunpack.c.h.s8.bf16 %v243_v40  ;;  %v249_v52 = vld [vmem:[%s17137_s26 + $0x568] sm:$0xff] }
 0x18d   :  { %1272 = vmatpush1.bf16.msra.mxu0 %v584_v55  ;;  %1436 = vmatpush1.bf16.msra.mxu1 %v586_v56  ;;  %v666_v55 = vunpack.c.h.s8.bf16 %v242_v48  ;;  %v673_v56 = vunpack.c.l.s8.bf16 %v249_v52  ;;  %v738_v48 = vunpack.c.l.s8.bf16 %v282_v47 }
 0x18e   :  { %1282 = vmatprep.subr.bf16.mxu0 %v593_v57  ;;  %1446 = vmatprep.subr.bf16.mxu1 %v595_v58  ;;  %v675_v57 = vunpack.c.l.s8.bf16 %v251_v53  ;;  %v248_v58 = vld [vmem:[%s17137_s26 + $0x560] sm:$0xff] }
 0x18f   :  { %v672_v62 = vunpack.c.l.s8.bf16 %v248_v58  ;;  %v680_v17 = vunpack.c.h.s8.bf16 %v248_v58 }
 0x190   :  { %1274 = vmatmul.mubr.bf16.vlgmr.msra.gmra.mrb[4].mxu0 %v12067_v16  ;;  %1438 = vmatmul.mubr.bf16.vlgmr.msra.gmra.mrb[4].mxu1 %v12067_v16  ;;  %v608_v16 = vunpack.c.l.s8.bf16 %v216_v8  ;;  %v258_v8 = vld [vmem:[%s17137_s26 + $0x5b0] sm:$0xff] }
 0x191   :  { %1283 = vmatpush1.bf16.msra.mxu0 %v592_v63  ;;  %1447 = vmatpush1.bf16.msra.mxu1 %v594_v0  ;;  %v674_v63 = vunpack.c.l.s8.bf16 %v250_v59  ;;  %v681_v0 = vunpack.c.h.s8.bf16 %v249_v52 }
 0x192   :  { %1284 = vmatprep.subr.bf16.mxu0 %v601_v35  ;;  %1448 = vmatprep.subr.bf16.mxu1 %v603_v1  ;;  %v683_v35 = vunpack.c.h.s8.bf16 %v251_v53  ;;  %v257_v1 = vld [vmem:[%s17137_s26 + $0x5a8] sm:$0xff] }
 0x193   :  { %1314 = vmatprep.mubr.bf16.mxu0 %v12082_v23  ;;  %1478 = vmatprep.mubr.bf16.mxu1 %v12082_v23  ;;  %v618_v23 = vunpack.c.h.s8.bf16 %v218_v9 }
 0x195   :  { %1285 = vmatpush1.bf16.msra.mxu0 %v600_v4  ;;  %1449 = vmatpush1.bf16.msra.mxu1 %v602_v5  ;;  %v682_v4 = vunpack.c.h.s8.bf16 %v250_v59  ;;  %v689_v5 = vunpack.c.l.s8.bf16 %v257_v1 }
 0x196   :  { %1286 = vmatprep.subr.bf16.mxu0 %v609_v6  ;;  %1450 = vmatprep.subr.bf16.mxu1 %v611_v7  ;;  %v691_v6 = vunpack.c.l.s8.bf16 %v259_v2  ;;  %v256_v7 = vld [vmem:[%s17137_s26 + $0x5a0] sm:$0xff] }
 0x197   :  { %v688_v9 = vunpack.c.l.s8.bf16 %v256_v7  ;;  %v696_v14 = vunpack.c.h.s8.bf16 %v256_v7 }
 0x199   :  { %1287 = vmatpush1.bf16.msra.mxu0 %v608_v16  ;;  %1451 = vmatpush1.bf16.msra.mxu1 %v610_v10  ;;  %v690_v16 = vunpack.c.l.s8.bf16 %v258_v8  ;;  %v697_v10 = vunpack.c.h.s8.bf16 %v257_v1 }
 0x19a   :  { %1288 = vmatprep.subr.bf16.mxu0 %v617_v11  ;;  %1452 = vmatprep.subr.bf16.mxu1 %v619_v12  ;;  %v699_v11 = vunpack.c.h.s8.bf16 %v259_v2  ;;  %v265_v12 = vld [vmem:[%s17137_s26 + $0x5e8] sm:$0xff] }
 0x19d   :  { %1289 = vmatpush1.bf16.msra.mxu0 %v616_v15  ;;  %1453 = vmatpush1.bf16.msra.mxu1 %v618_v23  ;;  %v698_v15 = vunpack.c.h.s8.bf16 %v258_v8  ;;  %v705_v23 = vunpack.c.l.s8.bf16 %v265_v12 }
 0x19e   :  { %1290 = vmatprep.subr.bf16.mxu0 %v625_v18  ;;  %1454 = vmatprep.subr.bf16.mxu1 %v627_v19  ;;  %v707_v18 = vunpack.c.l.s8.bf16 %v267_v13  ;;  %v264_v19 = vld [vmem:[%s17137_s26 + $0x5e0] sm:$0xff] }
 0x19f   :  { %v704_v21 = vunpack.c.l.s8.bf16 %v264_v19  ;;  %v712_v27 = vunpack.c.h.s8.bf16 %v264_v19  ;;  %v307_v19 = vld [vmem:[%s17137_s26 + $0x738] sm:$0xff] }
 0x1a1   :  { %1291 = vmatpush1.bf16.msra.mxu0 %v624_v22  ;;  %1455 = vmatpush1.bf16.msra.mxu1 %v626_v43  ;;  %v706_v22 = vunpack.c.l.s8.bf16 %v266_v20  ;;  %v713_v43 = vunpack.c.h.s8.bf16 %v265_v12 }
 0x1a2   :  { %1292 = vmatprep.subr.bf16.mxu0 %v633_v24  ;;  %1456 = vmatprep.subr.bf16.mxu1 %v635_v25  ;;  %v715_v24 = vunpack.c.h.s8.bf16 %v267_v13  ;;  %v273_v25 = vld [vmem:[%s17137_s26 + $0x628] sm:$0xff] }
 0x1a5   :  { %1293 = vmatpush1.bf16.msra.mxu0 %v632_v28  ;;  %1457 = vmatpush1.bf16.msra.mxu1 %v634_v29  ;;  %v714_v28 = vunpack.c.h.s8.bf16 %v266_v20  ;;  %v721_v29 = vunpack.c.l.s8.bf16 %v273_v25 }
 0x1a6   :  { %1294 = vmatprep.subr.bf16.mxu0 %v641_v31  ;;  %1458 = vmatprep.subr.bf16.mxu1 %v643_v32  ;;  %v723_v31 = vunpack.c.l.s8.bf16 %v275_v26  ;;  %v272_v32 = vld [vmem:[%s17137_s26 + $0x620] sm:$0xff] }
 0x1a7   :  { %v720_v34 = vunpack.c.l.s8.bf16 %v272_v32  ;;  %v728_v40 = vunpack.c.h.s8.bf16 %v272_v32  ;;  %v315_v32 = vld [vmem:[%s17137_s26 + $0x778] sm:$0xff] }
 0x1a9   :  { %1295 = vmatpush1.bf16.msra.mxu0 %v640_v42  ;;  %1459 = vmatpush1.bf16.msra.mxu1 %v642_v36  ;;  %v722_v42 = vunpack.c.l.s8.bf16 %v274_v33  ;;  %v729_v36 = vunpack.c.h.s8.bf16 %v273_v25  ;;  %v306_v25 = vld [vmem:[%s17137_s26 + $0x730] sm:$0xff] }
 0x1aa   :  { %1296 = vmatprep.subr.bf16.mxu0 %v649_v37  ;;  %1460 = vmatprep.subr.bf16.mxu1 %v651_v38  ;;  %v731_v37 = vunpack.c.h.s8.bf16 %v275_v26  ;;  %v281_v38 = vld [vmem:[%s17137_s26 + $0x668] sm:$0xff] }
 0x1ad   :  { %1297 = vmatpush1.bf16.msra.mxu0 %v648_v41  ;;  %1461 = vmatpush1.bf16.msra.mxu1 %v650_v49  ;;  %v730_v41 = vunpack.c.h.s8.bf16 %v274_v33  ;;  %v737_v49 = vunpack.c.l.s8.bf16 %v281_v38 }
 0x1ae   :  { %1298 = vmatprep.subr.bf16.mxu0 %v657_v45  ;;  %1462 = vmatprep.subr.bf16.mxu1 %v659_v46  ;;  %v739_v45 = vunpack.c.l.s8.bf16 %v283_v39  ;;  %v280_v46 = vld [vmem:[%s17137_s26 + $0x660] sm:$0xff] }
 0x1af   :  { %v744_v52 = vunpack.c.h.s8.bf16 %v280_v46 }
 0x1b1   :  { %1299 = vmatpush1.bf16.msra.mxu0 %v656_v30  ;;  %1463 = vmatpush1.bf16.msra.mxu1 %v658_v50  ;;  %v745_v30 = vunpack.c.h.s8.bf16 %v281_v38  ;;  %v747_v50 = vunpack.c.h.s8.bf16 %v283_v39  ;;  %v314_v38 = vld [vmem:[%s17137_s26 + $0x770] sm:$0xff] }
 0x1b2   :  { %1300 = vmatprep.subr.bf16.mxu0 %v665_v61  ;;  %1464 = vmatprep.subr.bf16.mxu1 %v667_v51  ;;  %v289_v61 = vld [vmem:[%s17137_s26 + $0x6a8] sm:$0xff]  ;;  %v291_v51 = vld [vmem:[%s17137_s26 + $0x6b8] sm:$0xff] }
 0x1b3   :  { %v753_v53 = vunpack.c.l.s8.bf16 %v289_v61  ;;  %v761_v59 = vunpack.c.h.s8.bf16 %v289_v61  ;;  %v322_v61 = vld [vmem:[%s17137_s26 + $0x7b0] sm:$0xff] }
 0x1b5   :  { %1301 = vmatpush1.bf16.msra.mxu0 %v664_v54  ;;  %1465 = vmatpush1.bf16.msra.mxu1 %v666_v55  ;;  %v755_v54 = vunpack.c.l.s8.bf16 %v291_v51  ;;  %v288_v55 = vld [vmem:[%s17137_s26 + $0x6a0] sm:$0xff] }
 0x1b6   :  { %1302 = vmatprep.subr.bf16.mxu0 %v673_v56  ;;  %1466 = vmatprep.subr.bf16.mxu1 %v675_v57  ;;  %v290_v56 = vld [vmem:[%s17137_s26 + $0x6b0] sm:$0xff]  ;;  %v752_v57 = vunpack.c.l.s8.bf16 %v288_v55 }
 0x1b7   :  { %v754_v58 = vunpack.c.l.s8.bf16 %v290_v56  ;;  %v762_v1 = vunpack.c.h.s8.bf16 %v290_v56 }
 0x1b9   :  { %1303 = vmatpush1.bf16.msra.mxu0 %v672_v62  ;;  %1467 = vmatpush1.bf16.msra.mxu1 %v674_v63  ;;  %v763_v62 = vunpack.c.h.s8.bf16 %v291_v51  ;;  %v297_v63 = vld [vmem:[%s17137_s26 + $0x6e8] sm:$0xff] }
 0x1ba   :  { %1304 = vmatprep.subr.bf16.mxu0 %v681_v0  ;;  %1468 = vmatprep.subr.bf16.mxu1 %v683_v35  ;;  %v299_v0 = vld [vmem:[%s17137_s26 + $0x6f8] sm:$0xff]  ;;  %v760_v35 = vunpack.c.h.s8.bf16 %v288_v55  ;;  %v769_v2 = vunpack.c.l.s8.bf16 %v297_v63 }
 0x1bb   :  { %v331_v55 = vld [vmem:[%s17137_s26 + $0x7f8] sm:$0xff] }
 0x1bd   :  { %1305 = vmatpush1.bf16.msra.mxu0 %v680_v17  ;;  %1469 = vmatpush1.bf16.msra.mxu1 %v682_v4  ;;  %v771_v17 = vunpack.c.l.s8.bf16 %v299_v0  ;;  %v296_v4 = vld [vmem:[%s17137_s26 + $0x6e0] sm:$0xff] }
 0x1be   :  { %1306 = vmatprep.subr.bf16.mxu0 %v689_v5  ;;  %1470 = vmatprep.subr.bf16.mxu1 %v691_v6  ;;  %v298_v5 = vld [vmem:[%s17137_s26 + $0x6f0] sm:$0xff]  ;;  %v776_v20 = vunpack.c.h.s8.bf16 %v296_v4 }
 0x1bf   :  { %v770_v12 = vunpack.c.l.s8.bf16 %v298_v5 }
 0x1c1   :  { %1307 = vmatpush1.bf16.msra.mxu0 %v688_v9  ;;  %1471 = vmatpush1.bf16.msra.mxu1 %v690_v16 }
 0x1c2   :  { %1308 = vmatprep.subr.bf16.mxu0 %v697_v10  ;;  %1472 = vmatprep.subr.bf16.mxu1 %v699_v11  ;;  %v768_v11 = vunpack.c.l.s8.bf16 %v296_v4  ;;  %v1581_v4 = vld [vmem:[%s17139_s25 + $0x18] sm:$0xff] }
 0x1c5   :  { %1309 = vmatpush1.bf16.msra.mxu0 %v696_v14  ;;  %1473 = vmatpush1.bf16.msra.mxu1 %v698_v15  ;;  %v777_v15 = vunpack.c.h.s8.bf16 %v297_v63  ;;  %v330_v63 = vld [vmem:[%s17137_s26 + $0x7f0] sm:$0xff] }
 0x1c6   :  { %1310 = vmatprep.subr.bf16.mxu0 %v705_v23  ;;  %1474 = vmatprep.subr.bf16.mxu1 %v707_v18  ;;  %v779_v23 = vunpack.c.h.s8.bf16 %v299_v0  ;;  %v305_v18 = vld [vmem:[%s17137_s26 + $0x728] sm:$0xff] }
 0x1c9   :  { %1311 = vmatpush1.bf16.msra.mxu0 %v704_v21  ;;  %1475 = vmatpush1.bf16.msra.mxu1 %v706_v22  ;;  %v778_v21 = vunpack.c.h.s8.bf16 %v298_v5  ;;  %v785_v22 = vunpack.c.l.s8.bf16 %v305_v18 }
 0x1ca   :  { %1312 = vmatprep.subr.bf16.mxu0 %v713_v43  ;;  %1476 = vmatprep.subr.bf16.mxu1 %v715_v24  ;;  %v787_v43 = vunpack.c.l.s8.bf16 %v307_v19  ;;  %v304_v24 = vld [vmem:[%s17137_s26 + $0x720] sm:$0xff] }
 0x1cb   :  { %v784_v26 = vunpack.c.l.s8.bf16 %v304_v24  ;;  %v792_v33 = vunpack.c.h.s8.bf16 %v304_v24 }
 0x1cd   :  { %1313 = vmatpush1.bf16.msra.mxu0 %v712_v27  ;;  %1477 = vmatpush1.bf16.msra.mxu1 %v714_v28  ;;  %v786_v27 = vunpack.c.l.s8.bf16 %v306_v25  ;;  %v793_v28 = vunpack.c.h.s8.bf16 %v305_v18 }
 0x1ce   :  { %1323 = vmatprep.subr.bf16.mxu0 %v721_v29  ;;  %1487 = vmatprep.subr.bf16.mxu1 %v723_v31  ;;  %v795_v29 = vunpack.c.h.s8.bf16 %v307_v19  ;;  %v313_v31 = vld [vmem:[%s17137_s26 + $0x768] sm:$0xff]  ;;  %v1717_v19 = vunpack.c.h.s8.bf16 %v1581_v4 }
 0x1d0   :  { %1315 = vmatmul.mubr.bf16.vlgmr.msra.gmra.mrb[4].mxu0 %v12180_v60  ;;  %1479 = vmatmul.mubr.bf16.vlgmr.msra.gmra.mrb[4].mxu1 %v12180_v60  ;;  %v736_v60 = vunpack.c.l.s8.bf16 %v280_v46  ;;  %v323_v46 = vld [vmem:[%s17137_s26 + $0x7b8] sm:$0xff] }
 0x1d1   :  { %1324 = vmatpush1.bf16.msra.mxu0 %v720_v34  ;;  %1488 = vmatpush1.bf16.msra.mxu1 %v722_v42  ;;  %v794_v34 = vunpack.c.h.s8.bf16 %v306_v25  ;;  %v801_v42 = vunpack.c.l.s8.bf16 %v313_v31 }
 0x1d2   :  { %1325 = vmatprep.subr.bf16.mxu0 %v729_v36  ;;  %1489 = vmatprep.subr.bf16.mxu1 %v731_v37  ;;  %v803_v36 = vunpack.c.l.s8.bf16 %v315_v32  ;;  %v312_v37 = vld [vmem:[%s17137_s26 + $0x760] sm:$0xff] }
 0x1d3   :  { %1355 = vmatprep.mubr.bf16.mxu0 %v12195_v3  ;;  %1519 = vmatprep.mubr.bf16.mxu1 %v12195_v3  ;;  %v746_v3 = vunpack.c.h.s8.bf16 %v282_v47  ;;  %v800_v39 = vunpack.c.l.s8.bf16 %v312_v37  ;;  %v808_v47 = vunpack.c.h.s8.bf16 %v312_v37 }
 0x1d5   :  { %1326 = vmatpush1.bf16.msra.mxu0 %v728_v40  ;;  %1490 = vmatpush1.bf16.msra.mxu1 %v730_v41  ;;  %v802_v40 = vunpack.c.l.s8.bf16 %v314_v38  ;;  %v809_v41 = vunpack.c.h.s8.bf16 %v313_v31 }
 0x1d6   :  { %1327 = vmatprep.subr.bf16.mxu0 %v737_v49  ;;  %1491 = vmatprep.subr.bf16.mxu1 %v739_v45  ;;  %v811_v49 = vunpack.c.h.s8.bf16 %v315_v32  ;;  %v321_v45 = vld [vmem:[%s17137_s26 + $0x7a8] sm:$0xff] }
 0x1d9   :  { %1328 = vmatpush1.bf16.msra.mxu0 %v736_v60  ;;  %1492 = vmatpush1.bf16.msra.mxu1 %v738_v48  ;;  %v810_v60 = vunpack.c.h.s8.bf16 %v314_v38  ;;  %v817_v48 = vunpack.c.l.s8.bf16 %v321_v45 }
 0x1da   :  { %1329 = vmatprep.subr.bf16.mxu0 %v745_v30  ;;  %1493 = vmatprep.subr.bf16.mxu1 %v747_v50  ;;  %v819_v30 = vunpack.c.l.s8.bf16 %v323_v46  ;;  %v320_v50 = vld [vmem:[%s17137_s26 + $0x7a0] sm:$0xff] }
 0x1db   :  { %v816_v51 = vunpack.c.l.s8.bf16 %v320_v50  ;;  %v824_v56 = vunpack.c.h.s8.bf16 %v320_v50 }
 0x1dd   :  { %1330 = vmatpush1.bf16.msra.mxu0 %v744_v52  ;;  %1494 = vmatpush1.bf16.msra.mxu1 %v746_v3  ;;  %v818_v52 = vunpack.c.l.s8.bf16 %v322_v61  ;;  %v825_v3 = vunpack.c.h.s8.bf16 %v321_v45 }
 0x1de   :  { %1331 = vmatprep.subr.bf16.mxu0 %v753_v53  ;;  %1495 = vmatprep.subr.bf16.mxu1 %v755_v54  ;;  %v827_v53 = vunpack.c.h.s8.bf16 %v323_v46  ;;  %v329_v54 = vld [vmem:[%s17137_s26 + $0x7e8] sm:$0xff] }
 0x1e1   :  { %1332 = vmatpush1.bf16.msra.mxu0 %v752_v57  ;;  %1496 = vmatpush1.bf16.msra.mxu1 %v754_v58  ;;  %v826_v57 = vunpack.c.h.s8.bf16 %v322_v61  ;;  %v833_v58 = vunpack.c.l.s8.bf16 %v329_v54 }
 0x1e2   :  { %1333 = vmatprep.subr.bf16.mxu0 %v761_v59  ;;  %1497 = vmatprep.subr.bf16.mxu1 %v763_v62  ;;  %v835_v59 = vunpack.c.l.s8.bf16 %v331_v55  ;;  %v328_v62 = vld [vmem:[%s17137_s26 + $0x7e0] sm:$0xff] }
 0x1e3   :  { %v12635_v6 = vpop.f32.mrb[0].mxu0  ;;  %v12637_v7 = vpop.f32.mrb[0].mxu1  ;;  %v832_v0 = vunpack.c.l.s8.bf16 %v328_v62  ;;  %v840_v5 = vunpack.c.h.s8.bf16 %v328_v62 }
 0x1e4   :  { %v12639_v8 = vpop.f32.mrb[1].mxu0  ;;  %v12641_v9 = vpop.f32.mrb[1].mxu1 }
 0x1e5   :  { %v1033_v16 = vpop.f32.mrb[2].mxu0  ;;  %v1197_v10 = vpop.f32.mrb[2].mxu1  ;;  %1334 = vmatpush1.bf16.msra.mxu0 %v760_v35  ;;  %1498 = vmatpush1.bf16.msra.mxu1 %v762_v1  ;;  %v834_v35 = vunpack.c.l.s8.bf16 %v330_v63  ;;  %v841_v1 = vunpack.c.h.s8.bf16 %v329_v54 }
 0x1e6   :  { %v1034_v13 = vpop.f32.mrb[3].mxu0  ;;  %v1198_v14 = vpop.f32.mrb[3].mxu1  ;;  %1335 = vmatprep.subr.bf16.mxu0 %v769_v2  ;;  %1499 = vmatprep.subr.bf16.mxu1 %v771_v17  ;;  %v843_v2 = vunpack.c.h.s8.bf16 %v331_v55  ;;  %v1579_v17 = vld [vmem:[%s17139_s25 + $0x8] sm:$0xff]  ;;  %v842_v16 = vunpack.c.h.s8.bf16 %v330_v63 }
 0x1e7   :  { %v1707_v10 = vunpack.c.l.s8.bf16 %v1579_v17  ;;  %v1580_v13 = vld [vmem:[%s17139_s25 + $0x10] sm:$0xff]  ;;  %v12706_v14 = vld [vmem:[%s17138_s1 + $0x20] sm:$0xff]  ;;  %v1715_v18 = vunpack.c.h.s8.bf16 %v1579_v17 }
 0x1e8   :  { %v1716_v24 = vunpack.c.h.s8.bf16 %v1580_v13 }
 0x1e9   :  { %1336 = vmatpush1.bf16.msra.mxu0 %v768_v11  ;;  %1500 = vmatpush1.bf16.msra.mxu1 %v770_v12  ;;  %v1709_v11 = vunpack.c.l.s8.bf16 %v1581_v4  ;;  %v1578_v12 = vld [vmem:[%s17139_s25] sm:$0xff] }
 0x1ea   :  { %1337 = vmatprep.subr.bf16.mxu0 %v777_v15  ;;  %1501 = vmatprep.subr.bf16.mxu1 %v779_v23  ;;  %v1706_v15 = vunpack.c.l.s8.bf16 %v1578_v12  ;;  %v1708_v23 = vunpack.c.l.s8.bf16 %v1580_v13 }
 0x1ed   :  { %1338 = vmatpush1.bf16.msra.mxu0 %v776_v20  ;;  %1502 = vmatpush1.bf16.msra.mxu1 %v778_v21  ;;  %v1587_v20 = vld [vmem:[%s17139_s25 + $0x48] sm:$0xff]  ;;  %v1589_v21 = vld [vmem:[%s17139_s25 + $0x58] sm:$0xff] }
 0x1ee   :  { %1339 = vmatprep.subr.bf16.mxu0 %v785_v22  ;;  %1503 = vmatprep.subr.bf16.mxu1 %v787_v43  ;;  %v12716_v22 = vcombine.high %v12706_v14, %v12706_v14  ;;  %v1714_v43 = vunpack.c.h.s8.bf16 %v1578_v12  ;;  %v1723_v25 = vunpack.c.l.s8.bf16 %v1587_v20  ;;  %v1731_v31 = vunpack.c.h.s8.bf16 %v1587_v20 }
 0x1ef   :  { %v1733_v32 = vunpack.c.h.s8.bf16 %v1589_v21 }
 0x1f1   :  { %1340 = vmatpush1.bf16.msra.mxu0 %v784_v26  ;;  %1504 = vmatpush1.bf16.msra.mxu1 %v786_v27  ;;  %v1725_v26 = vunpack.c.l.s8.bf16 %v1589_v21  ;;  %v1586_v27 = vld [vmem:[%s17139_s25 + $0x40] sm:$0xff] }
 0x1f2   :  { %1341 = vmatprep.subr.bf16.mxu0 %v793_v28  ;;  %1505 = vmatprep.subr.bf16.mxu1 %v795_v29  ;;  %v1588_v28 = vld [vmem:[%s17139_s25 + $0x50] sm:$0xff] }
 0x1f3   :  { %v1724_v29 = vunpack.c.l.s8.bf16 %v1588_v28 }
 0x1f5   :  { %1342 = vmatpush1.bf16.msra.mxu0 %v792_v33  ;;  %1506 = vmatpush1.bf16.msra.mxu1 %v794_v34  ;;  %v1595_v33 = vld [vmem:[%s17139_s25 + $0x88] sm:$0xff]  ;;  %v1597_v34 = vld [vmem:[%s17139_s25 + $0x98] sm:$0xff] }
 0x1f6   :  { %1343 = vmatprep.subr.bf16.mxu0 %v801_v42  ;;  %1507 = vmatprep.subr.bf16.mxu1 %v803_v36  ;;  %v1730_v42 = vunpack.c.h.s8.bf16 %v1586_v27  ;;  %v1732_v36 = vunpack.c.h.s8.bf16 %v1588_v28  ;;  %v1739_v37 = vunpack.c.l.s8.bf16 %v1595_v33  ;;  %v1741_v38 = vunpack.c.l.s8.bf16 %v1597_v34 }
 0x1f7   :  { %v1747_v45 = vunpack.c.h.s8.bf16 %v1595_v33  ;;  %v1749_v46 = vunpack.c.h.s8.bf16 %v1597_v34 }
 0x1f9   :  { %1344 = vmatpush1.bf16.msra.mxu0 %v800_v39  ;;  %1508 = vmatpush1.bf16.msra.mxu1 %v802_v40  ;;  %v1594_v39 = vld [vmem:[%s17139_s25 + $0x80] sm:$0xff]  ;;  %v1596_v40 = vld [vmem:[%s17139_s25 + $0x90] sm:$0xff] }
 0x1fa   :  { %1345 = vmatprep.subr.bf16.mxu0 %v809_v41  ;;  %1509 = vmatprep.subr.bf16.mxu1 %v811_v49  ;;  %v1738_v41 = vunpack.c.l.s8.bf16 %v1594_v39  ;;  %v1740_v49 = vunpack.c.l.s8.bf16 %v1596_v40 }
 0x1fd   :  { %1346 = vmatpush1.bf16.msra.mxu0 %v808_v47  ;;  %1510 = vmatpush1.bf16.msra.mxu1 %v810_v60  ;;  %v1603_v47 = vld [vmem:[%s17139_s25 + $0xc8] sm:$0xff]  ;;  %v1605_v60 = vld [vmem:[%s17139_s25 + $0xd8] sm:$0xff] }
 0x1fe   :  { %1347 = vmatprep.subr.bf16.mxu0 %v817_v48  ;;  %1511 = vmatprep.subr.bf16.mxu1 %v819_v30  ;;  %v1746_v48 = vunpack.c.h.s8.bf16 %v1594_v39  ;;  %v1748_v30 = vunpack.c.h.s8.bf16 %v1596_v40  ;;  %v1755_v50 = vunpack.c.l.s8.bf16 %v1603_v47  ;;  %v1757_v61 = vunpack.c.l.s8.bf16 %v1605_v60 }
 0x1ff   :  { %v1763_v54 = vunpack.c.h.s8.bf16 %v1603_v47  ;;  %v1765_v55 = vunpack.c.h.s8.bf16 %v1605_v60 }
 0x201   :  { %1348 = vmatpush1.bf16.msra.mxu0 %v816_v51  ;;  %1512 = vmatpush1.bf16.msra.mxu1 %v818_v52  ;;  %v1602_v51 = vld [vmem:[%s17139_s25 + $0xc0] sm:$0xff]  ;;  %v1604_v52 = vld [vmem:[%s17139_s25 + $0xd0] sm:$0xff] }
 0x202   :  { %1349 = vmatprep.subr.bf16.mxu0 %v825_v3  ;;  %1513 = vmatprep.subr.bf16.mxu1 %v827_v53  ;;  %v1754_v3 = vunpack.c.l.s8.bf16 %v1602_v51  ;;  %v1756_v53 = vunpack.c.l.s8.bf16 %v1604_v52 }
 0x205   :  { %1350 = vmatpush1.bf16.msra.mxu0 %v824_v56  ;;  %1514 = vmatpush1.bf16.msra.mxu1 %v826_v57  ;;  %v1611_v56 = vld [vmem:[%s17139_s25 + $0x108] sm:$0xff]  ;;  %v1613_v57 = vld [vmem:[%s17139_s25 + $0x118] sm:$0xff] }
 0x206   :  { %1351 = vmatprep.subr.bf16.mxu0 %v833_v58  ;;  %1515 = vmatprep.subr.bf16.mxu1 %v835_v59  ;;  %v1762_v58 = vunpack.c.h.s8.bf16 %v1602_v51  ;;  %v1764_v59 = vunpack.c.h.s8.bf16 %v1604_v52  ;;  %v1771_v62 = vunpack.c.l.s8.bf16 %v1611_v56  ;;  %v1773_v63 = vunpack.c.l.s8.bf16 %v1613_v57 }
 0x207   :  { %v1779_v17 = vunpack.c.h.s8.bf16 %v1611_v56  ;;  %v1781_v4 = vunpack.c.h.s8.bf16 %v1613_v57 }
 0x209   :  { %1352 = vmatpush1.bf16.msra.mxu0 %v832_v0  ;;  %1516 = vmatpush1.bf16.msra.mxu1 %v834_v35  ;;  %v1610_v0 = vld [vmem:[%s17139_s25 + $0x100] sm:$0xff]  ;;  %v1612_v35 = vld [vmem:[%s17139_s25 + $0x110] sm:$0xff] }
 0x20a   :  { %1353 = vmatprep.subr.bf16.mxu0 %v841_v1  ;;  %1517 = vmatprep.subr.bf16.mxu1 %v843_v2  ;;  %v1770_v1 = vunpack.c.l.s8.bf16 %v1610_v0  ;;  %v1772_v2 = vunpack.c.l.s8.bf16 %v1612_v35 }
 0x20d   :  { %1354 = vmatpush1.bf16.msra.mxu0 %v840_v5  ;;  %1518 = vmatpush1.bf16.msra.mxu1 %v842_v16  ;;  %v1619_v5 = vld [vmem:[%s17139_s25 + $0x148] sm:$0xff]  ;;  %v1621_v16 = vld [vmem:[%s17139_s25 + $0x158] sm:$0xff] }
 0x20e   :  { %1976 = vmatprep.subr.bf16.mxu0 %v1707_v10  ;;  %2058 = vmatprep.subr.bf16.mxu1 %v1709_v11  ;;  %v1778_v10 = vunpack.c.h.s8.bf16 %v1610_v0  ;;  %v1780_v11 = vunpack.c.h.s8.bf16 %v1612_v35  ;;  %v1787_v12 = vunpack.c.l.s8.bf16 %v1619_v5  ;;  %v1789_v13 = vunpack.c.l.s8.bf16 %v1621_v16 }
 0x20f   :  { %v1795_v20 = vunpack.c.h.s8.bf16 %v1619_v5  ;;  %v1797_v21 = vunpack.c.h.s8.bf16 %v1621_v16 }
 0x210   :  { %1356 = vmatmul.mubr.bf16.vlgmr.msra.gmra.mrb[4].mxu0 %v12293_v44  ;;  %1520 = vmatmul.mubr.bf16.vlgmr.msra.gmra.mrb[4].mxu1 %v12293_v44  ;;  %v1722_v44 = vunpack.c.l.s8.bf16 %v1586_v27 }
 0x211   :  { %1977 = vmatpush1.bf16.msra.mxu0 %v1706_v15  ;;  %2059 = vmatpush1.bf16.msra.mxu1 %v1708_v23  ;;  %v1618_v15 = vld [vmem:[%s17139_s25 + $0x140] sm:$0xff]  ;;  %v1620_v23 = vld [vmem:[%s17139_s25 + $0x150] sm:$0xff] }
 0x212   :  { %1978 = vmatprep.subr.bf16.mxu0 %v1715_v18  ;;  %2060 = vmatprep.subr.bf16.mxu1 %v1717_v19  ;;  %v1786_v18 = vunpack.c.l.s8.bf16 %v1618_v15  ;;  %v1788_v19 = vunpack.c.l.s8.bf16 %v1620_v23 }
 0x213   :  { %2008 = vmatprep.mubr.bf16.mxu0 %v12716_v22  ;;  %2090 = vmatprep.mubr.bf16.mxu1 %v12716_v22 }
 0x215   :  { %1979 = vmatpush1.bf16.msra.mxu0 %v1714_v43  ;;  %2061 = vmatpush1.bf16.msra.mxu1 %v1716_v24  ;;  %v1627_v43 = vld [vmem:[%s17139_s25 + $0x188] sm:$0xff]  ;;  %v1629_v24 = vld [vmem:[%s17139_s25 + $0x198] sm:$0xff] }
 0x216   :  { %1980 = vmatprep.subr.bf16.mxu0 %v1723_v25  ;;  %2062 = vmatprep.subr.bf16.mxu1 %v1725_v26  ;;  %v1794_v25 = vunpack.c.h.s8.bf16 %v1618_v15  ;;  %v1796_v26 = vunpack.c.h.s8.bf16 %v1620_v23  ;;  %v1803_v27 = vunpack.c.l.s8.bf16 %v1627_v43  ;;  %v1805_v28 = vunpack.c.l.s8.bf16 %v1629_v24 }
 0x217   :  { %v1811_v33 = vunpack.c.h.s8.bf16 %v1627_v43  ;;  %v1813_v34 = vunpack.c.h.s8.bf16 %v1629_v24 }
 0x219   :  { %1981 = vmatpush1.bf16.msra.mxu0 %v1722_v44  ;;  %2063 = vmatpush1.bf16.msra.mxu1 %v1724_v29  ;;  %v1626_v44 = vld [vmem:[%s17139_s25 + $0x180] sm:$0xff]  ;;  %v1628_v29 = vld [vmem:[%s17139_s25 + $0x190] sm:$0xff] }
 0x21a   :  { %1982 = vmatprep.subr.bf16.mxu0 %v1731_v31  ;;  %2064 = vmatprep.subr.bf16.mxu1 %v1733_v32  ;;  %v1802_v31 = vunpack.c.l.s8.bf16 %v1626_v44  ;;  %v1804_v32 = vunpack.c.l.s8.bf16 %v1628_v29 }
 0x21d   :  { %1983 = vmatpush1.bf16.msra.mxu0 %v1730_v42  ;;  %2065 = vmatpush1.bf16.msra.mxu1 %v1732_v36  ;;  %v1635_v42 = vld [vmem:[%s17139_s25 + $0x1c8] sm:$0xff]  ;;  %v1637_v36 = vld [vmem:[%s17139_s25 + $0x1d8] sm:$0xff] }
 0x21e   :  { %1984 = vmatprep.subr.bf16.mxu0 %v1739_v37  ;;  %2066 = vmatprep.subr.bf16.mxu1 %v1741_v38  ;;  %v1810_v37 = vunpack.c.h.s8.bf16 %v1626_v44  ;;  %v1812_v38 = vunpack.c.h.s8.bf16 %v1628_v29  ;;  %v1819_v39 = vunpack.c.l.s8.bf16 %v1635_v42  ;;  %v1821_v40 = vunpack.c.l.s8.bf16 %v1637_v36 }
 0x21f   :  { %v1827_v47 = vunpack.c.h.s8.bf16 %v1635_v42  ;;  %v1829_v60 = vunpack.c.h.s8.bf16 %v1637_v36 }
 0x221   :  { %1985 = vmatpush1.bf16.msra.mxu0 %v1738_v41  ;;  %2067 = vmatpush1.bf16.msra.mxu1 %v1740_v49  ;;  %v1634_v41 = vld [vmem:[%s17139_s25 + $0x1c0] sm:$0xff]  ;;  %v1636_v49 = vld [vmem:[%s17139_s25 + $0x1d0] sm:$0xff] }
 0x222   :  { %1986 = vmatprep.subr.bf16.mxu0 %v1747_v45  ;;  %2068 = vmatprep.subr.bf16.mxu1 %v1749_v46  ;;  %v1818_v45 = vunpack.c.l.s8.bf16 %v1634_v41  ;;  %v1820_v46 = vunpack.c.l.s8.bf16 %v1636_v49 }
 0x225   :  { %1987 = vmatpush1.bf16.msra.mxu0 %v1746_v48  ;;  %2069 = vmatpush1.bf16.msra.mxu1 %v1748_v30  ;;  %v1643_v48 = vld [vmem:[%s17139_s25 + $0x208] sm:$0xff]  ;;  %v1645_v30 = vld [vmem:[%s17139_s25 + $0x218] sm:$0xff] }
 0x226   :  { %1988 = vmatprep.subr.bf16.mxu0 %v1755_v50  ;;  %2070 = vmatprep.subr.bf16.mxu1 %v1757_v61  ;;  %v1826_v50 = vunpack.c.h.s8.bf16 %v1634_v41  ;;  %v1828_v61 = vunpack.c.h.s8.bf16 %v1636_v49  ;;  %v1835_v51 = vunpack.c.l.s8.bf16 %v1643_v48  ;;  %v1837_v52 = vunpack.c.l.s8.bf16 %v1645_v30 }
 0x229   :  { %1989 = vmatpush1.bf16.msra.mxu0 %v1754_v3  ;;  %2071 = vmatpush1.bf16.msra.mxu1 %v1756_v53  ;;  %v1642_v3 = vld [vmem:[%s17139_s25 + $0x200] sm:$0xff]  ;;  %v1644_v53 = vld [vmem:[%s17139_s25 + $0x210] sm:$0xff] }
 0x22a   :  { %1990 = vmatprep.subr.bf16.mxu0 %v1763_v54  ;;  %2072 = vmatprep.subr.bf16.mxu1 %v1765_v55  ;;  %v12814_v54 = vcombine.low %v12706_v14, %v12706_v14  ;;  %v12819_v55 = vld [vmem:[%s17138_s1 + $0x28] sm:$0xff]  ;;  %v1834_v56 = vunpack.c.l.s8.bf16 %v1642_v3  ;;  %v1836_v57 = vunpack.c.l.s8.bf16 %v1644_v53  ;;  %v1653_v14 = vld [vmem:[%s17139_s25 + $0x258] sm:$0xff]  ;;  %v1842_v0 = vunpack.c.h.s8.bf16 %v1642_v3 }
 0x22b   :  { %v1844_v35 = vunpack.c.h.s8.bf16 %v1644_v53 }
 0x22d   :  { %1991 = vmatpush1.bf16.msra.mxu0 %v1762_v58  ;;  %2073 = vmatpush1.bf16.msra.mxu1 %v1764_v59  ;;  %v1843_v58 = vunpack.c.h.s8.bf16 %v1643_v48  ;;  %v1845_v59 = vunpack.c.h.s8.bf16 %v1645_v30 }
 0x22e   :  { %1992 = vmatprep.subr.bf16.mxu0 %v1771_v62  ;;  %2074 = vmatprep.subr.bf16.mxu1 %v1773_v63  ;;  %v1651_v62 = vld [vmem:[%s17139_s25 + $0x248] sm:$0xff]  ;;  %v12829_v63 = vcombine.high %v12819_v55, %v12819_v55 }
 0x231   :  { %1993 = vmatpush1.bf16.msra.mxu0 %v1770_v1  ;;  %2075 = vmatpush1.bf16.msra.mxu1 %v1772_v2  ;;  %v1851_v1 = vunpack.c.l.s8.bf16 %v1651_v62  ;;  %v1853_v2 = vunpack.c.l.s8.bf16 %v1653_v14 }
 0x232   :  { %1994 = vmatprep.subr.bf16.mxu0 %v1779_v17  ;;  %2076 = vmatprep.subr.bf16.mxu1 %v1781_v4  ;;  %v1650_v17 = vld [vmem:[%s17139_s25 + $0x240] sm:$0xff]  ;;  %v1652_v4 = vld [vmem:[%s17139_s25 + $0x250] sm:$0xff] }
 0x233   :  { %v1850_v5 = vunpack.c.l.s8.bf16 %v1650_v17  ;;  %v1852_v16 = vunpack.c.l.s8.bf16 %v1652_v4  ;;  %v1858_v15 = vunpack.c.h.s8.bf16 %v1650_v17  ;;  %v1860_v23 = vunpack.c.h.s8.bf16 %v1652_v4 }
 0x235   :  { %1995 = vmatpush1.bf16.msra.mxu0 %v1778_v10  ;;  %2077 = vmatpush1.bf16.msra.mxu1 %v1780_v11  ;;  %v1859_v10 = vunpack.c.h.s8.bf16 %v1651_v62  ;;  %v1861_v11 = vunpack.c.h.s8.bf16 %v1653_v14 }
 0x236   :  { %1996 = vmatprep.subr.bf16.mxu0 %v1787_v12  ;;  %2078 = vmatprep.subr.bf16.mxu1 %v1789_v13  ;;  %v1659_v12 = vld [vmem:[%s17139_s25 + $0x288] sm:$0xff]  ;;  %v1661_v13 = vld [vmem:[%s17139_s25 + $0x298] sm:$0xff] }
 0x239   :  { %1997 = vmatpush1.bf16.msra.mxu0 %v1786_v18  ;;  %2079 = vmatpush1.bf16.msra.mxu1 %v1788_v19  ;;  %v1867_v18 = vunpack.c.l.s8.bf16 %v1659_v12  ;;  %v1869_v19 = vunpack.c.l.s8.bf16 %v1661_v13 }
 0x23a   :  { %1998 = vmatprep.subr.bf16.mxu0 %v1795_v20  ;;  %2080 = vmatprep.subr.bf16.mxu1 %v1797_v21  ;;  %v1658_v20 = vld [vmem:[%s17139_s25 + $0x280] sm:$0xff]  ;;  %v1660_v21 = vld [vmem:[%s17139_s25 + $0x290] sm:$0xff] }
 0x23b   :  { %v1866_v43 = vunpack.c.l.s8.bf16 %v1658_v20  ;;  %v1868_v24 = vunpack.c.l.s8.bf16 %v1660_v21  ;;  %v1874_v44 = vunpack.c.h.s8.bf16 %v1658_v20  ;;  %v1876_v29 = vunpack.c.h.s8.bf16 %v1660_v21 }
 0x23d   :  { %1999 = vmatpush1.bf16.msra.mxu0 %v1794_v25  ;;  %2081 = vmatpush1.bf16.msra.mxu1 %v1796_v26  ;;  %v1875_v25 = vunpack.c.h.s8.bf16 %v1659_v12  ;;  %v1877_v26 = vunpack.c.h.s8.bf16 %v1661_v13 }
 0x23e   :  { %2000 = vmatprep.subr.bf16.mxu0 %v1803_v27  ;;  %2082 = vmatprep.subr.bf16.mxu1 %v1805_v28  ;;  %v1667_v27 = vld [vmem:[%s17139_s25 + $0x2c8] sm:$0xff]  ;;  %v1669_v28 = vld [vmem:[%s17139_s25 + $0x2d8] sm:$0xff] }
 0x241   :  { %2001 = vmatpush1.bf16.msra.mxu0 %v1802_v31  ;;  %2083 = vmatpush1.bf16.msra.mxu1 %v1804_v32  ;;  %v1883_v31 = vunpack.c.l.s8.bf16 %v1667_v27  ;;  %v1885_v32 = vunpack.c.l.s8.bf16 %v1669_v28 }
 0x242   :  { %2002 = vmatprep.subr.bf16.mxu0 %v1811_v33  ;;  %2084 = vmatprep.subr.bf16.mxu1 %v1813_v34  ;;  %v1666_v33 = vld [vmem:[%s17139_s25 + $0x2c0] sm:$0xff]  ;;  %v1668_v34 = vld [vmem:[%s17139_s25 + $0x2d0] sm:$0xff] }
 0x243   :  { %v1882_v42 = vunpack.c.l.s8.bf16 %v1666_v33  ;;  %v1884_v36 = vunpack.c.l.s8.bf16 %v1668_v34  ;;  %v1890_v41 = vunpack.c.h.s8.bf16 %v1666_v33  ;;  %v1892_v49 = vunpack.c.h.s8.bf16 %v1668_v34 }
 0x245   :  { %2003 = vmatpush1.bf16.msra.mxu0 %v1810_v37  ;;  %2085 = vmatpush1.bf16.msra.mxu1 %v1812_v38  ;;  %v1891_v37 = vunpack.c.h.s8.bf16 %v1667_v27  ;;  %v1893_v38 = vunpack.c.h.s8.bf16 %v1669_v28 }
 0x246   :  { %2004 = vmatprep.subr.bf16.mxu0 %v1819_v39  ;;  %2086 = vmatprep.subr.bf16.mxu1 %v1821_v40  ;;  %v1675_v39 = vld [vmem:[%s17139_s25 + $0x308] sm:$0xff]  ;;  %v1677_v40 = vld [vmem:[%s17139_s25 + $0x318] sm:$0xff] }
 0x249   :  { %2005 = vmatpush1.bf16.msra.mxu0 %v1818_v45  ;;  %2087 = vmatpush1.bf16.msra.mxu1 %v1820_v46  ;;  %v1899_v45 = vunpack.c.l.s8.bf16 %v1675_v39  ;;  %v1901_v46 = vunpack.c.l.s8.bf16 %v1677_v40 }
 0x24a   :  { %2006 = vmatprep.subr.bf16.mxu0 %v1827_v47  ;;  %2088 = vmatprep.subr.bf16.mxu1 %v1829_v60  ;;  %v1674_v47 = vld [vmem:[%s17139_s25 + $0x300] sm:$0xff]  ;;  %v1676_v60 = vld [vmem:[%s17139_s25 + $0x310] sm:$0xff] }
 0x24b   :  { %v1898_v48 = vunpack.c.l.s8.bf16 %v1674_v47  ;;  %v1900_v30 = vunpack.c.l.s8.bf16 %v1676_v60  ;;  %v1906_v3 = vunpack.c.h.s8.bf16 %v1674_v47  ;;  %v1908_v53 = vunpack.c.h.s8.bf16 %v1676_v60  ;;  %v1593_v47 = vld [vmem:[%s17139_s25 + $0x78] sm:$0xff] }
 0x24d   :  { %2007 = vmatpush1.bf16.msra.mxu0 %v1826_v50  ;;  %2089 = vmatpush1.bf16.msra.mxu1 %v1828_v61  ;;  %v1907_v50 = vunpack.c.h.s8.bf16 %v1675_v39  ;;  %v1909_v61 = vunpack.c.h.s8.bf16 %v1677_v40  ;;  %v12927_v39 = vcombine.low %v12819_v55, %v12819_v55 }
 0x24e   :  { %2017 = vmatprep.subr.bf16.mxu0 %v1835_v51  ;;  %2099 = vmatprep.subr.bf16.mxu1 %v1837_v52  ;;  %v1683_v51 = vld [vmem:[%s17139_s25 + $0x348] sm:$0xff]  ;;  %v1685_v52 = vld [vmem:[%s17139_s25 + $0x358] sm:$0xff] }
 0x250   :  { %2009 = vmatmul.mubr.bf16.vlgmr.msra.gmra.mrb[8].mxu0 %v12814_v54  ;;  %2091 = vmatmul.mubr.bf16.vlgmr.msra.gmra.mrb[8].mxu1 %v12814_v54 }
 0x251   :  { %2018 = vmatpush1.bf16.msra.mxu0 %v1834_v56  ;;  %2100 = vmatpush1.bf16.msra.mxu1 %v1836_v57  ;;  %v1915_v56 = vunpack.c.l.s8.bf16 %v1683_v51  ;;  %v1917_v57 = vunpack.c.l.s8.bf16 %v1685_v52 }
 0x252   :  { %2019 = vmatprep.subr.bf16.mxu0 %v1843_v58  ;;  %2101 = vmatprep.subr.bf16.mxu1 %v1845_v59  ;;  %v1682_v58 = vld [vmem:[%s17139_s25 + $0x340] sm:$0xff]  ;;  %v1684_v59 = vld [vmem:[%s17139_s25 + $0x350] sm:$0xff] }
 0x253   :  { %2049 = vmatprep.mubr.bf16.mxu0 %v12829_v63  ;;  %2131 = vmatprep.mubr.bf16.mxu1 %v12829_v63  ;;  %v1914_v62 = vunpack.c.l.s8.bf16 %v1682_v58  ;;  %v1916_v14 = vunpack.c.l.s8.bf16 %v1684_v59  ;;  %v1922_v17 = vunpack.c.h.s8.bf16 %v1682_v58  ;;  %v1924_v4 = vunpack.c.h.s8.bf16 %v1684_v59 }
 0x255   :  { %2020 = vmatpush1.bf16.msra.mxu0 %v1842_v0  ;;  %2102 = vmatpush1.bf16.msra.mxu1 %v1844_v35  ;;  %v1923_v0 = vunpack.c.h.s8.bf16 %v1683_v51  ;;  %v1925_v35 = vunpack.c.h.s8.bf16 %v1685_v52 }
 0x256   :  { %2021 = vmatprep.subr.bf16.mxu0 %v1851_v1  ;;  %2103 = vmatprep.subr.bf16.mxu1 %v1853_v2  ;;  %v1691_v1 = vld [vmem:[%s17139_s25 + $0x388] sm:$0xff]  ;;  %v1693_v2 = vld [vmem:[%s17139_s25 + $0x398] sm:$0xff] }
 0x259   :  { %2022 = vmatpush1.bf16.msra.mxu0 %v1850_v5  ;;  %2104 = vmatpush1.bf16.msra.mxu1 %v1852_v16  ;;  %v1931_v5 = vunpack.c.l.s8.bf16 %v1691_v1  ;;  %v1933_v16 = vunpack.c.l.s8.bf16 %v1693_v2 }
 0x25a   :  { %2023 = vmatprep.subr.bf16.mxu0 %v1859_v10  ;;  %2105 = vmatprep.subr.bf16.mxu1 %v1861_v11  ;;  %v1690_v10 = vld [vmem:[%s17139_s25 + $0x380] sm:$0xff]  ;;  %v1692_v11 = vld [vmem:[%s17139_s25 + $0x390] sm:$0xff] }
 0x25b   :  { %v1930_v12 = vunpack.c.l.s8.bf16 %v1690_v10  ;;  %v1932_v13 = vunpack.c.l.s8.bf16 %v1692_v11  ;;  %v1938_v20 = vunpack.c.h.s8.bf16 %v1690_v10  ;;  %v1940_v21 = vunpack.c.h.s8.bf16 %v1692_v11 }
 0x25d   :  { %2024 = vmatpush1.bf16.msra.mxu0 %v1858_v15  ;;  %2106 = vmatpush1.bf16.msra.mxu1 %v1860_v23  ;;  %v1939_v15 = vunpack.c.h.s8.bf16 %v1691_v1  ;;  %v1941_v23 = vunpack.c.h.s8.bf16 %v1693_v2 }
 0x25e   :  { %2025 = vmatprep.subr.bf16.mxu0 %v1867_v18  ;;  %2107 = vmatprep.subr.bf16.mxu1 %v1869_v19  ;;  %v1699_v18 = vld [vmem:[%s17139_s25 + $0x3c8] sm:$0xff]  ;;  %v1701_v19 = vld [vmem:[%s17139_s25 + $0x3d8] sm:$0xff] }
 0x261   :  { %2026 = vmatpush1.bf16.msra.mxu0 %v1866_v43  ;;  %2108 = vmatpush1.bf16.msra.mxu1 %v1868_v24  ;;  %v1947_v43 = vunpack.c.l.s8.bf16 %v1699_v18  ;;  %v1949_v24 = vunpack.c.l.s8.bf16 %v1701_v19 }
 0x262   :  { %2027 = vmatprep.subr.bf16.mxu0 %v1875_v25  ;;  %2109 = vmatprep.subr.bf16.mxu1 %v1877_v26  ;;  %v1698_v25 = vld [vmem:[%s17139_s25 + $0x3c0] sm:$0xff]  ;;  %v1700_v26 = vld [vmem:[%s17139_s25 + $0x3d0] sm:$0xff] }
 0x263   :  { %v1946_v27 = vunpack.c.l.s8.bf16 %v1698_v25  ;;  %v1948_v28 = vunpack.c.l.s8.bf16 %v1700_v26  ;;  %v1954_v33 = vunpack.c.h.s8.bf16 %v1698_v25  ;;  %v1956_v34 = vunpack.c.h.s8.bf16 %v1700_v26 }
 0x265   :  { %2028 = vmatpush1.bf16.msra.mxu0 %v1874_v44  ;;  %2110 = vmatpush1.bf16.msra.mxu1 %v1876_v29  ;;  %v1955_v44 = vunpack.c.h.s8.bf16 %v1699_v18  ;;  %v1957_v29 = vunpack.c.h.s8.bf16 %v1701_v19 }
 0x266   :  { %2029 = vmatprep.subr.bf16.mxu0 %v1883_v31  ;;  %2111 = vmatprep.subr.bf16.mxu1 %v1885_v32  ;;  %v1583_v31 = vld [vmem:[%s17139_s25 + $0x28] sm:$0xff]  ;;  %v1585_v32 = vld [vmem:[%s17139_s25 + $0x38] sm:$0xff] }
 0x269   :  { %2030 = vmatpush1.bf16.msra.mxu0 %v1882_v42  ;;  %2112 = vmatpush1.bf16.msra.mxu1 %v1884_v36  ;;  %v1711_v42 = vunpack.c.l.s8.bf16 %v1583_v31  ;;  %v1713_v36 = vunpack.c.l.s8.bf16 %v1585_v32 }
 0x26a   :  { %2031 = vmatprep.subr.bf16.mxu0 %v1891_v37  ;;  %2113 = vmatprep.subr.bf16.mxu1 %v1893_v38  ;;  %v1582_v37 = vld [vmem:[%s17139_s25 + $0x20] sm:$0xff]  ;;  %v1584_v38 = vld [vmem:[%s17139_s25 + $0x30] sm:$0xff] }
 0x26b   :  { %v1710_v40 = vunpack.c.l.s8.bf16 %v1582_v37  ;;  %v1718_v55 = vunpack.c.h.s8.bf16 %v1582_v37  ;;  %v1720_v60 = vunpack.c.h.s8.bf16 %v1584_v38 }
 0x26d   :  { %2032 = vmatpush1.bf16.msra.mxu0 %v1890_v41  ;;  %2114 = vmatpush1.bf16.msra.mxu1 %v1892_v49  ;;  %v1712_v41 = vunpack.c.l.s8.bf16 %v1584_v38  ;;  %v1719_v49 = vunpack.c.h.s8.bf16 %v1583_v31 }
 0x26e   :  { %2033 = vmatprep.subr.bf16.mxu0 %v1899_v45  ;;  %2115 = vmatprep.subr.bf16.mxu1 %v1901_v46  ;;  %v1721_v45 = vunpack.c.h.s8.bf16 %v1585_v32  ;;  %v1591_v46 = vld [vmem:[%s17139_s25 + $0x68] sm:$0xff] }
 0x271   :  { %2034 = vmatpush1.bf16.msra.mxu0 %v1898_v48  ;;  %2116 = vmatpush1.bf16.msra.mxu1 %v1900_v30  ;;  %v1727_v48 = vunpack.c.l.s8.bf16 %v1591_v46  ;;  %v1729_v30 = vunpack.c.l.s8.bf16 %v1593_v47 }
 0x272   :  { %2035 = vmatprep.subr.bf16.mxu0 %v1907_v50  ;;  %2117 = vmatprep.subr.bf16.mxu1 %v1909_v61  ;;  %v1590_v50 = vld [vmem:[%s17139_s25 + $0x60] sm:$0xff]  ;;  %v1592_v61 = vld [vmem:[%s17139_s25 + $0x70] sm:$0xff] }
 0x273   :  { %v1726_v51 = vunpack.c.l.s8.bf16 %v1590_v50  ;;  %v1728_v52 = vunpack.c.l.s8.bf16 %v1592_v61  ;;  %v1734_v58 = vunpack.c.h.s8.bf16 %v1590_v50 }
 0x275   :  { %2036 = vmatpush1.bf16.msra.mxu0 %v1906_v3  ;;  %2118 = vmatpush1.bf16.msra.mxu1 %v1908_v53  ;;  %v1735_v3 = vunpack.c.h.s8.bf16 %v1591_v46  ;;  %v1737_v53 = vunpack.c.h.s8.bf16 %v1593_v47 }
 0x276   :  { %2037 = vmatprep.subr.bf16.mxu0 %v1915_v56  ;;  %2119 = vmatprep.subr.bf16.mxu1 %v1917_v57  ;;  %v1599_v56 = vld [vmem:[%s17139_s25 + $0xa8] sm:$0xff]  ;;  %v1601_v57 = vld [vmem:[%s17139_s25 + $0xb8] sm:$0xff] }
 0x277   :  { %v1743_v59 = vunpack.c.l.s8.bf16 %v1599_v56  ;;  %v1751_v2 = vunpack.c.h.s8.bf16 %v1599_v56 }
 0x279   :  { %2038 = vmatpush1.bf16.msra.mxu0 %v1914_v62  ;;  %2120 = vmatpush1.bf16.msra.mxu1 %v1916_v14  ;;  %v1745_v62 = vunpack.c.l.s8.bf16 %v1601_v57  ;;  %v1598_v14 = vld [vmem:[%s17139_s25 + $0xa0] sm:$0xff] }
 0x27a   :  { %2039 = vmatprep.subr.bf16.mxu0 %v1923_v0  ;;  %2121 = vmatprep.subr.bf16.mxu1 %v1925_v35  ;;  %v1600_v0 = vld [vmem:[%s17139_s25 + $0xb0] sm:$0xff]  ;;  %v1742_v35 = vunpack.c.l.s8.bf16 %v1598_v14 }
 0x27b   :  { %v1744_v1 = vunpack.c.l.s8.bf16 %v1600_v0  ;;  %v1752_v10 = vunpack.c.h.s8.bf16 %v1600_v0 }
 0x27d   :  { %2040 = vmatpush1.bf16.msra.mxu0 %v1922_v17  ;;  %2122 = vmatpush1.bf16.msra.mxu1 %v1924_v4  ;;  %v1753_v17 = vunpack.c.h.s8.bf16 %v1601_v57  ;;  %v1607_v4 = vld [vmem:[%s17139_s25 + $0xe8] sm:$0xff] }
 0x27e   :  { %2041 = vmatprep.subr.bf16.mxu0 %v1931_v5  ;;  %2123 = vmatprep.subr.bf16.mxu1 %v1933_v16  ;;  %v1609_v5 = vld [vmem:[%s17139_s25 + $0xf8] sm:$0xff]  ;;  %v1750_v16 = vunpack.c.h.s8.bf16 %v1598_v14  ;;  %v1759_v11 = vunpack.c.l.s8.bf16 %v1607_v4  ;;  %v1767_v19 = vunpack.c.h.s8.bf16 %v1607_v4 }
 0x281   :  { %2042 = vmatpush1.bf16.msra.mxu0 %v1930_v12  ;;  %2124 = vmatpush1.bf16.msra.mxu1 %v1932_v13  ;;  %v1761_v12 = vunpack.c.l.s8.bf16 %v1609_v5  ;;  %v1606_v13 = vld [vmem:[%s17139_s25 + $0xe0] sm:$0xff] }
 0x282   :  { %2043 = vmatprep.subr.bf16.mxu0 %v1939_v15  ;;  %2125 = vmatprep.subr.bf16.mxu1 %v1941_v23  ;;  %v1608_v15 = vld [vmem:[%s17139_s25 + $0xf0] sm:$0xff]  ;;  %v1758_v23 = vunpack.c.l.s8.bf16 %v1606_v13 }
 0x283   :  { %v1760_v18 = vunpack.c.l.s8.bf16 %v1608_v15  ;;  %v1768_v25 = vunpack.c.h.s8.bf16 %v1608_v15 }
 0x285   :  { %2044 = vmatpush1.bf16.msra.mxu0 %v1938_v20  ;;  %2126 = vmatpush1.bf16.msra.mxu1 %v1940_v21  ;;  %v1769_v20 = vunpack.c.h.s8.bf16 %v1609_v5  ;;  %v1615_v21 = vld [vmem:[%s17139_s25 + $0x128] sm:$0xff] }
 0x286   :  { %2045 = vmatprep.subr.bf16.mxu0 %v1947_v43  ;;  %2127 = vmatprep.subr.bf16.mxu1 %v1949_v24  ;;  %v1617_v43 = vld [vmem:[%s17139_s25 + $0x138] sm:$0xff]  ;;  %v1766_v24 = vunpack.c.h.s8.bf16 %v1606_v13  ;;  %v1775_v26 = vunpack.c.l.s8.bf16 %v1615_v21  ;;  %v1783_v32 = vunpack.c.h.s8.bf16 %v1615_v21 }
 0x289   :  { %2046 = vmatpush1.bf16.msra.mxu0 %v1946_v27  ;;  %2128 = vmatpush1.bf16.msra.mxu1 %v1948_v28  ;;  %v1777_v27 = vunpack.c.l.s8.bf16 %v1617_v43  ;;  %v1614_v28 = vld [vmem:[%s17139_s25 + $0x120] sm:$0xff] }
 0x28a   :  { %2047 = vmatprep.subr.bf16.mxu0 %v1955_v44  ;;  %2129 = vmatprep.subr.bf16.mxu1 %v1957_v29  ;;  %v1616_v44 = vld [vmem:[%s17139_s25 + $0x130] sm:$0xff]  ;;  %v1774_v29 = vunpack.c.l.s8.bf16 %v1614_v28 }
 0x28b   :  { %v1776_v31 = vunpack.c.l.s8.bf16 %v1616_v44  ;;  %v1784_v37 = vunpack.c.h.s8.bf16 %v1616_v44 }
 0x28d   :  { %2048 = vmatpush1.bf16.msra.mxu0 %v1954_v33  ;;  %2130 = vmatpush1.bf16.msra.mxu1 %v1956_v34  ;;  %v1785_v33 = vunpack.c.h.s8.bf16 %v1617_v43  ;;  %v1623_v34 = vld [vmem:[%s17139_s25 + $0x168] sm:$0xff] }
 0x28e   :  { %2140 = vmatprep.subr.bf16.mxu0 %v1711_v42  ;;  %2222 = vmatprep.subr.bf16.mxu1 %v1713_v36  ;;  %v1625_v42 = vld [vmem:[%s17139_s25 + $0x178] sm:$0xff]  ;;  %v1782_v36 = vunpack.c.h.s8.bf16 %v1614_v28  ;;  %v1791_v38 = vunpack.c.l.s8.bf16 %v1623_v34  ;;  %v1799_v47 = vunpack.c.h.s8.bf16 %v1623_v34 }
 0x290   :  { %2050 = vmatmul.mubr.bf16.vlgmr.msra.gmra.mrb[8].mxu0 %v12927_v39  ;;  %2132 = vmatmul.mubr.bf16.vlgmr.msra.gmra.mrb[8].mxu1 %v12927_v39 }
 0x291   :  { %2141 = vmatpush1.bf16.msra.mxu0 %v1710_v40  ;;  %2223 = vmatpush1.bf16.msra.mxu1 %v1712_v41  ;;  %v1793_v40 = vunpack.c.l.s8.bf16 %v1625_v42  ;;  %v1622_v41 = vld [vmem:[%s17139_s25 + $0x160] sm:$0xff] }
 0x292   :  { %2142 = vmatprep.subr.bf16.mxu0 %v1719_v49  ;;  %2224 = vmatprep.subr.bf16.mxu1 %v1721_v45  ;;  %v1624_v49 = vld [vmem:[%s17139_s25 + $0x170] sm:$0xff]  ;;  %v1790_v45 = vunpack.c.l.s8.bf16 %v1622_v41 }
 0x293   :  { %2172 = vmatprep.mubr.bf16.mxu0 %v12716_v22  ;;  %2254 = vmatprep.mubr.bf16.mxu1 %v12716_v22  ;;  %v1736_v22 = vunpack.c.h.s8.bf16 %v1592_v61  ;;  %v1792_v46 = vunpack.c.l.s8.bf16 %v1624_v49  ;;  %v1800_v50 = vunpack.c.h.s8.bf16 %v1624_v49  ;;  %v1662_v49 = vld [vmem:[%s17139_s25 + $0x2a0] sm:$0xff] }
 0x295   :  { %2143 = vmatpush1.bf16.msra.mxu0 %v1718_v55  ;;  %2225 = vmatpush1.bf16.msra.mxu1 %v1720_v60  ;;  %v1801_v55 = vunpack.c.h.s8.bf16 %v1625_v42  ;;  %v1631_v60 = vld [vmem:[%s17139_s25 + $0x1a8] sm:$0xff] }
 0x296   :  { %2144 = vmatprep.subr.bf16.mxu0 %v1727_v48  ;;  %2226 = vmatprep.subr.bf16.mxu1 %v1729_v30  ;;  %v1633_v48 = vld [vmem:[%s17139_s25 + $0x1b8] sm:$0xff]  ;;  %v1798_v30 = vunpack.c.h.s8.bf16 %v1622_v41  ;;  %v1807_v61 = vunpack.c.l.s8.bf16 %v1631_v60  ;;  %v1815_v57 = vunpack.c.h.s8.bf16 %v1631_v60 }
 0x299   :  { %2145 = vmatpush1.bf16.msra.mxu0 %v1726_v51  ;;  %2227 = vmatpush1.bf16.msra.mxu1 %v1728_v52  ;;  %v1809_v51 = vunpack.c.l.s8.bf16 %v1633_v48  ;;  %v1630_v52 = vld [vmem:[%s17139_s25 + $0x1a0] sm:$0xff] }
 0x29a   :  { %2146 = vmatprep.subr.bf16.mxu0 %v1735_v3  ;;  %2228 = vmatprep.subr.bf16.mxu1 %v1737_v53  ;;  %v1632_v3 = vld [vmem:[%s17139_s25 + $0x1b0] sm:$0xff]  ;;  %v1806_v53 = vunpack.c.l.s8.bf16 %v1630_v52 }
 0x29b   :  { %v1808_v56 = vunpack.c.l.s8.bf16 %v1632_v3  ;;  %v1816_v14 = vunpack.c.h.s8.bf16 %v1632_v3  ;;  %v1670_v3 = vld [vmem:[%s17139_s25 + $0x2e0] sm:$0xff] }
 0x29d   :  { %2147 = vmatpush1.bf16.msra.mxu0 %v1734_v58  ;;  %2229 = vmatpush1.bf16.msra.mxu1 %v1736_v22  ;;  %v1817_v58 = vunpack.c.h.s8.bf16 %v1633_v48  ;;  %v1639_v22 = vld [vmem:[%s17139_s25 + $0x1e8] sm:$0xff] }
 0x29e   :  { %2148 = vmatprep.subr.bf16.mxu0 %v1743_v59  ;;  %2230 = vmatprep.subr.bf16.mxu1 %v1745_v62  ;;  %v1641_v59 = vld [vmem:[%s17139_s25 + $0x1f8] sm:$0xff]  ;;  %v1814_v62 = vunpack.c.h.s8.bf16 %v1630_v52  ;;  %v1823_v0 = vunpack.c.l.s8.bf16 %v1639_v22  ;;  %v1831_v5 = vunpack.c.h.s8.bf16 %v1639_v22  ;;  %v1671_v48 = vld [vmem:[%s17139_s25 + $0x2e8] sm:$0xff] }
 0x2a1   :  { %2149 = vmatpush1.bf16.msra.mxu0 %v1742_v35  ;;  %2231 = vmatpush1.bf16.msra.mxu1 %v1744_v1  ;;  %v1825_v35 = vunpack.c.l.s8.bf16 %v1641_v59  ;;  %v1638_v1 = vld [vmem:[%s17139_s25 + $0x1e0] sm:$0xff] }
 0x2a2   :  { %2150 = vmatprep.subr.bf16.mxu0 %v1751_v2  ;;  %2232 = vmatprep.subr.bf16.mxu1 %v1753_v17  ;;  %v1640_v2 = vld [vmem:[%s17139_s25 + $0x1f0] sm:$0xff]  ;;  %v1822_v17 = vunpack.c.l.s8.bf16 %v1638_v1 }
 0x2a3   :  { %v1824_v4 = vunpack.c.l.s8.bf16 %v1640_v2  ;;  %v1832_v13 = vunpack.c.h.s8.bf16 %v1640_v2  ;;  %v1895_v2 = vunpack.c.h.s8.bf16 %v1671_v48 }
 0x2a5   :  { %2151 = vmatpush1.bf16.msra.mxu0 %v1750_v16  ;;  %2233 = vmatpush1.bf16.msra.mxu1 %v1752_v10  ;;  %v1833_v16 = vunpack.c.h.s8.bf16 %v1641_v59  ;;  %v1647_v10 = vld [vmem:[%s17139_s25 + $0x228] sm:$0xff] }
 0x2a6   :  { %2152 = vmatprep.subr.bf16.mxu0 %v1759_v11  ;;  %2234 = vmatprep.subr.bf16.mxu1 %v1761_v12  ;;  %v1649_v11 = vld [vmem:[%s17139_s25 + $0x238] sm:$0xff]  ;;  %v1830_v12 = vunpack.c.h.s8.bf16 %v1638_v1  ;;  %v1839_v15 = vunpack.c.l.s8.bf16 %v1647_v10  ;;  %v1847_v43 = vunpack.c.h.s8.bf16 %v1647_v10 }
 0x2a9   :  { %2153 = vmatpush1.bf16.msra.mxu0 %v1758_v23  ;;  %2235 = vmatpush1.bf16.msra.mxu1 %v1760_v18  ;;  %v1841_v23 = vunpack.c.l.s8.bf16 %v1649_v11  ;;  %v1646_v18 = vld [vmem:[%s17139_s25 + $0x220] sm:$0xff] }
 0x2aa   :  { %2154 = vmatprep.subr.bf16.mxu0 %v1767_v19  ;;  %2236 = vmatprep.subr.bf16.mxu1 %v1769_v20  ;;  %v1648_v19 = vld [vmem:[%s17139_s25 + $0x230] sm:$0xff]  ;;  %v1838_v20 = vunpack.c.l.s8.bf16 %v1646_v18 }
 0x2ab   :  { %v1840_v21 = vunpack.c.l.s8.bf16 %v1648_v19  ;;  %v1848_v28 = vunpack.c.h.s8.bf16 %v1648_v19 }
 0x2ad   :  { %2155 = vmatpush1.bf16.msra.mxu0 %v1766_v24  ;;  %2237 = vmatpush1.bf16.msra.mxu1 %v1768_v25  ;;  %v1849_v24 = vunpack.c.h.s8.bf16 %v1649_v11  ;;  %v1655_v25 = vld [vmem:[%s17139_s25 + $0x268] sm:$0xff] }
 0x2ae   :  { %2156 = vmatprep.subr.bf16.mxu0 %v1775_v26  ;;  %2238 = vmatprep.subr.bf16.mxu1 %v1777_v27  ;;  %v1657_v26 = vld [vmem:[%s17139_s25 + $0x278] sm:$0xff]  ;;  %v1846_v27 = vunpack.c.h.s8.bf16 %v1646_v18  ;;  %v1855_v44 = vunpack.c.l.s8.bf16 %v1655_v25  ;;  %v1863_v34 = vunpack.c.h.s8.bf16 %v1655_v25 }
 0x2af   :  { %v1865_v42 = vunpack.c.h.s8.bf16 %v1657_v26 }
 0x2b1   :  { %2157 = vmatpush1.bf16.msra.mxu0 %v1774_v29  ;;  %2239 = vmatpush1.bf16.msra.mxu1 %v1776_v31  ;;  %v1857_v29 = vunpack.c.l.s8.bf16 %v1657_v26  ;;  %v1654_v31 = vld [vmem:[%s17139_s25 + $0x260] sm:$0xff] }
 0x2b2   :  { %2158 = vmatprep.subr.bf16.mxu0 %v1783_v32  ;;  %2240 = vmatprep.subr.bf16.mxu1 %v1785_v33  ;;  %v1656_v32 = vld [vmem:[%s17139_s25 + $0x270] sm:$0xff] }
 0x2b3   :  { %v1856_v33 = vunpack.c.l.s8.bf16 %v1656_v32 }
 0x2b5   :  { %2159 = vmatpush1.bf16.msra.mxu0 %v1782_v36  ;;  %2241 = vmatpush1.bf16.msra.mxu1 %v1784_v37  ;;  %v1663_v36 = vld [vmem:[%s17139_s25 + $0x2a8] sm:$0xff]  ;;  %v1665_v37 = vld [vmem:[%s17139_s25 + $0x2b8] sm:$0xff] }
 0x2b6   :  { %2160 = vmatprep.subr.bf16.mxu0 %v1791_v38  ;;  %2242 = vmatprep.subr.bf16.mxu1 %v1793_v40  ;;  %v1862_v38 = vunpack.c.h.s8.bf16 %v1654_v31  ;;  %v1871_v40 = vunpack.c.l.s8.bf16 %v1663_v36  ;;  %v1873_v41 = vunpack.c.l.s8.bf16 %v1665_v37  ;;  %v1881_v60 = vunpack.c.h.s8.bf16 %v1665_v37 }
 0x2b9   :  { %2161 = vmatpush1.bf16.msra.mxu0 %v1790_v45  ;;  %2243 = vmatpush1.bf16.msra.mxu1 %v1792_v46  ;;  %v1664_v45 = vld [vmem:[%s17139_s25 + $0x2b0] sm:$0xff]  ;;  %v1870_v46 = vunpack.c.l.s8.bf16 %v1662_v49 }
 0x2ba   :  { %2162 = vmatprep.subr.bf16.mxu0 %v1799_v47  ;;  %2244 = vmatprep.subr.bf16.mxu1 %v1801_v55  ;;  %v1872_v47 = vunpack.c.l.s8.bf16 %v1664_v45  ;;  %v1879_v55 = vunpack.c.h.s8.bf16 %v1663_v36 }
 0x2bd   :  { %2163 = vmatpush1.bf16.msra.mxu0 %v1798_v30  ;;  %2245 = vmatpush1.bf16.msra.mxu1 %v1800_v50  ;;  %v1673_v30 = vld [vmem:[%s17139_s25 + $0x2f8] sm:$0xff]  ;;  %v1878_v50 = vunpack.c.h.s8.bf16 %v1662_v49 }
 0x2be   :  { %2164 = vmatprep.subr.bf16.mxu0 %v1807_v61  ;;  %2246 = vmatprep.subr.bf16.mxu1 %v1809_v51  ;;  %v1880_v61 = vunpack.c.h.s8.bf16 %v1664_v45  ;;  %v1887_v51 = vunpack.c.l.s8.bf16 %v1671_v48  ;;  %v1889_v52 = vunpack.c.l.s8.bf16 %v1673_v30 }
 0x2c1   :  { %2165 = vmatpush1.bf16.msra.mxu0 %v1806_v53  ;;  %2247 = vmatpush1.bf16.msra.mxu1 %v1808_v56  ;;  %v1672_v53 = vld [vmem:[%s17139_s25 + $0x2f0] sm:$0xff] }
 0x2c2   :  { %2166 = vmatprep.subr.bf16.mxu0 %v1815_v57  ;;  %2248 = vmatprep.subr.bf16.mxu1 %v1817_v58  ;;  %v1896_v10 = vunpack.c.h.s8.bf16 %v1672_v53 }
 0x2c5   :  { %2167 = vmatpush1.bf16.msra.mxu0 %v1814_v62  ;;  %2249 = vmatpush1.bf16.msra.mxu1 %v1816_v14  ;;  %v1886_v14 = vunpack.c.l.s8.bf16 %v1670_v3 }
 0x2c6   :  { %2168 = vmatprep.subr.bf16.mxu0 %v1823_v0  ;;  %2250 = vmatprep.subr.bf16.mxu1 %v1825_v35  ;;  %v1888_v0 = vunpack.c.l.s8.bf16 %v1672_v53 }
 0x2c9   :  { %2169 = vmatpush1.bf16.msra.mxu0 %v1822_v17  ;;  %2251 = vmatpush1.bf16.msra.mxu1 %v1824_v4  ;;  %v1897_v17 = vunpack.c.h.s8.bf16 %v1673_v30  ;;  %v1679_v4 = vld [vmem:[%s17139_s25 + $0x328] sm:$0xff] }
 0x2ca   :  { %2170 = vmatprep.subr.bf16.mxu0 %v1831_v5  ;;  %2252 = vmatprep.subr.bf16.mxu1 %v1833_v16  ;;  %v1681_v5 = vld [vmem:[%s17139_s25 + $0x338] sm:$0xff]  ;;  %v1894_v16 = vunpack.c.h.s8.bf16 %v1670_v3  ;;  %v1903_v11 = vunpack.c.l.s8.bf16 %v1679_v4  ;;  %v1911_v19 = vunpack.c.h.s8.bf16 %v1679_v4  ;;  %v2430_v4 = vld [vmem:[%s17086_s6 + $0x10] sm:$0xff] }
 0x2cd   :  { %2171 = vmatpush1.bf16.msra.mxu0 %v1830_v12  ;;  %2253 = vmatpush1.bf16.msra.mxu1 %v1832_v13  ;;  %v1905_v12 = vunpack.c.l.s8.bf16 %v1681_v5  ;;  %v1678_v13 = vld [vmem:[%s17139_s25 + $0x320] sm:$0xff] }
 0x2ce   :  { %2181 = vmatprep.subr.bf16.mxu0 %v1839_v15  ;;  %2263 = vmatprep.subr.bf16.mxu1 %v1841_v23  ;;  %v1680_v15 = vld [vmem:[%s17139_s25 + $0x330] sm:$0xff]  ;;  %v1902_v23 = vunpack.c.l.s8.bf16 %v1678_v13 }
 0x2cf   :  { %v1904_v18 = vunpack.c.l.s8.bf16 %v1680_v15  ;;  %v1912_v25 = vunpack.c.h.s8.bf16 %v1680_v15 }
 0x2d0   :  { %2173 = vmatmul.mubr.bf16.vlgmr.msra.gmra.mrb[12].mxu0 %v12814_v54  ;;  %2255 = vmatmul.mubr.bf16.vlgmr.msra.gmra.mrb[12].mxu1 %v12814_v54  ;;  %v1854_v54 = vunpack.c.l.s8.bf16 %v1654_v31 }
 0x2d1   :  { %2182 = vmatpush1.bf16.msra.mxu0 %v1838_v20  ;;  %2264 = vmatpush1.bf16.msra.mxu1 %v1840_v21  ;;  %v1913_v20 = vunpack.c.h.s8.bf16 %v1681_v5  ;;  %v1687_v21 = vld [vmem:[%s17139_s25 + $0x368] sm:$0xff] }
 0x2d2   :  { %2183 = vmatprep.subr.bf16.mxu0 %v1847_v43  ;;  %2265 = vmatprep.subr.bf16.mxu1 %v1849_v24  ;;  %v1689_v43 = vld [vmem:[%s17139_s25 + $0x378] sm:$0xff]  ;;  %v1910_v24 = vunpack.c.h.s8.bf16 %v1678_v13  ;;  %v1919_v26 = vunpack.c.l.s8.bf16 %v1687_v21 }
 0x2d3   :  { %2213 = vmatprep.mubr.bf16.mxu0 %v12829_v63  ;;  %2295 = vmatprep.mubr.bf16.mxu1 %v12829_v63  ;;  %v1864_v63 = vunpack.c.h.s8.bf16 %v1656_v32  ;;  %v1927_v32 = vunpack.c.h.s8.bf16 %v1687_v21  ;;  %v2439_v13 = vld [vmem:[%s17086_s6 + $0x58] sm:$0xff]  ;;  %v2438_v21 = vld [vmem:[%s17086_s6 + $0x50] sm:$0xff] }
 0x2d5   :  { %2184 = vmatpush1.bf16.msra.mxu0 %v1846_v27  ;;  %2266 = vmatpush1.bf16.msra.mxu1 %v1848_v28  ;;  %v1921_v27 = vunpack.c.l.s8.bf16 %v1689_v43  ;;  %v1686_v28 = vld [vmem:[%s17139_s25 + $0x360] sm:$0xff] }
 0x2d6   :  { %2185 = vmatprep.subr.bf16.mxu0 %v1855_v44  ;;  %2267 = vmatprep.subr.bf16.mxu1 %v1857_v29  ;;  %v1688_v44 = vld [vmem:[%s17139_s25 + $0x370] sm:$0xff]  ;;  %v1918_v29 = vunpack.c.l.s8.bf16 %v1686_v28 }
 0x2d7   :  { %v1920_v31 = vunpack.c.l.s8.bf16 %v1688_v44  ;;  %v1928_v36 = vunpack.c.h.s8.bf16 %v1688_v44  ;;  %v2710_v44 = vunpack.c.h.s8.bf16 %v2438_v21 }
 0x2d9   :  { %2186 = vmatpush1.bf16.msra.mxu0 %v1854_v54  ;;  %2268 = vmatpush1.bf16.msra.mxu1 %v1856_v33  ;;  %v1929_v54 = vunpack.c.h.s8.bf16 %v1689_v43  ;;  %v1695_v33 = vld [vmem:[%s17139_s25 + $0x3a8] sm:$0xff] }
 0x2da   :  { %2187 = vmatprep.subr.bf16.mxu0 %v1863_v34  ;;  %2269 = vmatprep.subr.bf16.mxu1 %v1865_v42  ;;  %v1697_v34 = vld [vmem:[%s17139_s25 + $0x3b8] sm:$0xff]  ;;  %v1926_v42 = vunpack.c.h.s8.bf16 %v1686_v28  ;;  %v1935_v37 = vunpack.c.l.s8.bf16 %v1695_v33  ;;  %v1943_v45 = vunpack.c.h.s8.bf16 %v1695_v33 }
 0x2dd   :  { %2188 = vmatpush1.bf16.msra.mxu0 %v1862_v38  ;;  %2270 = vmatpush1.bf16.msra.mxu1 %v1864_v63  ;;  %v1937_v38 = vunpack.c.l.s8.bf16 %v1697_v34  ;;  %v1694_v63 = vld [vmem:[%s17139_s25 + $0x3a0] sm:$0xff] }
 0x2de   :  { %2189 = vmatprep.subr.bf16.mxu0 %v1871_v40  ;;  %2271 = vmatprep.subr.bf16.mxu1 %v1873_v41  ;;  %v1696_v40 = vld [vmem:[%s17139_s25 + $0x3b0] sm:$0xff]  ;;  %v1934_v41 = vunpack.c.l.s8.bf16 %v1694_v63 }
 0x2df   :  { %v1936_v49 = vunpack.c.l.s8.bf16 %v1696_v40  ;;  %v1944_v48 = vunpack.c.h.s8.bf16 %v1696_v40 }
 0x2e1   :  { %2190 = vmatpush1.bf16.msra.mxu0 %v1870_v46  ;;  %2272 = vmatpush1.bf16.msra.mxu1 %v1872_v47  ;;  %v1945_v46 = vunpack.c.h.s8.bf16 %v1697_v34  ;;  %v1703_v47 = vld [vmem:[%s17139_s25 + $0x3e8] sm:$0xff] }
 0x2e2   :  { %2191 = vmatprep.subr.bf16.mxu0 %v1879_v55  ;;  %2273 = vmatprep.subr.bf16.mxu1 %v1881_v60  ;;  %v1705_v55 = vld [vmem:[%s17139_s25 + $0x3f8] sm:$0xff]  ;;  %v1942_v60 = vunpack.c.h.s8.bf16 %v1694_v63  ;;  %v1951_v30 = vunpack.c.l.s8.bf16 %v1703_v47  ;;  %v1959_v53 = vunpack.c.h.s8.bf16 %v1703_v47 }
 0x2e3   :  { %v13069_v56 = vpop.f32.mrb[4].mxu0  ;;  %v13071_v57 = vpop.f32.mrb[4].mxu1 }
 0x2e4   :  { %v13073_v58 = vpop.f32.mrb[5].mxu0  ;;  %v13075_v22 = vpop.f32.mrb[5].mxu1 }
 0x2e5   :  { %v1361_v59 = vpop.f32.mrb[6].mxu0  ;;  %v1525_v62 = vpop.f32.mrb[6].mxu1  ;;  %2192 = vmatpush1.bf16.msra.mxu0 %v1878_v50  ;;  %2274 = vmatpush1.bf16.msra.mxu1 %v1880_v61  ;;  %v1953_v50 = vunpack.c.l.s8.bf16 %v1705_v55  ;;  %v1702_v61 = vld [vmem:[%s17139_s25 + $0x3e0] sm:$0xff] }
 0x2e6   :  { %v1362_v35 = vpop.f32.mrb[7].mxu0  ;;  %v1526_v1 = vpop.f32.mrb[7].mxu1  ;;  %2193 = vmatprep.subr.bf16.mxu0 %v1887_v51  ;;  %2275 = vmatprep.subr.bf16.mxu1 %v1889_v52  ;;  %v1704_v51 = vld [vmem:[%s17139_s25 + $0x3f0] sm:$0xff]  ;;  %v1950_v52 = vunpack.c.l.s8.bf16 %v1702_v61  ;;  %v1961_v59 = vunpack.c.h.s8.bf16 %v1705_v55  ;;  %v2429_v62 = vld [vmem:[%s17086_s6 + $0x8] sm:$0xff] }
 0x2e7   :  { %v1952_v3 = vunpack.c.l.s8.bf16 %v1704_v51  ;;  %v1960_v35 = vunpack.c.h.s8.bf16 %v1704_v51  ;;  %v2685_v1 = vunpack.c.l.s8.bf16 %v2429_v62 }
 0x2e9   :  { %2194 = vmatpush1.bf16.msra.mxu0 %v1886_v14  ;;  %2276 = vmatpush1.bf16.msra.mxu1 %v1888_v0  ;;  %v2431_v14 = vld [vmem:[%s17086_s6 + $0x18] sm:$0xff]  ;;  %v1958_v0 = vunpack.c.h.s8.bf16 %v1702_v61 }
 0x2ea   :  { %2195 = vmatprep.subr.bf16.mxu0 %v1895_v2  ;;  %2277 = vmatprep.subr.bf16.mxu1 %v1897_v17  ;;  %v2687_v2 = vunpack.c.l.s8.bf16 %v2431_v14  ;;  %v2428_v17 = vld [vmem:[%s17086_s6] sm:$0xff] }
 0x2eb   :  { %v2684_v5 = vunpack.c.l.s8.bf16 %v2428_v17  ;;  %v2692_v15 = vunpack.c.h.s8.bf16 %v2428_v17 }
 0x2ed   :  { %2196 = vmatpush1.bf16.msra.mxu0 %v1894_v16  ;;  %2278 = vmatpush1.bf16.msra.mxu1 %v1896_v10  ;;  %v2686_v16 = vunpack.c.l.s8.bf16 %v2430_v4  ;;  %v2693_v10 = vunpack.c.h.s8.bf16 %v2429_v62 }
 0x2ee   :  { %2197 = vmatprep.subr.bf16.mxu0 %v1903_v11  ;;  %2279 = vmatprep.subr.bf16.mxu1 %v1905_v12  ;;  %v2695_v11 = vunpack.c.h.s8.bf16 %v2431_v14  ;;  %v2437_v12 = vld [vmem:[%s17086_s6 + $0x48] sm:$0xff] }
 0x2f1   :  { %2198 = vmatpush1.bf16.msra.mxu0 %v1902_v23  ;;  %2280 = vmatpush1.bf16.msra.mxu1 %v1904_v18  ;;  %v2694_v23 = vunpack.c.h.s8.bf16 %v2430_v4  ;;  %v2701_v18 = vunpack.c.l.s8.bf16 %v2437_v12 }
 0x2f2   :  { %2199 = vmatprep.subr.bf16.mxu0 %v1911_v19  ;;  %2281 = vmatprep.subr.bf16.mxu1 %v1913_v20  ;;  %v2703_v19 = vunpack.c.l.s8.bf16 %v2439_v13  ;;  %v2436_v20 = vld [vmem:[%s17086_s6 + $0x40] sm:$0xff] }
 0x2f3   :  { %v2700_v43 = vunpack.c.l.s8.bf16 %v2436_v20  ;;  %v2708_v28 = vunpack.c.h.s8.bf16 %v2436_v20 }
 0x2f5   :  { %2200 = vmatpush1.bf16.msra.mxu0 %v1910_v24  ;;  %2282 = vmatpush1.bf16.msra.mxu1 %v1912_v25  ;;  %v2709_v24 = vunpack.c.h.s8.bf16 %v2437_v12  ;;  %v2711_v25 = vunpack.c.h.s8.bf16 %v2439_v13 }
 0x2f6   :  { %2201 = vmatprep.subr.bf16.mxu0 %v1919_v26  ;;  %2283 = vmatprep.subr.bf16.mxu1 %v1921_v27  ;;  %v2445_v26 = vld [vmem:[%s17086_s6 + $0x88] sm:$0xff]  ;;  %v2447_v27 = vld [vmem:[%s17086_s6 + $0x98] sm:$0xff] }
 0x2f9   :  { %2202 = vmatpush1.bf16.msra.mxu0 %v1918_v29  ;;  %2284 = vmatpush1.bf16.msra.mxu1 %v1920_v31  ;;  %v2717_v29 = vunpack.c.l.s8.bf16 %v2445_v26  ;;  %v2719_v31 = vunpack.c.l.s8.bf16 %v2447_v27 }
 0x2fa   :  { %2203 = vmatprep.subr.bf16.mxu0 %v1927_v32  ;;  %2285 = vmatprep.subr.bf16.mxu1 %v1929_v54  ;;  %v2444_v32 = vld [vmem:[%s17086_s6 + $0x80] sm:$0xff]  ;;  %v2446_v54 = vld [vmem:[%s17086_s6 + $0x90] sm:$0xff] }
 0x2fb   :  { %v2716_v33 = vunpack.c.l.s8.bf16 %v2444_v32  ;;  %v2718_v34 = vunpack.c.l.s8.bf16 %v2446_v54  ;;  %v2724_v63 = vunpack.c.h.s8.bf16 %v2444_v32  ;;  %v2726_v40 = vunpack.c.h.s8.bf16 %v2446_v54 }
 0x2fd   :  { %2204 = vmatpush1.bf16.msra.mxu0 %v1926_v42  ;;  %2286 = vmatpush1.bf16.msra.mxu1 %v1928_v36  ;;  %v2725_v42 = vunpack.c.h.s8.bf16 %v2445_v26  ;;  %v2727_v36 = vunpack.c.h.s8.bf16 %v2447_v27 }
 0x2fe   :  { %2205 = vmatprep.subr.bf16.mxu0 %v1935_v37  ;;  %2287 = vmatprep.subr.bf16.mxu1 %v1937_v38  ;;  %v2453_v37 = vld [vmem:[%s17086_s6 + $0xc8] sm:$0xff]  ;;  %v2455_v38 = vld [vmem:[%s17086_s6 + $0xd8] sm:$0xff] }
 0x301   :  { %2206 = vmatpush1.bf16.msra.mxu0 %v1934_v41  ;;  %2288 = vmatpush1.bf16.msra.mxu1 %v1936_v49  ;;  %v2733_v41 = vunpack.c.l.s8.bf16 %v2453_v37  ;;  %v2735_v49 = vunpack.c.l.s8.bf16 %v2455_v38 }
 0x302   :  { %2207 = vmatprep.subr.bf16.mxu0 %v1943_v45  ;;  %2289 = vmatprep.subr.bf16.mxu1 %v1945_v46  ;;  %v2452_v45 = vld [vmem:[%s17086_s6 + $0xc0] sm:$0xff]  ;;  %v2454_v46 = vld [vmem:[%s17086_s6 + $0xd0] sm:$0xff] }
 0x303   :  { %v2732_v47 = vunpack.c.l.s8.bf16 %v2452_v45  ;;  %v2734_v55 = vunpack.c.l.s8.bf16 %v2454_v46  ;;  %v2740_v61 = vunpack.c.h.s8.bf16 %v2452_v45  ;;  %v2742_v51 = vunpack.c.h.s8.bf16 %v2454_v46 }
 0x305   :  { %2208 = vmatpush1.bf16.msra.mxu0 %v1942_v60  ;;  %2290 = vmatpush1.bf16.msra.mxu1 %v1944_v48  ;;  %v2741_v60 = vunpack.c.h.s8.bf16 %v2453_v37  ;;  %v2743_v48 = vunpack.c.h.s8.bf16 %v2455_v38 }
 0x306   :  { %2209 = vmatprep.subr.bf16.mxu0 %v1951_v30  ;;  %2291 = vmatprep.subr.bf16.mxu1 %v1953_v50  ;;  %v2461_v30 = vld [vmem:[%s17086_s6 + $0x108] sm:$0xff]  ;;  %v2463_v50 = vld [vmem:[%s17086_s6 + $0x118] sm:$0xff] }
 0x309   :  { %2210 = vmatpush1.bf16.msra.mxu0 %v1950_v52  ;;  %2292 = vmatpush1.bf16.msra.mxu1 %v1952_v3  ;;  %v2749_v52 = vunpack.c.l.s8.bf16 %v2461_v30  ;;  %v2751_v3 = vunpack.c.l.s8.bf16 %v2463_v50 }
 0x30a   :  { %2211 = vmatprep.subr.bf16.mxu0 %v1959_v53  ;;  %2293 = vmatprep.subr.bf16.mxu1 %v1961_v59  ;;  %v2460_v53 = vld [vmem:[%s17086_s6 + $0x100] sm:$0xff]  ;;  %v2462_v59 = vld [vmem:[%s17086_s6 + $0x110] sm:$0xff] }
 0x30b   :  { %v2748_v62 = vunpack.c.l.s8.bf16 %v2460_v53  ;;  %v2750_v14 = vunpack.c.l.s8.bf16 %v2462_v59  ;;  %v2756_v17 = vunpack.c.h.s8.bf16 %v2460_v53  ;;  %v2758_v4 = vunpack.c.h.s8.bf16 %v2462_v59 }
 0x30d   :  { %2212 = vmatpush1.bf16.msra.mxu0 %v1958_v0  ;;  %2294 = vmatpush1.bf16.msra.mxu1 %v1960_v35  ;;  %v2757_v0 = vunpack.c.h.s8.bf16 %v2461_v30  ;;  %v2759_v35 = vunpack.c.h.s8.bf16 %v2463_v50 }
 0x30e   :  { %3196 = vmatprep.subr.bf16.mxu0 %v2685_v1  ;;  %3360 = vmatprep.subr.bf16.mxu1 %v2687_v2  ;;  %v2469_v1 = vld [vmem:[%s17086_s6 + $0x148] sm:$0xff]  ;;  %v2471_v2 = vld [vmem:[%s17086_s6 + $0x158] sm:$0xff] }
 0x310   :  { %2214 = vmatmul.mubr.bf16.vlgmr.msra.gmra.mrb[12].mxu0 %v12927_v39  ;;  %2296 = vmatmul.mubr.bf16.vlgmr.msra.gmra.mrb[12].mxu1 %v12927_v39  ;;  %v2702_v39 = vunpack.c.l.s8.bf16 %v2438_v21 }
 0x311   :  { %3197 = vmatpush1.bf16.msra.mxu0 %v2684_v5  ;;  %3361 = vmatpush1.bf16.msra.mxu1 %v2686_v16  ;;  %v2765_v5 = vunpack.c.l.s8.bf16 %v2469_v1  ;;  %v2767_v16 = vunpack.c.l.s8.bf16 %v2471_v2 }
 0x312   :  { %3198 = vmatprep.subr.bf16.mxu0 %v2693_v10  ;;  %3362 = vmatprep.subr.bf16.mxu1 %v2695_v11  ;;  %v2468_v10 = vld [vmem:[%s17086_s6 + $0x140] sm:$0xff]  ;;  %v2470_v11 = vld [vmem:[%s17086_s6 + $0x150] sm:$0xff] }
 0x313   :  { %v2764_v12 = vunpack.c.l.s8.bf16 %v2468_v10  ;;  %v2766_v13 = vunpack.c.l.s8.bf16 %v2470_v11  ;;  %v2772_v20 = vunpack.c.h.s8.bf16 %v2468_v10  ;;  %v2774_v21 = vunpack.c.h.s8.bf16 %v2470_v11 }
 0x315   :  { %3199 = vmatpush1.bf16.msra.mxu0 %v2692_v15  ;;  %3363 = vmatpush1.bf16.msra.mxu1 %v2694_v23  ;;  %v2773_v15 = vunpack.c.h.s8.bf16 %v2469_v1  ;;  %v2775_v23 = vunpack.c.h.s8.bf16 %v2471_v2  ;;  %v13274_v1 = vld [vmem:[%s17146_s2] sm:$0xff] }
 0x316   :  { %3200 = vmatprep.subr.bf16.mxu0 %v2701_v18  ;;  %3364 = vmatprep.subr.bf16.mxu1 %v2703_v19  ;;  %v2477_v18 = vld [vmem:[%s17086_s6 + $0x188] sm:$0xff]  ;;  %v2479_v19 = vld [vmem:[%s17086_s6 + $0x198] sm:$0xff] }
 0x319   :  { %3201 = vmatpush1.bf16.msra.mxu0 %v2700_v43  ;;  %3365 = vmatpush1.bf16.msra.mxu1 %v2702_v39  ;;  %v2781_v43 = vunpack.c.l.s8.bf16 %v2477_v18  ;;  %v2783_v39 = vunpack.c.l.s8.bf16 %v2479_v19 }
 0x31a   :  { %3202 = vmatprep.subr.bf16.mxu0 %v2709_v24  ;;  %3366 = vmatprep.subr.bf16.mxu1 %v2711_v25  ;;  %v2476_v24 = vld [vmem:[%s17086_s6 + $0x180] sm:$0xff]  ;;  %v2478_v25 = vld [vmem:[%s17086_s6 + $0x190] sm:$0xff] }
 0x31b   :  { %v2780_v26 = vunpack.c.l.s8.bf16 %v2476_v24  ;;  %v2782_v27 = vunpack.c.l.s8.bf16 %v2478_v25  ;;  %v2788_v32 = vunpack.c.h.s8.bf16 %v2476_v24  ;;  %v2790_v54 = vunpack.c.h.s8.bf16 %v2478_v25 }
 0x31d   :  { %3203 = vmatpush1.bf16.msra.mxu0 %v2708_v28  ;;  %3367 = vmatpush1.bf16.msra.mxu1 %v2710_v44  ;;  %v2789_v28 = vunpack.c.h.s8.bf16 %v2477_v18  ;;  %v2791_v44 = vunpack.c.h.s8.bf16 %v2479_v19 }
 0x31e   :  { %3204 = vmatprep.subr.bf16.mxu0 %v2717_v29  ;;  %3368 = vmatprep.subr.bf16.mxu1 %v2719_v31  ;;  %v2485_v29 = vld [vmem:[%s17086_s6 + $0x1c8] sm:$0xff]  ;;  %v2487_v31 = vld [vmem:[%s17086_s6 + $0x1d8] sm:$0xff] }
 0x321   :  { %3205 = vmatpush1.bf16.msra.mxu0 %v2716_v33  ;;  %3369 = vmatpush1.bf16.msra.mxu1 %v2718_v34  ;;  %v2797_v33 = vunpack.c.l.s8.bf16 %v2485_v29  ;;  %v2799_v34 = vunpack.c.l.s8.bf16 %v2487_v31 }
 0x322   :  { %3206 = vmatprep.subr.bf16.mxu0 %v2725_v42  ;;  %3370 = vmatprep.subr.bf16.mxu1 %v2727_v36  ;;  %v2484_v42 = vld [vmem:[%s17086_s6 + $0x1c0] sm:$0xff]  ;;  %v2486_v36 = vld [vmem:[%s17086_s6 + $0x1d0] sm:$0xff] }
 0x323   :  { %v2796_v37 = vunpack.c.l.s8.bf16 %v2484_v42  ;;  %v2798_v38 = vunpack.c.l.s8.bf16 %v2486_v36  ;;  %v2804_v45 = vunpack.c.h.s8.bf16 %v2484_v42  ;;  %v2806_v46 = vunpack.c.h.s8.bf16 %v2486_v36 }
 0x325   :  { %3207 = vmatpush1.bf16.msra.mxu0 %v2724_v63  ;;  %3371 = vmatpush1.bf16.msra.mxu1 %v2726_v40  ;;  %v2805_v63 = vunpack.c.h.s8.bf16 %v2485_v29  ;;  %v2807_v40 = vunpack.c.h.s8.bf16 %v2487_v31 }
 0x326   :  { %3208 = vmatprep.subr.bf16.mxu0 %v2733_v41  ;;  %3372 = vmatprep.subr.bf16.mxu1 %v2735_v49  ;;  %v13226_v41 = vld [vmem:[%s17086_s6 + $0x208] sm:$0xff]  ;;  %v13231_v49 = vld [vmem:[%s17086_s6 + $0x218] sm:$0xff] }
 0x329   :  { %3209 = vmatpush1.bf16.msra.mxu0 %v2732_v47  ;;  %3373 = vmatpush1.bf16.msra.mxu1 %v2734_v55  ;;  %v2813_v47 = vunpack.c.l.s8.bf16 %v13226_v41  ;;  %v2815_v55 = vunpack.c.l.s8.bf16 %v13231_v49 }
 0x32a   :  { %3210 = vmatprep.subr.bf16.mxu0 %v2741_v60  ;;  %3374 = vmatprep.subr.bf16.mxu1 %v2743_v48  ;;  %v1530_v60 = vlaneseq }
 0x32c   :  { %v13235_v48 = vshrl.u32 %v1530_v60, 7 }
 0x32d   :  { %3211 = vmatpush1.bf16.msra.mxu0 %v2740_v61  ;;  %3375 = vmatpush1.bf16.msra.mxu1 %v2742_v51  ;;  %v13249_v51 = vld [vmem:[%s17143_s4] sm:$0xff] }
 0x32e   :  { %3212 = vmatprep.subr.bf16.mxu0 %v2749_v52  ;;  %3376 = vmatprep.subr.bf16.mxu1 %v2751_v3  ;;  %v13238_v30 = vsub.s32 0, %v13235_v48  ;;  %v13241_v50 = vsub.s32 2, %v13235_v48  ;;  %v13244_v61 = vsub.s32 1, %v13235_v48  ;;  %v13252_v52 = vsub.s32 3, %v13235_v48  ;;  %v13257_v3 = vld [vmem:[%s17145_s22] sm:$0xff] }
 0x330   :  { %17140 = vst [vmem:[#allocation5_spill] sm:$0xff] %v13238_v30  ;;  %17141 = vst [vmem:[#allocation6_spill] sm:$0xff] %v13241_v50  ;;  %v1533_v53 = vrot.slane %v13249_v51, %v13238_v30  ;;  %v1541_v59 = vrot.slane %v13249_v51, %v13241_v50  ;;  %v2313_v2 = vrot.slane %v13257_v3, %v13244_v61 }
 0x331   :  { %3213 = vmatpush1.bf16.msra.mxu0 %v2748_v62  ;;  %3377 = vmatpush1.bf16.msra.mxu1 %v2750_v14  ;;  %17142 = vst [vmem:[#allocation7_spill] sm:$0xff] %v13244_v61  ;;  %17144 = vst [vmem:[#allocation8_spill] sm:$0xff] %v13252_v52  ;;  %v1537_v62 = vrot.slane %v13249_v51, %v13244_v61  ;;  %v1545_v14 = vrot.slane %v13249_v51, %v13252_v52 }
 0x332   :  { %3214 = vmatprep.subr.bf16.mxu0 %v2757_v0  ;;  %3378 = vmatprep.subr.bf16.mxu1 %v2759_v35  ;;  %v2309_v0 = vrot.slane %v13257_v3, %v13238_v30  ;;  %v2317_v35 = vrot.slane %v13257_v3, %v13241_v50 }
 0x335   :  { %3215 = vmatpush1.bf16.msra.mxu0 %v2756_v17  ;;  %3379 = vmatpush1.bf16.msra.mxu1 %v2758_v4  ;;  %v2321_v17 = vrot.slane %v13257_v3, %v13252_v52  ;;  %v1570_v4 = vmul.f32 %v1533_v53, %v12635_v6  ;;  %v2500_v53 = vld [vmem:[%s17086_s6 + $0x240] sm:$0xff] }
 0x336   :  { %3216 = vmatprep.subr.bf16.mxu0 %v2765_v5  ;;  %3380 = vmatprep.subr.bf16.mxu1 %v2767_v16  ;;  %v1572_v5 = vmul.f32 %v1541_v59, %v12637_v7  ;;  %v1571_v16 = vmul.f32 %v1537_v62, %v12639_v8  ;;  %v2379_v7 = vrot.slane %v13274_v1, %v13252_v52  ;;  %v2502_v59 = vld [vmem:[%s17086_s6 + $0x250] sm:$0xff]  ;;  %v2828_v62 = vunpack.c.l.s8.bf16 %v2500_v53 }
 0x339   :  { %3217 = vmatpush1.bf16.msra.mxu0 %v2764_v12  ;;  %3381 = vmatpush1.bf16.msra.mxu1 %v2766_v13  ;;  %v1573_v12 = vmul.f32 %v1545_v14, %v12641_v9  ;;  %v2830_v14 = vunpack.c.l.s8.bf16 %v2502_v59 }
 0x33a   :  { %3218 = vmatprep.subr.bf16.mxu0 %v2773_v15  ;;  %3382 = vmatprep.subr.bf16.mxu1 %v2775_v23  ;;  %v2367_v15 = vrot.slane %v13274_v1, %v13238_v30 }
 0x33d   :  { %3219 = vmatpush1.bf16.msra.mxu0 %v2772_v20  ;;  %3383 = vmatpush1.bf16.msra.mxu1 %v2774_v21  ;;  %v2371_v21 = vrot.slane %v13274_v1, %v13244_v61 }
 0x33e   :  { %3220 = vmatprep.subr.bf16.mxu0 %v2781_v43  ;;  %3384 = vmatprep.subr.bf16.mxu1 %v2783_v39 }
 0x341   :  { %3221 = vmatpush1.bf16.msra.mxu0 %v2780_v26  ;;  %3385 = vmatpush1.bf16.msra.mxu1 %v2782_v27 }
 0x342   :  { %3222 = vmatprep.subr.bf16.mxu0 %v2789_v28  ;;  %3386 = vmatprep.subr.bf16.mxu1 %v2791_v44 }
 0x345   :  { %3223 = vmatpush1.bf16.msra.mxu0 %v2788_v32  ;;  %3387 = vmatpush1.bf16.msra.mxu1 %v2790_v54  ;;  %v2492_v32 = vld [vmem:[%s17086_s6 + $0x200] sm:$0xff]  ;;  %v2494_v54 = vld [vmem:[%s17086_s6 + $0x210] sm:$0xff] }
 0x346   :  { %3224 = vmatprep.subr.bf16.mxu0 %v2797_v33  ;;  %3388 = vmatprep.subr.bf16.mxu1 %v2799_v34  ;;  %v2812_v36 = vunpack.c.l.s8.bf16 %v2492_v32 }
 0x349   :  { %3225 = vmatpush1.bf16.msra.mxu0 %v2796_v37  ;;  %3389 = vmatpush1.bf16.msra.mxu1 %v2798_v38  ;;  %v2814_v37 = vunpack.c.l.s8.bf16 %v2494_v54 }
 0x34a   :  { %3226 = vmatprep.subr.bf16.mxu0 %v2805_v63  ;;  %3390 = vmatprep.subr.bf16.mxu1 %v2807_v40  ;;  %v2821_v63 = vunpack.c.h.s8.bf16 %v13226_v41  ;;  %v2823_v40 = vunpack.c.h.s8.bf16 %v13231_v49  ;;  %v2822_v41 = vunpack.c.h.s8.bf16 %v2494_v54 }
 0x34d   :  { %3227 = vmatpush1.bf16.msra.mxu0 %v2804_v45  ;;  %3391 = vmatpush1.bf16.msra.mxu1 %v2806_v46  ;;  %v2501_v45 = vld [vmem:[%s17086_s6 + $0x248] sm:$0xff]  ;;  %v2503_v46 = vld [vmem:[%s17086_s6 + $0x258] sm:$0xff] }
 0x34e   :  { %3237 = vmatprep.subr.bf16.mxu0 %v2813_v47  ;;  %3401 = vmatprep.subr.bf16.mxu1 %v2815_v55  ;;  %v2820_v55 = vunpack.c.h.s8.bf16 %v2492_v32  ;;  %v2829_v49 = vunpack.c.l.s8.bf16 %v2501_v45  ;;  %v2831_v60 = vunpack.c.l.s8.bf16 %v2503_v46 }
 0x363   :  { %v2051_v10 = vpop.f32.mrb[8].mxu0  ;;  %v2133_v11 = vpop.f32.mrb[8].mxu1 }
 0x364   :  { %v2346_v13 = vmul.f32 %v2309_v0, %v2051_v10  ;;  %v2348_v23 = vmul.f32 %v2317_v35, %v2133_v11  ;;  %v2053_v18 = vpop.f32.mrb[9].mxu0  ;;  %v2135_v19 = vpop.f32.mrb[9].mxu1  ;;  %v2837_v0 = vunpack.c.h.s8.bf16 %v2501_v45  ;;  %v2839_v35 = vunpack.c.h.s8.bf16 %v2503_v46  ;;  %v2508_v11 = vld [vmem:[%s17086_s6 + $0x280] sm:$0xff]  ;;  %v2533_v45 = vld [vmem:[%s17086_s6 + $0x348] sm:$0xff]  ;;  %v2535_v46 = vld [vmem:[%s17086_s6 + $0x358] sm:$0xff] }
 0x365   :  { %v2347_v20 = vmul.f32 %v2313_v2, %v2053_v18  ;;  %v2349_v6 = vmul.f32 %v2321_v17, %v2135_v19  ;;  %v2055_v8 = vpop.f32.mrb[10].mxu0  ;;  %v2137_v43 = vpop.f32.mrb[10].mxu1  ;;  %v2509_v2 = vld [vmem:[%s17086_s6 + $0x288] sm:$0xff]  ;;  %v2511_v17 = vld [vmem:[%s17086_s6 + $0x298] sm:$0xff] }
 0x366   :  { %v2354_v39 = vadd.f32 %v2346_v13, %v1570_v4  ;;  %v13290_v24 = vadd.f32 %v2348_v23, %v1572_v5  ;;  %v2056_v9 = vpop.f32.mrb[11].mxu0  ;;  %v2138_v25 = vpop.f32.mrb[11].mxu1  ;;  %v2836_v4 = vunpack.c.h.s8.bf16 %v2500_v53  ;;  %v2838_v5 = vunpack.c.h.s8.bf16 %v2502_v59  ;;  %v2517_v19 = vld [vmem:[%s17086_s6 + $0x2c8] sm:$0xff]  ;;  %v2516_v43 = vld [vmem:[%s17086_s6 + $0x2c0] sm:$0xff]  ;;  %v2534_v59 = vld [vmem:[%s17086_s6 + $0x350] sm:$0xff] }
 0x367   :  { %v2355_v26 = vadd.f32 %v2347_v20, %v1571_v16  ;;  %v2357_v27 = vadd.f32 %v2349_v6, %v1573_v12  ;;  %v2845_v16 = vunpack.c.l.s8.bf16 %v2509_v2  ;;  %v2847_v10 = vunpack.c.l.s8.bf16 %v2511_v17  ;;  %v2510_v12 = vld [vmem:[%s17086_s6 + $0x290] sm:$0xff]  ;;  %v2519_v20 = vld [vmem:[%s17086_s6 + $0x2d8] sm:$0xff]  ;;  %v2532_v53 = vld [vmem:[%s17086_s6 + $0x340] sm:$0xff] }
 0x368   :  { %v2404_v28 = vadd.f32 %v2367_v15, %v2354_v39  ;;  %v2844_v13 = vunpack.c.l.s8.bf16 %v2508_v11  ;;  %v2846_v15 = vunpack.c.l.s8.bf16 %v2510_v12  ;;  %v2853_v23 = vunpack.c.h.s8.bf16 %v2509_v2  ;;  %v2518_v39 = vld [vmem:[%s17086_s6 + $0x2d0] sm:$0xff]  ;;  %v2541_v2 = vld [vmem:[%s17086_s6 + $0x388] sm:$0xff] }
 0x369   :  { %v2405_v44 = vadd.f32 %v2371_v21, %v2355_v26  ;;  %v2407_v29 = vadd.f32 %v2379_v7, %v2357_v27  ;;  %v2855_v18 = vunpack.c.h.s8.bf16 %v2511_v17  ;;  %v2852_v21 = vunpack.c.h.s8.bf16 %v2508_v11  ;;  %v2543_v17 = vld [vmem:[%s17086_s6 + $0x398] sm:$0xff]  ;;  %v2540_v11 = vld [vmem:[%s17086_s6 + $0x380] sm:$0xff] }
 0x36a   :  { %v2412_v31 = vmax.f32 %v2404_v28, 0.0  ;;  %v2854_v6 = vunpack.c.h.s8.bf16 %v2510_v12  ;;  %v2861_v7 = vunpack.c.l.s8.bf16 %v2517_v19  ;;  %v2863_v8 = vunpack.c.l.s8.bf16 %v2519_v20  ;;  %v2525_v28 = vld [vmem:[%s17086_s6 + $0x308] sm:$0xff]  ;;  %v2542_v12 = vld [vmem:[%s17086_s6 + $0x390] sm:$0xff] }
 0x36b   :  { %v2413_v33 = vmax.f32 %v2405_v44, 0.0  ;;  %v2415_v34 = vmax.f32 %v2407_v29, 0.0  ;;  %v2860_v9 = vunpack.c.l.s8.bf16 %v2516_v43  ;;  %v2862_v25 = vunpack.c.l.s8.bf16 %v2518_v39  ;;  %v2527_v44 = vld [vmem:[%s17086_s6 + $0x318] sm:$0xff] }
 0x36c   :  { %v13300_v38 = vpack.c.bf16 %v2412_v31, %v2412_v31  ;;  %v2869_v26 = vunpack.c.h.s8.bf16 %v2517_v19  ;;  %v2871_v27 = vunpack.c.h.s8.bf16 %v2519_v20  ;;  %v2868_v29 = vunpack.c.h.s8.bf16 %v2516_v43  ;;  %v2549_v19 = vld [vmem:[%s17086_s6 + $0x3c8] sm:$0xff]  ;;  %v2551_v20 = vld [vmem:[%s17086_s6 + $0x3d8] sm:$0xff] }
 0x36d   :  { %v13298_v42 = vpack.c.bf16 %v2413_v33, %v2413_v33  ;;  %v13312_v47 = vpack.c.bf16 %v2415_v34, %v2415_v34  ;;  %v2870_v31 = vunpack.c.h.s8.bf16 %v2518_v39  ;;  %v2877_v32 = vunpack.c.l.s8.bf16 %v2525_v28  ;;  %v2524_v33 = vld [vmem:[%s17086_s6 + $0x300] sm:$0xff]  ;;  %v2526_v34 = vld [vmem:[%s17086_s6 + $0x310] sm:$0xff] }
 0x36e   :  { %v2879_v54 = vunpack.c.l.s8.bf16 %v2527_v44  ;;  %v2927_v43 = vunpack.c.l.s8.bf16 %v2551_v20  ;;  %v2548_v39 = vld [vmem:[%s17086_s6 + $0x3c0] sm:$0xff] }
 0x36f   :  { %3228 = vmatprep.mubr.bf16.mxu0 %v13298_v42  ;;  %3392 = vmatprep.mubr.bf16.mxu1 %v13298_v42 }
 0x370   :  { %3229 = vmatmul.mubr.bf16.vlgmr.msra.gmra.mrb[16].mxu0 %v13300_v38  ;;  %3393 = vmatmul.mubr.bf16.vlgmr.msra.gmra.mrb[16].mxu1 %v13300_v38 }
 0x371   :  { %3238 = vmatpush1.bf16.msra.mxu0 %v2812_v36  ;;  %3402 = vmatpush1.bf16.msra.mxu1 %v2814_v37  ;;  %v2876_v36 = vunpack.c.l.s8.bf16 %v2524_v33  ;;  %v2878_v37 = vunpack.c.l.s8.bf16 %v2526_v34 }
 0x372   :  { %3269 = vmatprep.mubr.bf16.mxu0 %v13312_v47  ;;  %3433 = vmatprep.mubr.bf16.mxu1 %v13312_v47 }
 0x373   :  { %3239 = vmatprep.subr.bf16.mxu0 %v2821_v63  ;;  %3403 = vmatprep.subr.bf16.mxu1 %v2823_v40  ;;  %v2885_v63 = vunpack.c.h.s8.bf16 %v2525_v28  ;;  %v2887_v40 = vunpack.c.h.s8.bf16 %v2527_v44  ;;  %v2933_v28 = vunpack.c.h.s8.bf16 %v2549_v19  ;;  %v2935_v44 = vunpack.c.h.s8.bf16 %v2551_v20 }
 0x375   :  { %3240 = vmatpush1.bf16.msra.mxu0 %v2820_v55  ;;  %3404 = vmatpush1.bf16.msra.mxu1 %v2822_v41  ;;  %v2884_v55 = vunpack.c.h.s8.bf16 %v2524_v33  ;;  %v2886_v41 = vunpack.c.h.s8.bf16 %v2526_v34 }
 0x376   :  { %3241 = vmatprep.subr.bf16.mxu0 %v2829_v49  ;;  %3405 = vmatprep.subr.bf16.mxu1 %v2831_v60  ;;  %v2893_v49 = vunpack.c.l.s8.bf16 %v2533_v45  ;;  %v2895_v60 = vunpack.c.l.s8.bf16 %v2535_v46 }
 0x379   :  { %3242 = vmatpush1.bf16.msra.mxu0 %v2828_v62  ;;  %3406 = vmatpush1.bf16.msra.mxu1 %v2830_v14  ;;  %v2892_v62 = vunpack.c.l.s8.bf16 %v2532_v53  ;;  %v2894_v14 = vunpack.c.l.s8.bf16 %v2534_v59 }
 0x37a   :  { %3243 = vmatprep.subr.bf16.mxu0 %v2837_v0  ;;  %3407 = vmatprep.subr.bf16.mxu1 %v2839_v35  ;;  %v2901_v0 = vunpack.c.h.s8.bf16 %v2533_v45  ;;  %v2903_v35 = vunpack.c.h.s8.bf16 %v2535_v46 }
 0x37d   :  { %3244 = vmatpush1.bf16.msra.mxu0 %v2836_v4  ;;  %3408 = vmatpush1.bf16.msra.mxu1 %v2838_v5  ;;  %v2900_v4 = vunpack.c.h.s8.bf16 %v2532_v53  ;;  %v2902_v5 = vunpack.c.h.s8.bf16 %v2534_v59 }
 0x37e   :  { %3245 = vmatprep.subr.bf16.mxu0 %v2845_v16  ;;  %3409 = vmatprep.subr.bf16.mxu1 %v2847_v10  ;;  %v2909_v16 = vunpack.c.l.s8.bf16 %v2541_v2  ;;  %v2911_v10 = vunpack.c.l.s8.bf16 %v2543_v17 }
 0x381   :  { %3246 = vmatpush1.bf16.msra.mxu0 %v2844_v13  ;;  %3410 = vmatpush1.bf16.msra.mxu1 %v2846_v15  ;;  %v2908_v13 = vunpack.c.l.s8.bf16 %v2540_v11  ;;  %v2910_v15 = vunpack.c.l.s8.bf16 %v2542_v12 }
 0x382   :  { %3247 = vmatprep.subr.bf16.mxu0 %v2853_v23  ;;  %3411 = vmatprep.subr.bf16.mxu1 %v2855_v18  ;;  %v2917_v23 = vunpack.c.h.s8.bf16 %v2541_v2  ;;  %v2919_v18 = vunpack.c.h.s8.bf16 %v2543_v17 }
 0x385   :  { %3248 = vmatpush1.bf16.msra.mxu0 %v2852_v21  ;;  %3412 = vmatpush1.bf16.msra.mxu1 %v2854_v6  ;;  %v2916_v21 = vunpack.c.h.s8.bf16 %v2540_v11  ;;  %v2918_v6 = vunpack.c.h.s8.bf16 %v2542_v12 }
 0x386   :  { %3249 = vmatprep.subr.bf16.mxu0 %v2861_v7  ;;  %3413 = vmatprep.subr.bf16.mxu1 %v2863_v8  ;;  %v2375_v7 = vrot.slane %v13274_v1, %v13241_v50  ;;  %v2925_v8 = vunpack.c.l.s8.bf16 %v2549_v19 }
 0x389   :  { %3250 = vmatpush1.bf16.msra.mxu0 %v2860_v9  ;;  %3414 = vmatpush1.bf16.msra.mxu1 %v2862_v25  ;;  %v2550_v9 = vld [vmem:[%s17086_s6 + $0x3d0] sm:$0xff]  ;;  %v2924_v25 = vunpack.c.l.s8.bf16 %v2548_v39 }
 0x38a   :  { %3251 = vmatprep.subr.bf16.mxu0 %v2869_v26  ;;  %3415 = vmatprep.subr.bf16.mxu1 %v2871_v27  ;;  %v2926_v26 = vunpack.c.l.s8.bf16 %v2550_v9  ;;  %v2406_v27 = vadd.f32 %v2375_v7, %v13290_v24  ;;  %v2583_v7 = vld [vmem:[%s17086_s6 + $0x4d8] sm:$0xff] }
 0x38c   :  { %v2414_v33 = vmax.f32 %v2406_v27, 0.0 }
 0x38d   :  { %3252 = vmatpush1.bf16.msra.mxu0 %v2868_v29  ;;  %3416 = vmatpush1.bf16.msra.mxu1 %v2870_v31  ;;  %v2557_v29 = vld [vmem:[%s17086_s6 + $0x408] sm:$0xff]  ;;  %v2559_v31 = vld [vmem:[%s17086_s6 + $0x418] sm:$0xff] }
 0x38e   :  { %3253 = vmatprep.subr.bf16.mxu0 %v2877_v32  ;;  %3417 = vmatprep.subr.bf16.mxu1 %v2879_v54  ;;  %v2932_v32 = vunpack.c.h.s8.bf16 %v2548_v39  ;;  %v2934_v54 = vunpack.c.h.s8.bf16 %v2550_v9  ;;  %v2941_v24 = vunpack.c.l.s8.bf16 %v2557_v29  ;;  %v2943_v34 = vunpack.c.l.s8.bf16 %v2559_v31 }
 0x38f   :  { %v13411_v45 = vpack.c.bf16 %v2414_v33, %v2414_v33  ;;  %v2949_v46 = vunpack.c.h.s8.bf16 %v2557_v29  ;;  %v2991_v9 = vunpack.c.l.s8.bf16 %v2583_v7  ;;  %v2999_v29 = vunpack.c.h.s8.bf16 %v2583_v7 }
 0x391   :  { %3254 = vmatpush1.bf16.msra.mxu0 %v2876_v36  ;;  %3418 = vmatpush1.bf16.msra.mxu1 %v2878_v37  ;;  %v2556_v36 = vld [vmem:[%s17086_s6 + $0x400] sm:$0xff]  ;;  %v2558_v37 = vld [vmem:[%s17086_s6 + $0x410] sm:$0xff] }
 0x392   :  { %3255 = vmatprep.subr.bf16.mxu0 %v2885_v63  ;;  %3419 = vmatprep.subr.bf16.mxu1 %v2887_v40  ;;  %v2940_v63 = vunpack.c.l.s8.bf16 %v2556_v36  ;;  %v2942_v40 = vunpack.c.l.s8.bf16 %v2558_v37  ;;  %v2950_v53 = vunpack.c.h.s8.bf16 %v2558_v37  ;;  %v2590_v37 = vld [vmem:[%s17086_s6 + $0x510] sm:$0xff] }
 0x395   :  { %3256 = vmatpush1.bf16.msra.mxu0 %v2884_v55  ;;  %3420 = vmatpush1.bf16.msra.mxu1 %v2886_v41  ;;  %v2951_v55 = vunpack.c.h.s8.bf16 %v2559_v31  ;;  %v2565_v41 = vld [vmem:[%s17086_s6 + $0x448] sm:$0xff] }
 0x396   :  { %3257 = vmatprep.subr.bf16.mxu0 %v2893_v49  ;;  %3421 = vmatprep.subr.bf16.mxu1 %v2895_v60  ;;  %v2567_v49 = vld [vmem:[%s17086_s6 + $0x458] sm:$0xff]  ;;  %v2948_v60 = vunpack.c.h.s8.bf16 %v2556_v36  ;;  %v2957_v59 = vunpack.c.l.s8.bf16 %v2565_v41  ;;  %v2965_v17 = vunpack.c.h.s8.bf16 %v2565_v41  ;;  %v2589_v31 = vld [vmem:[%s17086_s6 + $0x508] sm:$0xff]  ;;  %v2588_v36 = vld [vmem:[%s17086_s6 + $0x500] sm:$0xff] }
 0x397   :  { %v2597_v41 = vld [vmem:[%s17086_s6 + $0x548] sm:$0xff] }
 0x399   :  { %3258 = vmatpush1.bf16.msra.mxu0 %v2892_v62  ;;  %3422 = vmatpush1.bf16.msra.mxu1 %v2894_v14  ;;  %v2959_v62 = vunpack.c.l.s8.bf16 %v2567_v49  ;;  %v2564_v14 = vld [vmem:[%s17086_s6 + $0x440] sm:$0xff] }
 0x39a   :  { %3259 = vmatprep.subr.bf16.mxu0 %v2901_v0  ;;  %3423 = vmatprep.subr.bf16.mxu1 %v2903_v35  ;;  %v2566_v0 = vld [vmem:[%s17086_s6 + $0x450] sm:$0xff]  ;;  %v2956_v35 = vunpack.c.l.s8.bf16 %v2564_v14 }
 0x39b   :  { %v2958_v2 = vunpack.c.l.s8.bf16 %v2566_v0  ;;  %v2966_v11 = vunpack.c.h.s8.bf16 %v2566_v0  ;;  %v2598_v0 = vld [vmem:[%s17086_s6 + $0x550] sm:$0xff] }
 0x39d   :  { %3260 = vmatpush1.bf16.msra.mxu0 %v2900_v4  ;;  %3424 = vmatpush1.bf16.msra.mxu1 %v2902_v5  ;;  %v2967_v4 = vunpack.c.h.s8.bf16 %v2567_v49  ;;  %v2573_v5 = vld [vmem:[%s17086_s6 + $0x488] sm:$0xff]  ;;  %v2599_v49 = vld [vmem:[%s17086_s6 + $0x558] sm:$0xff] }
 0x39e   :  { %3261 = vmatprep.subr.bf16.mxu0 %v2909_v16  ;;  %3425 = vmatprep.subr.bf16.mxu1 %v2911_v10  ;;  %v2575_v16 = vld [vmem:[%s17086_s6 + $0x498] sm:$0xff]  ;;  %v2964_v10 = vunpack.c.h.s8.bf16 %v2564_v14  ;;  %v2973_v12 = vunpack.c.l.s8.bf16 %v2573_v5  ;;  %v2981_v20 = vunpack.c.h.s8.bf16 %v2573_v5  ;;  %v2596_v14 = vld [vmem:[%s17086_s6 + $0x540] sm:$0xff]  ;;  %v2605_v5 = vld [vmem:[%s17086_s6 + $0x588] sm:$0xff] }
 0x3a1   :  { %3262 = vmatpush1.bf16.msra.mxu0 %v2908_v13  ;;  %3426 = vmatpush1.bf16.msra.mxu1 %v2910_v15  ;;  %v2975_v13 = vunpack.c.l.s8.bf16 %v2575_v16  ;;  %v2572_v15 = vld [vmem:[%s17086_s6 + $0x480] sm:$0xff] }
 0x3a2   :  { %3263 = vmatprep.subr.bf16.mxu0 %v2917_v23  ;;  %3427 = vmatprep.subr.bf16.mxu1 %v2919_v18  ;;  %v2574_v23 = vld [vmem:[%s17086_s6 + $0x490] sm:$0xff]  ;;  %v2972_v18 = vunpack.c.l.s8.bf16 %v2572_v15 }
 0x3a3   :  { %v2974_v19 = vunpack.c.l.s8.bf16 %v2574_v23 }
 0x3a5   :  { %3264 = vmatpush1.bf16.msra.mxu0 %v2916_v21  ;;  %3428 = vmatpush1.bf16.msra.mxu1 %v2918_v6  ;;  %v2983_v21 = vunpack.c.h.s8.bf16 %v2575_v16  ;;  %v2581_v6 = vld [vmem:[%s17086_s6 + $0x4c8] sm:$0xff]  ;;  %v2607_v16 = vld [vmem:[%s17086_s6 + $0x598] sm:$0xff] }
 0x3a6   :  { %3265 = vmatprep.subr.bf16.mxu0 %v2925_v8  ;;  %3429 = vmatprep.subr.bf16.mxu1 %v2927_v43  ;;  %v2980_v8 = vunpack.c.h.s8.bf16 %v2572_v15  ;;  %v2982_v43 = vunpack.c.h.s8.bf16 %v2574_v23  ;;  %v2989_v39 = vunpack.c.l.s8.bf16 %v2581_v6  ;;  %v3039_v15 = vunpack.c.l.s8.bf16 %v2607_v16  ;;  %v2604_v23 = vld [vmem:[%s17086_s6 + $0x580] sm:$0xff] }
 0x3a9   :  { %3266 = vmatpush1.bf16.msra.mxu0 %v2924_v25  ;;  %3430 = vmatpush1.bf16.msra.mxu1 %v2926_v26  ;;  %v2580_v25 = vld [vmem:[%s17086_s6 + $0x4c0] sm:$0xff]  ;;  %v2582_v26 = vld [vmem:[%s17086_s6 + $0x4d0] sm:$0xff] }
 0x3aa   :  { %3267 = vmatprep.subr.bf16.mxu0 %v2933_v28  ;;  %3431 = vmatprep.subr.bf16.mxu1 %v2935_v44  ;;  %v2988_v27 = vunpack.c.l.s8.bf16 %v2580_v25  ;;  %v2990_v28 = vunpack.c.l.s8.bf16 %v2582_v26  ;;  %v2997_v44 = vunpack.c.h.s8.bf16 %v2581_v6  ;;  %v2998_v33 = vunpack.c.h.s8.bf16 %v2582_v26  ;;  %v2613_v26 = vld [vmem:[%s17086_s6 + $0x5c8] sm:$0xff] }
 0x3ab   :  { %v3036_v6 = vunpack.c.l.s8.bf16 %v2604_v23 }
 0x3ad   :  { %3268 = vmatpush1.bf16.msra.mxu0 %v2932_v32  ;;  %3432 = vmatpush1.bf16.msra.mxu1 %v2934_v54  ;;  %v2591_v32 = vld [vmem:[%s17086_s6 + $0x518] sm:$0xff]  ;;  %v2996_v54 = vunpack.c.h.s8.bf16 %v2580_v25 }
 0x3ae   :  { %3278 = vmatprep.subr.bf16.mxu0 %v2941_v24  ;;  %3442 = vmatprep.subr.bf16.mxu1 %v2943_v34  ;;  %v3005_v24 = vunpack.c.l.s8.bf16 %v2589_v31  ;;  %v3007_v34 = vunpack.c.l.s8.bf16 %v2591_v32 }
 0x3b0   :  { %3270 = vmatmul.mubr.bf16.vlgmr.msra.gmra.mrb[16].mxu0 %v13411_v45  ;;  %3434 = vmatmul.mubr.bf16.vlgmr.msra.gmra.mrb[16].mxu1 %v13411_v45 }
 0x3b1   :  { %3279 = vmatpush1.bf16.msra.mxu0 %v2940_v63  ;;  %3443 = vmatpush1.bf16.msra.mxu1 %v2942_v40  ;;  %v3004_v63 = vunpack.c.l.s8.bf16 %v2588_v36  ;;  %v3006_v40 = vunpack.c.l.s8.bf16 %v2590_v37 }
 0x3b2   :  { %3280 = vmatprep.subr.bf16.mxu0 %v2949_v46  ;;  %3444 = vmatprep.subr.bf16.mxu1 %v2951_v55  ;;  %v3013_v46 = vunpack.c.h.s8.bf16 %v2589_v31  ;;  %v3015_v55 = vunpack.c.h.s8.bf16 %v2591_v32  ;;  %v3044_v31 = vunpack.c.h.s8.bf16 %v2604_v23 }
 0x3b5   :  { %3281 = vmatpush1.bf16.msra.mxu0 %v2948_v60  ;;  %3445 = vmatpush1.bf16.msra.mxu1 %v2950_v53  ;;  %v3012_v60 = vunpack.c.h.s8.bf16 %v2588_v36  ;;  %v3014_v53 = vunpack.c.h.s8.bf16 %v2590_v37  ;;  %v2614_v36 = vld [vmem:[%s17086_s6 + $0x5d0] sm:$0xff] }
 0x3b6   :  { %3282 = vmatprep.subr.bf16.mxu0 %v2957_v59  ;;  %3446 = vmatprep.subr.bf16.mxu1 %v2959_v62  ;;  %v3021_v59 = vunpack.c.l.s8.bf16 %v2597_v41  ;;  %v3023_v62 = vunpack.c.l.s8.bf16 %v2599_v49 }
 0x3b9   :  { %3283 = vmatpush1.bf16.msra.mxu0 %v2956_v35  ;;  %3447 = vmatpush1.bf16.msra.mxu1 %v2958_v2  ;;  %v3020_v35 = vunpack.c.l.s8.bf16 %v2596_v14  ;;  %v3022_v2 = vunpack.c.l.s8.bf16 %v2598_v0 }
 0x3ba   :  { %3284 = vmatprep.subr.bf16.mxu0 %v2965_v17  ;;  %3448 = vmatprep.subr.bf16.mxu1 %v2967_v4  ;;  %v3029_v17 = vunpack.c.h.s8.bf16 %v2597_v41  ;;  %v3031_v4 = vunpack.c.h.s8.bf16 %v2599_v49 }
 0x3bd   :  { %3285 = vmatpush1.bf16.msra.mxu0 %v2964_v10  ;;  %3449 = vmatpush1.bf16.msra.mxu1 %v2966_v11  ;;  %v3028_v10 = vunpack.c.h.s8.bf16 %v2596_v14  ;;  %v3030_v11 = vunpack.c.h.s8.bf16 %v2598_v0  ;;  %v3054_v0 = vunpack.c.l.s8.bf16 %v2614_v36 }
 0x3be   :  { %3286 = vmatprep.subr.bf16.mxu0 %v2973_v12  ;;  %3450 = vmatprep.subr.bf16.mxu1 %v2975_v13  ;;  %v13482_v12 = vsub.s32 4, %v13235_v48  ;;  %v3037_v13 = vunpack.c.l.s8.bf16 %v2605_v5 }
 0x3c0   :  { %17147 = vst [vmem:[#allocation9_spill] sm:$0xff] %v13482_v12 }
 0x3c1   :  { %3287 = vmatpush1.bf16.msra.mxu0 %v2972_v18  ;;  %3451 = vmatpush1.bf16.msra.mxu1 %v2974_v19  ;;  %v2606_v18 = vld [vmem:[%s17086_s6 + $0x590] sm:$0xff]  ;;  %v13491_v19 = vsub.s32 6, %v13235_v48 }
 0x3c2   :  { %3288 = vmatprep.subr.bf16.mxu0 %v2981_v20  ;;  %3452 = vmatprep.subr.bf16.mxu1 %v2983_v21  ;;  %v13494_v20 = vsub.s32 5, %v13235_v48  ;;  %v13497_v21 = vsub.s32 7, %v13235_v48  ;;  %v3038_v7 = vunpack.c.l.s8.bf16 %v2606_v18  ;;  %v3046_v32 = vunpack.c.h.s8.bf16 %v2606_v18 }
 0x3c3   :  { %17148 = vst [vmem:[#allocation10_spill] sm:$0xff] %v13491_v19 }
 0x3c4   :  { %17149 = vst [vmem:[#allocation11_spill] sm:$0xff] %v13494_v20  ;;  %17150 = vst [vmem:[#allocation12_spill] sm:$0xff] %v13497_v21  ;;  %v1553_v25 = vrot.slane %v13249_v51, %v13494_v20  ;;  %v1561_v48 = vrot.slane %v13249_v51, %v13497_v21 }
 0x3c5   :  { %3289 = vmatpush1.bf16.msra.mxu0 %v2980_v8  ;;  %3453 = vmatpush1.bf16.msra.mxu1 %v2982_v43  ;;  %v1549_v8 = vrot.slane %v13249_v51, %v13482_v12  ;;  %v3045_v43 = vunpack.c.h.s8.bf16 %v2605_v5  ;;  %v3061_v5 = vunpack.c.h.s8.bf16 %v2613_v26 }
 0x3c6   :  { %3290 = vmatprep.subr.bf16.mxu0 %v2989_v39  ;;  %3454 = vmatprep.subr.bf16.mxu1 %v2991_v9  ;;  %v3047_v39 = vunpack.c.h.s8.bf16 %v2607_v16  ;;  %v1557_v9 = vrot.slane %v13249_v51, %v13491_v19  ;;  %v2337_v51 = vrot.slane %v13257_v3, %v13497_v21 }
 0x3c8   :  { %v1576_v37 = vmul.f32 %v1557_v9, %v13071_v57  ;;  %v2620_v9 = vld [vmem:[%s17086_s6 + $0x600] sm:$0xff] }
 0x3c9   :  { %3291 = vmatpush1.bf16.msra.mxu0 %v2988_v27  ;;  %3455 = vmatpush1.bf16.msra.mxu1 %v2990_v28  ;;  %v2615_v27 = vld [vmem:[%s17086_s6 + $0x5d8] sm:$0xff]  ;;  %v2325_v28 = vrot.slane %v13257_v3, %v13482_v12 }
 0x3ca   :  { %3292 = vmatprep.subr.bf16.mxu0 %v2997_v44  ;;  %3456 = vmatprep.subr.bf16.mxu1 %v2999_v29  ;;  %v2333_v44 = vrot.slane %v13257_v3, %v13491_v19  ;;  %v2329_v29 = vrot.slane %v13257_v3, %v13494_v20  ;;  %v1575_v3 = vmul.f32 %v1553_v25, %v13073_v58  ;;  %v3063_v16 = vunpack.c.h.s8.bf16 %v2615_v27  ;;  %v2622_v25 = vld [vmem:[%s17086_s6 + $0x610] sm:$0xff] }
 0x3cd   :  { %3293 = vmatpush1.bf16.msra.mxu0 %v2996_v54  ;;  %3457 = vmatpush1.bf16.msra.mxu1 %v2998_v33  ;;  %v1574_v54 = vmul.f32 %v1549_v8, %v13069_v56  ;;  %v3053_v33 = vunpack.c.l.s8.bf16 %v2613_v26  ;;  %v2383_v56 = vrot.slane %v13274_v1, %v13482_v12 }
 0x3ce   :  { %3294 = vmatprep.subr.bf16.mxu0 %v3005_v24  ;;  %3458 = vmatprep.subr.bf16.mxu1 %v3007_v34  ;;  %v3055_v24 = vunpack.c.l.s8.bf16 %v2615_v27  ;;  %v2612_v34 = vld [vmem:[%s17086_s6 + $0x5c0] sm:$0xff] }
 0x3cf   :  { %v3052_v14 = vunpack.c.l.s8.bf16 %v2612_v34 }
 0x3d1   :  { %3295 = vmatpush1.bf16.msra.mxu0 %v3004_v63  ;;  %3459 = vmatpush1.bf16.msra.mxu1 %v3006_v40  ;;  %v1577_v63 = vmul.f32 %v1561_v48, %v13075_v22 }
 0x3d2   :  { %3296 = vmatprep.subr.bf16.mxu0 %v3013_v46  ;;  %3460 = vmatprep.subr.bf16.mxu1 %v3015_v55 }
 0x3d5   :  { %3297 = vmatpush1.bf16.msra.mxu0 %v3012_v60  ;;  %3461 = vmatpush1.bf16.msra.mxu1 %v3014_v53  ;;  %v2387_v60 = vrot.slane %v13274_v1, %v13494_v20 }
 0x3d6   :  { %3298 = vmatprep.subr.bf16.mxu0 %v3021_v59  ;;  %3462 = vmatprep.subr.bf16.mxu1 %v3023_v62  ;;  %v2395_v59 = vrot.slane %v13274_v1, %v13497_v21  ;;  %v2621_v1 = vld [vmem:[%s17086_s6 + $0x608] sm:$0xff] }
 0x3d9   :  { %3299 = vmatpush1.bf16.msra.mxu0 %v3020_v35  ;;  %3463 = vmatpush1.bf16.msra.mxu1 %v3022_v2 }
 0x3da   :  { %3300 = vmatprep.subr.bf16.mxu0 %v3029_v17  ;;  %3464 = vmatprep.subr.bf16.mxu1 %v3031_v4 }
 0x3dd   :  { %3301 = vmatpush1.bf16.msra.mxu0 %v3028_v10  ;;  %3465 = vmatpush1.bf16.msra.mxu1 %v3030_v11 }
 0x3de   :  { %3302 = vmatprep.subr.bf16.mxu0 %v3037_v13  ;;  %3466 = vmatprep.subr.bf16.mxu1 %v3039_v15  ;;  %v2623_v13 = vld [vmem:[%s17086_s6 + $0x618] sm:$0xff] }
 0x3e1   :  { %3303 = vmatpush1.bf16.msra.mxu0 %v3036_v6  ;;  %3467 = vmatpush1.bf16.msra.mxu1 %v3038_v7  ;;  %v3060_v6 = vunpack.c.h.s8.bf16 %v2612_v34  ;;  %v3062_v7 = vunpack.c.h.s8.bf16 %v2614_v36  ;;  %v3078_v34 = vunpack.c.h.s8.bf16 %v2622_v25 }
 0x3e2   :  { %3304 = vmatprep.subr.bf16.mxu0 %v3045_v43  ;;  %3468 = vmatprep.subr.bf16.mxu1 %v3047_v39  ;;  %v3069_v43 = vunpack.c.l.s8.bf16 %v2621_v1  ;;  %v3071_v39 = vunpack.c.l.s8.bf16 %v2623_v13 }
 0x3e3   :  { %v2215_v40 = vpop.f32.mrb[12].mxu0  ;;  %v2297_v46 = vpop.f32.mrb[12].mxu1 }
 0x3e4   :  { %v2350_v55 = vmul.f32 %v2325_v28, %v2215_v40  ;;  %v2352_v41 = vmul.f32 %v2333_v44, %v2297_v46  ;;  %v2217_v49 = vpop.f32.mrb[13].mxu0  ;;  %v2299_v53 = vpop.f32.mrb[13].mxu1  ;;  %v3068_v28 = vunpack.c.l.s8.bf16 %v2620_v9  ;;  %v3070_v44 = vunpack.c.l.s8.bf16 %v2622_v25 }
 0x3e5   :  { %v2351_v57 = vmul.f32 %v2329_v29, %v2217_v49  ;;  %v2353_v62 = vmul.f32 %v2337_v51, %v2299_v53  ;;  %3305 = vmatpush1.bf16.msra.mxu0 %v3044_v31  ;;  %3469 = vmatpush1.bf16.msra.mxu1 %v3046_v32  ;;  %v2219_v58 = vpop.f32.mrb[14].mxu0  ;;  %v2301_v22 = vpop.f32.mrb[14].mxu1  ;;  %v3077_v51 = vunpack.c.h.s8.bf16 %v2621_v1  ;;  %v3079_v31 = vunpack.c.h.s8.bf16 %v2623_v13  ;;  %v2629_v32 = vld [vmem:[%s17086_s6 + $0x648] sm:$0xff]  ;;  %v2639_v49 = vld [vmem:[%s17086_s6 + $0x698] sm:$0xff]  ;;  %v2644_v1 = vld [vmem:[%s17086_s6 + $0x6c0] sm:$0xff] }
 0x3e6   :  { %v2358_v35 = vadd.f32 %v2350_v55, %v1574_v54  ;;  %v13537_v2 = vadd.f32 %v2352_v41, %v1576_v37  ;;  %v2220_v17 = vpop.f32.mrb[15].mxu0  ;;  %v2302_v4 = vpop.f32.mrb[15].mxu1  ;;  %3306 = vmatprep.subr.bf16.mxu0 %v3053_v33  ;;  %3470 = vmatprep.subr.bf16.mxu1 %v3055_v24  ;;  %v2631_v54 = vld [vmem:[%s17086_s6 + $0x658] sm:$0xff]  ;;  %v3076_v24 = vunpack.c.h.s8.bf16 %v2620_v9  ;;  %v3085_v36 = vunpack.c.l.s8.bf16 %v2629_v32  ;;  %v2637_v41 = vld [vmem:[%s17086_s6 + $0x688] sm:$0xff]  ;;  %v2638_v58 = vld [vmem:[%s17086_s6 + $0x690] sm:$0xff] }
 0x3e7   :  { %v2359_v10 = vadd.f32 %v2351_v57, %v1575_v3  ;;  %v2361_v11 = vadd.f32 %v2353_v62, %v1577_v63  ;;  %v3087_v37 = vunpack.c.l.s8.bf16 %v2631_v54  ;;  %v2628_v3 = vld [vmem:[%s17086_s6 + $0x640] sm:$0xff]  ;;  %v2630_v63 = vld [vmem:[%s17086_s6 + $0x650] sm:$0xff]  ;;  %v3093_v46 = vunpack.c.h.s8.bf16 %v2629_v32  ;;  %v2645_v17 = vld [vmem:[%s17086_s6 + $0x6c8] sm:$0xff] }
 0x3e8   :  { %v2408_v15 = vadd.f32 %v2383_v56, %v2358_v35  ;;  %v3084_v40 = vunpack.c.l.s8.bf16 %v2628_v3  ;;  %v3086_v56 = vunpack.c.l.s8.bf16 %v2630_v63  ;;  %v3095_v55 = vunpack.c.h.s8.bf16 %v2631_v54  ;;  %v2636_v62 = vld [vmem:[%s17086_s6 + $0x680] sm:$0xff]  ;;  %v2647_v4 = vld [vmem:[%s17086_s6 + $0x6d8] sm:$0xff]  ;;  %v2646_v13 = vld [vmem:[%s17086_s6 + $0x6d0] sm:$0xff] }
 0x3e9   :  { %v2409_v23 = vadd.f32 %v2387_v60, %v2359_v10  ;;  %v2411_v18 = vadd.f32 %v2395_v59, %v2361_v11  ;;  %3307 = vmatpush1.bf16.msra.mxu0 %v3052_v14  ;;  %3471 = vmatpush1.bf16.msra.mxu1 %v3054_v0  ;;  %v3092_v60 = vunpack.c.h.s8.bf16 %v2628_v3  ;;  %v3094_v53 = vunpack.c.h.s8.bf16 %v2630_v63  ;;  %v2661_v32 = vld [vmem:[%s17086_s6 + $0x748] sm:$0xff]  ;;  %v2663_v54 = vld [vmem:[%s17086_s6 + $0x758] sm:$0xff]  ;;  %v2660_v3 = vld [vmem:[%s17086_s6 + $0x740] sm:$0xff] }
 0x3ea   :  { %v2416_v8 = vmax.f32 %v2408_v15, 0.0  ;;  %3308 = vmatprep.subr.bf16.mxu0 %v3061_v5  ;;  %3472 = vmatprep.subr.bf16.mxu1 %v3063_v16  ;;  %v3101_v59 = vunpack.c.l.s8.bf16 %v2637_v41  ;;  %v3103_v57 = vunpack.c.l.s8.bf16 %v2639_v49  ;;  %v3100_v22 = vunpack.c.l.s8.bf16 %v2636_v62  ;;  %v2662_v63 = vld [vmem:[%s17086_s6 + $0x750] sm:$0xff] }
 0x3eb   :  { %v2417_v48 = vmax.f32 %v2409_v23, 0.0  ;;  %v2419_v26 = vmax.f32 %v2411_v18, 0.0  ;;  %v3102_v14 = vunpack.c.l.s8.bf16 %v2638_v58  ;;  %v3109_v0 = vunpack.c.h.s8.bf16 %v2637_v41  ;;  %v2669_v41 = vld [vmem:[%s17086_s6 + $0x788] sm:$0xff] }
 0x3ec   :  { %v13553_v29 = vpack.c.bf16 %v2416_v8, %v2416_v8  ;;  %v3111_v35 = vunpack.c.h.s8.bf16 %v2639_v49  ;;  %v3108_v5 = vunpack.c.h.s8.bf16 %v2636_v62  ;;  %v3110_v16 = vunpack.c.h.s8.bf16 %v2638_v58  ;;  %v2655_v8 = vld [vmem:[%s17086_s6 + $0x718] sm:$0xff]  ;;  %v2668_v62 = vld [vmem:[%s17086_s6 + $0x780] sm:$0xff]  ;;  %v2670_v58 = vld [vmem:[%s17086_s6 + $0x790] sm:$0xff] }
 0x3ed   :  { %v13551_v27 = vpack.c.bf16 %v2417_v48, %v2417_v48  ;;  %3309 = vmatpush1.bf16.msra.mxu0 %v3060_v6  ;;  %3473 = vmatpush1.bf16.msra.mxu1 %v3062_v7  ;;  %v13563_v33 = vpack.c.bf16 %v2419_v26, %v2419_v26  ;;  %v3117_v10 = vunpack.c.l.s8.bf16 %v2645_v17  ;;  %v3119_v11 = vunpack.c.l.s8.bf16 %v2647_v4  ;;  %v2653_v7 = vld [vmem:[%s17086_s6 + $0x708] sm:$0xff]  ;;  %v2652_v48 = vld [vmem:[%s17086_s6 + $0x700] sm:$0xff]  ;;  %v2654_v26 = vld [vmem:[%s17086_s6 + $0x710] sm:$0xff] }
 0x3ee   :  { %3319 = vmatprep.subr.bf16.mxu0 %v3069_v43  ;;  %3483 = vmatprep.subr.bf16.mxu1 %v3071_v39  ;;  %v3116_v15 = vunpack.c.l.s8.bf16 %v2644_v1  ;;  %v3118_v23 = vunpack.c.l.s8.bf16 %v2646_v13  ;;  %v3125_v18 = vunpack.c.h.s8.bf16 %v2645_v17  ;;  %v3127_v6 = vunpack.c.h.s8.bf16 %v2647_v4  ;;  %v2671_v49 = vld [vmem:[%s17086_s6 + $0x798] sm:$0xff]  ;;  %v2677_v17 = vld [vmem:[%s17086_s6 + $0x7c8] sm:$0xff] }
 0x3ef   :  { %3310 = vmatprep.mubr.bf16.mxu0 %v13551_v27  ;;  %3474 = vmatprep.mubr.bf16.mxu1 %v13551_v27  ;;  %v3124_v43 = vunpack.c.h.s8.bf16 %v2644_v1  ;;  %v3126_v39 = vunpack.c.h.s8.bf16 %v2646_v13  ;;  %v3133_v9 = vunpack.c.l.s8.bf16 %v2653_v7  ;;  %v3135_v25 = vunpack.c.l.s8.bf16 %v2655_v8  ;;  %v2679_v4 = vld [vmem:[%s17086_s6 + $0x7d8] sm:$0xff] }
 0x3f0   :  { %3311 = vmatmul.mubr.bf16.vlgmr.msra.gmra.mrb[16].mxu0 %v13553_v29  ;;  %3475 = vmatmul.mubr.bf16.vlgmr.msra.gmra.mrb[16].mxu1 %v13553_v29  ;;  %v3181_v1 = vunpack.c.l.s8.bf16 %v2677_v17  ;;  %v3183_v13 = vunpack.c.l.s8.bf16 %v2679_v4 }
 0x3f1   :  { %3320 = vmatpush1.bf16.msra.mxu0 %v3068_v28  ;;  %3484 = vmatpush1.bf16.msra.mxu1 %v3070_v44  ;;  %v3132_v28 = vunpack.c.l.s8.bf16 %v2652_v48  ;;  %v3134_v44 = vunpack.c.l.s8.bf16 %v2654_v26 }
 0x3f2   :  { %3351 = vmatprep.mubr.bf16.mxu0 %v13563_v33  ;;  %3515 = vmatprep.mubr.bf16.mxu1 %v13563_v33 }
 0x3f3   :  { %3321 = vmatprep.subr.bf16.mxu0 %v3077_v51  ;;  %3485 = vmatprep.subr.bf16.mxu1 %v3079_v31  ;;  %v3141_v51 = vunpack.c.h.s8.bf16 %v2653_v7  ;;  %v3143_v31 = vunpack.c.h.s8.bf16 %v2655_v8  ;;  %v3189_v8 = vunpack.c.h.s8.bf16 %v2677_v17 }
 0x3f5   :  { %3322 = vmatpush1.bf16.msra.mxu0 %v3076_v24  ;;  %3486 = vmatpush1.bf16.msra.mxu1 %v3078_v34  ;;  %v3140_v24 = vunpack.c.h.s8.bf16 %v2652_v48  ;;  %v3142_v34 = vunpack.c.h.s8.bf16 %v2654_v26 }
 0x3f6   :  { %3323 = vmatprep.subr.bf16.mxu0 %v3085_v36  ;;  %3487 = vmatprep.subr.bf16.mxu1 %v3087_v37  ;;  %v3149_v36 = vunpack.c.l.s8.bf16 %v2661_v32  ;;  %v3151_v37 = vunpack.c.l.s8.bf16 %v2663_v54 }
 0x3f9   :  { %3324 = vmatpush1.bf16.msra.mxu0 %v3084_v40  ;;  %3488 = vmatpush1.bf16.msra.mxu1 %v3086_v56  ;;  %v3148_v40 = vunpack.c.l.s8.bf16 %v2660_v3  ;;  %v3150_v56 = vunpack.c.l.s8.bf16 %v2662_v63 }
 0x3fa   :  { %3325 = vmatprep.subr.bf16.mxu0 %v3093_v46  ;;  %3489 = vmatprep.subr.bf16.mxu1 %v3095_v55  ;;  %v3157_v46 = vunpack.c.h.s8.bf16 %v2661_v32  ;;  %v3159_v55 = vunpack.c.h.s8.bf16 %v2663_v54 }
 0x3fd   :  { %3326 = vmatpush1.bf16.msra.mxu0 %v3092_v60  ;;  %3490 = vmatpush1.bf16.msra.mxu1 %v3094_v53  ;;  %v3156_v60 = vunpack.c.h.s8.bf16 %v2660_v3  ;;  %v3158_v53 = vunpack.c.h.s8.bf16 %v2662_v63 }
 0x3fe   :  { %3327 = vmatprep.subr.bf16.mxu0 %v3101_v59  ;;  %3491 = vmatprep.subr.bf16.mxu1 %v3103_v57  ;;  %v3165_v59 = vunpack.c.l.s8.bf16 %v2669_v41  ;;  %v3167_v57 = vunpack.c.l.s8.bf16 %v2671_v49 }
 0x401   :  { %3328 = vmatpush1.bf16.msra.mxu0 %v3100_v22  ;;  %3492 = vmatpush1.bf16.msra.mxu1 %v3102_v14  ;;  %v3164_v22 = vunpack.c.l.s8.bf16 %v2668_v62  ;;  %v3166_v14 = vunpack.c.l.s8.bf16 %v2670_v58 }
 0x402   :  { %3329 = vmatprep.subr.bf16.mxu0 %v3109_v0  ;;  %3493 = vmatprep.subr.bf16.mxu1 %v3111_v35  ;;  %v3173_v0 = vunpack.c.h.s8.bf16 %v2669_v41  ;;  %v3175_v35 = vunpack.c.h.s8.bf16 %v2671_v49 }
 0x405   :  { %3330 = vmatpush1.bf16.msra.mxu0 %v3108_v5  ;;  %3494 = vmatpush1.bf16.msra.mxu1 %v3110_v16  ;;  %v3172_v5 = vunpack.c.h.s8.bf16 %v2668_v62  ;;  %v3174_v16 = vunpack.c.h.s8.bf16 %v2670_v58 }
 0x406   :  { %3331 = vmatprep.subr.bf16.mxu0 %v3117_v10  ;;  %3495 = vmatprep.subr.bf16.mxu1 %v3119_v11  ;;  %v11694_v10 = vld [vmem:[%s17146_s2] sm:$0xff] }
 0x407   :  { %v2391_v11 = vrot.slane %v11694_v10, %v13491_v19  ;;  %v2459_v10 = vld [vmem:[%s17086_s6 + $0xf8] sm:$0xff] }
 0x409   :  { %3332 = vmatpush1.bf16.msra.mxu0 %v3116_v15  ;;  %3496 = vmatpush1.bf16.msra.mxu1 %v3118_v23  ;;  %v2676_v15 = vld [vmem:[%s17086_s6 + $0x7c0] sm:$0xff]  ;;  %v2678_v23 = vld [vmem:[%s17086_s6 + $0x7d0] sm:$0xff]  ;;  %v2410_v7 = vadd.f32 %v2391_v11, %v13537_v2 }
 0x40a   :  { %3333 = vmatprep.subr.bf16.mxu0 %v3125_v18  ;;  %3497 = vmatprep.subr.bf16.mxu1 %v3127_v6  ;;  %v3180_v18 = vunpack.c.l.s8.bf16 %v2676_v15  ;;  %v3182_v6 = vunpack.c.l.s8.bf16 %v2678_v23  ;;  %v3190_v48 = vunpack.c.h.s8.bf16 %v2678_v23  ;;  %v2739_v23 = vunpack.c.l.s8.bf16 %v2459_v10 }
 0x40b   :  { %v2418_v26 = vmax.f32 %v2410_v7, 0.0 }
 0x40d   :  { %3334 = vmatpush1.bf16.msra.mxu0 %v3124_v43  ;;  %3498 = vmatpush1.bf16.msra.mxu1 %v3126_v39  ;;  %v3191_v43 = vunpack.c.h.s8.bf16 %v2679_v4  ;;  %v2433_v39 = vld [vmem:[%s17086_s6 + $0x28] sm:$0xff]  ;;  %v13664_v32 = vpack.c.bf16 %v2418_v26, %v2418_v26 }
 0x40e   :  { %3335 = vmatprep.subr.bf16.mxu0 %v3133_v9  ;;  %3499 = vmatprep.subr.bf16.mxu1 %v3135_v25  ;;  %v2435_v9 = vld [vmem:[%s17086_s6 + $0x38] sm:$0xff]  ;;  %v3188_v25 = vunpack.c.h.s8.bf16 %v2676_v15  ;;  %v2689_v2 = vunpack.c.l.s8.bf16 %v2433_v39  ;;  %v2456_v15 = vld [vmem:[%s17086_s6 + $0xe0] sm:$0xff] }
 0x411   :  { %3336 = vmatpush1.bf16.msra.mxu0 %v3132_v28  ;;  %3500 = vmatpush1.bf16.msra.mxu1 %v3134_v44  ;;  %v2691_v28 = vunpack.c.l.s8.bf16 %v2435_v9  ;;  %v2432_v44 = vld [vmem:[%s17086_s6 + $0x20] sm:$0xff] }
 0x412   :  { %3337 = vmatprep.subr.bf16.mxu0 %v3141_v51  ;;  %3501 = vmatprep.subr.bf16.mxu1 %v3143_v31  ;;  %v2434_v51 = vld [vmem:[%s17086_s6 + $0x30] sm:$0xff]  ;;  %v2688_v31 = vunpack.c.l.s8.bf16 %v2432_v44  ;;  %v2696_v3 = vunpack.c.h.s8.bf16 %v2432_v44 }
 0x413   :  { %v2690_v54 = vunpack.c.l.s8.bf16 %v2434_v51  ;;  %v2698_v63 = vunpack.c.h.s8.bf16 %v2434_v51  ;;  %v2466_v44 = vld [vmem:[%s17086_s6 + $0x130] sm:$0xff] }
 0x415   :  { %3338 = vmatpush1.bf16.msra.mxu0 %v3140_v24  ;;  %3502 = vmatpush1.bf16.msra.mxu1 %v3142_v34  ;;  %v2697_v24 = vunpack.c.h.s8.bf16 %v2433_v39  ;;  %v2699_v34 = vunpack.c.h.s8.bf16 %v2435_v9  ;;  %v2465_v39 = vld [vmem:[%s17086_s6 + $0x128] sm:$0xff]  ;;  %v2467_v9 = vld [vmem:[%s17086_s6 + $0x138] sm:$0xff] }
 0x416   :  { %3339 = vmatprep.subr.bf16.mxu0 %v3149_v36  ;;  %3503 = vmatprep.subr.bf16.mxu1 %v3151_v37  ;;  %v2441_v36 = vld [vmem:[%s17086_s6 + $0x68] sm:$0xff]  ;;  %v2443_v37 = vld [vmem:[%s17086_s6 + $0x78] sm:$0xff]  ;;  %v2753_v26 = vunpack.c.l.s8.bf16 %v2465_v39 }
 0x419   :  { %3340 = vmatpush1.bf16.msra.mxu0 %v3148_v40  ;;  %3504 = vmatpush1.bf16.msra.mxu1 %v3150_v56  ;;  %v2705_v40 = vunpack.c.l.s8.bf16 %v2441_v36  ;;  %v2440_v56 = vld [vmem:[%s17086_s6 + $0x60] sm:$0xff] }
 0x41a   :  { %3341 = vmatprep.subr.bf16.mxu0 %v3157_v46  ;;  %3505 = vmatprep.subr.bf16.mxu1 %v3159_v55  ;;  %v2707_v46 = vunpack.c.l.s8.bf16 %v2443_v37  ;;  %v2442_v55 = vld [vmem:[%s17086_s6 + $0x70] sm:$0xff]  ;;  %v2704_v41 = vunpack.c.l.s8.bf16 %v2440_v56 }
 0x41b   :  { %v2706_v49 = vunpack.c.l.s8.bf16 %v2442_v55  ;;  %v2714_v62 = vunpack.c.h.s8.bf16 %v2442_v55 }
 0x41d   :  { %3342 = vmatpush1.bf16.msra.mxu0 %v3156_v60  ;;  %3506 = vmatpush1.bf16.msra.mxu1 %v3158_v53  ;;  %v2713_v60 = vunpack.c.h.s8.bf16 %v2441_v36  ;;  %v2449_v53 = vld [vmem:[%s17086_s6 + $0xa8] sm:$0xff]  ;;  %v2475_v36 = vld [vmem:[%s17086_s6 + $0x178] sm:$0xff] }
 0x41e   :  { %3343 = vmatprep.subr.bf16.mxu0 %v3165_v59  ;;  %3507 = vmatprep.subr.bf16.mxu1 %v3167_v57  ;;  %v2451_v59 = vld [vmem:[%s17086_s6 + $0xb8] sm:$0xff]  ;;  %v2712_v57 = vunpack.c.h.s8.bf16 %v2440_v56  ;;  %v2721_v58 = vunpack.c.l.s8.bf16 %v2449_v53  ;;  %v2729_v4 = vunpack.c.h.s8.bf16 %v2449_v53  ;;  %v2771_v56 = vunpack.c.l.s8.bf16 %v2475_v36 }
 0x41f   :  { %v2483_v53 = vld [vmem:[%s17086_s6 + $0x1b8] sm:$0xff] }
 0x421   :  { %3344 = vmatpush1.bf16.msra.mxu0 %v3164_v22  ;;  %3508 = vmatpush1.bf16.msra.mxu1 %v3166_v14  ;;  %v2448_v22 = vld [vmem:[%s17086_s6 + $0xa0] sm:$0xff]  ;;  %v2723_v14 = vunpack.c.l.s8.bf16 %v2451_v59 }
 0x422   :  { %3345 = vmatprep.subr.bf16.mxu0 %v3173_v0  ;;  %3509 = vmatprep.subr.bf16.mxu1 %v3175_v35  ;;  %v2450_v0 = vld [vmem:[%s17086_s6 + $0xb0] sm:$0xff]  ;;  %v2720_v35 = vunpack.c.l.s8.bf16 %v2448_v22  ;;  %v2728_v11 = vunpack.c.h.s8.bf16 %v2448_v22  ;;  %v2787_v22 = vunpack.c.l.s8.bf16 %v2483_v53 }
 0x423   :  { %v2722_v17 = vunpack.c.l.s8.bf16 %v2450_v0 }
 0x425   :  { %3346 = vmatpush1.bf16.msra.mxu0 %v3172_v5  ;;  %3510 = vmatpush1.bf16.msra.mxu1 %v3174_v16  ;;  %v2731_v5 = vunpack.c.h.s8.bf16 %v2451_v59  ;;  %v2457_v16 = vld [vmem:[%s17086_s6 + $0xe8] sm:$0xff] }
 0x426   :  { %3347 = vmatprep.subr.bf16.mxu0 %v3181_v1  ;;  %3511 = vmatprep.subr.bf16.mxu1 %v3183_v13  ;;  %v2730_v1 = vunpack.c.h.s8.bf16 %v2450_v0  ;;  %v2737_v13 = vunpack.c.l.s8.bf16 %v2457_v16 }
 0x429   :  { %3348 = vmatpush1.bf16.msra.mxu0 %v3180_v18  ;;  %3512 = vmatpush1.bf16.msra.mxu1 %v3182_v6  ;;  %v2458_v18 = vld [vmem:[%s17086_s6 + $0xf0] sm:$0xff]  ;;  %v2736_v6 = vunpack.c.l.s8.bf16 %v2456_v15 }
 0x42a   :  { %3349 = vmatprep.subr.bf16.mxu0 %v3189_v8  ;;  %3513 = vmatprep.subr.bf16.mxu1 %v3191_v43  ;;  %v2738_v7 = vunpack.c.l.s8.bf16 %v2458_v18  ;;  %v2745_v8 = vunpack.c.h.s8.bf16 %v2457_v16  ;;  %v2747_v43 = vunpack.c.h.s8.bf16 %v2459_v10  ;;  %v2491_v16 = vld [vmem:[%s17086_s6 + $0x1f8] sm:$0xff] }
 0x42d   :  { %3350 = vmatpush1.bf16.msra.mxu0 %v3188_v25  ;;  %3514 = vmatpush1.bf16.msra.mxu1 %v3190_v48  ;;  %v2744_v25 = vunpack.c.h.s8.bf16 %v2456_v15  ;;  %v2746_v48 = vunpack.c.h.s8.bf16 %v2458_v18  ;;  %v2803_v15 = vunpack.c.l.s8.bf16 %v2491_v16 }
 0x42e   :  { %3524 = vmatprep.subr.bf16.mxu0 %v2689_v2  ;;  %3688 = vmatprep.subr.bf16.mxu1 %v2691_v28  ;;  %v2464_v2 = vld [vmem:[%s17086_s6 + $0x120] sm:$0xff]  ;;  %v2755_v28 = vunpack.c.l.s8.bf16 %v2467_v9 }
 0x42f   :  { %v2752_v51 = vunpack.c.l.s8.bf16 %v2464_v2 }
 0x430   :  { %3352 = vmatmul.mubr.bf16.vlgmr.msra.gmra.mrb[16].mxu0 %v13664_v32  ;;  %3516 = vmatmul.mubr.bf16.vlgmr.msra.gmra.mrb[16].mxu1 %v13664_v32 }
 0x431   :  { %3525 = vmatpush1.bf16.msra.mxu0 %v2688_v31  ;;  %3556 = vmatprep.mubr.bf16.mxu0 %v13298_v42  ;;  %v2754_v31 = vunpack.c.l.s8.bf16 %v2466_v44 }
 0x432   :  { %3689 = vmatpush1.bf16.msra.mxu1 %v2690_v54  ;;  %3720 = vmatprep.mubr.bf16.mxu1 %v13298_v42  ;;  %v2715_v42 = vunpack.c.h.s8.bf16 %v2443_v37  ;;  %v2761_v54 = vunpack.c.h.s8.bf16 %v2465_v39  ;;  %v2760_v37 = vunpack.c.h.s8.bf16 %v2464_v2  ;;  %v2499_v39 = vld [vmem:[%s17086_s6 + $0x238] sm:$0xff] }
 0x433   :  { %3526 = vmatprep.subr.bf16.mxu0 %v2697_v24  ;;  %3690 = vmatprep.subr.bf16.mxu1 %v2699_v34  ;;  %v2763_v24 = vunpack.c.h.s8.bf16 %v2467_v9  ;;  %v2473_v34 = vld [vmem:[%s17086_s6 + $0x168] sm:$0xff]  ;;  %v2819_v2 = vunpack.c.l.s8.bf16 %v2499_v39 }
 0x435   :  { %3527 = vmatpush1.bf16.msra.mxu0 %v2696_v3  ;;  %v2762_v3 = vunpack.c.h.s8.bf16 %v2466_v44 }
 0x436   :  { %3691 = vmatpush1.bf16.msra.mxu1 %v2698_v63  ;;  %3528 = vmatprep.subr.bf16.mxu0 %v2705_v40  ;;  %v2769_v63 = vunpack.c.l.s8.bf16 %v2473_v34  ;;  %v2472_v40 = vld [vmem:[%s17086_s6 + $0x160] sm:$0xff] }
 0x437   :  { %3692 = vmatprep.subr.bf16.mxu1 %v2707_v46  ;;  %v2474_v46 = vld [vmem:[%s17086_s6 + $0x170] sm:$0xff]  ;;  %v2768_v55 = vunpack.c.l.s8.bf16 %v2472_v40  ;;  %v2776_v59 = vunpack.c.h.s8.bf16 %v2472_v40 }
 0x439   :  { %3529 = vmatpush1.bf16.msra.mxu0 %v2704_v41  ;;  %v2770_v41 = vunpack.c.l.s8.bf16 %v2474_v46 }
 0x43a   :  { %3693 = vmatpush1.bf16.msra.mxu1 %v2706_v49  ;;  %3530 = vmatprep.subr.bf16.mxu0 %v2713_v60  ;;  %v2777_v49 = vunpack.c.h.s8.bf16 %v2473_v34  ;;  %v2779_v60 = vunpack.c.h.s8.bf16 %v2475_v36  ;;  %v2507_v34 = vld [vmem:[%s17086_s6 + $0x278] sm:$0xff] }
 0x43b   :  { %3694 = vmatprep.subr.bf16.mxu1 %v2715_v42  ;;  %v2481_v42 = vld [vmem:[%s17086_s6 + $0x1a8] sm:$0xff]  ;;  %v2835_v40 = vunpack.c.l.s8.bf16 %v2507_v34 }
 0x43d   :  { %3531 = vmatpush1.bf16.msra.mxu0 %v2712_v57  ;;  %v2778_v57 = vunpack.c.h.s8.bf16 %v2474_v46 }
 0x43e   :  { %3695 = vmatpush1.bf16.msra.mxu1 %v2714_v62  ;;  %3532 = vmatprep.subr.bf16.mxu0 %v2721_v58  ;;  %v2785_v62 = vunpack.c.l.s8.bf16 %v2481_v42  ;;  %v2480_v58 = vld [vmem:[%s17086_s6 + $0x1a0] sm:$0xff] }
 0x43f   :  { %3696 = vmatprep.subr.bf16.mxu1 %v2723_v14  ;;  %v2482_v14 = vld [vmem:[%s17086_s6 + $0x1b0] sm:$0xff]  ;;  %v2784_v0 = vunpack.c.l.s8.bf16 %v2480_v58  ;;  %v2792_v10 = vunpack.c.h.s8.bf16 %v2480_v58 }
 0x441   :  { %3533 = vmatpush1.bf16.msra.mxu0 %v2720_v35  ;;  %v2786_v35 = vunpack.c.l.s8.bf16 %v2482_v14 }
 0x442   :  { %3697 = vmatpush1.bf16.msra.mxu1 %v2722_v17  ;;  %3534 = vmatprep.subr.bf16.mxu0 %v2729_v4  ;;  %v2793_v17 = vunpack.c.h.s8.bf16 %v2481_v42  ;;  %v2795_v4 = vunpack.c.h.s8.bf16 %v2483_v53 }
 0x443   :  { %3698 = vmatprep.subr.bf16.mxu1 %v2731_v5  ;;  %v2489_v5 = vld [vmem:[%s17086_s6 + $0x1e8] sm:$0xff] }
 0x445   :  { %3535 = vmatpush1.bf16.msra.mxu0 %v2728_v11  ;;  %v2794_v11 = vunpack.c.h.s8.bf16 %v2482_v14 }
 0x446   :  { %3699 = vmatpush1.bf16.msra.mxu1 %v2730_v1  ;;  %3536 = vmatprep.subr.bf16.mxu0 %v2737_v13  ;;  %v2801_v1 = vunpack.c.l.s8.bf16 %v2489_v5  ;;  %v2488_v13 = vld [vmem:[%s17086_s6 + $0x1e0] sm:$0xff] }
 0x447   :  { %3700 = vmatprep.subr.bf16.mxu1 %v2739_v23  ;;  %v2490_v23 = vld [vmem:[%s17086_s6 + $0x1f0] sm:$0xff]  ;;  %v2800_v18 = vunpack.c.l.s8.bf16 %v2488_v13  ;;  %v2808_v9 = vunpack.c.h.s8.bf16 %v2488_v13 }
 0x449   :  { %3537 = vmatpush1.bf16.msra.mxu0 %v2736_v6  ;;  %v2802_v6 = vunpack.c.l.s8.bf16 %v2490_v23 }
 0x44a   :  { %3701 = vmatpush1.bf16.msra.mxu1 %v2738_v7  ;;  %3538 = vmatprep.subr.bf16.mxu0 %v2745_v8  ;;  %v2809_v7 = vunpack.c.h.s8.bf16 %v2489_v5  ;;  %v2811_v8 = vunpack.c.h.s8.bf16 %v2491_v16 }
 0x44b   :  { %3702 = vmatprep.subr.bf16.mxu1 %v2747_v43  ;;  %v2497_v43 = vld [vmem:[%s17086_s6 + $0x228] sm:$0xff] }
 0x44d   :  { %3539 = vmatpush1.bf16.msra.mxu0 %v2744_v25  ;;  %v2810_v25 = vunpack.c.h.s8.bf16 %v2490_v23 }
 0x44e   :  { %3703 = vmatpush1.bf16.msra.mxu1 %v2746_v48  ;;  %3540 = vmatprep.subr.bf16.mxu0 %v2753_v26  ;;  %v2817_v48 = vunpack.c.l.s8.bf16 %v2497_v43  ;;  %v2496_v26 = vld [vmem:[%s17086_s6 + $0x220] sm:$0xff] }
 0x44f   :  { %3704 = vmatprep.subr.bf16.mxu1 %v2755_v28  ;;  %v2498_v28 = vld [vmem:[%s17086_s6 + $0x230] sm:$0xff]  ;;  %v2816_v44 = vunpack.c.l.s8.bf16 %v2496_v26  ;;  %v2824_v36 = vunpack.c.h.s8.bf16 %v2496_v26 }
 0x451   :  { %3541 = vmatpush1.bf16.msra.mxu0 %v2752_v51  ;;  %v2818_v51 = vunpack.c.l.s8.bf16 %v2498_v28 }
 0x452   :  { %3705 = vmatpush1.bf16.msra.mxu1 %v2754_v31  ;;  %3542 = vmatprep.subr.bf16.mxu0 %v2761_v54  ;;  %v2825_v31 = vunpack.c.h.s8.bf16 %v2497_v43  ;;  %v2505_v54 = vld [vmem:[%s17086_s6 + $0x268] sm:$0xff] }
 0x453   :  { %3706 = vmatprep.subr.bf16.mxu1 %v2763_v24  ;;  %v2827_v24 = vunpack.c.h.s8.bf16 %v2499_v39 }
 0x455   :  { %3543 = vmatpush1.bf16.msra.mxu0 %v2760_v37  ;;  %v2826_v37 = vunpack.c.h.s8.bf16 %v2498_v28 }
 0x456   :  { %3707 = vmatpush1.bf16.msra.mxu1 %v2762_v3  ;;  %3544 = vmatprep.subr.bf16.mxu0 %v2769_v63  ;;  %v2833_v3 = vunpack.c.l.s8.bf16 %v2505_v54  ;;  %v2504_v63 = vld [vmem:[%s17086_s6 + $0x260] sm:$0xff] }
 0x457   :  { %3708 = vmatprep.subr.bf16.mxu1 %v2771_v56  ;;  %v2506_v56 = vld [vmem:[%s17086_s6 + $0x270] sm:$0xff] }
 0x458   :  { %v2834_v46 = vunpack.c.l.s8.bf16 %v2506_v56  ;;  %v2842_v42 = vunpack.c.h.s8.bf16 %v2506_v56 }
 0x459   :  { %3545 = vmatpush1.bf16.msra.mxu0 %v2768_v55  ;;  %v2841_v55 = vunpack.c.h.s8.bf16 %v2505_v54 }
 0x45a   :  { %3709 = vmatpush1.bf16.msra.mxu1 %v2770_v41  ;;  %3546 = vmatprep.subr.bf16.mxu0 %v2777_v49  ;;  %v2843_v41 = vunpack.c.h.s8.bf16 %v2507_v34  ;;  %v2513_v49 = vld [vmem:[%s17086_s6 + $0x2a8] sm:$0xff] }
 0x45b   :  { %3710 = vmatprep.subr.bf16.mxu1 %v2779_v60  ;;  %v2840_v60 = vunpack.c.h.s8.bf16 %v2504_v63  ;;  %v2849_v53 = vunpack.c.l.s8.bf16 %v2513_v49  ;;  %v2857_v14 = vunpack.c.h.s8.bf16 %v2513_v49 }
 0x45d   :  { %3547 = vmatpush1.bf16.msra.mxu0 %v2776_v59  ;;  %v2512_v59 = vld [vmem:[%s17086_s6 + $0x2a0] sm:$0xff] }
 0x45e   :  { %3711 = vmatpush1.bf16.msra.mxu1 %v2778_v57  ;;  %3548 = vmatprep.subr.bf16.mxu0 %v2785_v62  ;;  %v2514_v62 = vld [vmem:[%s17086_s6 + $0x2b0] sm:$0xff]  ;;  %v2848_v58 = vunpack.c.l.s8.bf16 %v2512_v59 }
 0x45f   :  { %3712 = vmatprep.subr.bf16.mxu1 %v2787_v22  ;;  %v2850_v22 = vunpack.c.l.s8.bf16 %v2514_v62  ;;  %v2858_v5 = vunpack.c.h.s8.bf16 %v2514_v62 }
 0x461   :  { %3549 = vmatpush1.bf16.msra.mxu0 %v2784_v0 }
 0x462   :  { %3713 = vmatpush1.bf16.msra.mxu1 %v2786_v35  ;;  %3550 = vmatprep.subr.bf16.mxu0 %v2793_v17  ;;  %v2521_v35 = vld [vmem:[%s17086_s6 + $0x2e8] sm:$0xff]  ;;  %v2523_v17 = vld [vmem:[%s17086_s6 + $0x2f8] sm:$0xff] }
 0x463   :  { %3714 = vmatprep.subr.bf16.mxu1 %v2795_v4  ;;  %v2856_v4 = vunpack.c.h.s8.bf16 %v2512_v59  ;;  %v2865_v16 = vunpack.c.l.s8.bf16 %v2521_v35  ;;  %v2873_v23 = vunpack.c.h.s8.bf16 %v2521_v35 }
 0x465   :  { %3551 = vmatpush1.bf16.msra.mxu0 %v2792_v10  ;;  %v2520_v10 = vld [vmem:[%s17086_s6 + $0x2e0] sm:$0xff] }
 0x466   :  { %3715 = vmatpush1.bf16.msra.mxu1 %v2794_v11  ;;  %3552 = vmatprep.subr.bf16.mxu0 %v2801_v1  ;;  %v2867_v11 = vunpack.c.l.s8.bf16 %v2523_v17  ;;  %v2522_v1 = vld [vmem:[%s17086_s6 + $0x2f0] sm:$0xff]  ;;  %v2864_v13 = vunpack.c.l.s8.bf16 %v2520_v10 }
 0x467   :  { %3716 = vmatprep.subr.bf16.mxu1 %v2803_v15  ;;  %v2866_v15 = vunpack.c.l.s8.bf16 %v2522_v1  ;;  %v2874_v43 = vunpack.c.h.s8.bf16 %v2522_v1 }
 0x469   :  { %3553 = vmatpush1.bf16.msra.mxu0 %v2800_v18  ;;  %v2875_v18 = vunpack.c.h.s8.bf16 %v2523_v17 }
 0x46a   :  { %3717 = vmatpush1.bf16.msra.mxu1 %v2802_v6  ;;  %3554 = vmatprep.subr.bf16.mxu0 %v2809_v7  ;;  %v2529_v6 = vld [vmem:[%s17086_s6 + $0x328] sm:$0xff]  ;;  %v2531_v7 = vld [vmem:[%s17086_s6 + $0x338] sm:$0xff] }
 0x46b   :  { %3718 = vmatprep.subr.bf16.mxu1 %v2811_v8  ;;  %v2872_v8 = vunpack.c.h.s8.bf16 %v2520_v10  ;;  %v2881_v39 = vunpack.c.l.s8.bf16 %v2529_v6  ;;  %v2889_v28 = vunpack.c.h.s8.bf16 %v2529_v6 }
 0x46d   :  { %3555 = vmatpush1.bf16.msra.mxu0 %v2808_v9  ;;  %v2528_v9 = vld [vmem:[%s17086_s6 + $0x320] sm:$0xff] }
 0x46e   :  { %3719 = vmatpush1.bf16.msra.mxu1 %v2810_v25  ;;  %3565 = vmatprep.subr.bf16.mxu0 %v2817_v48  ;;  %v2883_v25 = vunpack.c.l.s8.bf16 %v2531_v7  ;;  %v2530_v48 = vld [vmem:[%s17086_s6 + $0x330] sm:$0xff]  ;;  %v2880_v26 = vunpack.c.l.s8.bf16 %v2528_v9  ;;  %v2888_v54 = vunpack.c.h.s8.bf16 %v2528_v9 }
 0x46f   :  { %3729 = vmatprep.subr.bf16.mxu1 %v2819_v2  ;;  %v2882_v2 = vunpack.c.l.s8.bf16 %v2530_v48 }
 0x470   :  { %3557 = vmatmul.mubr.bf16.vlgmr.msra.gmra.mrb[20].mxu0 %v13300_v38 }
 0x471   :  { %3721 = vmatmul.mubr.bf16.vlgmr.msra.gmra.mrb[20].mxu1 %v13300_v38  ;;  %3566 = vmatpush1.bf16.msra.mxu0 %v2816_v44  ;;  %v2832_v38 = vunpack.c.l.s8.bf16 %v2504_v63  ;;  %v2891_v44 = vunpack.c.h.s8.bf16 %v2531_v7 }
 0x472   :  { %3597 = vmatprep.mubr.bf16.mxu0 %v13312_v47  ;;  %3730 = vmatpush1.bf16.msra.mxu1 %v2818_v51  ;;  %v2537_v51 = vld [vmem:[%s17086_s6 + $0x368] sm:$0xff] }
 0x473   :  { %3761 = vmatprep.mubr.bf16.mxu1 %v13312_v47  ;;  %3567 = vmatprep.subr.bf16.mxu0 %v2825_v31  ;;  %v2515_v47 = vld [vmem:[%s17086_s6 + $0x2b8] sm:$0xff]  ;;  %v2897_v34 = vunpack.c.l.s8.bf16 %v2537_v51  ;;  %v2905_v56 = vunpack.c.h.s8.bf16 %v2537_v51 }
 0x474   :  { %3731 = vmatprep.subr.bf16.mxu1 %v2827_v24  ;;  %v2851_v57 = vunpack.c.l.s8.bf16 %v2515_v47  ;;  %v2859_v0 = vunpack.c.h.s8.bf16 %v2515_v47  ;;  %v2539_v31 = vld [vmem:[%s17086_s6 + $0x378] sm:$0xff]  ;;  %v2890_v24 = vunpack.c.h.s8.bf16 %v2530_v48 }
 0x475   :  { %3568 = vmatpush1.bf16.msra.mxu0 %v2824_v36  ;;  %v2536_v36 = vld [vmem:[%s17086_s6 + $0x360] sm:$0xff] }
 0x476   :  { %3732 = vmatpush1.bf16.msra.mxu1 %v2826_v37  ;;  %3569 = vmatprep.subr.bf16.mxu0 %v2833_v3  ;;  %v2899_v37 = vunpack.c.l.s8.bf16 %v2539_v31  ;;  %v2538_v3 = vld [vmem:[%s17086_s6 + $0x370] sm:$0xff]  ;;  %v2896_v63 = vunpack.c.l.s8.bf16 %v2536_v36 }
 0x477   :  { %3733 = vmatprep.subr.bf16.mxu1 %v2835_v40  ;;  %v2898_v40 = vunpack.c.l.s8.bf16 %v2538_v3  ;;  %v2906_v49 = vunpack.c.h.s8.bf16 %v2538_v3 }
 0x479   :  { %3570 = vmatpush1.bf16.msra.mxu0 %v2832_v38  ;;  %v2907_v38 = vunpack.c.h.s8.bf16 %v2539_v31 }
 0x47a   :  { %3734 = vmatpush1.bf16.msra.mxu1 %v2834_v46  ;;  %3571 = vmatprep.subr.bf16.mxu0 %v2841_v55  ;;  %v2545_v46 = vld [vmem:[%s17086_s6 + $0x3a8] sm:$0xff]  ;;  %v2547_v55 = vld [vmem:[%s17086_s6 + $0x3b8] sm:$0xff] }
 0x47b   :  { %3735 = vmatprep.subr.bf16.mxu1 %v2843_v41  ;;  %v2904_v41 = vunpack.c.h.s8.bf16 %v2536_v36  ;;  %v2913_v47 = vunpack.c.l.s8.bf16 %v2545_v46  ;;  %v2921_v62 = vunpack.c.h.s8.bf16 %v2545_v46  ;;  %v2576_v46 = vld [vmem:[%s17086_s6 + $0x4a0] sm:$0xff] }
 0x47d   :  { %3572 = vmatpush1.bf16.msra.mxu0 %v2840_v60  ;;  %v2544_v60 = vld [vmem:[%s17086_s6 + $0x3a0] sm:$0xff] }
 0x47e   :  { %3736 = vmatpush1.bf16.msra.mxu1 %v2842_v42  ;;  %3573 = vmatprep.subr.bf16.mxu0 %v2849_v53  ;;  %v2915_v42 = vunpack.c.l.s8.bf16 %v2547_v55  ;;  %v2546_v53 = vld [vmem:[%s17086_s6 + $0x3b0] sm:$0xff]  ;;  %v2912_v59 = vunpack.c.l.s8.bf16 %v2544_v60 }
 0x47f   :  { %3737 = vmatprep.subr.bf16.mxu1 %v2851_v57  ;;  %v2914_v57 = vunpack.c.l.s8.bf16 %v2546_v53  ;;  %v2922_v35 = vunpack.c.h.s8.bf16 %v2546_v53  ;;  %v2585_v53 = vld [vmem:[%s17086_s6 + $0x4e8] sm:$0xff] }
 0x481   :  { %3574 = vmatpush1.bf16.msra.mxu0 %v2848_v58  ;;  %v2923_v58 = vunpack.c.h.s8.bf16 %v2547_v55 }
 0x482   :  { %3738 = vmatpush1.bf16.msra.mxu1 %v2850_v22  ;;  %3575 = vmatprep.subr.bf16.mxu0 %v2857_v14  ;;  %v2553_v22 = vld [vmem:[%s17086_s6 + $0x3e8] sm:$0xff]  ;;  %v2555_v14 = vld [vmem:[%s17086_s6 + $0x3f8] sm:$0xff] }
 0x483   :  { %3739 = vmatprep.subr.bf16.mxu1 %v2859_v0  ;;  %v2920_v0 = vunpack.c.h.s8.bf16 %v2544_v60  ;;  %v2929_v17 = vunpack.c.l.s8.bf16 %v2553_v22  ;;  %v2937_v1 = vunpack.c.h.s8.bf16 %v2553_v22  ;;  %v2584_v22 = vld [vmem:[%s17086_s6 + $0x4e0] sm:$0xff] }
 0x485   :  { %3576 = vmatpush1.bf16.msra.mxu0 %v2856_v4  ;;  %v2552_v4 = vld [vmem:[%s17086_s6 + $0x3e0] sm:$0xff] }
 0x486   :  { %3740 = vmatpush1.bf16.msra.mxu1 %v2858_v5  ;;  %3577 = vmatprep.subr.bf16.mxu0 %v2865_v16  ;;  %v2931_v5 = vunpack.c.l.s8.bf16 %v2555_v14  ;;  %v2554_v16 = vld [vmem:[%s17086_s6 + $0x3f0] sm:$0xff]  ;;  %v2928_v10 = vunpack.c.l.s8.bf16 %v2552_v4 }
 0x487   :  { %3741 = vmatprep.subr.bf16.mxu1 %v2867_v11  ;;  %v2930_v11 = vunpack.c.l.s8.bf16 %v2554_v16  ;;  %v2938_v6 = vunpack.c.h.s8.bf16 %v2554_v16  ;;  %v2593_v16 = vld [vmem:[%s17086_s6 + $0x528] sm:$0xff] }
 0x489   :  { %3578 = vmatpush1.bf16.msra.mxu0 %v2864_v13  ;;  %v2939_v13 = vunpack.c.h.s8.bf16 %v2555_v14 }
 0x48a   :  { %3742 = vmatpush1.bf16.msra.mxu1 %v2866_v15  ;;  %3579 = vmatprep.subr.bf16.mxu0 %v2873_v23  ;;  %v2561_v15 = vld [vmem:[%s17086_s6 + $0x428] sm:$0xff]  ;;  %v2563_v23 = vld [vmem:[%s17086_s6 + $0x438] sm:$0xff] }
 0x48b   :  { %3743 = vmatprep.subr.bf16.mxu1 %v2875_v18  ;;  %v2936_v18 = vunpack.c.h.s8.bf16 %v2552_v4  ;;  %v2945_v7 = vunpack.c.l.s8.bf16 %v2561_v15  ;;  %v2953_v48 = vunpack.c.h.s8.bf16 %v2561_v15  ;;  %v3001_v4 = vunpack.c.h.s8.bf16 %v2585_v53  ;;  %v2592_v15 = vld [vmem:[%s17086_s6 + $0x520] sm:$0xff] }
 0x48d   :  { %3580 = vmatpush1.bf16.msra.mxu0 %v2872_v8  ;;  %v2560_v8 = vld [vmem:[%s17086_s6 + $0x420] sm:$0xff] }
 0x48e   :  { %3744 = vmatpush1.bf16.msra.mxu1 %v2874_v43  ;;  %3581 = vmatprep.subr.bf16.mxu0 %v2881_v39  ;;  %v2947_v43 = vunpack.c.l.s8.bf16 %v2563_v23  ;;  %v2562_v39 = vld [vmem:[%s17086_s6 + $0x430] sm:$0xff]  ;;  %v2944_v9 = vunpack.c.l.s8.bf16 %v2560_v8 }
 0x48f   :  { %3745 = vmatprep.subr.bf16.mxu1 %v2883_v25  ;;  %v2946_v25 = vunpack.c.l.s8.bf16 %v2562_v39  ;;  %v2954_v51 = vunpack.c.h.s8.bf16 %v2562_v39  ;;  %v2601_v39 = vld [vmem:[%s17086_s6 + $0x568] sm:$0xff] }
 0x491   :  { %3582 = vmatpush1.bf16.msra.mxu0 %v2880_v26  ;;  %v2569_v26 = vld [vmem:[%s17086_s6 + $0x468] sm:$0xff] }
 0x492   :  { %3746 = vmatpush1.bf16.msra.mxu1 %v2882_v2  ;;  %3583 = vmatprep.subr.bf16.mxu0 %v2889_v28  ;;  %v2955_v2 = vunpack.c.h.s8.bf16 %v2563_v23  ;;  %v2571_v28 = vld [vmem:[%s17086_s6 + $0x478] sm:$0xff]  ;;  %v2961_v31 = vunpack.c.l.s8.bf16 %v2569_v26 }
 0x493   :  { %3747 = vmatprep.subr.bf16.mxu1 %v2891_v44  ;;  %v2952_v44 = vunpack.c.h.s8.bf16 %v2560_v8  ;;  %v2971_v3 = vunpack.c.h.s8.bf16 %v2571_v28  ;;  %v3017_v8 = vunpack.c.h.s8.bf16 %v2593_v16 }
 0x495   :  { %3584 = vmatpush1.bf16.msra.mxu0 %v2888_v54  ;;  %v2568_v54 = vld [vmem:[%s17086_s6 + $0x460] sm:$0xff] }
 0x496   :  { %3748 = vmatpush1.bf16.msra.mxu1 %v2890_v24  ;;  %3585 = vmatprep.subr.bf16.mxu0 %v2897_v34  ;;  %v2963_v24 = vunpack.c.l.s8.bf16 %v2571_v28  ;;  %v2570_v34 = vld [vmem:[%s17086_s6 + $0x470] sm:$0xff] }
 0x497   :  { %3749 = vmatprep.subr.bf16.mxu1 %v2899_v37  ;;  %v2962_v36 = vunpack.c.l.s8.bf16 %v2570_v34  ;;  %v2969_v37 = vunpack.c.h.s8.bf16 %v2569_v26  ;;  %v3025_v26 = vunpack.c.l.s8.bf16 %v2601_v39 }
 0x499   :  { %3586 = vmatpush1.bf16.msra.mxu0 %v2896_v63  ;;  %v2577_v63 = vld [vmem:[%s17086_s6 + $0x4a8] sm:$0xff] }
 0x49a   :  { %3750 = vmatpush1.bf16.msra.mxu1 %v2898_v40  ;;  %3587 = vmatprep.subr.bf16.mxu0 %v2905_v56  ;;  %v2968_v40 = vunpack.c.h.s8.bf16 %v2568_v54  ;;  %v2970_v56 = vunpack.c.h.s8.bf16 %v2570_v34  ;;  %v2985_v60 = vunpack.c.h.s8.bf16 %v2577_v63  ;;  %v2609_v34 = vld [vmem:[%s17086_s6 + $0x5a8] sm:$0xff] }
 0x49b   :  { %3751 = vmatprep.subr.bf16.mxu1 %v2907_v38  ;;  %v2977_v38 = vunpack.c.l.s8.bf16 %v2577_v63  ;;  %v2608_v63 = vld [vmem:[%s17086_s6 + $0x5a0] sm:$0xff] }
 0x49d   :  { %3588 = vmatpush1.bf16.msra.mxu0 %v2904_v41  ;;  %v2578_v41 = vld [vmem:[%s17086_s6 + $0x4b0] sm:$0xff] }
 0x49e   :  { %3752 = vmatpush1.bf16.msra.mxu1 %v2906_v49  ;;  %3589 = vmatprep.subr.bf16.mxu0 %v2913_v47  ;;  %v2976_v49 = vunpack.c.l.s8.bf16 %v2576_v46  ;;  %v2978_v47 = vunpack.c.l.s8.bf16 %v2578_v41 }
 0x49f   :  { %3753 = vmatprep.subr.bf16.mxu1 %v2915_v42 }
 0x4a1   :  { %3590 = vmatpush1.bf16.msra.mxu0 %v2912_v59  ;;  %v2587_v59 = vld [vmem:[%s17086_s6 + $0x4f8] sm:$0xff] }
 0x4a2   :  { %3754 = vmatpush1.bf16.msra.mxu1 %v2914_v57  ;;  %3591 = vmatprep.subr.bf16.mxu0 %v2921_v62  ;;  %v2984_v57 = vunpack.c.h.s8.bf16 %v2576_v46  ;;  %v2986_v62 = vunpack.c.h.s8.bf16 %v2578_v41  ;;  %v2995_v14 = vunpack.c.l.s8.bf16 %v2587_v59  ;;  %v3049_v46 = vunpack.c.h.s8.bf16 %v2609_v34  ;;  %v2617_v41 = vld [vmem:[%s17086_s6 + $0x5e8] sm:$0xff] }
 0x4a3   :  { %3755 = vmatprep.subr.bf16.mxu1 %v2923_v58  ;;  %v2993_v58 = vunpack.c.l.s8.bf16 %v2585_v53  ;;  %v2616_v53 = vld [vmem:[%s17086_s6 + $0x5e0] sm:$0xff] }
 0x4a5   :  { %3592 = vmatpush1.bf16.msra.mxu0 %v2920_v0  ;;  %v2586_v0 = vld [vmem:[%s17086_s6 + $0x4f0] sm:$0xff] }
 0x4a6   :  { %3756 = vmatpush1.bf16.msra.mxu1 %v2922_v35  ;;  %3593 = vmatprep.subr.bf16.mxu0 %v2929_v17  ;;  %v2992_v35 = vunpack.c.l.s8.bf16 %v2584_v22  ;;  %v2994_v17 = vunpack.c.l.s8.bf16 %v2586_v0 }
 0x4a7   :  { %3757 = vmatprep.subr.bf16.mxu1 %v2931_v5  ;;  %v3003_v5 = vunpack.c.h.s8.bf16 %v2587_v59 }
 0x4a9   :  { %3594 = vmatpush1.bf16.msra.mxu0 %v2928_v10  ;;  %v2595_v10 = vld [vmem:[%s17086_s6 + $0x538] sm:$0xff] }
 0x4aa   :  { %3758 = vmatpush1.bf16.msra.mxu1 %v2930_v11  ;;  %3595 = vmatprep.subr.bf16.mxu0 %v2937_v1  ;;  %v3000_v11 = vunpack.c.h.s8.bf16 %v2584_v22  ;;  %v3002_v1 = vunpack.c.h.s8.bf16 %v2586_v0  ;;  %v3011_v23 = vunpack.c.l.s8.bf16 %v2595_v10  ;;  %v3065_v22 = vunpack.c.h.s8.bf16 %v2617_v41  ;;  %v2625_v0 = vld [vmem:[%s17086_s6 + $0x628] sm:$0xff] }
 0x4ab   :  { %3759 = vmatprep.subr.bf16.mxu1 %v2939_v13  ;;  %v3009_v13 = vunpack.c.l.s8.bf16 %v2593_v16  ;;  %v2624_v16 = vld [vmem:[%s17086_s6 + $0x620] sm:$0xff] }
 0x4ad   :  { %3596 = vmatpush1.bf16.msra.mxu0 %v2936_v18  ;;  %v2594_v18 = vld [vmem:[%s17086_s6 + $0x530] sm:$0xff] }
 0x4ae   :  { %3760 = vmatpush1.bf16.msra.mxu1 %v2938_v6  ;;  %3606 = vmatprep.subr.bf16.mxu0 %v2945_v7  ;;  %v3008_v6 = vunpack.c.l.s8.bf16 %v2592_v15  ;;  %v3010_v7 = vunpack.c.l.s8.bf16 %v2594_v18 }
 0x4af   :  { %3770 = vmatprep.subr.bf16.mxu1 %v2947_v43  ;;  %v3019_v43 = vunpack.c.h.s8.bf16 %v2595_v10 }
 0x4b0   :  { %3598 = vmatmul.mubr.bf16.vlgmr.msra.gmra.mrb[20].mxu0 %v13411_v45 }
 0x4b1   :  { %3762 = vmatmul.mubr.bf16.vlgmr.msra.gmra.mrb[20].mxu1 %v13411_v45  ;;  %3607 = vmatpush1.bf16.msra.mxu0 %v2944_v9  ;;  %v2960_v45 = vunpack.c.l.s8.bf16 %v2568_v54  ;;  %v2603_v9 = vld [vmem:[%s17086_s6 + $0x578] sm:$0xff]  ;;  %v3033_v54 = vunpack.c.h.s8.bf16 %v2601_v39  ;;  %v2632_v39 = vld [vmem:[%s17086_s6 + $0x660] sm:$0xff] }
 0x4b2   :  { %3638 = vmatprep.mubr.bf16.mxu0 %v13551_v27  ;;  %3771 = vmatpush1.bf16.msra.mxu1 %v2946_v25  ;;  %v3016_v25 = vunpack.c.h.s8.bf16 %v2592_v15  ;;  %v3027_v28 = vunpack.c.l.s8.bf16 %v2603_v9  ;;  %v3081_v15 = vunpack.c.h.s8.bf16 %v2625_v0 }
 0x4b3   :  { %3802 = vmatprep.mubr.bf16.mxu1 %v13551_v27  ;;  %3608 = vmatprep.subr.bf16.mxu0 %v2953_v48  ;;  %v2579_v27 = vld [vmem:[%s17086_s6 + $0x4b8] sm:$0xff]  ;;  %v3018_v48 = vunpack.c.h.s8.bf16 %v2594_v18 }
 0x4b4   :  { %3772 = vmatprep.subr.bf16.mxu1 %v2955_v2  ;;  %v2979_v55 = vunpack.c.l.s8.bf16 %v2579_v27  ;;  %v2987_v42 = vunpack.c.h.s8.bf16 %v2579_v27  ;;  %v2600_v2 = vld [vmem:[%s17086_s6 + $0x560] sm:$0xff] }
 0x4b5   :  { %3609 = vmatpush1.bf16.msra.mxu0 %v2952_v44  ;;  %v2602_v44 = vld [vmem:[%s17086_s6 + $0x570] sm:$0xff] }
 0x4b6   :  { %3773 = vmatpush1.bf16.msra.mxu1 %v2954_v51  ;;  %3610 = vmatprep.subr.bf16.mxu0 %v2961_v31  ;;  %v3024_v51 = vunpack.c.l.s8.bf16 %v2600_v2  ;;  %v3026_v31 = vunpack.c.l.s8.bf16 %v2602_v44 }
 0x4b7   :  { %3774 = vmatprep.subr.bf16.mxu1 %v2963_v24  ;;  %v3035_v24 = vunpack.c.h.s8.bf16 %v2603_v9 }
 0x4b9   :  { %3611 = vmatpush1.bf16.msra.mxu0 %v2960_v45  ;;  %v2611_v45 = vld [vmem:[%s17086_s6 + $0x5b8] sm:$0xff] }
 0x4ba   :  { %3775 = vmatpush1.bf16.msra.mxu1 %v2962_v36  ;;  %3612 = vmatprep.subr.bf16.mxu0 %v2969_v37  ;;  %v3032_v36 = vunpack.c.h.s8.bf16 %v2600_v2  ;;  %v3034_v37 = vunpack.c.h.s8.bf16 %v2602_v44  ;;  %v3043_v27 = vunpack.c.l.s8.bf16 %v2611_v45  ;;  %v3096_v44 = vunpack.c.h.s8.bf16 %v2632_v39 }
 0x4bb   :  { %3776 = vmatprep.subr.bf16.mxu1 %v2971_v3  ;;  %v3041_v3 = vunpack.c.l.s8.bf16 %v2609_v34  ;;  %v2642_v34 = vld [vmem:[%s17086_s6 + $0x6b0] sm:$0xff] }
 0x4bd   :  { %3613 = vmatpush1.bf16.msra.mxu0 %v2968_v40  ;;  %v2610_v40 = vld [vmem:[%s17086_s6 + $0x5b0] sm:$0xff] }
 0x4be   :  { %3777 = vmatpush1.bf16.msra.mxu1 %v2970_v56  ;;  %3614 = vmatprep.subr.bf16.mxu0 %v2977_v38  ;;  %v3040_v56 = vunpack.c.l.s8.bf16 %v2608_v63  ;;  %v3042_v38 = vunpack.c.l.s8.bf16 %v2610_v40 }
 0x4bf   :  { %3778 = vmatprep.subr.bf16.mxu1 %v2979_v55  ;;  %v3051_v55 = vunpack.c.h.s8.bf16 %v2611_v45 }
 0x4c1   :  { %3615 = vmatpush1.bf16.msra.mxu0 %v2976_v49  ;;  %v2619_v49 = vld [vmem:[%s17086_s6 + $0x5f8] sm:$0xff] }
 0x4c2   :  { %3779 = vmatpush1.bf16.msra.mxu1 %v2978_v47  ;;  %3616 = vmatprep.subr.bf16.mxu0 %v2985_v60  ;;  %v3048_v47 = vunpack.c.h.s8.bf16 %v2608_v63  ;;  %v3050_v60 = vunpack.c.h.s8.bf16 %v2610_v40  ;;  %v3059_v59 = vunpack.c.l.s8.bf16 %v2619_v49  ;;  %v2649_v63 = vld [vmem:[%s17086_s6 + $0x6e8] sm:$0xff] }
 0x4c3   :  { %3780 = vmatprep.subr.bf16.mxu1 %v2987_v42  ;;  %v3057_v42 = vunpack.c.l.s8.bf16 %v2617_v41 }
 0x4c5   :  { %3617 = vmatpush1.bf16.msra.mxu0 %v2984_v57  ;;  %v2618_v57 = vld [vmem:[%s17086_s6 + $0x5f0] sm:$0xff] }
 0x4c6   :  { %3781 = vmatpush1.bf16.msra.mxu1 %v2986_v62  ;;  %3618 = vmatprep.subr.bf16.mxu0 %v2993_v58  ;;  %v3056_v62 = vunpack.c.l.s8.bf16 %v2616_v53  ;;  %v3058_v58 = vunpack.c.l.s8.bf16 %v2618_v57 }
 0x4c7   :  { %3782 = vmatprep.subr.bf16.mxu1 %v2995_v14  ;;  %v3067_v14 = vunpack.c.h.s8.bf16 %v2619_v49 }
 0x4c9   :  { %3619 = vmatpush1.bf16.msra.mxu0 %v2992_v35  ;;  %v2627_v35 = vld [vmem:[%s17086_s6 + $0x638] sm:$0xff] }
 0x4ca   :  { %3783 = vmatpush1.bf16.msra.mxu1 %v2994_v17  ;;  %3620 = vmatprep.subr.bf16.mxu0 %v3001_v4  ;;  %v3064_v17 = vunpack.c.h.s8.bf16 %v2616_v53  ;;  %v3066_v4 = vunpack.c.h.s8.bf16 %v2618_v57  ;;  %v3075_v10 = vunpack.c.l.s8.bf16 %v2627_v35  ;;  %v3083_v18 = vunpack.c.h.s8.bf16 %v2627_v35  ;;  %v2657_v35 = vld [vmem:[%s17086_s6 + $0x728] sm:$0xff] }
 0x4cb   :  { %3784 = vmatprep.subr.bf16.mxu1 %v3003_v5  ;;  %v3073_v5 = vunpack.c.l.s8.bf16 %v2625_v0 }
 0x4cd   :  { %3621 = vmatpush1.bf16.msra.mxu0 %v3000_v11  ;;  %v2626_v11 = vld [vmem:[%s17086_s6 + $0x630] sm:$0xff] }
 0x4ce   :  { %3785 = vmatpush1.bf16.msra.mxu1 %v3002_v1  ;;  %3622 = vmatprep.subr.bf16.mxu0 %v3009_v13  ;;  %v3072_v1 = vunpack.c.l.s8.bf16 %v2624_v16  ;;  %v3074_v13 = vunpack.c.l.s8.bf16 %v2626_v11 }
 0x4cf   :  { %3786 = vmatprep.subr.bf16.mxu1 %v3011_v23  ;;  %v2633_v23 = vld [vmem:[%s17086_s6 + $0x668] sm:$0xff] }
 0x4d1   :  { %3623 = vmatpush1.bf16.msra.mxu0 %v3008_v6  ;;  %v2635_v6 = vld [vmem:[%s17086_s6 + $0x678] sm:$0xff] }
 0x4d2   :  { %3787 = vmatpush1.bf16.msra.mxu1 %v3010_v7  ;;  %3624 = vmatprep.subr.bf16.mxu0 %v3017_v8  ;;  %v3080_v7 = vunpack.c.h.s8.bf16 %v2624_v16  ;;  %v3082_v8 = vunpack.c.h.s8.bf16 %v2626_v11  ;;  %v3091_v9 = vunpack.c.l.s8.bf16 %v2635_v6  ;;  %v3099_v2 = vunpack.c.h.s8.bf16 %v2635_v6  ;;  %v2665_v6 = vld [vmem:[%s17086_s6 + $0x768] sm:$0xff] }
 0x4d3   :  { %3788 = vmatprep.subr.bf16.mxu1 %v3019_v43  ;;  %v3089_v43 = vunpack.c.l.s8.bf16 %v2633_v23  ;;  %v3137_v16 = vunpack.c.l.s8.bf16 %v2657_v35 }
 0x4d5   :  { %3625 = vmatpush1.bf16.msra.mxu0 %v3016_v25  ;;  %v2634_v25 = vld [vmem:[%s17086_s6 + $0x670] sm:$0xff] }
 0x4d6   :  { %3789 = vmatpush1.bf16.msra.mxu1 %v3018_v48  ;;  %3626 = vmatprep.subr.bf16.mxu0 %v3025_v26  ;;  %v3090_v48 = vunpack.c.l.s8.bf16 %v2634_v25  ;;  %v3097_v26 = vunpack.c.h.s8.bf16 %v2633_v23  ;;  %v3145_v23 = vunpack.c.h.s8.bf16 %v2657_v35 }
 0x4d7   :  { %3790 = vmatprep.subr.bf16.mxu1 %v3027_v28  ;;  %v2641_v28 = vld [vmem:[%s17086_s6 + $0x6a8] sm:$0xff] }
 0x4d9   :  { %3627 = vmatpush1.bf16.msra.mxu0 %v3024_v51  ;;  %v3098_v51 = vunpack.c.h.s8.bf16 %v2634_v25 }
 0x4da   :  { %3791 = vmatpush1.bf16.msra.mxu1 %v3026_v31  ;;  %3628 = vmatprep.subr.bf16.mxu0 %v3033_v54  ;;  %v3105_v31 = vunpack.c.l.s8.bf16 %v2641_v28  ;;  %v2640_v54 = vld [vmem:[%s17086_s6 + $0x6a0] sm:$0xff] }
 0x4db   :  { %3792 = vmatprep.subr.bf16.mxu1 %v3035_v24  ;;  %v3104_v45 = vunpack.c.l.s8.bf16 %v2640_v54  ;;  %v3112_v40 = vunpack.c.h.s8.bf16 %v2640_v54 }
 0x4dd   :  { %3629 = vmatpush1.bf16.msra.mxu0 %v3032_v36  ;;  %v3106_v36 = vunpack.c.l.s8.bf16 %v2642_v34 }
 0x4de   :  { %3793 = vmatpush1.bf16.msra.mxu1 %v3034_v37  ;;  %3630 = vmatprep.subr.bf16.mxu0 %v3041_v3  ;;  %v3113_v37 = vunpack.c.h.s8.bf16 %v2641_v28 }
 0x4df   :  { %3794 = vmatprep.subr.bf16.mxu1 %v3043_v27  ;;  %v2651_v27 = vld [vmem:[%s17086_s6 + $0x6f8] sm:$0xff] }
 0x4e0   :  { %v3123_v49 = vunpack.c.l.s8.bf16 %v2651_v27  ;;  %v3131_v0 = vunpack.c.h.s8.bf16 %v2651_v27 }
 0x4e1   :  { %3631 = vmatpush1.bf16.msra.mxu0 %v3040_v56  ;;  %v3114_v56 = vunpack.c.h.s8.bf16 %v2642_v34 }
 0x4e2   :  { %3795 = vmatpush1.bf16.msra.mxu1 %v3042_v38  ;;  %3632 = vmatprep.subr.bf16.mxu0 %v3049_v46  ;;  %v3121_v38 = vunpack.c.l.s8.bf16 %v2649_v63  ;;  %v2648_v46 = vld [vmem:[%s17086_s6 + $0x6e0] sm:$0xff] }
 0x4e3   :  { %3796 = vmatprep.subr.bf16.mxu1 %v3051_v55  ;;  %v3120_v57 = vunpack.c.l.s8.bf16 %v2648_v46 }
 0x4e5   :  { %3633 = vmatpush1.bf16.msra.mxu0 %v3048_v47  ;;  %v2650_v47 = vld [vmem:[%s17086_s6 + $0x6f0] sm:$0xff] }
 0x4e6   :  { %3797 = vmatpush1.bf16.msra.mxu1 %v3050_v60  ;;  %3634 = vmatprep.subr.bf16.mxu0 %v3057_v42 }
 0x4e7   :  { %3798 = vmatprep.subr.bf16.mxu1 %v3059_v59 }
 0x4e9   :  { %3635 = vmatpush1.bf16.msra.mxu0 %v3056_v62 }
 0x4ea   :  { %3799 = vmatpush1.bf16.msra.mxu1 %v3058_v58  ;;  %3636 = vmatprep.subr.bf16.mxu0 %v3065_v22  ;;  %v3122_v22 = vunpack.c.l.s8.bf16 %v2650_v47 }
 0x4eb   :  { %3800 = vmatprep.subr.bf16.mxu1 %v3067_v14  ;;  %v3129_v14 = vunpack.c.h.s8.bf16 %v2649_v63 }
 0x4ed   :  { %3637 = vmatpush1.bf16.msra.mxu0 %v3064_v17  ;;  %v2659_v17 = vld [vmem:[%s17086_s6 + $0x738] sm:$0xff] }
 0x4ee   :  { %3801 = vmatpush1.bf16.msra.mxu1 %v3066_v4  ;;  %3647 = vmatprep.subr.bf16.mxu0 %v3073_v5  ;;  %v3128_v4 = vunpack.c.h.s8.bf16 %v2648_v46  ;;  %v3130_v5 = vunpack.c.h.s8.bf16 %v2650_v47  ;;  %v3139_v11 = vunpack.c.l.s8.bf16 %v2659_v17  ;;  %v14066_v46 = vld [vmem:[%s17088_s8] sm:$0xff] }
 0x4ef   :  { %3811 = vmatprep.subr.bf16.mxu1 %v3075_v10  ;;  %v2656_v10 = vld [vmem:[%s17086_s6 + $0x720] sm:$0xff] }
 0x4f0   :  { %3639 = vmatmul.mubr.bf16.vlgmr.msra.gmra.mrb[20].mxu0 %v13553_v29 }
 0x4f1   :  { %3803 = vmatmul.mubr.bf16.vlgmr.msra.gmra.mrb[20].mxu1 %v13553_v29  ;;  %3648 = vmatpush1.bf16.msra.mxu0 %v3072_v1  ;;  %v3088_v29 = vunpack.c.l.s8.bf16 %v2632_v39  ;;  %v2658_v1 = vld [vmem:[%s17086_s6 + $0x730] sm:$0xff]  ;;  %v3153_v39 = vunpack.c.l.s8.bf16 %v2665_v6 }
 0x4f2   :  { %3679 = vmatprep.mubr.bf16.mxu0 %v13563_v33  ;;  %3812 = vmatpush1.bf16.msra.mxu1 %v3074_v13  ;;  %v3136_v13 = vunpack.c.l.s8.bf16 %v2656_v10 }
 0x4f3   :  { %3843 = vmatprep.mubr.bf16.mxu1 %v13563_v33  ;;  %3649 = vmatprep.subr.bf16.mxu0 %v3081_v15  ;;  %v2643_v33 = vld [vmem:[%s17086_s6 + $0x6b8] sm:$0xff]  ;;  %v3138_v15 = vunpack.c.l.s8.bf16 %v2658_v1 }
 0x4f4   :  { %3813 = vmatprep.subr.bf16.mxu1 %v3083_v18  ;;  %v3107_v24 = vunpack.c.l.s8.bf16 %v2643_v33  ;;  %v3115_v3 = vunpack.c.h.s8.bf16 %v2643_v33  ;;  %v3147_v18 = vunpack.c.h.s8.bf16 %v2659_v17  ;;  %v2673_v33 = vld [vmem:[%s17086_s6 + $0x7a8] sm:$0xff] }
 0x4f5   :  { %3650 = vmatpush1.bf16.msra.mxu0 %v3080_v7  ;;  %v2667_v7 = vld [vmem:[%s17086_s6 + $0x778] sm:$0xff]  ;;  %v3169_v54 = vunpack.c.l.s8.bf16 %v2673_v33  ;;  %v3177_v63 = vunpack.c.h.s8.bf16 %v2673_v33 }
 0x4f6   :  { %3814 = vmatpush1.bf16.msra.mxu1 %v3082_v8  ;;  %3651 = vmatprep.subr.bf16.mxu0 %v3089_v43  ;;  %v3144_v8 = vunpack.c.h.s8.bf16 %v2656_v10  ;;  %v3146_v43 = vunpack.c.h.s8.bf16 %v2658_v1  ;;  %v3155_v25 = vunpack.c.l.s8.bf16 %v2667_v7  ;;  %v3163_v28 = vunpack.c.h.s8.bf16 %v2667_v7 }
 0x4f7   :  { %3815 = vmatprep.subr.bf16.mxu1 %v3091_v9  ;;  %v2664_v9 = vld [vmem:[%s17086_s6 + $0x760] sm:$0xff] }
 0x4f9   :  { %3652 = vmatpush1.bf16.msra.mxu0 %v3088_v29  ;;  %v2666_v29 = vld [vmem:[%s17086_s6 + $0x770] sm:$0xff] }
 0x4fa   :  { %3816 = vmatpush1.bf16.msra.mxu1 %v3090_v48  ;;  %3653 = vmatprep.subr.bf16.mxu0 %v3097_v26  ;;  %v3152_v48 = vunpack.c.l.s8.bf16 %v2664_v9  ;;  %v3154_v26 = vunpack.c.l.s8.bf16 %v2666_v29 }
 0x4fb   :  { %3817 = vmatprep.subr.bf16.mxu1 %v3099_v2  ;;  %v3161_v2 = vunpack.c.h.s8.bf16 %v2665_v6 }
 0x4fd   :  { %3654 = vmatpush1.bf16.msra.mxu0 %v3096_v44  ;;  %v2675_v44 = vld [vmem:[%s17086_s6 + $0x7b8] sm:$0xff] }
 0x4fe   :  { %3818 = vmatpush1.bf16.msra.mxu1 %v3098_v51  ;;  %3655 = vmatprep.subr.bf16.mxu0 %v3105_v31  ;;  %v3160_v51 = vunpack.c.h.s8.bf16 %v2664_v9  ;;  %v3162_v31 = vunpack.c.h.s8.bf16 %v2666_v29  ;;  %v3171_v34 = vunpack.c.l.s8.bf16 %v2675_v44  ;;  %v3179_v27 = vunpack.c.h.s8.bf16 %v2675_v44  ;;  %v3978_v9 = vld [vmem:[%s17089_s9 + $0x46] sm:$0xff] }
 0x4ff   :  { %3819 = vmatprep.subr.bf16.mxu1 %v3107_v24  ;;  %v2672_v24 = vld [vmem:[%s17086_s6 + $0x7a0] sm:$0xff]  ;;  %v4214_v33 = vunpack.c.l.s8.bf16 %v3978_v9 }
 0x501   :  { %3656 = vmatpush1.bf16.msra.mxu0 %v3104_v45  ;;  %v2674_v45 = vld [vmem:[%s17086_s6 + $0x7b0] sm:$0xff] }
 0x502   :  { %3820 = vmatpush1.bf16.msra.mxu1 %v3106_v36  ;;  %3657 = vmatprep.subr.bf16.mxu0 %v3113_v37  ;;  %v14053_v36 = vld [vmem:[%s17087_s7] sm:$0xff]  ;;  %v3168_v37 = vunpack.c.l.s8.bf16 %v2672_v24  ;;  %v3178_v47 = vunpack.c.h.s8.bf16 %v2674_v45 }
 0x503   :  { %v14003_v55 = vpop.f32.mrb[16].mxu0  ;;  %v14005_v41 = vpop.f32.mrb[16].mxu1  ;;  %3821 = vmatprep.subr.bf16.mxu1 %v3115_v3  ;;  %v3170_v3 = vunpack.c.l.s8.bf16 %v2674_v45 }
 0x504   :  { %v14010_v60 = vpop.f32.mrb[17].mxu0  ;;  %v14012_v42 = vpop.f32.mrb[17].mxu1 }
 0x505   :  { %v3357_v53 = vpop.f32.mrb[18].mxu0  ;;  %v3521_v59 = vpop.f32.mrb[18].mxu1  ;;  %3658 = vmatpush1.bf16.msra.mxu0 %v3112_v40  ;;  %v2681_v40 = vld [vmem:[%s17086_s6 + $0x7e8] sm:$0xff] }
 0x506   :  { %3822 = vmatpush1.bf16.msra.mxu1 %v3114_v56  ;;  %v3358_v62 = vpop.f32.mrb[19].mxu0  ;;  %v3522_v58 = vpop.f32.mrb[19].mxu1  ;;  %3659 = vmatprep.subr.bf16.mxu0 %v3121_v38  ;;  %v3861_v56 = vrot.slane %v14053_v36, %v13244_v61  ;;  %v2683_v38 = vld [vmem:[%s17086_s6 + $0x7f8] sm:$0xff]  ;;  %v3185_v53 = vunpack.c.l.s8.bf16 %v2681_v40  ;;  %v2680_v59 = vld [vmem:[%s17086_s6 + $0x7e0] sm:$0xff] }
 0x507   :  { %3823 = vmatprep.subr.bf16.mxu1 %v3123_v49  ;;  %v3176_v49 = vunpack.c.h.s8.bf16 %v2672_v24  ;;  %v2682_v62 = vld [vmem:[%s17086_s6 + $0x7f0] sm:$0xff]  ;;  %v3968_v58 = vld [vmem:[%s17089_s9] sm:$0xff]  ;;  %v3184_v35 = vunpack.c.l.s8.bf16 %v2680_v59  ;;  %v3195_v10 = vunpack.c.h.s8.bf16 %v2683_v38 }
 0x508   :  { %v3186_v17 = vunpack.c.l.s8.bf16 %v2682_v62  ;;  %v3982_v24 = vld [vmem:[%s17089_s9 + $0x62] sm:$0xff] }
 0x509   :  { %3660 = vmatpush1.bf16.msra.mxu0 %v3120_v57  ;;  %v3187_v57 = vunpack.c.l.s8.bf16 %v2683_v38 }
 0x50a   :  { %3824 = vmatpush1.bf16.msra.mxu1 %v3122_v22  ;;  %3661 = vmatprep.subr.bf16.mxu0 %v3129_v14  ;;  %v3970_v22 = vld [vmem:[%s17089_s9 + $0xe] sm:$0xff]  ;;  %v3895_v14 = vmul.f32 %v3861_v56, %v14010_v60  ;;  %v3972_v60 = vld [vmem:[%s17089_s9 + $0x1c] sm:$0xff] }
 0x50b   :  { %3825 = vmatprep.subr.bf16.mxu1 %v3131_v0  ;;  %v3911_v0 = vrot.slane %v14066_v46, %v13244_v61  ;;  %v4199_v1 = vunpack.c.h.s8.bf16 %v3970_v22  ;;  %v4203_v29 = vunpack.c.h.s8.bf16 %v3972_v60 }
 0x50d   :  { %3662 = vmatpush1.bf16.msra.mxu0 %v3128_v4  ;;  %v3193_v4 = vunpack.c.h.s8.bf16 %v2681_v40  ;;  %v4222_v40 = vunpack.c.l.s8.bf16 %v3982_v24 }
 0x50e   :  { %3826 = vmatpush1.bf16.msra.mxu1 %v3130_v5  ;;  %3663 = vmatprep.subr.bf16.mxu0 %v3137_v16  ;;  %v4194_v5 = vunpack.c.l.s8.bf16 %v3968_v58  ;;  %v4198_v16 = vunpack.c.l.s8.bf16 %v3970_v22 }
 0x50f   :  { %3827 = vmatprep.subr.bf16.mxu1 %v3139_v11  ;;  %v4195_v11 = vunpack.c.h.s8.bf16 %v3968_v58 }
 0x510   :  { %v10812_v6 = vcombine.high %v4194_v5, %v4198_v16 }
 0x511   :  { %3664 = vmatpush1.bf16.msra.mxu0 %v3136_v13  ;;  %v3945_v13 = vadd.f32 %v3911_v0, %v3895_v14  ;;  %v10814_v7 = vcombine.high %v4195_v11, %v4199_v1 }
 0x512   :  { %3828 = vmatpush1.bf16.msra.mxu1 %v3138_v15  ;;  %3665 = vmatprep.subr.bf16.mxu0 %v3145_v23  ;;  %v3974_v15 = vld [vmem:[%s17089_s9 + $0x2a] sm:$0xff]  ;;  %v3192_v23 = vunpack.c.h.s8.bf16 %v2680_v59 }
 0x513   :  { %3829 = vmatprep.subr.bf16.mxu1 %v3147_v18  ;;  %v3194_v18 = vunpack.c.h.s8.bf16 %v2682_v62 }
 0x515   :  { %3666 = vmatpush1.bf16.msra.mxu0 %v3144_v8  ;;  %v4202_v8 = vunpack.c.l.s8.bf16 %v3972_v60 }
 0x516   :  { %3830 = vmatpush1.bf16.msra.mxu1 %v3146_v43  ;;  %3667 = vmatprep.subr.bf16.mxu0 %v3153_v39  ;;  %v4206_v43 = vunpack.c.l.s8.bf16 %v3974_v15  ;;  %v3976_v39 = vld [vmem:[%s17089_s9 + $0x38] sm:$0xff] }
 0x517   :  { %3831 = vmatprep.subr.bf16.mxu1 %v3155_v25  ;;  %v3953_v25 = vmax.f32 %v3945_v13, 0.0 }
 0x518   :  { %v10819_v44 = vcombine.high %v4202_v8, %v4206_v43 }
 0x519   :  { %3668 = vmatpush1.bf16.msra.mxu0 %v3152_v48  ;;  %v4207_v48 = vunpack.c.h.s8.bf16 %v3974_v15  ;;  %v3992_v15 = vld [vmem:[%s17089_s9 + $0xa8] sm:$0xff] }
 0x51a   :  { %3832 = vmatpush1.bf16.msra.mxu1 %v3154_v26  ;;  %3669 = vmatprep.subr.bf16.mxu0 %v3161_v2  ;;  %v10811_v26 = vcombine.low %v4194_v5, %v4198_v16  ;;  %v10813_v2 = vcombine.low %v4195_v11, %v4199_v1 }
 0x51b   :  { %3833 = vmatprep.subr.bf16.mxu1 %v3163_v28  ;;  %v4210_v28 = vunpack.c.l.s8.bf16 %v3976_v39  ;;  %v10821_v45 = vcombine.high %v4203_v29, %v4207_v48 }
 0x51d   :  { %3670 = vmatpush1.bf16.msra.mxu0 %v3160_v51  ;;  %v4211_v51 = vunpack.c.h.s8.bf16 %v3976_v39 }
 0x51e   :  { %3834 = vmatpush1.bf16.msra.mxu1 %v3162_v31  ;;  %3671 = vmatprep.subr.bf16.mxu0 %v3169_v54  ;;  %v4215_v31 = vunpack.c.h.s8.bf16 %v3978_v9  ;;  %v3980_v54 = vld [vmem:[%s17089_s9 + $0x54] sm:$0xff]  ;;  %v4243_v9 = vunpack.c.h.s8.bf16 %v3992_v15 }
 0x51f   :  { %3835 = vmatprep.subr.bf16.mxu1 %v3171_v34  ;;  %v14101_v34 = vpack.c.bf16 %v3953_v25, %v3953_v25  ;;  %v4219_v38 = vunpack.c.h.s8.bf16 %v3980_v54 }
 0x520   :  { %v10828_v56 = vcombine.high %v4211_v51, %v4215_v31  ;;  %v10827_v59 = vcombine.low %v4211_v51, %v4215_v31 }
 0x521   :  { %3672 = vmatpush1.bf16.msra.mxu0 %v3168_v37  ;;  %v10818_v37 = vcombine.low %v4202_v8, %v4206_v43  ;;  %v4242_v8 = vunpack.c.l.s8.bf16 %v3992_v15  ;;  %v4012_v15 = vld [vmem:[%s17089_s9 + $0x134] sm:$0xff] }
 0x522   :  { %3836 = vmatpush1.bf16.msra.mxu1 %v3170_v3  ;;  %3673 = vmatprep.subr.bf16.mxu0 %v3177_v63  ;;  %v10820_v3 = vcombine.low %v4203_v29, %v4207_v48  ;;  %v10826_v63 = vcombine.high %v4210_v28, %v4214_v33  ;;  %v3996_v29 = vld [vmem:[%s17089_s9 + $0xc4] sm:$0xff]  ;;  %v3998_v48 = vld [vmem:[%s17089_s9 + $0xd2] sm:$0xff] }
 0x523   :  { %3837 = vmatprep.subr.bf16.mxu1 %v3179_v27  ;;  %v4218_v27 = vunpack.c.l.s8.bf16 %v3980_v54  ;;  %v4251_v31 = vunpack.c.h.s8.bf16 %v3996_v29  ;;  %v4255_v54 = vunpack.c.h.s8.bf16 %v3998_v48 }
 0x525   :  { %3674 = vmatpush1.bf16.msra.mxu0 %v3176_v49  ;;  %v4223_v49 = vunpack.c.h.s8.bf16 %v3982_v24  ;;  %v4000_v24 = vld [vmem:[%s17089_s9 + $0xe0] sm:$0xff] }
 0x526   :  { %3838 = vmatpush1.bf16.msra.mxu1 %v3178_v47  ;;  %3675 = vmatprep.subr.bf16.mxu0 %v3185_v53  ;;  %v3984_v47 = vld [vmem:[%s17089_s9 + $0x70] sm:$0xff]  ;;  %v10825_v53 = vcombine.low %v4210_v28, %v4214_v33  ;;  %v4250_v33 = vunpack.c.l.s8.bf16 %v3996_v29 }
 0x527   :  { %3839 = vmatprep.subr.bf16.mxu1 %v3187_v57  ;;  %v10833_v57 = vcombine.high %v4218_v27, %v4222_v40  ;;  %v4226_v62 = vunpack.c.l.s8.bf16 %v3984_v47  ;;  %v10835_v22 = vcombine.high %v4219_v38, %v4223_v49  ;;  %v4227_v14 = vunpack.c.h.s8.bf16 %v3984_v47  ;;  %v4004_v47 = vld [vmem:[%s17089_s9 + $0xfc] sm:$0xff]  ;;  %v4016_v29 = vld [vmem:[%s17089_s9 + $0x150] sm:$0xff] }
 0x528   :  { %v10834_v5 = vcombine.low %v4219_v38, %v4223_v49  ;;  %v4259_v38 = vunpack.c.h.s8.bf16 %v4000_v24 }
 0x529   :  { %3676 = vmatpush1.bf16.msra.mxu0 %v3184_v35  ;;  %v3988_v35 = vld [vmem:[%s17089_s9 + $0x8c] sm:$0xff] }
 0x52a   :  { %3840 = vmatpush1.bf16.msra.mxu1 %v3186_v17  ;;  %3677 = vmatprep.subr.bf16.mxu0 %v3193_v4  ;;  %v3990_v17 = vld [vmem:[%s17089_s9 + $0x9a] sm:$0xff]  ;;  %v10832_v4 = vcombine.low %v4218_v27, %v4222_v40  ;;  %v4235_v13 = vunpack.c.h.s8.bf16 %v3988_v35  ;;  %v4258_v27 = vunpack.c.l.s8.bf16 %v4000_v24  ;;  %v4020_v24 = vld [vmem:[%s17089_s9 + $0x16c] sm:$0xff] }
 0x52b   :  { %3841 = vmatprep.subr.bf16.mxu1 %v3195_v10  ;;  %v4234_v10 = vunpack.c.l.s8.bf16 %v3988_v35  ;;  %v4238_v11 = vunpack.c.l.s8.bf16 %v3990_v17  ;;  %v4239_v60 = vunpack.c.h.s8.bf16 %v3990_v17  ;;  %v4008_v35 = vld [vmem:[%s17089_s9 + $0x118] sm:$0xff]  ;;  %v4010_v17 = vld [vmem:[%s17089_s9 + $0x126] sm:$0xff] }
 0x52d   :  { %3678 = vmatpush1.bf16.msra.mxu0 %v3192_v23  ;;  %v3994_v23 = vld [vmem:[%s17089_s9 + $0xb6] sm:$0xff]  ;;  %v10849_v39 = vcombine.high %v4235_v13, %v4239_v60 }
 0x52e   :  { %3842 = vmatpush1.bf16.msra.mxu1 %v3194_v18  ;;  %6706 = vmatprep.subr.bf16.mxu0 %v10812_v6  ;;  %v4246_v43 = vunpack.c.l.s8.bf16 %v3994_v23  ;;  %v4247_v25 = vunpack.c.h.s8.bf16 %v3994_v23  ;;  %v4014_v23 = vld [vmem:[%s17089_s9 + $0x142] sm:$0xff] }
 0x52f   :  { %6870 = vmatprep.subr.bf16.mxu1 %v10814_v7  ;;  %v10847_v7 = vcombine.high %v4234_v10, %v4238_v11 }
 0x530   :  { %3680 = vmatmul.mubr.bf16.vlgmr.msra.gmra.mrb[20].mxu0 %v13664_v32  ;;  %v10854_v28 = vcombine.high %v4242_v8, %v4246_v43  ;;  %v10856_v51 = vcombine.high %v4243_v9, %v4247_v25 }
 0x531   :  { %3844 = vmatmul.mubr.bf16.vlgmr.msra.gmra.mrb[20].mxu1 %v13664_v32  ;;  %6707 = vmatpush1.bf16.msra.mxu0 %v10811_v26  ;;  %v3986_v32 = vld [vmem:[%s17089_s9 + $0x7e] sm:$0xff]  ;;  %v10846_v26 = vcombine.low %v4234_v10, %v4238_v11  ;;  %v4274_v10 = vunpack.c.l.s8.bf16 %v4008_v35  ;;  %v4278_v11 = vunpack.c.l.s8.bf16 %v4010_v17 }
 0x532   :  { %6738 = vmatprep.mubr.bf16.mxu0 %v14101_v34  ;;  %6871 = vmatpush1.bf16.msra.mxu1 %v10813_v2  ;;  %v4230_v58 = vunpack.c.l.s8.bf16 %v3986_v32  ;;  %v4231_v0 = vunpack.c.h.s8.bf16 %v3986_v32  ;;  %v10848_v2 = vcombine.low %v4235_v13, %v4239_v60  ;;  %v4006_v32 = vld [vmem:[%s17089_s9 + $0x10a] sm:$0xff]  ;;  %v4275_v13 = vunpack.c.h.s8.bf16 %v4008_v35 }
 0x533   :  { %6902 = vmatprep.mubr.bf16.mxu1 %v14101_v34  ;;  %6708 = vmatprep.subr.bf16.mxu0 %v10819_v44  ;;  %v4254_v44 = vunpack.c.l.s8.bf16 %v3998_v48  ;;  %v4279_v60 = vunpack.c.h.s8.bf16 %v4010_v17  ;;  %v4018_v48 = vld [vmem:[%s17089_s9 + $0x15e] sm:$0xff] }
 0x534   :  { %6872 = vmatprep.subr.bf16.mxu1 %v10821_v45  ;;  %v10840_v16 = vcombine.high %v4226_v62, %v4230_v58  ;;  %v10842_v1 = vcombine.high %v4227_v14, %v4231_v0  ;;  %v10839_v18 = vcombine.low %v4226_v62, %v4230_v58  ;;  %v10841_v6 = vcombine.low %v4227_v14, %v4231_v0  ;;  %v4002_v45 = vld [vmem:[%s17089_s9 + $0xee] sm:$0xff]  ;;  %v4028_v17 = vld [vmem:[%s17089_s9 + $0x1a4] sm:$0xff] }
 0x535   :  { %6709 = vmatpush1.bf16.msra.mxu0 %v10818_v37  ;;  %v10853_v37 = vcombine.low %v4242_v8, %v4246_v43  ;;  %v4262_v40 = vunpack.c.l.s8.bf16 %v4002_v45  ;;  %v4263_v49 = vunpack.c.h.s8.bf16 %v4002_v45  ;;  %v4266_v62 = vunpack.c.l.s8.bf16 %v4004_v47  ;;  %v4022_v45 = vld [vmem:[%s17089_s9 + $0x17a] sm:$0xff] }
 0x536   :  { %6873 = vmatpush1.bf16.msra.mxu1 %v10820_v3  ;;  %6710 = vmatprep.subr.bf16.mxu0 %v10826_v63  ;;  %v10855_v3 = vcombine.low %v4243_v9, %v4247_v25  ;;  %v10861_v63 = vcombine.high %v4250_v33, %v4254_v44  ;;  %v4270_v58 = vunpack.c.l.s8.bf16 %v4006_v32  ;;  %v4267_v14 = vunpack.c.h.s8.bf16 %v4004_v47  ;;  %v4024_v47 = vld [vmem:[%s17089_s9 + $0x188] sm:$0xff] }
 0x537   :  { %6874 = vmatprep.subr.bf16.mxu1 %v10828_v56  ;;  %v10863_v56 = vcombine.high %v4251_v31, %v4255_v54  ;;  %v4271_v0 = vunpack.c.h.s8.bf16 %v4006_v32  ;;  %v4282_v8 = vunpack.c.l.s8.bf16 %v4012_v15  ;;  %v4286_v43 = vunpack.c.l.s8.bf16 %v4014_v23  ;;  %v4026_v32 = vld [vmem:[%s17089_s9 + $0x196] sm:$0xff] }
 0x538   :  { %v4283_v9 = vunpack.c.h.s8.bf16 %v4012_v15  ;;  %v4287_v25 = vunpack.c.h.s8.bf16 %v4014_v23  ;;  %v4311_v35 = vunpack.c.h.s8.bf16 %v4026_v32 }
 0x539   :  { %6711 = vmatpush1.bf16.msra.mxu0 %v10825_v53  ;;  %v10860_v53 = vcombine.low %v4250_v33, %v4254_v44  ;;  %v4290_v33 = vunpack.c.l.s8.bf16 %v4016_v29  ;;  %v4294_v44 = vunpack.c.l.s8.bf16 %v4018_v48 }
 0x53a   :  { %6875 = vmatpush1.bf16.msra.mxu1 %v10827_v59  ;;  %6712 = vmatprep.subr.bf16.mxu0 %v10833_v57  ;;  %v10862_v59 = vcombine.low %v4251_v31, %v4255_v54  ;;  %v10868_v57 = vcombine.high %v4258_v27, %v4262_v40  ;;  %v4291_v31 = vunpack.c.h.s8.bf16 %v4016_v29  ;;  %v4295_v54 = vunpack.c.h.s8.bf16 %v4018_v48 }
 0x53b   :  { %6876 = vmatprep.subr.bf16.mxu1 %v10835_v22  ;;  %v10870_v22 = vcombine.high %v4259_v38, %v4263_v49 }
 0x53d   :  { %6713 = vmatpush1.bf16.msra.mxu0 %v10832_v4  ;;  %v10867_v4 = vcombine.low %v4258_v27, %v4262_v40  ;;  %v4298_v27 = vunpack.c.l.s8.bf16 %v4020_v24  ;;  %v4302_v40 = vunpack.c.l.s8.bf16 %v4022_v45 }
 0x53e   :  { %6877 = vmatpush1.bf16.msra.mxu1 %v10834_v5  ;;  %6714 = vmatprep.subr.bf16.mxu0 %v10840_v16  ;;  %v10869_v5 = vcombine.low %v4259_v38, %v4263_v49  ;;  %v10875_v16 = vcombine.high %v4266_v62, %v4270_v58  ;;  %v4299_v38 = vunpack.c.h.s8.bf16 %v4020_v24  ;;  %v4303_v49 = vunpack.c.h.s8.bf16 %v4022_v45 }
 0x53f   :  { %6878 = vmatprep.subr.bf16.mxu1 %v10842_v1  ;;  %v10877_v1 = vcombine.high %v4267_v14, %v4271_v0 }
 0x541   :  { %6715 = vmatpush1.bf16.msra.mxu0 %v10839_v18  ;;  %v10874_v18 = vcombine.low %v4266_v62, %v4270_v58  ;;  %v10903_v62 = vcombine.high %v4298_v27, %v4302_v40  ;;  %v4306_v58 = vunpack.c.l.s8.bf16 %v4024_v47 }
 0x542   :  { %6879 = vmatpush1.bf16.msra.mxu1 %v10841_v6  ;;  %6716 = vmatprep.subr.bf16.mxu0 %v10847_v7  ;;  %v10876_v6 = vcombine.low %v4267_v14, %v4271_v0  ;;  %v10882_v7 = vcombine.high %v4274_v10, %v4278_v11  ;;  %v10905_v14 = vcombine.high %v4299_v38, %v4303_v49  ;;  %v4307_v0 = vunpack.c.h.s8.bf16 %v4024_v47 }
 0x543   :  { %6880 = vmatprep.subr.bf16.mxu1 %v10849_v39  ;;  %v10884_v39 = vcombine.high %v4275_v13, %v4279_v60 }
 0x544   :  { %v10912_v23 = vcombine.high %v4307_v0, %v4311_v35 }
 0x545   :  { %6717 = vmatpush1.bf16.msra.mxu0 %v10846_v26  ;;  %v10881_v26 = vcombine.low %v4274_v10, %v4278_v11  ;;  %v10902_v10 = vcombine.low %v4298_v27, %v4302_v40  ;;  %v10904_v11 = vcombine.low %v4299_v38, %v4303_v49  ;;  %v4040_v27 = vld [vmem:[%s17089_s9 + $0x1f8] sm:$0xff]  ;;  %v4042_v40 = vld [vmem:[%s17089_s9 + $0x206] sm:$0xff] }
 0x546   :  { %6881 = vmatpush1.bf16.msra.mxu1 %v10848_v2  ;;  %6718 = vmatprep.subr.bf16.mxu0 %v10854_v28  ;;  %v10883_v2 = vcombine.low %v4275_v13, %v4279_v60  ;;  %v10889_v28 = vcombine.high %v4282_v8, %v4286_v43  ;;  %v4314_v60 = vunpack.c.l.s8.bf16 %v4028_v17 }
 0x547   :  { %6882 = vmatprep.subr.bf16.mxu1 %v10856_v51  ;;  %v10891_v51 = vcombine.high %v4283_v9, %v4287_v25 }
 0x549   :  { %6719 = vmatpush1.bf16.msra.mxu0 %v10853_v37  ;;  %v10888_v37 = vcombine.low %v4282_v8, %v4286_v43  ;;  %v4034_v8 = vld [vmem:[%s17089_s9 + $0x1ce] sm:$0xff] }
 0x54a   :  { %6883 = vmatpush1.bf16.msra.mxu1 %v10855_v3  ;;  %6720 = vmatprep.subr.bf16.mxu0 %v10861_v63  ;;  %v10890_v3 = vcombine.low %v4283_v9, %v4287_v25  ;;  %v10896_v63 = vcombine.high %v4290_v33, %v4294_v44  ;;  %v10911_v9 = vcombine.low %v4307_v0, %v4311_v35  ;;  %v4046_v0 = vld [vmem:[%s17089_s9 + $0x222] sm:$0xff] }
 0x54b   :  { %6884 = vmatprep.subr.bf16.mxu1 %v10863_v56  ;;  %v10898_v56 = vcombine.high %v4291_v31, %v4295_v54 }
 0x54d   :  { %6721 = vmatpush1.bf16.msra.mxu0 %v10860_v53  ;;  %v3857_v53 = vrot.slane %v14053_v36, %v13238_v30 }
 0x54e   :  { %6885 = vmatpush1.bf16.msra.mxu1 %v10862_v59  ;;  %6722 = vmatprep.subr.bf16.mxu0 %v10868_v57  ;;  %v10895_v59 = vcombine.low %v4290_v33, %v4294_v44  ;;  %v10897_v57 = vcombine.low %v4291_v31, %v4295_v54  ;;  %v4327_v33 = vunpack.c.h.s8.bf16 %v4034_v8 }
 0x54f   :  { %6886 = vmatprep.subr.bf16.mxu1 %v10870_v22  ;;  %v4310_v22 = vunpack.c.l.s8.bf16 %v4026_v32 }
 0x551   :  { %6723 = vmatpush1.bf16.msra.mxu0 %v10867_v4  ;;  %v4030_v4 = vld [vmem:[%s17089_s9 + $0x1b2] sm:$0xff]  ;;  %v10910_v13 = vcombine.high %v4306_v58, %v4310_v22 }
 0x552   :  { %6887 = vmatpush1.bf16.msra.mxu1 %v10869_v5  ;;  %6724 = vmatprep.subr.bf16.mxu0 %v10875_v16  ;;  %v3869_v5 = vrot.slane %v14053_v36, %v13252_v52  ;;  %v3907_v16 = vrot.slane %v14066_v46, %v13238_v30  ;;  %v4318_v15 = vunpack.c.l.s8.bf16 %v4030_v4  ;;  %v14929_v30 = vld [vmem:[%s17089_s9 + $0x3c0] sm:$0x3f] }
 0x553   :  { %6888 = vmatprep.subr.bf16.mxu1 %v10877_v1  ;;  %v3894_v1 = vmul.f32 %v3857_v53, %v14003_v55  ;;  %v3919_v55 = vrot.slane %v14066_v46, %v13252_v52  ;;  %v14908_v52 = vld [vmem:[%s17089_s9 + $0x3b2] sm:$0x3f] }
 0x554   :  { %v3897_v43 = vmul.f32 %v3869_v5, %v14012_v42  ;;  %v10917_v29 = vcombine.high %v4314_v60, %v4318_v15  ;;  %v4036_v42 = vld [vmem:[%s17089_s9 + $0x1dc] sm:$0xff]  ;;  %v10916_v31 = vcombine.low %v4314_v60, %v4318_v15  ;;  %v4351_v60 = vunpack.c.h.s8.bf16 %v4046_v0  ;;  %v4048_v15 = vld [vmem:[%s17089_s9 + $0x230] sm:$0xff] }
 0x555   :  { %6725 = vmatpush1.bf16.msra.mxu0 %v10874_v18  ;;  %v4315_v18 = vunpack.c.h.s8.bf16 %v4028_v17  ;;  %v3944_v25 = vadd.f32 %v3907_v16, %v3894_v1  ;;  %v4331_v38 = vunpack.c.h.s8.bf16 %v4036_v42 }
 0x556   :  { %6889 = vmatpush1.bf16.msra.mxu1 %v10876_v6  ;;  %6726 = vmatprep.subr.bf16.mxu0 %v10882_v7  ;;  %v4319_v6 = vunpack.c.h.s8.bf16 %v4030_v4  ;;  %v4032_v7 = vld [vmem:[%s17089_s9 + $0x1c0] sm:$0xff]  ;;  %v3947_v44 = vadd.f32 %v3919_v55, %v3897_v43 }
 0x557   :  { %6890 = vmatprep.subr.bf16.mxu1 %v10884_v39  ;;  %v10909_v39 = vcombine.low %v4306_v58, %v4310_v22  ;;  %v4322_v48 = vunpack.c.l.s8.bf16 %v4032_v7  ;;  %v3952_v54 = vmax.f32 %v3944_v25, 0.0  ;;  %v4339_v58 = vunpack.c.h.s8.bf16 %v4040_v27  ;;  %v4052_v25 = vld [vmem:[%s17089_s9 + $0x24c] sm:$0xff] }
 0x558   :  { %v10918_v24 = vcombine.low %v4315_v18, %v4319_v6  ;;  %v4343_v22 = vunpack.c.h.s8.bf16 %v4042_v40 }
 0x559   :  { %6727 = vmatpush1.bf16.msra.mxu0 %v10881_v26  ;;  %v4326_v26 = vunpack.c.l.s8.bf16 %v4034_v8  ;;  %v14207_v32 = vpack.c.bf16 %v3952_v54, %v3952_v54  ;;  %v4354_v8 = vunpack.c.l.s8.bf16 %v4048_v15  ;;  %v4058_v54 = vld [vmem:[%s17089_s9 + $0x276] sm:$0xff] }
 0x55a   :  { %6891 = vmatpush1.bf16.msra.mxu1 %v10883_v2  ;;  %6728 = vmatprep.subr.bf16.mxu0 %v10889_v28  ;;  %v10919_v2 = vcombine.high %v4315_v18, %v4319_v6  ;;  %v4323_v28 = vunpack.c.h.s8.bf16 %v4032_v7  ;;  %v10940_v1 = vcombine.high %v4339_v58, %v4343_v22  ;;  %v10939_v6 = vcombine.low %v4339_v58, %v4343_v22 }
 0x55b   :  { %6892 = vmatprep.subr.bf16.mxu1 %v10891_v51  ;;  %v4038_v51 = vld [vmem:[%s17089_s9 + $0x1ea] sm:$0xff]  ;;  %v10924_v45 = vcombine.high %v4322_v48, %v4326_v26  ;;  %v10923_v47 = vcombine.low %v4322_v48, %v4326_v26 }
 0x55c   :  { %v4335_v49 = vunpack.c.h.s8.bf16 %v4038_v51  ;;  %v10925_v53 = vcombine.low %v4323_v28, %v4327_v33 }
 0x55d   :  { %6729 = vmatpush1.bf16.msra.mxu0 %v10888_v37  ;;  %v10926_v37 = vcombine.high %v4323_v28, %v4327_v33  ;;  %v4362_v28 = vunpack.c.l.s8.bf16 %v4052_v25 }
 0x55e   :  { %6893 = vmatpush1.bf16.msra.mxu1 %v10890_v3  ;;  %6730 = vmatprep.subr.bf16.mxu0 %v10896_v63  ;;  %v4330_v3 = vunpack.c.l.s8.bf16 %v4036_v42  ;;  %v4334_v63 = vunpack.c.l.s8.bf16 %v4038_v51  ;;  %v10933_v17 = vcombine.high %v4331_v38, %v4335_v49  ;;  %v10932_v5 = vcombine.low %v4331_v38, %v4335_v49  ;;  %v4060_v38 = vld [vmem:[%s17089_s9 + $0x284] sm:$0xff]  ;;  %v4062_v49 = vld [vmem:[%s17089_s9 + $0x292] sm:$0xff] }
 0x55f   :  { %6894 = vmatprep.subr.bf16.mxu1 %v10898_v56  ;;  %v3955_v56 = vmax.f32 %v3947_v44, 0.0  ;;  %v4363_v42 = vunpack.c.h.s8.bf16 %v4052_v25  ;;  %v4379_v22 = vunpack.c.h.s8.bf16 %v4060_v38  ;;  %v4072_v25 = vld [vmem:[%s17089_s9 + $0x2d8] sm:$0xff] }
 0x560   :  { %v10930_v4 = vcombine.low %v4330_v3, %v4334_v63 }
 0x561   :  { %6731 = vmatpush1.bf16.msra.mxu0 %v10895_v59  ;;  %v4338_v59 = vunpack.c.l.s8.bf16 %v4040_v27  ;;  %v14215_v35 = vpack.c.bf16 %v3955_v56, %v3955_v56  ;;  %v4375_v56 = vunpack.c.h.s8.bf16 %v4058_v54 }
 0x562   :  { %6895 = vmatpush1.bf16.msra.mxu1 %v10897_v57  ;;  %6732 = vmatprep.subr.bf16.mxu0 %v10903_v62  ;;  %v4342_v57 = vunpack.c.l.s8.bf16 %v4042_v40  ;;  %v10931_v62 = vcombine.high %v4330_v3, %v4334_v63  ;;  %v4374_v63 = vunpack.c.l.s8.bf16 %v4058_v54  ;;  %v4078_v54 = vld [vmem:[%s17089_s9 + $0x302] sm:$0xff] }
 0x563   :  { %6896 = vmatprep.subr.bf16.mxu1 %v10905_v14  ;;  %v4044_v14 = vld [vmem:[%s17089_s9 + $0x214] sm:$0xff] }
 0x564   :  { %v10938_v16 = vcombine.high %v4338_v59, %v4342_v57  ;;  %v10937_v18 = vcombine.low %v4338_v59, %v4342_v57  ;;  %v4378_v57 = vunpack.c.l.s8.bf16 %v4060_v38  ;;  %v4080_v38 = vld [vmem:[%s17089_s9 + $0x310] sm:$0xff] }
 0x565   :  { %6733 = vmatpush1.bf16.msra.mxu0 %v10902_v10  ;;  %v4346_v10 = vunpack.c.l.s8.bf16 %v4044_v14 }
 0x566   :  { %6897 = vmatpush1.bf16.msra.mxu1 %v10904_v11  ;;  %6734 = vmatprep.subr.bf16.mxu0 %v10910_v13  ;;  %v4350_v11 = vunpack.c.l.s8.bf16 %v4046_v0  ;;  %v4347_v13 = vunpack.c.h.s8.bf16 %v4044_v14  ;;  %v4383_v14 = vunpack.c.h.s8.bf16 %v4062_v49  ;;  %v4064_v0 = vld [vmem:[%s17089_s9 + $0x2a0] sm:$0xff] }
 0x567   :  { %6898 = vmatprep.subr.bf16.mxu1 %v10912_v23  ;;  %v4050_v23 = vld [vmem:[%s17089_s9 + $0x23e] sm:$0xff] }
 0x568   :  { %v10945_v7 = vcombine.high %v4346_v10, %v4350_v11  ;;  %v4358_v43 = vunpack.c.l.s8.bf16 %v4050_v23  ;;  %v10947_v55 = vcombine.high %v4347_v13, %v4351_v60  ;;  %v10944_v48 = vcombine.low %v4346_v10, %v4350_v11 }
 0x569   :  { %6735 = vmatpush1.bf16.msra.mxu0 %v10909_v39  ;;  %v4355_v39 = vunpack.c.h.s8.bf16 %v4048_v15  ;;  %v10946_v26 = vcombine.low %v4347_v13, %v4351_v60  ;;  %v4386_v10 = vunpack.c.l.s8.bf16 %v4064_v0  ;;  %v4387_v13 = vunpack.c.h.s8.bf16 %v4064_v0  ;;  %v4068_v15 = vld [vmem:[%s17089_s9 + $0x2bc] sm:$0xff]  ;;  %v4084_v0 = vld [vmem:[%s17089_s9 + $0x32c] sm:$0xff] }
 0x56a   :  { %6899 = vmatpush1.bf16.msra.mxu1 %v10911_v9  ;;  %6736 = vmatprep.subr.bf16.mxu0 %v10917_v29  ;;  %v4359_v9 = vunpack.c.h.s8.bf16 %v4050_v23  ;;  %v4054_v29 = vld [vmem:[%s17089_s9 + $0x25a] sm:$0xff]  ;;  %v4070_v23 = vld [vmem:[%s17089_s9 + $0x2ca] sm:$0xff] }
 0x56b   :  { %6900 = vmatprep.subr.bf16.mxu1 %v10919_v2  ;;  %v10952_v2 = vcombine.high %v4354_v8, %v4358_v43  ;;  %v4366_v33 = vunpack.c.l.s8.bf16 %v4054_v29  ;;  %v4367_v51 = vunpack.c.h.s8.bf16 %v4054_v29  ;;  %v4074_v29 = vld [vmem:[%s17089_s9 + $0x2e6] sm:$0xff] }
 0x56c   :  { %v10954_v44 = vcombine.high %v4355_v39, %v4359_v9 }
 0x56d   :  { %6737 = vmatpush1.bf16.msra.mxu0 %v10916_v31  ;;  %v4056_v31 = vld [vmem:[%s17089_s9 + $0x268] sm:$0xff]  ;;  %v10961_v27 = vcombine.high %v4363_v42, %v4367_v51 }
 0x56e   :  { %6901 = vmatpush1.bf16.msra.mxu1 %v10918_v24  ;;  %6747 = vmatprep.subr.bf16.mxu0 %v10924_v45  ;;  %v10951_v24 = vcombine.low %v4354_v8, %v4358_v43  ;;  %v10953_v45 = vcombine.low %v4355_v39, %v4359_v9  ;;  %v4370_v3 = vunpack.c.l.s8.bf16 %v4056_v31  ;;  %v4371_v40 = vunpack.c.h.s8.bf16 %v4056_v31  ;;  %v4076_v31 = vld [vmem:[%s17089_s9 + $0x2f4] sm:$0xff] }
 0x56f   :  { %6911 = vmatprep.subr.bf16.mxu1 %v10926_v37  ;;  %v10959_v37 = vcombine.high %v4362_v28, %v4366_v33  ;;  %v4394_v8 = vunpack.c.l.s8.bf16 %v4068_v15  ;;  %v4398_v43 = vunpack.c.l.s8.bf16 %v4070_v23  ;;  %v4395_v39 = vunpack.c.h.s8.bf16 %v4068_v15  ;;  %v4088_v15 = vld [vmem:[%s17089_s9 + $0x348] sm:$0xff] }
 0x570   :  { %6739 = vmatmul.mubr.bf16.vlgmr.msra.gmra.mrb[24].mxu0 %v14207_v32  ;;  %v10966_v59 = vcombine.high %v4370_v3, %v4374_v63  ;;  %v10968_v58 = vcombine.high %v4371_v40, %v4375_v56  ;;  %v4399_v9 = vunpack.c.h.s8.bf16 %v4070_v23  ;;  %v4090_v23 = vld [vmem:[%s17089_s9 + $0x356] sm:$0xff] }
 0x571   :  { %6903 = vmatmul.mubr.bf16.vlgmr.msra.gmra.mrb[24].mxu1 %v14207_v32  ;;  %6748 = vmatpush1.bf16.msra.mxu0 %v10923_v47  ;;  %v10958_v47 = vcombine.low %v4362_v28, %v4366_v33  ;;  %v4402_v28 = vunpack.c.l.s8.bf16 %v4072_v25  ;;  %v4406_v33 = vunpack.c.l.s8.bf16 %v4074_v29 }
 0x572   :  { %6779 = vmatprep.mubr.bf16.mxu0 %v14215_v35  ;;  %6912 = vmatpush1.bf16.msra.mxu1 %v10925_v53  ;;  %v10960_v53 = vcombine.low %v4363_v42, %v4367_v51  ;;  %v4403_v42 = vunpack.c.h.s8.bf16 %v4072_v25  ;;  %v4407_v51 = vunpack.c.h.s8.bf16 %v4074_v29  ;;  %v4439_v25 = vunpack.c.h.s8.bf16 %v4090_v23  ;;  %v4092_v29 = vld [vmem:[%s17089_s9 + $0x364] sm:$0xff] }
 0x573   :  { %6943 = vmatprep.mubr.bf16.mxu1 %v14215_v35  ;;  %6749 = vmatprep.subr.bf16.mxu0 %v10931_v62  ;;  %v4382_v62 = vunpack.c.l.s8.bf16 %v4062_v49  ;;  %v4082_v49 = vld [vmem:[%s17089_s9 + $0x31e] sm:$0xff] }
 0x574   :  { %6913 = vmatprep.subr.bf16.mxu1 %v10933_v17  ;;  %v4066_v17 = vld [vmem:[%s17089_s9 + $0x2ae] sm:$0xff] }
 0x575   :  { %6750 = vmatpush1.bf16.msra.mxu0 %v10930_v4  ;;  %v10965_v4 = vcombine.low %v4370_v3, %v4374_v63  ;;  %v4390_v11 = vunpack.c.l.s8.bf16 %v4066_v17  ;;  %v4391_v60 = vunpack.c.h.s8.bf16 %v4066_v17  ;;  %v4410_v3 = vunpack.c.l.s8.bf16 %v4076_v31  ;;  %v4086_v17 = vld [vmem:[%s17089_s9 + $0x33a] sm:$0xff] }
 0x576   :  { %6914 = vmatpush1.bf16.msra.mxu1 %v10932_v5  ;;  %6751 = vmatprep.subr.bf16.mxu0 %v10938_v16  ;;  %v10967_v5 = vcombine.low %v4371_v40, %v4375_v56  ;;  %v10973_v16 = vcombine.high %v4378_v57, %v4382_v62  ;;  %v4414_v63 = vunpack.c.l.s8.bf16 %v4078_v54  ;;  %v4411_v40 = vunpack.c.h.s8.bf16 %v4076_v31 }
 0x577   :  { %6915 = vmatprep.subr.bf16.mxu1 %v10940_v1  ;;  %v10975_v1 = vcombine.high %v4379_v22, %v4383_v14  ;;  %v4415_v56 = vunpack.c.h.s8.bf16 %v4078_v54  ;;  %v4443_v31 = vunpack.c.h.s8.bf16 %v4092_v29 }
 0x579   :  { %6752 = vmatpush1.bf16.msra.mxu0 %v10937_v18  ;;  %v10972_v18 = vcombine.low %v4378_v57, %v4382_v62  ;;  %v4418_v57 = vunpack.c.l.s8.bf16 %v4080_v38  ;;  %v4422_v62 = vunpack.c.l.s8.bf16 %v4082_v49 }
 0x57a   :  { %6916 = vmatpush1.bf16.msra.mxu1 %v10939_v6  ;;  %6753 = vmatprep.subr.bf16.mxu0 %v10945_v7  ;;  %v10974_v6 = vcombine.low %v4379_v22, %v4383_v14  ;;  %v10980_v7 = vcombine.high %v4386_v10, %v4390_v11  ;;  %v4419_v22 = vunpack.c.h.s8.bf16 %v4080_v38  ;;  %v4423_v14 = vunpack.c.h.s8.bf16 %v4082_v49  ;;  %v4100_v49 = vld [vmem:[%s17089_s9 + $0x39c] sm:$0xff] }
 0x57b   :  { %6917 = vmatprep.subr.bf16.mxu1 %v10947_v55  ;;  %v10982_v55 = vcombine.high %v4387_v13, %v4391_v60 }
 0x57d   :  { %6754 = vmatpush1.bf16.msra.mxu0 %v10944_v48  ;;  %v10979_v48 = vcombine.low %v4386_v10, %v4390_v11  ;;  %v4426_v10 = vunpack.c.l.s8.bf16 %v4084_v0  ;;  %v4430_v11 = vunpack.c.l.s8.bf16 %v4086_v17 }
 0x57e   :  { %6918 = vmatpush1.bf16.msra.mxu1 %v10946_v26  ;;  %6755 = vmatprep.subr.bf16.mxu0 %v10952_v2  ;;  %v10981_v26 = vcombine.low %v4387_v13, %v4391_v60  ;;  %v10987_v2 = vcombine.high %v4394_v8, %v4398_v43  ;;  %v4427_v13 = vunpack.c.h.s8.bf16 %v4084_v0  ;;  %v4431_v60 = vunpack.c.h.s8.bf16 %v4086_v17 }
 0x57f   :  { %6919 = vmatprep.subr.bf16.mxu1 %v10954_v44  ;;  %v10989_v44 = vcombine.high %v4395_v39, %v4399_v9  ;;  %v4459_v0 = vunpack.c.h.s8.bf16 %v4100_v49 }
 0x581   :  { %6756 = vmatpush1.bf16.msra.mxu0 %v10951_v24  ;;  %v10986_v24 = vcombine.low %v4394_v8, %v4398_v43  ;;  %v11015_v8 = vcombine.high %v4426_v10, %v4430_v11  ;;  %v4434_v43 = vunpack.c.l.s8.bf16 %v4088_v15 }
 0x582   :  { %6920 = vmatpush1.bf16.msra.mxu1 %v10953_v45  ;;  %6757 = vmatprep.subr.bf16.mxu0 %v10959_v37  ;;  %v10988_v45 = vcombine.low %v4395_v39, %v4399_v9  ;;  %v10994_v37 = vcombine.high %v4402_v28, %v4406_v33  ;;  %v11017_v39 = vcombine.high %v4427_v13, %v4431_v60  ;;  %v4435_v9 = vunpack.c.h.s8.bf16 %v4088_v15 }
 0x583   :  { %6921 = vmatprep.subr.bf16.mxu1 %v10961_v27  ;;  %v10996_v27 = vcombine.high %v4403_v42, %v4407_v51 }
 0x585   :  { %6758 = vmatpush1.bf16.msra.mxu0 %v10958_v47  ;;  %v10993_v47 = vcombine.low %v4402_v28, %v4406_v33  ;;  %v11016_v28 = vcombine.low %v4427_v13, %v4431_v60 }
 0x586   :  { %6922 = vmatpush1.bf16.msra.mxu1 %v10960_v53  ;;  %6759 = vmatprep.subr.bf16.mxu0 %v10966_v59  ;;  %v10995_v53 = vcombine.low %v4403_v42, %v4407_v51  ;;  %v11001_v59 = vcombine.high %v4410_v3, %v4414_v63  ;;  %v11024_v51 = vcombine.high %v4435_v9, %v4439_v25 }
 0x587   :  { %6923 = vmatprep.subr.bf16.mxu1 %v10968_v58  ;;  %v11003_v58 = vcombine.high %v4411_v40, %v4415_v56 }
 0x589   :  { %6760 = vmatpush1.bf16.msra.mxu0 %v10965_v4  ;;  %v11000_v4 = vcombine.low %v4410_v3, %v4414_v63 }
 0x58a   :  { %6924 = vmatpush1.bf16.msra.mxu1 %v10967_v5  ;;  %6761 = vmatprep.subr.bf16.mxu0 %v10973_v16  ;;  %v11002_v5 = vcombine.low %v4411_v40, %v4415_v56  ;;  %v11008_v16 = vcombine.high %v4418_v57, %v4422_v62 }
 0x58b   :  { %6925 = vmatprep.subr.bf16.mxu1 %v10975_v1  ;;  %v11010_v1 = vcombine.high %v4419_v22, %v4423_v14 }
 0x58d   :  { %6762 = vmatpush1.bf16.msra.mxu0 %v10972_v18  ;;  %v3865_v18 = vrot.slane %v14053_v36, %v13241_v50  ;;  %v4094_v36 = vld [vmem:[%s17089_s9 + $0x372] sm:$0xff] }
 0x58e   :  { %6926 = vmatpush1.bf16.msra.mxu1 %v10974_v6  ;;  %6763 = vmatprep.subr.bf16.mxu0 %v10980_v7  ;;  %v11007_v6 = vcombine.low %v4418_v57, %v4422_v62  ;;  %v11009_v7 = vcombine.low %v4419_v22, %v4423_v14  ;;  %v4446_v42 = vunpack.c.l.s8.bf16 %v4094_v36  ;;  %v4447_v54 = vunpack.c.h.s8.bf16 %v4094_v36 }
 0x58f   :  { %6927 = vmatprep.subr.bf16.mxu1 %v10982_v55  ;;  %v4438_v55 = vunpack.c.l.s8.bf16 %v4090_v23 }
 0x590   :  { %v11031_v40 = vcombine.high %v4443_v31, %v4447_v54  ;;  %v11030_v57 = vcombine.low %v4443_v31, %v4447_v54 }
 0x591   :  { %6764 = vmatpush1.bf16.msra.mxu0 %v10979_v48  ;;  %v3896_v48 = vmul.f32 %v3865_v18, %v14005_v41  ;;  %v11022_v33 = vcombine.high %v4434_v43, %v4438_v55  ;;  %v4098_v41 = vld [vmem:[%s17089_s9 + $0x38e] sm:$0xff] }
 0x592   :  { %6928 = vmatpush1.bf16.msra.mxu1 %v10981_v26  ;;  %6765 = vmatprep.subr.bf16.mxu0 %v10987_v2  ;;  %v3915_v26 = vrot.slane %v14066_v46, %v13241_v50  ;;  %v11014_v2 = vcombine.low %v4426_v10, %v4430_v11  ;;  %v4455_v38 = vunpack.c.h.s8.bf16 %v4098_v41  ;;  %v14877_v50 = vld [vmem:[%s17089_s9 + $0x388] sm:$0x3f] }
 0x593   :  { %6929 = vmatprep.subr.bf16.mxu1 %v10989_v44  ;;  %v4442_v44 = vunpack.c.l.s8.bf16 %v4092_v29 }
 0x594   :  { %v3946_v46 = vadd.f32 %v3915_v26, %v3896_v48  ;;  %v4112_v48 = vld [vmem:[%s17089_s9 + $0x3f0] sm:$0xff]  ;;  %v4114_v26 = vld [vmem:[%s17089_s9 + $0x3fe] sm:$0xff] }
 0x595   :  { %6766 = vmatpush1.bf16.msra.mxu0 %v10986_v24  ;;  %v4096_v24 = vld [vmem:[%s17089_s9 + $0x380] sm:$0xff]  ;;  %v11029_v3 = vcombine.high %v4442_v44, %v4446_v42  ;;  %v4483_v31 = vunpack.c.h.s8.bf16 %v4112_v48  ;;  %v4487_v54 = vunpack.c.h.s8.bf16 %v4114_v26 }
 0x596   :  { %6930 = vmatpush1.bf16.msra.mxu1 %v10988_v45  ;;  %6767 = vmatprep.subr.bf16.mxu0 %v10994_v37  ;;  %v11021_v45 = vcombine.low %v4434_v43, %v4438_v55  ;;  %v11023_v37 = vcombine.low %v4435_v9, %v4439_v25  ;;  %v4450_v63 = vunpack.c.l.s8.bf16 %v4096_v24  ;;  %v4451_v56 = vunpack.c.h.s8.bf16 %v4096_v24  ;;  %v4116_v24 = vld [vmem:[%s17089_s9 + $0x40c] sm:$0xff] }
 0x597   :  { %6931 = vmatprep.subr.bf16.mxu1 %v10996_v27  ;;  %v4454_v27 = vunpack.c.l.s8.bf16 %v4098_v41  ;;  %v4118_v41 = vld [vmem:[%s17089_s9 + $0x41a] sm:$0xff] }
 0x598   :  { %v11038_v14 = vcombine.high %v4451_v56, %v4455_v38  ;;  %v11037_v11 = vcombine.low %v4451_v56, %v4455_v38  ;;  %v4495_v56 = vunpack.c.h.s8.bf16 %v4118_v41  ;;  %v4120_v38 = vld [vmem:[%s17089_s9 + $0x428] sm:$0xff] }
 0x599   :  { %6768 = vmatpush1.bf16.msra.mxu0 %v10993_v47  ;;  %v4102_v47 = vld [vmem:[%s17089_s9 + $0x3aa] sm:$0xff]  ;;  %v11036_v62 = vcombine.high %v4450_v63, %v4454_v27  ;;  %v11035_v10 = vcombine.low %v4450_v63, %v4454_v27  ;;  %v4494_v63 = vunpack.c.l.s8.bf16 %v4118_v41  ;;  %v11066_v27 = vcombine.high %v4483_v31, %v4487_v54 }
 0x59a   :  { %6932 = vmatpush1.bf16.msra.mxu1 %v10995_v53  ;;  %6769 = vmatprep.subr.bf16.mxu0 %v11001_v59  ;;  %v3954_v53 = vmax.f32 %v3946_v46, 0.0  ;;  %v11028_v59 = vcombine.low %v4442_v44, %v4446_v42  ;;  %v4462_v22 = vunpack.c.l.s8.bf16 %v4102_v47  ;;  %v4463_v17 = vunpack.c.h.s8.bf16 %v4102_v47 }
 0x59b   :  { %6933 = vmatprep.subr.bf16.mxu1 %v11003_v58  ;;  %v4458_v58 = vunpack.c.l.s8.bf16 %v4100_v49  ;;  %v4482_v44 = vunpack.c.l.s8.bf16 %v4112_v48  ;;  %v4486_v42 = vunpack.c.l.s8.bf16 %v4114_v26  ;;  %v4122_v49 = vld [vmem:[%s17089_s9 + $0x436] sm:$0xff] }
 0x59c   :  { %v11045_v15 = vcombine.high %v4459_v0, %v4463_v17  ;;  %v11044_v43 = vcombine.low %v4459_v0, %v4463_v17  ;;  %v4124_v0 = vld [vmem:[%s17089_s9 + $0x444] sm:$0xff]  ;;  %v4126_v17 = vld [vmem:[%s17089_s9 + $0x452] sm:$0xff] }
 0x59d   :  { %6770 = vmatpush1.bf16.msra.mxu0 %v11000_v4  ;;  %v4104_v4 = vld [vmem:[%s17089_s9 + $0x3b8] sm:$0xff]  ;;  %v11063_v47 = vcombine.low %v4482_v44, %v4486_v42 }
 0x59e   :  { %6934 = vmatpush1.bf16.msra.mxu1 %v11002_v5  ;;  %6771 = vmatprep.subr.bf16.mxu0 %v11008_v16  ;;  %v4106_v5 = vld [vmem:[%s17089_s9 + $0x3c6] sm:$0xff]  ;;  %v14316_v16 = vpack.c.bf16 %v3954_v53, %v3954_v53  ;;  %v4466_v13 = vunpack.c.l.s8.bf16 %v4104_v4  ;;  %v4467_v23 = vunpack.c.h.s8.bf16 %v4104_v4  ;;  %v11065_v53 = vcombine.low %v4483_v31, %v4487_v54  ;;  %v4136_v31 = vld [vmem:[%s17089_s9 + $0x498] sm:$0xff] }
 0x59f   :  { %6935 = vmatprep.subr.bf16.mxu1 %v11010_v1  ;;  %v11043_v1 = vcombine.high %v4458_v58, %v4462_v22  ;;  %v4470_v60 = vunpack.c.l.s8.bf16 %v4106_v5  ;;  %v4471_v18 = vunpack.c.h.s8.bf16 %v4106_v5  ;;  %v4138_v54 = vld [vmem:[%s17089_s9 + $0x4a6] sm:$0xff] }
 0x5a1   :  { %6772 = vmatpush1.bf16.msra.mxu0 %v11007_v6  ;;  %v4108_v6 = vld [vmem:[%s17089_s9 + $0x3d4] sm:$0xff]  ;;  %v11050_v55 = vcombine.high %v4466_v13, %v4470_v60  ;;  %v11052_v25 = vcombine.high %v4467_v23, %v4471_v18 }
 0x5a2   :  { %6936 = vmatpush1.bf16.msra.mxu1 %v11009_v7  ;;  %6773 = vmatprep.subr.bf16.mxu0 %v11015_v8  ;;  %v4110_v7 = vld [vmem:[%s17089_s9 + $0x3e2] sm:$0xff]  ;;  %v11042_v8 = vcombine.low %v4458_v58, %v4462_v22  ;;  %v4475_v29 = vunpack.c.h.s8.bf16 %v4108_v6  ;;  %v4499_v22 = vunpack.c.h.s8.bf16 %v4120_v38 }
 0x5a3   :  { %6937 = vmatprep.subr.bf16.mxu1 %v11017_v39  ;;  %v4474_v39 = vunpack.c.l.s8.bf16 %v4108_v6  ;;  %v4478_v9 = vunpack.c.l.s8.bf16 %v4110_v7  ;;  %v4479_v36 = vunpack.c.h.s8.bf16 %v4110_v7 }
 0x5a5   :  { %6774 = vmatpush1.bf16.msra.mxu0 %v11014_v2  ;;  %v11049_v2 = vcombine.low %v4466_v13, %v4470_v60  ;;  %v11056_v46 = vcombine.low %v4474_v39, %v4478_v9  ;;  %v4507_v60 = vunpack.c.h.s8.bf16 %v4124_v0 }
 0x5a6   :  { %6938 = vmatpush1.bf16.msra.mxu1 %v11016_v28  ;;  %6775 = vmatprep.subr.bf16.mxu0 %v11022_v33  ;;  %v11051_v28 = vcombine.low %v4467_v23, %v4471_v18  ;;  %v11057_v33 = vcombine.high %v4474_v39, %v4478_v9  ;;  %v4128_v23 = vld [vmem:[%s17089_s9 + $0x460] sm:$0xff]  ;;  %v4130_v18 = vld [vmem:[%s17089_s9 + $0x46e] sm:$0xff] }
 0x5a7   :  { %6939 = vmatprep.subr.bf16.mxu1 %v11024_v51  ;;  %v11059_v51 = vcombine.high %v4475_v29, %v4479_v36  ;;  %v4515_v9 = vunpack.c.h.s8.bf16 %v4128_v23 }
 0x5a9   :  { %6776 = vmatpush1.bf16.msra.mxu0 %v11021_v45  ;;  %v11058_v45 = vcombine.low %v4475_v29, %v4479_v36  ;;  %v4132_v29 = vld [vmem:[%s17089_s9 + $0x47c] sm:$0xff]  ;;  %v4134_v36 = vld [vmem:[%s17089_s9 + $0x48a] sm:$0xff] }
 0x5aa   :  { %6940 = vmatpush1.bf16.msra.mxu1 %v11023_v37  ;;  %6777 = vmatprep.subr.bf16.mxu0 %v11029_v3  ;;  %v11064_v37 = vcombine.high %v4482_v44, %v4486_v42  ;;  %v4490_v3 = vunpack.c.l.s8.bf16 %v4116_v24  ;;  %v4523_v42 = vunpack.c.h.s8.bf16 %v4132_v29 }
 0x5ab   :  { %6941 = vmatprep.subr.bf16.mxu1 %v11031_v40  ;;  %v4491_v40 = vunpack.c.h.s8.bf16 %v4116_v24 }
 0x5ac   :  { %v11070_v4 = vcombine.low %v4490_v3, %v4494_v63 }
 0x5ad   :  { %6778 = vmatpush1.bf16.msra.mxu0 %v11028_v59  ;;  %v11071_v59 = vcombine.high %v4490_v3, %v4494_v63  ;;  %v11073_v58 = vcombine.high %v4491_v40, %v4495_v56  ;;  %v11072_v5 = vcombine.low %v4491_v40, %v4495_v56  ;;  %v4531_v63 = vunpack.c.h.s8.bf16 %v4136_v31  ;;  %v4140_v40 = vld [vmem:[%s17089_s9 + $0x4b4] sm:$0xff]  ;;  %v4142_v56 = vld [vmem:[%s17089_s9 + $0x4c2] sm:$0xff] }
 0x5ae   :  { %6942 = vmatpush1.bf16.msra.mxu1 %v11030_v57  ;;  %6788 = vmatprep.subr.bf16.mxu0 %v11036_v62  ;;  %v4498_v57 = vunpack.c.l.s8.bf16 %v4120_v38  ;;  %v4502_v62 = vunpack.c.l.s8.bf16 %v4122_v49 }
 0x5af   :  { %6952 = vmatprep.subr.bf16.mxu1 %v11038_v14  ;;  %v4503_v14 = vunpack.c.h.s8.bf16 %v4122_v49 }
 0x5b0   :  { %6780 = vmatmul.mubr.bf16.vlgmr.msra.gmra.mrb[24].mxu0 %v14316_v16  ;;  %v11077_v6 = vcombine.low %v4498_v57, %v4502_v62 }
 0x5b1   :  { %6944 = vmatmul.mubr.bf16.vlgmr.msra.gmra.mrb[24].mxu1 %v14316_v16  ;;  %6789 = vmatpush1.bf16.msra.mxu0 %v11035_v10  ;;  %v11078_v10 = vcombine.high %v4498_v57, %v4502_v62  ;;  %v11080_v13 = vcombine.high %v4499_v22, %v4503_v14  ;;  %v11079_v7 = vcombine.low %v4499_v22, %v4503_v14  ;;  %v4539_v62 = vunpack.c.h.s8.bf16 %v4140_v40  ;;  %v4144_v22 = vld [vmem:[%s17089_s9 + $0x4d0] sm:$0xff]  ;;  %v4146_v14 = vld [vmem:[%s17089_s9 + $0x4de] sm:$0xff] }
 0x5b2   :  { %6953 = vmatpush1.bf16.msra.mxu1 %v11037_v11  ;;  %6790 = vmatprep.subr.bf16.mxu0 %v11043_v1  ;;  %v4506_v11 = vunpack.c.l.s8.bf16 %v4124_v0  ;;  %v4510_v1 = vunpack.c.l.s8.bf16 %v4126_v17 }
 0x5b3   :  { %6954 = vmatprep.subr.bf16.mxu1 %v11045_v15  ;;  %v4511_v15 = vunpack.c.h.s8.bf16 %v4126_v17 }
 0x5b4   :  { %v11084_v48 = vcombine.low %v4506_v11, %v4510_v1 }
 0x5b5   :  { %6791 = vmatpush1.bf16.msra.mxu0 %v11042_v8  ;;  %v11085_v8 = vcombine.high %v4506_v11, %v4510_v1  ;;  %v11087_v39 = vcombine.high %v4507_v60, %v4511_v15  ;;  %v11086_v26 = vcombine.low %v4507_v60, %v4511_v15  ;;  %v4547_v1 = vunpack.c.h.s8.bf16 %v4144_v22  ;;  %v4148_v60 = vld [vmem:[%s17089_s9 + $0x4ec] sm:$0xff]  ;;  %v4150_v15 = vld [vmem:[%s17089_s9 + $0x4fa] sm:$0xff] }
 0x5b6   :  { %6955 = vmatpush1.bf16.msra.mxu1 %v11044_v43  ;;  %6792 = vmatprep.subr.bf16.mxu0 %v11050_v55  ;;  %v4514_v43 = vunpack.c.l.s8.bf16 %v4128_v23  ;;  %v4518_v55 = vunpack.c.l.s8.bf16 %v4130_v18 }
 0x5b7   :  { %6956 = vmatprep.subr.bf16.mxu1 %v11052_v25  ;;  %v4519_v25 = vunpack.c.h.s8.bf16 %v4130_v18 }
 0x5b8   :  { %v11091_v24 = vcombine.low %v4514_v43, %v4518_v55 }
 0x5b9   :  { %6793 = vmatpush1.bf16.msra.mxu0 %v11049_v2  ;;  %v11092_v2 = vcombine.high %v4514_v43, %v4518_v55  ;;  %v11094_v44 = vcombine.high %v4515_v9, %v4519_v25  ;;  %v11093_v41 = vcombine.low %v4515_v9, %v4519_v25  ;;  %v4555_v55 = vunpack.c.h.s8.bf16 %v4148_v60  ;;  %v4152_v9 = vld [vmem:[%s17089_s9 + $0x508] sm:$0xff]  ;;  %v4154_v25 = vld [vmem:[%s17089_s9 + $0x516] sm:$0xff] }
 0x5ba   :  { %6957 = vmatpush1.bf16.msra.mxu1 %v11051_v28  ;;  %6794 = vmatprep.subr.bf16.mxu0 %v11057_v33  ;;  %v4522_v28 = vunpack.c.l.s8.bf16 %v4132_v29  ;;  %v4526_v33 = vunpack.c.l.s8.bf16 %v4134_v36 }
 0x5bb   :  { %6958 = vmatprep.subr.bf16.mxu1 %v11059_v51  ;;  %v4527_v51 = vunpack.c.h.s8.bf16 %v4134_v36 }
 0x5bc   :  { %v11098_v38 = vcombine.low %v4522_v28, %v4526_v33 }
 0x5bd   :  { %6795 = vmatpush1.bf16.msra.mxu0 %v11056_v46  ;;  %v11099_v46 = vcombine.high %v4522_v28, %v4526_v33  ;;  %v11101_v3 = vcombine.high %v4523_v42, %v4527_v51  ;;  %v11100_v49 = vcombine.low %v4523_v42, %v4527_v51  ;;  %v4563_v33 = vunpack.c.h.s8.bf16 %v4152_v9  ;;  %v4156_v42 = vld [vmem:[%s17089_s9 + $0x524] sm:$0xff]  ;;  %v4158_v51 = vld [vmem:[%s17089_s9 + $0x532] sm:$0xff] }
 0x5be   :  { %6959 = vmatpush1.bf16.msra.mxu1 %v11058_v45  ;;  %6796 = vmatprep.subr.bf16.mxu0 %v11064_v37  ;;  %v4530_v45 = vunpack.c.l.s8.bf16 %v4136_v31  ;;  %v4534_v37 = vunpack.c.l.s8.bf16 %v4138_v54 }
 0x5bf   :  { %6960 = vmatprep.subr.bf16.mxu1 %v11066_v27  ;;  %v4535_v27 = vunpack.c.h.s8.bf16 %v4138_v54 }
 0x5c0   :  { %v11105_v0 = vcombine.low %v4530_v45, %v4534_v37 }
 0x5c1   :  { %6797 = vmatpush1.bf16.msra.mxu0 %v11063_v47  ;;  %v11106_v47 = vcombine.high %v4530_v45, %v4534_v37  ;;  %v11108_v57 = vcombine.high %v4531_v63, %v4535_v27  ;;  %v11107_v17 = vcombine.low %v4531_v63, %v4535_v27  ;;  %v4571_v37 = vunpack.c.h.s8.bf16 %v4156_v42  ;;  %v4160_v63 = vld [vmem:[%s17089_s9 + $0x540] sm:$0xff]  ;;  %v4162_v27 = vld [vmem:[%s17089_s9 + $0x54e] sm:$0xff] }
 0x5c2   :  { %6961 = vmatpush1.bf16.msra.mxu1 %v11065_v53  ;;  %6798 = vmatprep.subr.bf16.mxu0 %v11071_v59  ;;  %v4538_v53 = vunpack.c.l.s8.bf16 %v4140_v40  ;;  %v4542_v59 = vunpack.c.l.s8.bf16 %v4142_v56 }
 0x5c3   :  { %6962 = vmatprep.subr.bf16.mxu1 %v11073_v58  ;;  %v4543_v58 = vunpack.c.h.s8.bf16 %v4142_v56 }
 0x5c4   :  { %v11112_v23 = vcombine.low %v4538_v53, %v4542_v59 }
 0x5c5   :  { %6799 = vmatpush1.bf16.msra.mxu0 %v11070_v4  ;;  %v11113_v4 = vcombine.high %v4538_v53, %v4542_v59  ;;  %v11115_v11 = vcombine.high %v4539_v62, %v4543_v58  ;;  %v11114_v18 = vcombine.low %v4539_v62, %v4543_v58  ;;  %v4579_v59 = vunpack.c.h.s8.bf16 %v4160_v63 }
 0x5c6   :  { %6963 = vmatpush1.bf16.msra.mxu1 %v11072_v5  ;;  %6800 = vmatprep.subr.bf16.mxu0 %v11078_v10  ;;  %v4546_v5 = vunpack.c.l.s8.bf16 %v4144_v22  ;;  %v4550_v10 = vunpack.c.l.s8.bf16 %v4146_v14 }
 0x5c7   :  { %6964 = vmatprep.subr.bf16.mxu1 %v11080_v13  ;;  %v4551_v13 = vunpack.c.h.s8.bf16 %v4146_v14 }
 0x5c8   :  { %v11119_v29 = vcombine.low %v4546_v5, %v4550_v10 }
 0x5c9   :  { %6801 = vmatpush1.bf16.msra.mxu0 %v11077_v6  ;;  %v11120_v6 = vcombine.high %v4546_v5, %v4550_v10  ;;  %v11122_v43 = vcombine.high %v4547_v1, %v4551_v13  ;;  %v11121_v36 = vcombine.low %v4547_v1, %v4551_v13  ;;  %v14416_v5 = vld [vmem:[%s17088_s8] sm:$0xff] }
 0x5ca   :  { %6965 = vmatpush1.bf16.msra.mxu1 %v11079_v7  ;;  %6802 = vmatprep.subr.bf16.mxu0 %v11085_v8  ;;  %v4554_v7 = vunpack.c.l.s8.bf16 %v4148_v60  ;;  %v4558_v8 = vunpack.c.l.s8.bf16 %v4150_v15  ;;  %v3923_v10 = vrot.slane %v14416_v5, %v13482_v12  ;;  %v3927_v13 = vrot.slane %v14416_v5, %v13494_v20 }
 0x5cb   :  { %6966 = vmatprep.subr.bf16.mxu1 %v11087_v39  ;;  %v4559_v39 = vunpack.c.h.s8.bf16 %v4150_v15 }
 0x5cc   :  { %v11126_v31 = vcombine.low %v4554_v7, %v4558_v8 }
 0x5cd   :  { %6803 = vmatpush1.bf16.msra.mxu0 %v11084_v48  ;;  %v11127_v48 = vcombine.high %v4554_v7, %v4558_v8  ;;  %v11129_v28 = vcombine.high %v4555_v55, %v4559_v39  ;;  %v11128_v54 = vcombine.low %v4555_v55, %v4559_v39 }
 0x5ce   :  { %6967 = vmatpush1.bf16.msra.mxu1 %v11086_v26  ;;  %6804 = vmatprep.subr.bf16.mxu0 %v11092_v2  ;;  %v4562_v26 = vunpack.c.l.s8.bf16 %v4152_v9  ;;  %v4566_v2 = vunpack.c.l.s8.bf16 %v4154_v25 }
 0x5cf   :  { %6968 = vmatprep.subr.bf16.mxu1 %v11094_v44  ;;  %v4567_v44 = vunpack.c.h.s8.bf16 %v4154_v25 }
 0x5d0   :  { %v11133_v40 = vcombine.low %v4562_v26, %v4566_v2 }
 0x5d1   :  { %6805 = vmatpush1.bf16.msra.mxu0 %v11091_v24  ;;  %v11134_v24 = vcombine.high %v4562_v26, %v4566_v2  ;;  %v11136_v45 = vcombine.high %v4563_v33, %v4567_v44  ;;  %v11135_v56 = vcombine.low %v4563_v33, %v4567_v44  ;;  %v4168_v26 = vld [vmem:[%s17089_s9 + $0x578] sm:$0xff]  ;;  %v4170_v44 = vld [vmem:[%s17089_s9 + $0x586] sm:$0xff] }
 0x5d2   :  { %6969 = vmatpush1.bf16.msra.mxu1 %v11093_v41  ;;  %6806 = vmatprep.subr.bf16.mxu0 %v11099_v46  ;;  %v4570_v41 = vunpack.c.l.s8.bf16 %v4156_v42  ;;  %v4574_v46 = vunpack.c.l.s8.bf16 %v4158_v51 }
 0x5d3   :  { %6970 = vmatprep.subr.bf16.mxu1 %v11101_v3  ;;  %v4575_v3 = vunpack.c.h.s8.bf16 %v4158_v51 }
 0x5d4   :  { %v11140_v62 = vcombine.low %v4570_v41, %v4574_v46 }
 0x5d5   :  { %6807 = vmatpush1.bf16.msra.mxu0 %v11098_v38  ;;  %v11141_v38 = vcombine.high %v4570_v41, %v4574_v46  ;;  %v11143_v53 = vcombine.high %v4571_v37, %v4575_v3  ;;  %v11142_v58 = vcombine.low %v4571_v37, %v4575_v3  ;;  %v4598_v3 = vunpack.c.l.s8.bf16 %v4170_v44 }
 0x5d6   :  { %6971 = vmatpush1.bf16.msra.mxu1 %v11100_v49  ;;  %6808 = vmatprep.subr.bf16.mxu0 %v11106_v47  ;;  %v4578_v49 = vunpack.c.l.s8.bf16 %v4160_v63  ;;  %v4582_v47 = vunpack.c.l.s8.bf16 %v4162_v27  ;;  %v4595_v63 = vunpack.c.h.s8.bf16 %v4168_v26 }
 0x5d7   :  { %6972 = vmatprep.subr.bf16.mxu1 %v11108_v57  ;;  %v4583_v57 = vunpack.c.h.s8.bf16 %v4162_v27  ;;  %v4599_v27 = vunpack.c.h.s8.bf16 %v4170_v44 }
 0x5d8   :  { %v11148_v22 = vcombine.high %v4578_v49, %v4582_v47  ;;  %v11147_v41 = vcombine.low %v4578_v49, %v4582_v47  ;;  %v4172_v49 = vld [vmem:[%s17089_s9 + $0x594] sm:$0xff]  ;;  %v4174_v47 = vld [vmem:[%s17089_s9 + $0x5a2] sm:$0xff] }
 0x5d9   :  { %6809 = vmatpush1.bf16.msra.mxu0 %v11105_v0  ;;  %v11150_v14 = vcombine.high %v4579_v59, %v4583_v57  ;;  %v14407_v0 = vld [vmem:[%s17087_s7] sm:$0xff]  ;;  %v11149_v46 = vcombine.low %v4579_v59, %v4583_v57 }
 0x5da   :  { %6973 = vmatpush1.bf16.msra.mxu1 %v11107_v17  ;;  %6810 = vmatprep.subr.bf16.mxu0 %v11113_v4  ;;  %v3873_v17 = vrot.slane %v14407_v0, %v13482_v12  ;;  %v3877_v4 = vrot.slane %v14407_v0, %v13494_v20  ;;  %v14851_v20 = vld [vmem:[%s17089_s9 + $0x28c] sm:$0x3f] }
 0x5db   :  { %6974 = vmatprep.subr.bf16.mxu1 %v11115_v11  ;;  %v3885_v11 = vrot.slane %v14407_v0, %v13497_v21 }
 0x5dd   :  { %6811 = vmatpush1.bf16.msra.mxu0 %v11112_v23 }
 0x5de   :  { %6975 = vmatpush1.bf16.msra.mxu1 %v11114_v18  ;;  %6812 = vmatprep.subr.bf16.mxu0 %v11120_v6  ;;  %v3935_v18 = vrot.slane %v14416_v5, %v13497_v21  ;;  %v14825_v21 = vld [vmem:[%s17089_s9 + $0x270] sm:$0x3f] }
 0x5df   :  { %6976 = vmatprep.subr.bf16.mxu1 %v11122_v43  ;;  %v4164_v43 = vld [vmem:[%s17089_s9 + $0x55c] sm:$0xff] }
 0x5e0   :  { %v4586_v33 = vunpack.c.l.s8.bf16 %v4164_v43 }
 0x5e1   :  { %6813 = vmatpush1.bf16.msra.mxu0 %v11119_v29  ;;  %v4166_v29 = vld [vmem:[%s17089_s9 + $0x56a] sm:$0xff] }
 0x5e2   :  { %6977 = vmatpush1.bf16.msra.mxu1 %v11121_v36  ;;  %6814 = vmatprep.subr.bf16.mxu0 %v11127_v48  ;;  %v4590_v51 = vunpack.c.l.s8.bf16 %v4166_v29 }
 0x5e3   :  { %6978 = vmatprep.subr.bf16.mxu1 %v11129_v28 }
 0x5e4   :  { %v11154_v59 = vcombine.low %v4586_v33, %v4590_v51 }
 0x5e5   :  { %6815 = vmatpush1.bf16.msra.mxu0 %v11126_v31  ;;  %v4587_v31 = vunpack.c.h.s8.bf16 %v4164_v43 }
 0x5e6   :  { %6979 = vmatpush1.bf16.msra.mxu1 %v11128_v54  ;;  %6816 = vmatprep.subr.bf16.mxu0 %v11134_v24  ;;  %v4591_v54 = vunpack.c.h.s8.bf16 %v4166_v29  ;;  %v4182_v29 = vld [vmem:[%s17089_s9 + $0x5da] sm:$0xff] }
 0x5e7   :  { %6980 = vmatprep.subr.bf16.mxu1 %v11136_v45  ;;  %v4594_v45 = vunpack.c.l.s8.bf16 %v4168_v26 }
 0x5e8   :  { %v11156_v57 = vcombine.low %v4587_v31, %v4591_v54 }
 0x5e9   :  { %6817 = vmatpush1.bf16.msra.mxu0 %v11133_v40 }
 0x5ea   :  { %6981 = vmatpush1.bf16.msra.mxu1 %v11135_v56  ;;  %6818 = vmatprep.subr.bf16.mxu0 %v11141_v38  ;;  %v11155_v56 = vcombine.high %v4586_v33, %v4590_v51  ;;  %v11157_v38 = vcombine.high %v4587_v31, %v4591_v54  ;;  %v4623_v31 = vunpack.c.h.s8.bf16 %v4182_v29  ;;  %v4184_v54 = vld [vmem:[%s17089_s9 + $0x5e8] sm:$0xff] }
 0x5eb   :  { %6982 = vmatprep.subr.bf16.mxu1 %v11143_v53 }
 0x5ed   :  { %6819 = vmatpush1.bf16.msra.mxu0 %v11140_v62  ;;  %v11162_v62 = vcombine.high %v4594_v45, %v4598_v3 }
 0x5ee   :  { %6983 = vmatpush1.bf16.msra.mxu1 %v11142_v58  ;;  %6829 = vmatprep.subr.bf16.mxu0 %v11148_v22  ;;  %v11164_v58 = vcombine.high %v4595_v63, %v4599_v27  ;;  %v4602_v22 = vunpack.c.l.s8.bf16 %v4172_v49 }
 0x5ef   :  { %6993 = vmatprep.subr.bf16.mxu1 %v11150_v14  ;;  %v4606_v14 = vunpack.c.l.s8.bf16 %v4174_v47 }
 0x5f1   :  { %v11169_v43 = vcombine.high %v4602_v22, %v4606_v14 }
 0x603   :  { %v3681_v1 = vpop.f32.mrb[20].mxu0 }
 0x604   :  { %v3898_v60 = vmul.f32 %v3873_v17, %v3681_v1  ;;  %v14424_v15 = vpop.f32.mrb[20].mxu1  ;;  %v3683_v23 = vpop.f32.mrb[21].mxu0  ;;  %v4603_v17 = vunpack.c.h.s8.bf16 %v4172_v49  ;;  %v11161_v1 = vcombine.low %v4594_v45, %v4598_v3  ;;  %v4626_v45 = vunpack.c.l.s8.bf16 %v4184_v54  ;;  %v4188_v49 = vld [vmem:[%s17089_s9 + $0x604] sm:$0xff] }
 0x605   :  { %v3899_v6 = vmul.f32 %v3877_v4, %v3683_v23  ;;  %v3847_v7 = vpop.f32.mrb[21].mxu1  ;;  %v3685_v8 = vpop.f32.mrb[22].mxu0  ;;  %v4607_v4 = vunpack.c.h.s8.bf16 %v4174_v47  ;;  %v4190_v47 = vld [vmem:[%s17089_s9 + $0x612] sm:$0xff] }
 0x606   :  { %v3948_v55 = vadd.f32 %v3923_v10, %v3898_v60  ;;  %v3901_v39 = vmul.f32 %v3885_v11, %v3847_v7  ;;  %v3849_v9 = vpop.f32.mrb[22].mxu1  ;;  %v3686_v25 = vpop.f32.mrb[23].mxu0  ;;  %v4176_v10 = vld [vmem:[%s17089_s9 + $0x5b0] sm:$0xff]  ;;  %v4178_v11 = vld [vmem:[%s17089_s9 + $0x5be] sm:$0xff] }
 0x607   :  { %v3949_v36 = vadd.f32 %v3927_v13, %v3899_v6  ;;  %v3850_v48 = vpop.f32.mrb[23].mxu1  ;;  %v11163_v13 = vcombine.low %v4595_v63, %v4599_v27  ;;  %v4610_v60 = vunpack.c.l.s8.bf16 %v4176_v10  ;;  %v4614_v23 = vunpack.c.l.s8.bf16 %v4178_v11  ;;  %v14469_v7 = vld [vmem:[%s17089_s9 + $0x2c4] sm:$0x3f]  ;;  %v14474_v8 = vld [vmem:[%s17089_s9 + $0x2d2] sm:$0x3f] }
 0x608   :  { %v3956_v2 = vmax.f32 %v3948_v55, 0.0  ;;  %v3951_v28 = vadd.f32 %v3935_v18, %v3901_v39  ;;  %v4611_v18 = vunpack.c.h.s8.bf16 %v4176_v10  ;;  %v4615_v6 = vunpack.c.h.s8.bf16 %v4178_v11  ;;  %v4180_v25 = vld [vmem:[%s17089_s9 + $0x5cc] sm:$0xff] }
 0x609   :  { %v3957_v42 = vmax.f32 %v3949_v36, 0.0  ;;  %v11171_v55 = vcombine.high %v4603_v17, %v4607_v4  ;;  %v4396_v39 = vunpack.c.l.s8.bf16 %v14469_v7  ;;  %v4400_v9 = vunpack.c.l.s8.bf16 %v14474_v8 }
 0x60a   :  { %v3959_v24 = vmax.f32 %v3951_v28, 0.0  ;;  %v14442_v40 = vpack.c.bf16 %v3956_v2, %v3956_v2  ;;  %v11168_v36 = vcombine.low %v4602_v22, %v4606_v14  ;;  %v11170_v2 = vcombine.low %v4603_v17, %v4607_v4  ;;  %v4192_v14 = vld [vmem:[%s17089_s9 + $0x620] sm:$0x55] }
 0x60b   :  { %v14440_v37 = vpack.c.bf16 %v3957_v42, %v3957_v42  ;;  %v14484_v48 = vcombine.high %v4396_v39, %v4400_v9  ;;  %v14486_v26 = vcombine.low %v4396_v39, %v4400_v9  ;;  %v11176_v28 = vcombine.high %v4610_v60, %v4614_v23  ;;  %v3971_v39 = vld [vmem:[%s17089_s9 + $0x16] sm:$0x3f] }
 0x60c   :  { %v14452_v53 = vpack.c.bf16 %v3959_v24, %v3959_v24  ;;  %v11178_v33 = vcombine.high %v4611_v18, %v4615_v6  ;;  %v4618_v44 = vunpack.c.l.s8.bf16 %v4180_v25  ;;  %v4622_v42 = vunpack.c.l.s8.bf16 %v4182_v29  ;;  %v4186_v24 = vld [vmem:[%s17089_s9 + $0x5f6] sm:$0xff] }
 0x60d   :  { %6820 = vmatprep.mubr.bf16.mxu0 %v14440_v37  ;;  %6984 = vmatprep.mubr.bf16.mxu1 %v14440_v37  ;;  %v4619_v51 = vunpack.c.h.s8.bf16 %v4180_v25  ;;  %v4630_v3 = vunpack.c.l.s8.bf16 %v4186_v24  ;;  %v4627_v63 = vunpack.c.h.s8.bf16 %v4184_v54  ;;  %v4631_v27 = vunpack.c.h.s8.bf16 %v4186_v24  ;;  %v3973_v54 = vld [vmem:[%s17089_s9 + $0x24] sm:$0x3f]  ;;  %v3975_v24 = vld [vmem:[%s17089_s9 + $0x32] sm:$0x3f] }
 0x60e   :  { %6821 = vmatmul.mubr.bf16.vlgmr.msra.gmra.mrb[24].mxu0 %v14442_v40  ;;  %6985 = vmatmul.mubr.bf16.vlgmr.msra.gmra.mrb[24].mxu1 %v14442_v40  ;;  %v4634_v17 = vunpack.c.l.s8.bf16 %v4188_v49  ;;  %v4638_v4 = vunpack.c.l.s8.bf16 %v4190_v47  ;;  %v4635_v10 = vunpack.c.h.s8.bf16 %v4188_v49  ;;  %v4639_v11 = vunpack.c.h.s8.bf16 %v4190_v47 }
 0x60f   :  { %6830 = vmatpush1.bf16.msra.mxu0 %v11147_v41  ;;  %6994 = vmatpush1.bf16.msra.mxu1 %v11149_v46  ;;  %v11175_v41 = vcombine.low %v4610_v60, %v4614_v23  ;;  %v11177_v46 = vcombine.low %v4611_v18, %v4615_v6  ;;  %v11192_v22 = vcombine.high %v4627_v63, %v4631_v27  ;;  %v4643_v23 = vunpack.c.h.s8.bf16 %v4192_v14 }
 0x610   :  { %11211 = vmatprep.mubr.msk.bf16.mxu0 %vm6680_vm0, %v14452_v53  ;;  %11213 = vmatprep.mubr.msk.bf16.mxu1 %vm6680_vm0, %v14452_v53  ;;  %v11191_v60 = vcombine.low %v4627_v63, %v4631_v27  ;;  %v11197_v6 = vcombine.high %v4634_v17, %v4638_v4  ;;  %v11196_v9 = vcombine.low %v4634_v17, %v4638_v4  ;;  %v4201_v63 = vunpack.c.h.s8.bf16 %v3971_v39  ;;  %v14562_v17 = vld [vmem:[%s17089_s9 + $0x12e] sm:$0x3f] }
 0x611   :  { %6831 = vmatprep.subr.bf16.mxu0 %v11155_v56  ;;  %6995 = vmatprep.subr.bf16.mxu1 %v11157_v38  ;;  %v11183_v56 = vcombine.high %v4618_v44, %v4622_v42  ;;  %v11185_v38 = vcombine.high %v4619_v51, %v4623_v31  ;;  %v11198_v25 = vcombine.low %v4635_v10, %v4639_v11  ;;  %v4204_v47 = vunpack.c.l.s8.bf16 %v3973_v54 }
 0x613   :  { %6832 = vmatpush1.bf16.msra.mxu0 %v11154_v59  ;;  %6996 = vmatpush1.bf16.msra.mxu1 %v11156_v57  ;;  %v3881_v59 = vrot.slane %v14407_v0, %v13491_v19  ;;  %v11182_v57 = vcombine.low %v4618_v44, %v4622_v42  ;;  %v3931_v0 = vrot.slane %v14416_v5, %v13491_v19  ;;  %v14517_v5 = vld [vmem:[%s17089_s9 + $0xe8] sm:$0x3f]  ;;  %v4200_v42 = vunpack.c.l.s8.bf16 %v3971_v39 }
 0x614   :  { %6833 = vmatprep.subr.bf16.mxu0 %v11162_v62  ;;  %6997 = vmatprep.subr.bf16.mxu1 %v11164_v58  ;;  %v11184_v62 = vcombine.low %v4619_v51, %v4623_v31  ;;  %v11190_v58 = vcombine.high %v4626_v45, %v4630_v3  ;;  %v4261_v51 = vunpack.c.h.s8.bf16 %v14517_v5  ;;  %v3983_v39 = vld [vmem:[%s17089_s9 + $0x6a] sm:$0x3f] }
 0x615   :  { %v3900_v18 = vmul.f32 %v3881_v59, %v14424_v15  ;;  %v14522_v15 = vld [vmem:[%s17089_s9 + $0xf6] sm:$0x3f]  ;;  %v4208_v59 = vunpack.c.l.s8.bf16 %v3975_v24 }
 0x616   :  { %v4265_v31 = vunpack.c.h.s8.bf16 %v14522_v15 }
 0x617   :  { %6834 = vmatpush1.bf16.msra.mxu0 %v11161_v1  ;;  %6998 = vmatpush1.bf16.msra.mxu1 %v11163_v13  ;;  %v4642_v1 = vunpack.c.l.s8.bf16 %v4192_v14  ;;  %v11189_v13 = vcombine.low %v4626_v45, %v4630_v3  ;;  %v3950_v44 = vadd.f32 %v3931_v0, %v3900_v18  ;;  %v14557_v14 = vld [vmem:[%s17089_s9 + $0x120] sm:$0x3f]  ;;  %v4209_v0 = vunpack.c.h.s8.bf16 %v3975_v24  ;;  %v3985_v24 = vld [vmem:[%s17089_s9 + $0x78] sm:$0x3f] }
 0x618   :  { %6835 = vmatprep.subr.bf16.mxu0 %v11169_v43  ;;  %6999 = vmatprep.subr.bf16.mxu1 %v11171_v55  ;;  %v11199_v43 = vcombine.high %v4635_v10, %v4639_v11  ;;  %v3969_v55 = vld [vmem:[%s17089_s9 + $0x8] sm:$0x3f]  ;;  %v10873_v49 = vcombine.low %v4261_v51, %v4265_v31  ;;  %v4205_v11 = vunpack.c.h.s8.bf16 %v3973_v54 }
 0x619   :  { %v11204_v29 = vcombine.high %v4642_v1, %v4642_v1  ;;  %v4197_v3 = vunpack.c.h.s8.bf16 %v3969_v55  ;;  %v3958_v27 = vmax.f32 %v3950_v44, 0.0 }
 0x61b   :  { %6836 = vmatpush1.bf16.msra.mxu0 %v11168_v36  ;;  %7000 = vmatpush1.bf16.msra.mxu1 %v11170_v2  ;;  %v11206_v36 = vcombine.high %v4643_v23, %v4643_v23  ;;  %v11203_v2 = vcombine.low %v4642_v1, %v4642_v1  ;;  %v10817_v10 = vcombine.low %v4197_v3, %v4201_v63  ;;  %v14604_v3 = vld [vmem:[%s17089_s9 + $0x166] sm:$0x3f] }
 0x61c   :  { %6837 = vmatprep.subr.bf16.mxu0 %v11176_v28  ;;  %7001 = vmatprep.subr.bf16.mxu1 %v11178_v33  ;;  %v11205_v28 = vcombine.low %v4643_v23, %v4643_v23  ;;  %v4196_v33 = vunpack.c.l.s8.bf16 %v3969_v55  ;;  %v14564_v1 = vpack.c.bf16 %v3958_v27, %v3958_v27  ;;  %v10823_v23 = vcombine.high %v4204_v47, %v4208_v59  ;;  %v3981_v55 = vld [vmem:[%s17089_s9 + $0x5c] sm:$0x3f] }
 0x61d   :  { %v6686_v45 = vsel %vm6684_vm1, %v11203_v2, 0  ;;  %v4220_v44 = vunpack.c.l.s8.bf16 %v3981_v55 }
 0x61e   :  { %v10815_v4 = vcombine.low %v4196_v33, %v4200_v42 }
 0x61f   :  { %6838 = vmatpush1.bf16.msra.mxu0 %v11175_v41  ;;  %7002 = vmatpush1.bf16.msra.mxu1 %v11177_v46  ;;  %v14535_v41 = vld [vmem:[%s17089_s9 + $0x104] sm:$0x3f]  ;;  %v14540_v46 = vld [vmem:[%s17089_s9 + $0x112] sm:$0x3f] }
 0x620   :  { %6839 = vmatprep.subr.bf16.mxu0 %v11183_v56  ;;  %7003 = vmatprep.subr.bf16.mxu1 %v11185_v38  ;;  %v6692_v56 = vsel %vm6684_vm1, %v11205_v28, 0  ;;  %v10816_v38 = vcombine.high %v4196_v33, %v4200_v42  ;;  %v10824_v28 = vcombine.low %v4205_v11, %v4209_v0  ;;  %v4224_v42 = vunpack.c.l.s8.bf16 %v3983_v39  ;;  %v14622_v11 = vld [vmem:[%s17089_s9 + $0x182] sm:$0x3f] }
 0x622   :  { %v10836_v0 = vcombine.low %v4220_v44, %v4224_v42 }
 0x623   :  { %6840 = vmatpush1.bf16.msra.mxu0 %v11182_v57  ;;  %7004 = vmatpush1.bf16.msra.mxu1 %v11184_v62  ;;  %v4269_v57 = vunpack.c.h.s8.bf16 %v14535_v41  ;;  %v4273_v62 = vunpack.c.h.s8.bf16 %v14540_v46 }
 0x624   :  { %6841 = vmatprep.subr.bf16.mxu0 %v11190_v58  ;;  %7005 = vmatprep.subr.bf16.mxu1 %v11192_v22  ;;  %v3977_v58 = vld [vmem:[%s17089_s9 + $0x40] sm:$0x3f]  ;;  %v3979_v22 = vld [vmem:[%s17089_s9 + $0x4e] sm:$0x3f] }
 0x625   :  { %v10880_v18 = vcombine.low %v4269_v57, %v4273_v62  ;;  %v4217_v2 = vunpack.c.h.s8.bf16 %v3979_v22 }
 0x627   :  { %6842 = vmatpush1.bf16.msra.mxu0 %v11189_v13  ;;  %7006 = vmatpush1.bf16.msra.mxu1 %v11191_v60  ;;  %v4212_v13 = vunpack.c.l.s8.bf16 %v3977_v58  ;;  %v4216_v60 = vunpack.c.l.s8.bf16 %v3979_v22  ;;  %v3989_v22 = vld [vmem:[%s17089_s9 + $0x94] sm:$0x3f] }
 0x628   :  { %6843 = vmatprep.subr.bf16.mxu0 %v11197_v6  ;;  %7007 = vmatprep.subr.bf16.mxu1 %v11199_v43  ;;  %v4277_v6 = vunpack.c.h.s8.bf16 %v14557_v14  ;;  %v4281_v43 = vunpack.c.h.s8.bf16 %v14562_v17 }
 0x629   :  { %v10830_v33 = vcombine.high %v4212_v13, %v4216_v60  ;;  %v10829_v63 = vcombine.low %v4212_v13, %v4216_v60  ;;  %v4229_v13 = vunpack.c.h.s8.bf16 %v3985_v24 }
 0x62a   :  { %v10887_v51 = vcombine.low %v4277_v6, %v4281_v43  ;;  %v4236_v6 = vunpack.c.l.s8.bf16 %v3989_v22 }
 0x62b   :  { %6844 = vmatpush1.bf16.msra.mxu0 %v11196_v9  ;;  %7008 = vmatpush1.bf16.msra.mxu1 %v11198_v25  ;;  %v14579_v9 = vld [vmem:[%s17089_s9 + $0x13c] sm:$0x3f]  ;;  %v14584_v25 = vld [vmem:[%s17089_s9 + $0x14a] sm:$0x3f] }
 0x62c   :  { %11210 = vmatprep.subr.msk.bf16.mxu0 %vm6684_vm1, %v11204_v29  ;;  %11212 = vmatprep.subr.msk.bf16.mxu1 %vm6684_vm1, %v11206_v36  ;;  %v10822_v29 = vcombine.low %v4204_v47, %v4208_v59  ;;  %v4213_v36 = vunpack.c.h.s8.bf16 %v3977_v58  ;;  %v4285_v31 = vunpack.c.h.s8.bf16 %v14579_v9  ;;  %v4289_v54 = vunpack.c.h.s8.bf16 %v14584_v25 }
 0x62d   :  { %v4228_v47 = vunpack.c.l.s8.bf16 %v3985_v24  ;;  %v4297_v58 = vunpack.c.h.s8.bf16 %v14604_v3 }
 0x62e   :  { %v10831_v27 = vcombine.low %v4213_v36, %v4217_v2  ;;  %v10894_v57 = vcombine.low %v4285_v31, %v4289_v54  ;;  %v3993_v36 = vld [vmem:[%s17089_s9 + $0xb0] sm:$0x3f]  ;;  %v3995_v2 = vld [vmem:[%s17089_s9 + $0xbe] sm:$0x3f] }
 0x62f   :  { %6846 = vmatpush1.bf16.msra.mxu0 %v6686_v45  ;;  %7010 = vmatpush1.bf16.msra.mxu1 %v6692_v56  ;;  %v3987_v45 = vld [vmem:[%s17089_s9 + $0x86] sm:$0x3f]  ;;  %v4221_v56 = vunpack.c.h.s8.bf16 %v3981_v55  ;;  %v4244_v24 = vunpack.c.l.s8.bf16 %v3993_v36 }
 0x630   :  { %7034 = vmatprep.subr.bf16.mxu0 %v10816_v38  ;;  %11400 = vmatprep.subr.bf16.mxu1 %v10873_v49  ;;  %v4225_v38 = vunpack.c.h.s8.bf16 %v3983_v39  ;;  %v10837_v49 = vcombine.high %v4220_v44, %v4224_v42  ;;  %v4232_v59 = vunpack.c.l.s8.bf16 %v3987_v45  ;;  %v4233_v60 = vunpack.c.h.s8.bf16 %v3987_v45 }
 0x631   :  { %v4248_v45 = vunpack.c.l.s8.bf16 %v3995_v2 }
 0x632   :  { %6862 = vmatmul.mubr.bf16.vlgmr.msra.gmra.mrb[24].mxu0 %v14564_v1  ;;  %7026 = vmatmul.mubr.bf16.vlgmr.msra.gmra.mrb[24].mxu1 %v14564_v1  ;;  %v10843_v44 = vcombine.low %v4228_v47, %v4232_v59  ;;  %v10845_v42 = vcombine.low %v4229_v13, %v4233_v60 }
 0x633   :  { %7035 = vmatpush1.bf16.msra.mxu0 %v10815_v4  ;;  %7066 = vmatprep.mubr.bf16.mxu0 %v14101_v34  ;;  %v3991_v4 = vld [vmem:[%s17089_s9 + $0xa2] sm:$0x3f]  ;;  %v10858_v13 = vcombine.high %v4244_v24, %v4248_v45 }
 0x634   :  { %11401 = vmatpush3.bf16.msra.mxu1 %v10817_v10  ;;  %7230 = vmatprep.mubr.bf16.mxu1 %v14101_v34  ;;  %v14599_v34 = vld [vmem:[%s17089_s9 + $0x158] sm:$0x3f]  ;;  %v4240_v43 = vunpack.c.l.s8.bf16 %v3991_v4  ;;  %v4241_v31 = vunpack.c.h.s8.bf16 %v3991_v4 }
 0x635   :  { %7036 = vmatprep.subr.bf16.mxu0 %v10823_v23  ;;  %11402 = vmatprep.subr.bf16.mxu1 %v10880_v18  ;;  %v4293_v62 = vunpack.c.h.s8.bf16 %v14599_v34  ;;  %v14617_v10 = vld [vmem:[%s17089_s9 + $0x174] sm:$0x3f]  ;;  %v10838_v23 = vcombine.low %v4221_v56, %v4225_v38  ;;  %v10844_v18 = vcombine.high %v4228_v47, %v4232_v59  ;;  %v14653_v59 = vld [vmem:[%s17089_s9 + $0x1ac] sm:$0x3f] }
 0x636   :  { %v4301_v39 = vunpack.c.h.s8.bf16 %v14617_v10  ;;  %v10851_v54 = vcombine.high %v4236_v6, %v4240_v43  ;;  %v10850_v47 = vcombine.low %v4236_v6, %v4240_v43  ;;  %v14665_v6 = vld [vmem:[%s17089_s9 + $0x2a8] sm:$0x3f]  ;;  %v14670_v43 = vld [vmem:[%s17089_s9 + $0x2b6] sm:$0x3f] }
 0x637   :  { %7037 = vmatpush1.bf16.msra.mxu0 %v10822_v29  ;;  %v10901_v55 = vcombine.low %v4293_v62, %v4297_v58  ;;  %v4305_v29 = vunpack.c.h.s8.bf16 %v14622_v11  ;;  %v4245_v62 = vunpack.c.h.s8.bf16 %v3993_v36  ;;  %v4249_v58 = vunpack.c.h.s8.bf16 %v3995_v2 }
 0x638   :  { %11403 = vmatpush3.bf16.msra.mxu1 %v10824_v28  ;;  %7038 = vmatprep.subr.bf16.mxu0 %v10830_v33  ;;  %v14635_v28 = vld [vmem:[%s17089_s9 + $0x190] sm:$0x3f]  ;;  %v14640_v33 = vld [vmem:[%s17089_s9 + $0x19e] sm:$0x3f] }
 0x639   :  { %11404 = vmatprep.subr.bf16.mxu1 %v10887_v51  ;;  %v4237_v51 = vunpack.c.h.s8.bf16 %v3989_v22  ;;  %v10908_v56 = vcombine.low %v4301_v39, %v4305_v29  ;;  %v4309_v38 = vunpack.c.h.s8.bf16 %v14635_v28  ;;  %v10859_v39 = vcombine.low %v4245_v62, %v4249_v58 }
 0x63a   :  { %v4397_v62 = vunpack.c.h.s8.bf16 %v14469_v7  ;;  %v4401_v58 = vunpack.c.h.s8.bf16 %v14474_v8  ;;  %v14710_v7 = vld [vmem:[%s17089_s9 + $0x2ee] sm:$0x3f] }
 0x63b   :  { %7039 = vmatpush1.bf16.msra.mxu0 %v10829_v63  ;;  %v3997_v63 = vld [vmem:[%s17089_s9 + $0xcc] sm:$0x3f] }
 0x63c   :  { %11405 = vmatpush3.bf16.msra.mxu1 %v10831_v27  ;;  %7040 = vmatprep.subr.bf16.mxu0 %v10837_v49  ;;  %v3999_v27 = vld [vmem:[%s17089_s9 + $0xda] sm:$0x3f]  ;;  %v4313_v49 = vunpack.c.h.s8.bf16 %v14640_v33  ;;  %v4252_v22 = vunpack.c.l.s8.bf16 %v3997_v63  ;;  %v4253_v29 = vunpack.c.h.s8.bf16 %v3997_v63 }
 0x63d   :  { %11406 = vmatprep.subr.bf16.mxu1 %v10894_v57  ;;  %v14658_v57 = vld [vmem:[%s17089_s9 + $0x1ba] sm:$0x3f]  ;;  %v4256_v4 = vunpack.c.l.s8.bf16 %v3999_v27  ;;  %v4257_v36 = vunpack.c.h.s8.bf16 %v3999_v27 }
 0x63e   :  { %v10915_v60 = vcombine.low %v4309_v38, %v4313_v49  ;;  %v4268_v49 = vunpack.c.l.s8.bf16 %v14535_v41  ;;  %v14705_v41 = vld [vmem:[%s17089_s9 + $0x2e0] sm:$0x3f]  ;;  %v4320_v19 = vunpack.c.l.s8.bf16 %v14658_v57 }
 0x63f   :  { %7041 = vmatpush1.bf16.msra.mxu0 %v10836_v0  ;;  %v10852_v0 = vcombine.low %v4237_v51, %v4241_v31  ;;  %v10865_v2 = vcombine.high %v4252_v22, %v4256_v4  ;;  %v4389_v51 = vunpack.c.h.s8.bf16 %v14665_v6  ;;  %v4393_v31 = vunpack.c.h.s8.bf16 %v14670_v43 }
 0x640   :  { %11407 = vmatpush3.bf16.msra.mxu1 %v10838_v23  ;;  %7042 = vmatprep.subr.bf16.mxu0 %v10844_v18  ;;  %v4317_v23 = vunpack.c.h.s8.bf16 %v14653_v59  ;;  %v4321_v18 = vunpack.c.h.s8.bf16 %v14658_v57  ;;  %v10866_v27 = vcombine.low %v4253_v29, %v4257_v36  ;;  %v10992_v29 = vcombine.low %v4397_v62, %v4401_v58  ;;  %v14868_v57 = vld [vmem:[%s17089_s9 + $0x476] sm:$0x3f] }
 0x641   :  { %11408 = vmatprep.subr.bf16.mxu1 %v10901_v55  ;;  %v10857_v55 = vcombine.low %v4244_v24, %v4248_v45  ;;  %v14684_v24 = vld [vmem:[%s17089_s9 + $0x1d6] sm:$0x3f]  ;;  %v10985_v38 = vcombine.low %v4389_v51, %v4393_v31  ;;  %v4405_v36 = vunpack.c.h.s8.bf16 %v14705_v41 }
 0x642   :  { %v10922_v45 = vcombine.low %v4317_v23, %v4321_v18  ;;  %v4329_v63 = vunpack.c.h.s8.bf16 %v14684_v24  ;;  %v4280_v23 = vunpack.c.l.s8.bf16 %v14562_v17  ;;  %v14719_v18 = vld [vmem:[%s17089_s9 + $0x200] sm:$0x3f]  ;;  %v14736_v17 = vld [vmem:[%s17089_s9 + $0x30a] sm:$0x3f]  ;;  %v4328_v12 = vunpack.c.l.s8.bf16 %v14684_v24 }
 0x643   :  { %7043 = vmatpush1.bf16.msra.mxu0 %v10843_v44  ;;  %v4260_v44 = vunpack.c.l.s8.bf16 %v14517_v5  ;;  %v10864_v5 = vcombine.low %v4252_v22, %v4256_v4  ;;  %v14695_v22 = vld [vmem:[%s17089_s9 + $0x1e4] sm:$0x3f]  ;;  %v14700_v4 = vld [vmem:[%s17089_s9 + $0x1f2] sm:$0x3f]  ;;  %v4453_v24 = vunpack.c.h.s8.bf16 %v14877_v50 }
 0x644   :  { %11409 = vmatpush3.bf16.msra.mxu1 %v10845_v42  ;;  %7044 = vmatprep.subr.bf16.mxu0 %v10851_v54  ;;  %v4264_v42 = vunpack.c.l.s8.bf16 %v14522_v15  ;;  %v14679_v54 = vld [vmem:[%s17089_s9 + $0x1c8] sm:$0x3f] }
 0x645   :  { %11410 = vmatprep.subr.bf16.mxu1 %v10908_v56  ;;  %v4325_v15 = vunpack.c.h.s8.bf16 %v14679_v54 }
 0x646   :  { %v10872_v56 = vcombine.high %v4260_v44, %v4264_v42  ;;  %v10871_v8 = vcombine.low %v4260_v44, %v4264_v42  ;;  %v4341_v42 = vunpack.c.h.s8.bf16 %v14719_v18 }
 0x647   :  { %7045 = vmatpush1.bf16.msra.mxu0 %v10850_v47  ;;  %v4272_v47 = vunpack.c.l.s8.bf16 %v14540_v46  ;;  %v10929_v46 = vcombine.low %v4325_v15, %v4329_v63  ;;  %v4288_v15 = vunpack.c.l.s8.bf16 %v14584_v25  ;;  %v14747_v63 = vld [vmem:[%s17089_s9 + $0x21c] sm:$0x3f]  ;;  %v14764_v25 = vld [vmem:[%s17089_s9 + $0x326] sm:$0x3f] }
 0x648   :  { %11411 = vmatpush3.bf16.msra.mxu1 %v10852_v0  ;;  %7046 = vmatprep.subr.bf16.mxu0 %v10858_v13  ;;  %v4333_v0 = vunpack.c.h.s8.bf16 %v14695_v22  ;;  %v4337_v13 = vunpack.c.h.s8.bf16 %v14700_v4  ;;  %v4349_v58 = vunpack.c.h.s8.bf16 %v14747_v63 }
 0x649   :  { %11412 = vmatprep.subr.bf16.mxu1 %v10915_v60  ;;  %v4276_v60 = vunpack.c.l.s8.bf16 %v14557_v14  ;;  %v14731_v14 = vld [vmem:[%s17089_s9 + $0x2fc] sm:$0x3f]  ;;  %v10878_v44 = vcombine.low %v4268_v49, %v4272_v47 }
 0x64a   :  { %v10936_v31 = vcombine.low %v4333_v0, %v4337_v13  ;;  %v4292_v0 = vunpack.c.l.s8.bf16 %v14599_v34  ;;  %v4296_v13 = vunpack.c.l.s8.bf16 %v14604_v3  ;;  %v14785_v34 = vld [vmem:[%s17089_s9 + $0x334] sm:$0x3f]  ;;  %v14790_v3 = vld [vmem:[%s17089_s9 + $0x342] sm:$0x3f] }
 0x64b   :  { %7047 = vmatpush1.bf16.msra.mxu0 %v10857_v55  ;;  %v14724_v55 = vld [vmem:[%s17089_s9 + $0x20e] sm:$0x3f] }
 0x64c   :  { %11413 = vmatpush3.bf16.msra.mxu1 %v10859_v39  ;;  %7048 = vmatprep.subr.bf16.mxu0 %v10865_v2  ;;  %v10879_v39 = vcombine.high %v4268_v49, %v4272_v47  ;;  %v4409_v2 = vunpack.c.h.s8.bf16 %v14710_v7  ;;  %v4345_v51 = vunpack.c.h.s8.bf16 %v14724_v55  ;;  %v14754_v49 = vld [vmem:[%s17089_s9 + $0x22a] sm:$0x3f]  ;;  %v10885_v47 = vcombine.low %v4276_v60, %v4280_v23 }
 0x64d   :  { %11414 = vmatprep.subr.bf16.mxu1 %v10922_v45  ;;  %v10886_v45 = vcombine.high %v4276_v60, %v4280_v23  ;;  %v14778_v60 = vld [vmem:[%s17089_s9 + $0x246] sm:$0x3f]  ;;  %v4344_v61 = vunpack.c.l.s8.bf16 %v14724_v55  ;;  %v14942_v55 = vld [vmem:[%s17089_s9 + $0x4bc] sm:$0x3f] }
 0x64e   :  { %v10943_v62 = vcombine.low %v4341_v42, %v4345_v51  ;;  %v4361_v42 = vunpack.c.h.s8.bf16 %v14778_v60 }
 0x64f   :  { %7049 = vmatpush1.bf16.msra.mxu0 %v10864_v5  ;;  %v4284_v5 = vunpack.c.l.s8.bf16 %v14579_v9  ;;  %v14759_v9 = vld [vmem:[%s17089_s9 + $0x318] sm:$0x3f] }
 0x650   :  { %11415 = vmatpush3.bf16.msra.mxu1 %v10866_v27  ;;  %7050 = vmatprep.subr.bf16.mxu0 %v10872_v56  ;;  %v10999_v27 = vcombine.low %v4405_v36, %v4409_v2  ;;  %v4413_v56 = vunpack.c.h.s8.bf16 %v14731_v14  ;;  %v4425_v36 = vunpack.c.h.s8.bf16 %v14764_v25 }
 0x651   :  { %11422 = vmatprep.subr.bf16.mxu1 %v10985_v38  ;;  %v4417_v38 = vunpack.c.h.s8.bf16 %v14736_v17  ;;  %v10892_v2 = vcombine.low %v4284_v5, %v4288_v15 }
 0x653   :  { %7231 = vmatmul.mubr.bf16.vlgmr.msra.gmra.mrb[28].mxu1 %v14207_v32  ;;  %7051 = vmatpush1.bf16.msra.mxu0 %v10871_v8  ;;  %v10893_v8 = vcombine.high %v4284_v5, %v4288_v15  ;;  %v11006_v23 = vcombine.low %v4413_v56, %v4417_v38  ;;  %v14799_v56 = vld [vmem:[%s17089_s9 + $0x254] sm:$0x3f]  ;;  %v4429_v5 = vunpack.c.h.s8.bf16 %v14785_v34  ;;  %v4433_v15 = vunpack.c.h.s8.bf16 %v14790_v3 }
 0x654   :  { %11423 = vmatpush3.bf16.msra.mxu1 %v10929_v46  ;;  %7270 = vmatprep.mubr.bf16.mxu1 %v14215_v35  ;;  %v4353_v46 = vunpack.c.h.s8.bf16 %v14754_v49 }
 0x655   :  { %7052 = vmatprep.subr.bf16.mxu0 %v10879_v39  ;;  %11424 = vmatprep.subr.bf16.mxu1 %v10992_v29  ;;  %v14773_v39 = vld [vmem:[%s17089_s9 + $0x238] sm:$0x3f]  ;;  %v4421_v29 = vunpack.c.h.s8.bf16 %v14759_v9 }
 0x656   :  { %v10950_v51 = vcombine.low %v4349_v58, %v4353_v46 }
 0x657   :  { %7053 = vmatpush1.bf16.msra.mxu0 %v10878_v44  ;;  %v4357_v44 = vunpack.c.h.s8.bf16 %v14773_v39  ;;  %v11013_v38 = vcombine.low %v4421_v29, %v4425_v36  ;;  %v4308_v29 = vunpack.c.l.s8.bf16 %v14635_v28  ;;  %v4312_v36 = vunpack.c.l.s8.bf16 %v14640_v33  ;;  %v14837_v28 = vld [vmem:[%s17089_s9 + $0x36c] sm:$0x3f]  ;;  %v14842_v33 = vld [vmem:[%s17089_s9 + $0x37a] sm:$0x3f] }
 0x658   :  { %11425 = vmatpush3.bf16.msra.mxu1 %v10936_v31  ;;  %7054 = vmatprep.subr.bf16.mxu0 %v10886_v45  ;;  %v10900_v31 = vcombine.high %v4292_v0, %v4296_v13  ;;  %v4300_v45 = vunpack.c.l.s8.bf16 %v14617_v10  ;;  %v14811_v10 = vld [vmem:[%s17089_s9 + $0x350] sm:$0x3f] }
 0x659   :  { %11426 = vmatprep.subr.bf16.mxu1 %v10999_v27  ;;  %v4304_v27 = vunpack.c.l.s8.bf16 %v14622_v11  ;;  %v14816_v11 = vld [vmem:[%s17089_s9 + $0x35e] sm:$0x3f]  ;;  %v10957_v58 = vcombine.low %v4357_v44, %v4361_v42 }
 0x65a   :  { %v4441_v44 = vunpack.c.h.s8.bf16 %v14816_v11 }
 0x65b   :  { %7055 = vmatpush1.bf16.msra.mxu0 %v10885_v47  ;;  %v14806_v47 = vld [vmem:[%s17089_s9 + $0x262] sm:$0x3f]  ;;  %v10907_v46 = vcombine.high %v4300_v45, %v4304_v27  ;;  %v10906_v42 = vcombine.low %v4300_v45, %v4304_v27  ;;  %v4445_v45 = vunpack.c.h.s8.bf16 %v14837_v28  ;;  %v4449_v27 = vunpack.c.h.s8.bf16 %v14842_v33 }
 0x65c   :  { %11427 = vmatpush3.bf16.msra.mxu1 %v10943_v62  ;;  %7056 = vmatprep.subr.bf16.mxu0 %v10893_v8  ;;  %v10899_v62 = vcombine.low %v4292_v0, %v4296_v13  ;;  %v4365_v8 = vunpack.c.h.s8.bf16 %v14799_v56  ;;  %v14830_v0 = vld [vmem:[%s17089_s9 + $0x27e] sm:$0x3f]  ;;  %v11020_v13 = vcombine.low %v4429_v5, %v4433_v15  ;;  %v10914_v5 = vcombine.high %v4308_v29, %v4312_v36 }
 0x65d   :  { %11428 = vmatprep.subr.bf16.mxu1 %v11006_v23  ;;  %v4369_v23 = vunpack.c.h.s8.bf16 %v14806_v47  ;;  %v4316_v15 = vunpack.c.l.s8.bf16 %v14653_v59  ;;  %v14863_v59 = vld [vmem:[%s17089_s9 + $0x468] sm:$0x3f] }
 0x65f   :  { %7057 = vmatpush1.bf16.msra.mxu0 %v10892_v2  ;;  %v4437_v2 = vunpack.c.h.s8.bf16 %v14811_v10 }
 0x660   :  { %11429 = vmatpush3.bf16.msra.mxu1 %v10950_v51  ;;  %7058 = vmatprep.subr.bf16.mxu0 %v10900_v31  ;;  %v4373_v51 = vunpack.c.h.s8.bf16 %v14825_v21  ;;  %v4377_v31 = vunpack.c.h.s8.bf16 %v14830_v0 }
 0x661   :  { %11430 = vmatprep.subr.bf16.mxu1 %v11013_v38  ;;  %v10964_v38 = vcombine.low %v4365_v8, %v4369_v23  ;;  %v10913_v8 = vcombine.low %v4308_v29, %v4312_v36  ;;  %v4381_v23 = vunpack.c.h.s8.bf16 %v14851_v20  ;;  %v14882_v29 = vld [vmem:[%s17089_s9 + $0x396] sm:$0x3f]  ;;  %v11034_v36 = vcombine.low %v4445_v45, %v4449_v27 }
 0x662   :  { %v4336_v27 = vunpack.c.l.s8.bf16 %v14700_v4  ;;  %v14920_v4 = vld [vmem:[%s17089_s9 + $0x4ae] sm:$0x3f] }
 0x663   :  { %7059 = vmatpush1.bf16.msra.mxu0 %v10899_v62  ;;  %v11027_v62 = vcombine.low %v4437_v2, %v4441_v44  ;;  %v4324_v44 = vunpack.c.l.s8.bf16 %v14679_v54  ;;  %v10920_v54 = vcombine.low %v4316_v15, %v4320_v19  ;;  %17152 = vst [vmem:[#allocation14_spill] sm:$0xff] %v14920_v4 }
 0x664   :  { %11431 = vmatpush3.bf16.msra.mxu1 %v10957_v58  ;;  %7060 = vmatprep.subr.bf16.mxu0 %v10907_v46  ;;  %v14858_v58 = vld [vmem:[%s17089_s9 + $0x29a] sm:$0x3f]  ;;  %v10971_v46 = vcombine.low %v4373_v51, %v4377_v31  ;;  %v4521_v51 = vunpack.c.h.s8.bf16 %v14868_v57  ;;  %v4457_v31 = vunpack.c.h.s8.bf16 %v14882_v29 }
 0x665   :  { %11432 = vmatprep.subr.bf16.mxu1 %v11020_v13  ;;  %v10921_v13 = vcombine.high %v4316_v15, %v4320_v19  ;;  %v4385_v2 = vunpack.c.h.s8.bf16 %v14858_v58  ;;  %v10928_v45 = vcombine.high %v4324_v44, %v4328_v12  ;;  %v4332_v15 = vunpack.c.l.s8.bf16 %v14695_v22  ;;  %v14915_v22 = vld [vmem:[%s17089_s9 + $0x4a0] sm:$0x3f] }
 0x666   :  { %17151 = vst [vmem:[#allocation13_spill] sm:$0xff] %v14915_v22 }
 0x667   :  { %7061 = vmatpush1.bf16.msra.mxu0 %v10906_v42  ;;  %v4517_v42 = vunpack.c.h.s8.bf16 %v14863_v59 }
 0x668   :  { %11433 = vmatpush3.bf16.msra.mxu1 %v10964_v38  ;;  %7062 = vmatprep.subr.bf16.mxu0 %v10914_v5  ;;  %v14891_v38 = vld [vmem:[%s17089_s9 + $0x484] sm:$0x3f]  ;;  %v14896_v5 = vld [vmem:[%s17089_s9 + $0x492] sm:$0x3f] }
 0x669   :  { %11434 = vmatprep.subr.bf16.mxu1 %v11027_v62  ;;  %v10978_v62 = vcombine.low %v4381_v23, %v4385_v2  ;;  %v11097_v19 = vcombine.low %v4517_v42, %v4521_v51  ;;  %v4529_v23 = vunpack.c.h.s8.bf16 %v14896_v5  ;;  %v11041_v2 = vcombine.low %v4453_v24, %v4457_v31  ;;  %v14947_v31 = vld [vmem:[%s17089_s9 + $0x4ca] sm:$0x3f] }
 0x66a   :  { %v4465_v42 = vunpack.c.h.s8.bf16 %v14908_v52  ;;  %v4340_v51 = vunpack.c.l.s8.bf16 %v14719_v18  ;;  %v4537_v24 = vunpack.c.h.s8.bf16 %v14920_v4  ;;  %17153 = vst [vmem:[#allocation15_spill] sm:$0xff] %v14947_v31  ;;  %v4352_v4 = vunpack.c.l.s8.bf16 %v14754_v49  ;;  %v14976_v49 = vld [vmem:[%s17089_s9 + $0x4e6] sm:$0x3f] }
 0x66b   :  { %7063 = vmatpush1.bf16.msra.mxu0 %v10913_v8  ;;  %v14903_v8 = vld [vmem:[%s17089_s9 + $0x3a4] sm:$0x3f]  ;;  %17155 = vst [vmem:[#allocation17_spill] sm:$0xff] %v14976_v49 }
 0x66c   :  { %11435 = vmatpush3.bf16.msra.mxu1 %v10971_v46  ;;  %7064 = vmatprep.subr.bf16.mxu0 %v10921_v13  ;;  %v4525_v46 = vunpack.c.h.s8.bf16 %v14891_v38  ;;  %v10927_v13 = vcombine.low %v4324_v44, %v4328_v12  ;;  %v14934_v12 = vld [vmem:[%s17089_s9 + $0x3ce] sm:$0x3f]  ;;  %v10935_v44 = vcombine.high %v4332_v15, %v4336_v27 }
 0x66d   :  { %11436 = vmatprep.subr.bf16.mxu1 %v11034_v36  ;;  %v4461_v36 = vunpack.c.h.s8.bf16 %v14903_v8 }
 0x66e   :  { %v11104_v18 = vcombine.low %v4525_v46, %v4529_v23  ;;  %v10942_v46 = vcombine.high %v4340_v51, %v4344_v61  ;;  %v4348_v23 = vunpack.c.l.s8.bf16 %v14747_v63  ;;  %v14971_v63 = vld [vmem:[%s17089_s9 + $0x4d8] sm:$0x3f] }
 0x66f   :  { %7065 = vmatpush1.bf16.msra.mxu0 %v10920_v54  ;;  %v4533_v54 = vunpack.c.h.s8.bf16 %v14915_v22  ;;  %v14958_v22 = vld [vmem:[%s17089_s9 + $0x3dc] sm:$0x3f]  ;;  %17154 = vst [vmem:[#allocation16_spill] sm:$0xff] %v14971_v63 }
 0x670   :  { %11437 = vmatpush3.bf16.msra.mxu1 %v10978_v62  ;;  %7075 = vmatprep.subr.bf16.mxu0 %v10928_v45  ;;  %v10934_v62 = vcombine.low %v4332_v15, %v4336_v27  ;;  %v4469_v45 = vunpack.c.h.s8.bf16 %v14929_v30  ;;  %v4541_v27 = vunpack.c.h.s8.bf16 %v14942_v55 }
 0x671   :  { %11444 = vmatprep.subr.bf16.mxu1 %v11097_v19  ;;  %v4473_v19 = vunpack.c.h.s8.bf16 %v14934_v12  ;;  %v11111_v15 = vcombine.low %v4533_v54, %v4537_v24  ;;  %v4356_v24 = vunpack.c.l.s8.bf16 %v14773_v39  ;;  %v14997_v39 = vld [vmem:[%s17089_s9 + $0x4f4] sm:$0x3f] }
 0x672   :  { %7067 = vmatmul.mubr.bf16.vlgmr.msra.gmra.mrb[28].mxu0 %v14207_v32  ;;  %v11048_v32 = vcombine.low %v4461_v36, %v4465_v42  ;;  %v4477_v42 = vunpack.c.h.s8.bf16 %v14958_v22  ;;  %17156 = vst [vmem:[#allocation18_spill] sm:$0xff] %v14997_v39 }
 0x673   :  { %7271 = vmatmul.mubr.bf16.vlgmr.msra.gmra.mrb[32].mxu1 %v14316_v16  ;;  %7076 = vmatpush1.bf16.msra.mxu0 %v10927_v13  ;;  %v14966_v13 = vld [vmem:[%s17089_s9 + $0x3ea] sm:$0x3f]  ;;  %v11055_v36 = vcombine.low %v4469_v45, %v4473_v19  ;;  %v4553_v45 = vunpack.c.h.s8.bf16 %v14976_v49  ;;  %v10948_v19 = vcombine.low %v4348_v23, %v4352_v4  ;;  %v4368_v49 = vunpack.c.l.s8.bf16 %v14806_v47  ;;  %v15028_v47 = vld [vmem:[%s17089_s9 + $0x51e] sm:$0x3f] }
 0x674   :  { %7107 = vmatprep.mubr.bf16.mxu0 %v14215_v35  ;;  %11445 = vmatpush3.bf16.msra.mxu1 %v11041_v2  ;;  %v4545_v35 = vunpack.c.h.s8.bf16 %v14947_v31  ;;  %v10941_v2 = vcombine.low %v4340_v51, %v4344_v61  ;;  %v4481_v54 = vunpack.c.h.s8.bf16 %v14966_v13  ;;  %v14985_v31 = vld [vmem:[%s17089_s9 + $0x3f8] sm:$0x3f]  ;;  %v14990_v61 = vld [vmem:[%s17089_s9 + $0x406] sm:$0x3f]  ;;  %17159 = vst [vmem:[#allocation21_spill] sm:$0xff] %v15028_v47 }
 0x675   :  { %7310 = vmatprep.mubr.bf16.mxu1 %v14440_v37  ;;  %7077 = vmatprep.subr.bf16.mxu0 %v10935_v44  ;;  %v10949_v44 = vcombine.high %v4348_v23, %v4352_v4  ;;  %v4557_v4 = vunpack.c.h.s8.bf16 %v14997_v39  ;;  %v15037_v39 = vld [vmem:[%s17089_s9 + $0x430] sm:$0x3f] }
 0x676   :  { %11446 = vmatprep.subr.bf16.mxu1 %v11104_v18  ;;  %v4360_v18 = vunpack.c.l.s8.bf16 %v14778_v60  ;;  %v11118_v51 = vcombine.low %v4541_v27, %v4545_v35  ;;  %v15002_v60 = vld [vmem:[%s17089_s9 + $0x502] sm:$0x3f]  ;;  %v4364_v35 = vunpack.c.l.s8.bf16 %v14799_v56  ;;  %v15023_v56 = vld [vmem:[%s17089_s9 + $0x510] sm:$0x3f] }
 0x677   :  { %7078 = vmatpush1.bf16.msra.mxu0 %v10934_v62  ;;  %v4549_v62 = vunpack.c.h.s8.bf16 %v14971_v63  ;;  %17157 = vst [vmem:[#allocation19_spill] sm:$0xff] %v15002_v60  ;;  %v15011_v63 = vld [vmem:[%s17089_s9 + $0x414] sm:$0x3f]  ;;  %v4561_v23 = vunpack.c.h.s8.bf16 %v15002_v60  ;;  %17158 = vst [vmem:[#allocation20_spill] sm:$0xff] %v15023_v56  ;;  %v4376_v60 = vunpack.c.l.s8.bf16 %v14830_v0  ;;  %v15054_v0 = vld [vmem:[%s17089_s9 + $0x53a] sm:$0x3f] }
 0x678   :  { %11447 = vmatpush3.bf16.msra.mxu1 %v11048_v32  ;;  %7079 = vmatprep.subr.bf16.mxu0 %v10942_v46  ;;  %v4485_v32 = vunpack.c.h.s8.bf16 %v14985_v31  ;;  %v4489_v46 = vunpack.c.h.s8.bf16 %v14990_v61  ;;  %v10956_v27 = vcombine.high %v4356_v24, %v4360_v18 }
 0x679   :  { %11448 = vmatprep.subr.bf16.mxu1 %v11111_v15  ;;  %v11062_v15 = vcombine.low %v4477_v42, %v4481_v54  ;;  %v10955_v42 = vcombine.low %v4356_v24, %v4360_v18  ;;  %v4493_v54 = vunpack.c.h.s8.bf16 %v15011_v63  ;;  %v15042_v24 = vld [vmem:[%s17089_s9 + $0x43e] sm:$0x3f]  ;;  %v11132_v18 = vcombine.low %v4557_v4, %v4561_v23 }
 0x67a   :  { %v4380_v23 = vunpack.c.l.s8.bf16 %v14851_v20 }
 0x67b   :  { %7080 = vmatpush1.bf16.msra.mxu0 %v10941_v2  ;;  %v11125_v2 = vcombine.low %v4549_v62, %v4553_v45  ;;  %v4372_v45 = vunpack.c.l.s8.bf16 %v14825_v21  ;;  %v15049_v21 = vld [vmem:[%s17089_s9 + $0x52c] sm:$0x3f] }
 0x67c   :  { %11449 = vmatpush3.bf16.msra.mxu1 %v11055_v36  ;;  %7081 = vmatprep.subr.bf16.mxu0 %v10949_v44  ;;  %v15018_v36 = vld [vmem:[%s17089_s9 + $0x422] sm:$0x3f]  ;;  %v11069_v44 = vcombine.low %v4485_v32, %v4489_v46  ;;  %v4569_v32 = vunpack.c.h.s8.bf16 %v15028_v47  ;;  %v10962_v46 = vcombine.low %v4364_v35, %v4368_v49  ;;  %v4384_v47 = vunpack.c.l.s8.bf16 %v14858_v58 }
 0x67d   :  { %11450 = vmatprep.subr.bf16.mxu1 %v11118_v51  ;;  %v10963_v51 = vcombine.high %v4364_v35, %v4368_v49  ;;  %v4497_v62 = vunpack.c.h.s8.bf16 %v15018_v36  ;;  %v10970_v4 = vcombine.high %v4372_v45, %v4376_v60  ;;  %v4573_v49 = vunpack.c.h.s8.bf16 %v15049_v21 }
 0x67e   :  { %v4577_v35 = vunpack.c.h.s8.bf16 %v15054_v0  ;;  %v10969_v20 = vcombine.low %v4372_v45, %v4376_v60  ;;  %v15084_v60 = vld [vmem:[%s17089_s9 + $0x556] sm:$0x3f] }
 0x67f   :  { %7082 = vmatpush1.bf16.msra.mxu0 %v10948_v19  ;;  %v4565_v19 = vunpack.c.h.s8.bf16 %v15023_v56  ;;  %v15063_v56 = vld [vmem:[%s17089_s9 + $0x44c] sm:$0x3f] }
 0x680   :  { %11451 = vmatpush3.bf16.msra.mxu1 %v11062_v15  ;;  %7083 = vmatprep.subr.bf16.mxu0 %v10956_v27  ;;  %v4501_v15 = vunpack.c.h.s8.bf16 %v15037_v39  ;;  %v4505_v27 = vunpack.c.h.s8.bf16 %v15042_v24  ;;  %v4509_v58 = vunpack.c.h.s8.bf16 %v15063_v56  ;;  %v11146_v45 = vcombine.low %v4573_v49, %v4577_v35 }
 0x681   :  { %11452 = vmatprep.subr.bf16.mxu1 %v11125_v2  ;;  %v11076_v2 = vcombine.low %v4493_v54, %v4497_v62  ;;  %v4404_v35 = vunpack.c.l.s8.bf16 %v14705_v41 }
 0x682   :  { %v11083_v54 = vcombine.low %v4501_v15, %v4505_v27 }
 0x683   :  { %7084 = vmatpush1.bf16.msra.mxu0 %v10955_v42  ;;  %v11139_v42 = vcombine.low %v4565_v19, %v4569_v32  ;;  %v4392_v19 = vunpack.c.l.s8.bf16 %v14670_v43  ;;  %v15079_v32 = vld [vmem:[%s17089_s9 + $0x548] sm:$0x3f] }
 0x684   :  { %11453 = vmatpush3.bf16.msra.mxu1 %v11069_v44  ;;  %7085 = vmatprep.subr.bf16.mxu0 %v10963_v51  ;;  %v15070_v44 = vld [vmem:[%s17089_s9 + $0x45a] sm:$0x3f]  ;;  %v10977_v51 = vcombine.high %v4380_v23, %v4384_v47  ;;  %v4581_v15 = vunpack.c.h.s8.bf16 %v15079_v32 }
 0x685   :  { %11454 = vmatprep.subr.bf16.mxu1 %v11132_v18  ;;  %v4513_v62 = vunpack.c.h.s8.bf16 %v15070_v44  ;;  %v4388_v18 = vunpack.c.l.s8.bf16 %v14665_v6  ;;  %v4585_v6 = vunpack.c.h.s8.bf16 %v15084_v60 }
 0x687   :  { %7086 = vmatpush1.bf16.msra.mxu0 %v10962_v46  ;;  %v10976_v46 = vcombine.low %v4380_v23, %v4384_v47  ;;  %v11090_v43 = vcombine.low %v4509_v58, %v4513_v62  ;;  %v10984_v27 = vcombine.high %v4388_v18, %v4392_v19  ;;  %v10983_v47 = vcombine.low %v4388_v18, %v4392_v19  ;;  %v15110_v58 = vld [vmem:[%s17089_s9 + $0x58e] sm:$0x3f] }
 0x688   :  { %11455 = vmatpush3.bf16.msra.mxu1 %v11076_v2  ;;  %7087 = vmatprep.subr.bf16.mxu0 %v10970_v4  ;;  %v15091_v2 = vld [vmem:[%s17089_s9 + $0x564] sm:$0x3f]  ;;  %v15096_v4 = vld [vmem:[%s17089_s9 + $0x572] sm:$0x3f]  ;;  %v11153_v23 = vcombine.low %v4581_v15, %v4585_v6  ;;  %v4412_v19 = vunpack.c.l.s8.bf16 %v14731_v14  ;;  %v15130_v15 = vld [vmem:[%s17089_s9 + $0x5aa] sm:$0x3f] }
 0x689   :  { %11456 = vmatprep.subr.bf16.mxu1 %v11139_v42  ;;  %v4589_v42 = vunpack.c.h.s8.bf16 %v15091_v2  ;;  %v4593_v49 = vunpack.c.h.s8.bf16 %v15096_v4 }
 0x68b   :  { %7088 = vmatpush1.bf16.msra.mxu0 %v10969_v20  ;;  %v4408_v20 = vunpack.c.l.s8.bf16 %v14710_v7  ;;  %v4601_v7 = vunpack.c.h.s8.bf16 %v15110_v58  ;;  %v11160_v62 = vcombine.low %v4589_v42, %v4593_v49 }
 0x68c   :  { %11457 = vmatpush3.bf16.msra.mxu1 %v11083_v54  ;;  %7089 = vmatprep.subr.bf16.mxu0 %v10977_v51  ;;  %v15105_v54 = vld [vmem:[%s17089_s9 + $0x580] sm:$0x3f]  ;;  %v11721_v51 = vmov 0  }
 0x68d   :  { %11458 = vmatprep.subr.bf16.mxu1 %v11146_v45  ;;  %v4597_v41 = vunpack.c.h.s8.bf16 %v15105_v54  ;;  %v10998_v18 = vcombine.high %v4404_v35, %v4408_v20  ;;  %v4416_v45 = vunpack.c.l.s8.bf16 %v14736_v17  ;;  %v10997_v6 = vcombine.low %v4404_v35, %v4408_v20 }
 0x68e   :  { %v4428_v20 = vunpack.c.l.s8.bf16 %v14785_v34 }
 0x68f   :  { %7090 = vmatpush1.bf16.msra.mxu0 %v10976_v46  ;;  %v15123_v46 = vld [vmem:[%s17089_s9 + $0x59c] sm:$0x3f]  ;;  %v11167_v14 = vcombine.low %v4597_v41, %v4601_v7  ;;  %v11004_v42 = vcombine.low %v4412_v19, %v4416_v45  ;;  %v4432_v41 = vunpack.c.l.s8.bf16 %v14790_v3  ;;  %v15155_v7 = vld [vmem:[%s17089_s9 + $0x5d4] sm:$0x3f] }
 0x690   :  { %11459 = vmatpush3.bf16.msra.mxu1 %v11090_v43  ;;  %7091 = vmatprep.subr.bf16.mxu0 %v10984_v27  ;;  %v4605_v17 = vunpack.c.h.s8.bf16 %v15123_v46  ;;  %v11005_v43 = vcombine.high %v4412_v19, %v4416_v45  ;;  %v4609_v27 = vunpack.c.h.s8.bf16 %v15130_v15  ;;  %v4621_v45 = vunpack.c.h.s8.bf16 %v15155_v7 }
 0x691   :  { %7318 = vmatprep.subr.bf16.mxu1 %v11721_v51  ;;  %v11019_v34 = vcombine.high %v4428_v20, %v4432_v41 }
 0x693   :  { %7311 = vmatmul.mubr.bf16.vlgmr.msra.gmra.mrb[36].mxu1 %v14442_v40  ;;  %7092 = vmatpush1.bf16.msra.mxu0 %v10983_v47  ;;  %v4424_v47 = vunpack.c.l.s8.bf16 %v14764_v25  ;;  %v11174_v25 = vcombine.low %v4605_v17, %v4609_v27  ;;  %v15170_v17 = vld [vmem:[%s17089_s9 + $0x5f0] sm:$0x3f]  ;;  %v11018_v27 = vcombine.low %v4428_v20, %v4432_v41 }
 0x694   :  { %7319 = vmatpush1.bf16.msra.mxu1 %v11153_v23  ;;  %11216 = vmatprep.mubr.msk.bf16.mxu1 %vm6680_vm0, %v14452_v53  ;;  %v15140_v23 = vld [vmem:[%s17089_s9 + $0x5b8] sm:$0x3f] }
 0x695   :  { %7093 = vmatprep.subr.bf16.mxu0 %v14484_v48  ;;  %7320 = vmatprep.subr.bf16.mxu1 %v11721_v51  ;;  %v4420_v48 = vunpack.c.l.s8.bf16 %v14759_v9  ;;  %v4613_v49 = vunpack.c.h.s8.bf16 %v15140_v23 }
 0x697   :  { %7094 = vmatpush1.bf16.msra.mxu0 %v14486_v26  ;;  %v15145_v26 = vld [vmem:[%s17089_s9 + $0x5c6] sm:$0x3f]  ;;  %v11012_v35 = vcombine.high %v4420_v48, %v4424_v47 }
 0x698   :  { %7321 = vmatpush1.bf16.msra.mxu1 %v11160_v62  ;;  %7095 = vmatprep.subr.bf16.mxu0 %v10998_v18  ;;  %v4617_v9 = vunpack.c.h.s8.bf16 %v15145_v26  ;;  %v15161_v62 = vld [vmem:[%s17089_s9 + $0x5e2] sm:$0x3f]  ;;  %v11011_v18 = vcombine.low %v4420_v48, %v4424_v47  ;;  %v4629_v48 = vunpack.c.h.s8.bf16 %v15170_v17 }
 0x699   :  { %7322 = vmatprep.subr.bf16.mxu1 %v11721_v51  ;;  %v4625_v3 = vunpack.c.h.s8.bf16 %v15161_v62 }
 0x69a   :  { %v11181_v19 = vcombine.low %v4613_v49, %v4617_v9  ;;  %v4448_v49 = vunpack.c.l.s8.bf16 %v14842_v33  ;;  %v15185_v9 = vld [vmem:[%s17089_s9 + $0x60c] sm:$0x3f] }
 0x69b   :  { %7096 = vmatpush1.bf16.msra.mxu0 %v10997_v6  ;;  %v4436_v6 = vunpack.c.l.s8.bf16 %v14811_v10  ;;  %v4637_v20 = vunpack.c.h.s8.bf16 %v15185_v9 }
 0x69c   :  { %7323 = vmatpush1.bf16.msra.mxu1 %v11167_v14  ;;  %7097 = vmatprep.subr.bf16.mxu0 %v11005_v43  ;;  %v4440_v14 = vunpack.c.l.s8.bf16 %v14816_v11  ;;  %v15175_v43 = vld [vmem:[%s17089_s9 + $0x5fe] sm:$0x3f]  ;;  %v11188_v11 = vcombine.low %v4621_v45, %v4625_v3  ;;  %v4456_v45 = vunpack.c.l.s8.bf16 %v14882_v29 }
 0x69d   :  { %7324 = vmatprep.subr.bf16.mxu1 %v11721_v51  ;;  %v4633_v10 = vunpack.c.h.s8.bf16 %v15175_v43 }
 0x69e   :  { %v11026_v47 = vcombine.high %v4436_v6, %v4440_v14 }
 0x69f   :  { %7098 = vmatpush1.bf16.msra.mxu0 %v11004_v42  ;;  %v4444_v42 = vunpack.c.l.s8.bf16 %v14837_v28  ;;  %v11025_v28 = vcombine.low %v4436_v6, %v4440_v14  ;;  %v11195_v33 = vcombine.low %v4629_v48, %v4633_v10  ;;  %v4464_v48 = vunpack.c.l.s8.bf16 %v14908_v52 }
 0x6a0   :  { %7325 = vmatpush1.bf16.msra.mxu1 %v11174_v25  ;;  %7099 = vmatprep.subr.bf16.mxu0 %v11012_v35  ;;  %v15191_v25 = vld [vmem:[%s17089_s9 + $0x61a] sm:$0x3f]  ;;  %v15196_v35 = vld [vmem:[%s17089_s9 + $0x628] sm:$0x15] }
 0x6a1   :  { %7326 = vmatprep.subr.bf16.mxu1 %v11721_v51  ;;  %v11033_v41 = vcombine.high %v4444_v42, %v4448_v49  ;;  %v11032_v3 = vcombine.low %v4444_v42, %v4448_v49  ;;  %v4472_v42 = vunpack.c.l.s8.bf16 %v14934_v12  ;;  %v7460_v49 = vld [vmem:[%s17092_s12] sm:$0xff]  ;;  %v4476_v12 = vunpack.c.l.s8.bf16 %v14958_v22 }
 0x6a2   :  { %v7616_v22 = vunpack.c.h.s8.bf16 %v7460_v49 }
 0x6a3   :  { %7100 = vmatpush1.bf16.msra.mxu0 %v11011_v18  ;;  %v4641_v18 = vunpack.c.h.s8.bf16 %v15191_v25 }
 0x6a4   :  { %7327 = vmatpush1.bf16.msra.mxu1 %v11181_v19  ;;  %7101 = vmatprep.subr.bf16.mxu0 %v11019_v34  ;;  %v4452_v19 = vunpack.c.l.s8.bf16 %v14877_v50  ;;  %v4645_v34 = vunpack.c.h.s8.bf16 %v15196_v35  ;;  %v7461_v50 = vld [vmem:[%s17092_s12 + $0x8] sm:$0xff] }
 0x6a5   :  { %7328 = vmatprep.subr.bf16.mxu1 %v11721_v51  ;;  %v11202_v6 = vcombine.low %v4637_v20, %v4641_v18  ;;  %v7610_v20 = vunpack.c.l.s8.bf16 %v7460_v49  ;;  %v7467_v18 = vld [vmem:[%s17092_s12 + $0x38] sm:$0xff]  ;;  %v4512_v49 = vunpack.c.l.s8.bf16 %v15070_v44 }
 0x6a6   :  { %v11040_v14 = vcombine.high %v4452_v19, %v4456_v45  ;;  %v11209_v10 = vcombine.low %v4645_v34, %v4645_v34  ;;  %v11039_v29 = vcombine.low %v4452_v19, %v4456_v45  ;;  %v4484_v19 = vunpack.c.l.s8.bf16 %v14985_v31  ;;  %v7466_v34 = vld [vmem:[%s17092_s12 + $0x30] sm:$0xff] }
 0x6a7   :  { %7102 = vmatpush1.bf16.msra.mxu0 %v11018_v27  ;;  %v4460_v27 = vunpack.c.l.s8.bf16 %v14903_v8  ;;  %v7611_v8 = vunpack.c.l.s8.bf16 %v7461_v50  ;;  %v4488_v45 = vunpack.c.l.s8.bf16 %v14990_v61  ;;  %v7622_v31 = vunpack.c.l.s8.bf16 %v7466_v34 }
 0x6a8   :  { %7329 = vmatpush1.bf16.msra.mxu1 %v11188_v11  ;;  %7103 = vmatprep.subr.bf16.mxu0 %v11026_v47  ;;  %v4468_v47 = vunpack.c.l.s8.bf16 %v14929_v30  ;;  %v6704_v52 = vsel %vm6684_vm1, %v11209_v10, 0  ;;  %v7629_v61 = vunpack.c.h.s8.bf16 %v7467_v18 }
 0x6a9   :  { %7330 = vmatprep.subr.bf16.mxu1 %v11721_v51  ;;  %v11047_v11 = vcombine.high %v4460_v27, %v4464_v48  ;;  %v11067_v10 = vcombine.low %v4484_v19, %v4488_v45 }
 0x6aa   :  { %v11054_v30 = vcombine.high %v4468_v47, %v4472_v42 }
 0x6ab   :  { %7104 = vmatpush1.bf16.msra.mxu0 %v11025_v28  ;;  %v11046_v28 = vcombine.low %v4460_v27, %v4464_v48  ;;  %v4496_v27 = vunpack.c.l.s8.bf16 %v15018_v36  ;;  %v7473_v48 = vld [vmem:[%s17092_s12 + $0x68] sm:$0xff] }
 0x6ac   :  { %7331 = vmatpush1.bf16.msra.mxu1 %v11195_v33  ;;  %7105 = vmatprep.subr.bf16.mxu0 %v11033_v41  ;;  %v4480_v33 = vunpack.c.l.s8.bf16 %v14966_v13  ;;  %v7617_v41 = vunpack.c.h.s8.bf16 %v7461_v50  ;;  %v7623_v13 = vunpack.c.l.s8.bf16 %v7467_v18  ;;  %v7635_v36 = vunpack.c.l.s8.bf16 %v7473_v48 }
 0x6ad   :  { %7332 = vmatprep.subr.bf16.mxu1 %v11721_v51 }
 0x6af   :  { %7106 = vmatpush1.bf16.msra.mxu0 %v11032_v3  ;;  %v11060_v3 = vcombine.low %v4476_v12, %v4480_v33 }
 0x6b0   :  { %7333 = vmatpush1.bf16.msra.mxu1 %v11202_v6  ;;  %7116 = vmatprep.subr.bf16.mxu0 %v11040_v14  ;;  %v11068_v6 = vcombine.high %v4484_v19, %v4488_v45  ;;  %v4492_v14 = vunpack.c.l.s8.bf16 %v15011_v63  ;;  %v7628_v63 = vunpack.c.h.s8.bf16 %v7466_v34  ;;  %v4528_v19 = vunpack.c.l.s8.bf16 %v14896_v5  ;;  %v7485_v45 = vld [vmem:[%s17092_s12 + $0xc8] sm:$0xff]  ;;  %v17160_v34 = vld [vmem:[#allocation13_spill] sm:$0xff] }
 0x6b1   :  { %7334 = vmatprep.subr.bf16.mxu1 %v11721_v51  ;;  %v7659_v5 = vunpack.c.l.s8.bf16 %v7485_v45 }
 0x6b2   :  { %7108 = vmatmul.mubr.bf16.vlgmr.msra.gmra.mrb[28].mxu0 %v14316_v16  ;;  %v11053_v16 = vcombine.low %v4468_v47, %v4472_v42  ;;  %v11075_v50 = vcombine.high %v4492_v14, %v4496_v27  ;;  %v7472_v47 = vld [vmem:[%s17092_s12 + $0x60] sm:$0xff]  ;;  %v11074_v42 = vcombine.low %v4492_v14, %v4496_v27 }
 0x6b3   :  { %7117 = vmatpush1.bf16.msra.mxu0 %v11039_v29  ;;  %7148 = vmatprep.mubr.bf16.mxu0 %v14440_v37  ;;  %v11061_v37 = vcombine.high %v4476_v12, %v4480_v33  ;;  %v4500_v29 = vunpack.c.l.s8.bf16 %v15037_v39  ;;  %v7634_v39 = vunpack.c.l.s8.bf16 %v7472_v47  ;;  %v4516_v33 = vunpack.c.l.s8.bf16 %v14863_v59  ;;  %v7484_v27 = vld [vmem:[%s17092_s12 + $0xc0] sm:$0xff] }
 0x6b4   :  { %7335 = vmatpush1.bf16.msra.mxu1 %v6704_v52  ;;  %7118 = vmatprep.subr.bf16.mxu0 %v11047_v11  ;;  %v4504_v11 = vunpack.c.l.s8.bf16 %v15042_v24  ;;  %v7641_v24 = vunpack.c.h.s8.bf16 %v7473_v48  ;;  %v4540_v48 = vunpack.c.l.s8.bf16 %v14942_v55  ;;  %v7664_v55 = vunpack.c.h.s8.bf16 %v7484_v27 }
 0x6b5   :  { %7914 = vmatprep.subr.bf16.mxu1 %v7611_v8  ;;  %v4508_v8 = vunpack.c.l.s8.bf16 %v15063_v56  ;;  %v7640_v56 = vunpack.c.h.s8.bf16 %v7472_v47 }
 0x6b6   :  { %v11082_v52 = vcombine.high %v4500_v29, %v4504_v11 }
 0x6b7   :  { %7351 = vmatmul.mubr.bf16.vlgmr.msra.gmra.mrb[40].mxu1 %v14564_v1  ;;  %7119 = vmatpush1.bf16.msra.mxu0 %v11046_v28  ;;  %v7479_v28 = vld [vmem:[%s17092_s12 + $0x98] sm:$0xff]  ;;  %v11089_v12 = vcombine.high %v4508_v8, %v4512_v49  ;;  %v11088_v18 = vcombine.low %v4508_v8, %v4512_v49  ;;  %v17164_v8 = vld [vmem:[#allocation17_spill] sm:$0xff] }
 0x6b8   :  { %7120 = vmatprep.subr.bf16.mxu0 %v11054_v30  ;;  %7915 = vmatpush1.bf16.msra.mxu1 %v7610_v20  ;;  %v11081_v30 = vcombine.low %v4500_v29, %v4504_v11  ;;  %v4520_v20 = vunpack.c.l.s8.bf16 %v14868_v57  ;;  %v7647_v44 = vunpack.c.l.s8.bf16 %v7479_v28  ;;  %v7653_v57 = vunpack.c.h.s8.bf16 %v7479_v28 }
 0x6b9   :  { %7916 = vmatprep.subr.bf16.mxu1 %v7617_v41  ;;  %v7478_v41 = vld [vmem:[%s17092_s12 + $0x90] sm:$0xff]  ;;  %v7658_v29 = vunpack.c.l.s8.bf16 %v7484_v27  ;;  %v7665_v11 = vunpack.c.h.s8.bf16 %v7485_v45  ;;  %v4552_v49 = vunpack.c.l.s8.bf16 %v17164_v8 }
 0x6ba   :  { %v7646_v59 = vunpack.c.l.s8.bf16 %v7478_v41 }
 0x6bb   :  { %7121 = vmatpush1.bf16.msra.mxu0 %v11053_v16  ;;  %v11096_v16 = vcombine.high %v4516_v33, %v4520_v20 }
 0x6bc   :  { %7122 = vmatprep.subr.bf16.mxu0 %v11061_v37  ;;  %7917 = vmatpush1.bf16.msra.mxu1 %v7616_v22  ;;  %v4524_v37 = vunpack.c.l.s8.bf16 %v14891_v38  ;;  %v11095_v22 = vcombine.low %v4516_v33, %v4520_v20  ;;  %v7652_v38 = vunpack.c.h.s8.bf16 %v7478_v41  ;;  %v17166_v20 = vld [vmem:[#allocation19_spill] sm:$0xff] }
 0x6bd   :  { %7918 = vmatprep.subr.bf16.mxu1 %v7623_v13 }
 0x6be   :  { %v11103_v13 = vcombine.high %v4524_v37, %v4528_v19 }
 0x6bf   :  { %7123 = vmatpush1.bf16.msra.mxu0 %v11060_v3  ;;  %v4532_v3 = vunpack.c.l.s8.bf16 %v17160_v34  ;;  %v7496_v34 = vld [vmem:[%s17092_s12 + $0x120] sm:$0xff] }
 0x6c0   :  { %7124 = vmatprep.subr.bf16.mxu0 %v11068_v6  ;;  %7919 = vmatpush1.bf16.msra.mxu1 %v7622_v31  ;;  %v17161_v6 = vld [vmem:[#allocation14_spill] sm:$0xff]  ;;  %v11102_v31 = vcombine.low %v4524_v37, %v4528_v19  ;;  %v17167_v19 = vld [vmem:[#allocation20_spill] sm:$0xff] }
 0x6c1   :  { %7920 = vmatprep.subr.bf16.mxu1 %v7629_v61  ;;  %v4536_v14 = vunpack.c.l.s8.bf16 %v17161_v6 }
 0x6c3   :  { %7125 = vmatpush1.bf16.msra.mxu0 %v11067_v10  ;;  %v11110_v61 = vcombine.high %v4532_v3, %v4536_v14  ;;  %v17162_v10 = vld [vmem:[#allocation15_spill] sm:$0xff] }
 0x6c4   :  { %7126 = vmatprep.subr.bf16.mxu0 %v11075_v50  ;;  %7921 = vmatpush1.bf16.msra.mxu1 %v7628_v63  ;;  %v4544_v50 = vunpack.c.l.s8.bf16 %v17162_v10  ;;  %v7491_v63 = vld [vmem:[%s17092_s12 + $0xf8] sm:$0xff]  ;;  %v4580_v10 = vunpack.c.l.s8.bf16 %v15079_v32 }
 0x6c5   :  { %7922 = vmatprep.subr.bf16.mxu1 %v7635_v36  ;;  %v11109_v36 = vcombine.low %v4532_v3, %v4536_v14  ;;  %v7677_v41 = vunpack.c.h.s8.bf16 %v7491_v63  ;;  %v4572_v14 = vunpack.c.l.s8.bf16 %v15049_v21  ;;  %v7688_v21 = vunpack.c.h.s8.bf16 %v7496_v34 }
 0x6c6   :  { %v11117_v47 = vcombine.high %v4540_v48, %v4544_v50  ;;  %v11116_v28 = vcombine.low %v4540_v48, %v4544_v50  ;;  %v4584_v50 = vunpack.c.l.s8.bf16 %v15084_v60 }
 0x6c7   :  { %7127 = vmatpush1.bf16.msra.mxu0 %v11074_v42  ;;  %v17163_v42 = vld [vmem:[#allocation16_spill] sm:$0xff] }
 0x6c8   :  { %7128 = vmatprep.subr.bf16.mxu0 %v11082_v52  ;;  %7923 = vmatpush1.bf16.msra.mxu1 %v7634_v39  ;;  %v4548_v52 = vunpack.c.l.s8.bf16 %v17163_v42  ;;  %v7671_v39 = vunpack.c.l.s8.bf16 %v7491_v63  ;;  %v11152_v63 = vcombine.high %v4580_v10, %v4584_v50  ;;  %v15295_v42 = vld [vmem:[%s17092_s12 + $0x188] sm:$0xff] }
 0x6c9   :  { %7924 = vmatprep.subr.bf16.mxu1 %v7641_v24  ;;  %v7490_v24 = vld [vmem:[%s17092_s12 + $0xf0] sm:$0xff] }
 0x6cb   :  { %7129 = vmatpush1.bf16.msra.mxu0 %v11081_v30  ;;  %v11124_v30 = vcombine.high %v4548_v52, %v4552_v49 }
 0x6cc   :  { %7130 = vmatprep.subr.bf16.mxu0 %v11089_v12  ;;  %7925 = vmatpush1.bf16.msra.mxu1 %v7640_v56  ;;  %v17165_v12 = vld [vmem:[#allocation18_spill] sm:$0xff]  ;;  %v4560_v56 = vunpack.c.l.s8.bf16 %v17166_v20  ;;  %v4620_v20 = vunpack.c.l.s8.bf16 %v15155_v7  ;;  %v17169_v7 = vld [vmem:[#allocation5_spill] sm:$0xff] }
 0x6cd   :  { %7926 = vmatprep.subr.bf16.mxu1 %v7647_v44  ;;  %v4556_v33 = vunpack.c.l.s8.bf16 %v17165_v12  ;;  %v7670_v44 = vunpack.c.l.s8.bf16 %v7490_v24  ;;  %v4612_v12 = vunpack.c.l.s8.bf16 %v15140_v23  ;;  %v4628_v23 = vunpack.c.l.s8.bf16 %v15170_v17 }
 0x6cf   :  { %7131 = vmatpush1.bf16.msra.mxu0 %v11088_v18  ;;  %v7497_v18 = vld [vmem:[%s17092_s12 + $0x128] sm:$0xff]  ;;  %v11131_v37 = vcombine.high %v4556_v33, %v4560_v56  ;;  %v11130_v3 = vcombine.low %v4556_v33, %v4560_v56  ;;  %v15312_v56 = vld [vmem:[%s17090_s10] sm:$0x7f] }
 0x6d0   :  { %7132 = vmatprep.subr.bf16.mxu0 %v11096_v16  ;;  %7927 = vmatpush1.bf16.msra.mxu1 %v7646_v59  ;;  %v11123_v16 = vcombine.low %v4548_v52, %v4552_v49  ;;  %v4564_v59 = vunpack.c.l.s8.bf16 %v17167_v19  ;;  %v7689_v27 = vunpack.c.h.s8.bf16 %v7497_v18  ;;  %v11151_v52 = vcombine.low %v4580_v10, %v4584_v50 }
 0x6d1   :  { %7928 = vmatprep.subr.bf16.mxu1 %v7653_v57  ;;  %v17168_v57 = vld [vmem:[#allocation21_spill] sm:$0xff]  ;;  %v4596_v49 = vunpack.c.l.s8.bf16 %v15105_v54  ;;  %v4608_v54 = vunpack.c.l.s8.bf16 %v15130_v15 }
 0x6d2   :  { %v4568_v45 = vunpack.c.l.s8.bf16 %v17168_v57  ;;  %v4636_v57 = vunpack.c.l.s8.bf16 %v15185_v9 }
 0x6d3   :  { %7133 = vmatpush1.bf16.msra.mxu0 %v11095_v22  ;;  %v7676_v22 = vunpack.c.h.s8.bf16 %v7490_v24 }
 0x6d4   :  { %7134 = vmatprep.subr.bf16.mxu0 %v11103_v13  ;;  %7929 = vmatpush1.bf16.msra.mxu1 %v7652_v38  ;;  %v7683_v13 = vunpack.c.l.s8.bf16 %v7497_v18  ;;  %v11138_v6 = vcombine.high %v4564_v59, %v4568_v45  ;;  %v4576_v38 = vunpack.c.l.s8.bf16 %v15054_v0  ;;  %v17170_v18 = vld [vmem:[#allocation7_spill] sm:$0xff] }
 0x6d5   :  { %7930 = vmatprep.subr.bf16.mxu1 %v7659_v5  ;;  %v7682_v5 = vunpack.c.l.s8.bf16 %v7496_v34 }
 0x6d6   :  { %v11145_v48 = vcombine.high %v4572_v14, %v4576_v38 }
 0x6d7   :  { %7135 = vmatpush1.bf16.msra.mxu0 %v11102_v31  ;;  %v7503_v31 = vld [vmem:[%s17092_s12 + $0x158] sm:$0xff] }
 0x6d8   :  { %7136 = vmatprep.subr.bf16.mxu0 %v11110_v61  ;;  %7931 = vmatpush1.bf16.msra.mxu1 %v7658_v29  ;;  %v11137_v61 = vcombine.low %v4564_v59, %v4568_v45  ;;  %v7695_v0 = vunpack.c.l.s8.bf16 %v7503_v31  ;;  %v7502_v29 = vld [vmem:[%s17092_s12 + $0x150] sm:$0xff]  ;;  %v7701_v60 = vunpack.c.h.s8.bf16 %v7503_v31  ;;  %v4640_v45 = vunpack.c.l.s8.bf16 %v15191_v25 }
 0x6d9   :  { %7932 = vmatprep.subr.bf16.mxu1 %v7665_v11  ;;  %v11144_v11 = vcombine.low %v4572_v14, %v4576_v38  ;;  %v7694_v32 = vunpack.c.l.s8.bf16 %v7502_v29  ;;  %v4644_v25 = vunpack.c.l.s8.bf16 %v15196_v35 }
 0x6db   :  { %7137 = vmatpush1.bf16.msra.mxu0 %v11109_v36  ;;  %v4588_v36 = vunpack.c.l.s8.bf16 %v15091_v2  ;;  %v7700_v2 = vunpack.c.h.s8.bf16 %v7502_v29 }
 0x6dc   :  { %7138 = vmatprep.subr.bf16.mxu0 %v11117_v47  ;;  %7933 = vmatpush1.bf16.msra.mxu1 %v7664_v55  ;;  %v4592_v47 = vunpack.c.l.s8.bf16 %v15096_v4  ;;  %v4600_v55 = vunpack.c.l.s8.bf16 %v15110_v58  ;;  %v7707_v4 = vunpack.c.l.s8.bf16 %v15295_v42 }
 0x6dd   :  { %7934 = vmatprep.subr.bf16.mxu1 %v7671_v39 }
 0x6de   :  { %v11159_v8 = vcombine.high %v4588_v36, %v4592_v47  ;;  %v11158_v39 = vcombine.low %v4588_v36, %v4592_v47  ;;  %v11166_v24 = vcombine.high %v4596_v49, %v4600_v55  ;;  %v11165_v58 = vcombine.low %v4596_v49, %v4600_v55  ;;  %v7463_v49 = vld [vmem:[%s17092_s12 + $0x18] sm:$0xff] }
 0x6df   :  { %7139 = vmatpush1.bf16.msra.mxu0 %v11116_v28  ;;  %v4604_v28 = vunpack.c.l.s8.bf16 %v15123_v46  ;;  %v4624_v46 = vunpack.c.l.s8.bf16 %v15161_v62  ;;  %v7363_v62 = vrot.slane %v15312_v56, %v17169_v7 }
 0x6e0   :  { %7140 = vmatprep.subr.bf16.mxu0 %v11124_v30  ;;  %7935 = vmatpush1.bf16.msra.mxu1 %v7670_v44 }
 0x6e1   :  { %7936 = vmatprep.subr.bf16.mxu1 %v7677_v41  ;;  %v11173_v30 = vcombine.high %v4604_v28, %v4608_v54  ;;  %v11172_v33 = vcombine.low %v4604_v28, %v4608_v54  ;;  %v11187_v44 = vcombine.high %v4620_v20, %v4624_v46  ;;  %v15319_v41 = vld [vmem:[%s17091_s11] sm:$0x7f]  ;;  %v11186_v59 = vcombine.low %v4620_v20, %v4624_v46 }
 0x6e2   :  { %v7407_v17 = vrot.slane %v15319_v41, %v17169_v7  ;;  %v7411_v34 = vrot.slane %v15319_v41, %v17170_v18  ;;  %v7613_v28 = vunpack.c.l.s8.bf16 %v7463_v49 }
 0x6e3   :  { %7141 = vmatpush1.bf16.msra.mxu0 %v11123_v16  ;;  %v7367_v16 = vrot.slane %v15312_v56, %v17170_v18 }
 0x6e4   :  { %7142 = vmatprep.subr.bf16.mxu0 %v11131_v37  ;;  %7937 = vmatpush1.bf16.msra.mxu1 %v7676_v22  ;;  %v17171_v37 = vld [vmem:[#allocation8_spill] sm:$0xff] }
 0x6e5   :  { %7938 = vmatprep.subr.bf16.mxu1 %v7683_v13  ;;  %v7375_v19 = vrot.slane %v15312_v56, %v17171_v37 }
 0x6e7   :  { %7143 = vmatpush1.bf16.msra.mxu0 %v11130_v3  ;;  %v7419_v3 = vrot.slane %v15319_v41, %v17171_v37 }
 0x6e8   :  { %7144 = vmatprep.subr.bf16.mxu0 %v11138_v6  ;;  %7939 = vmatpush1.bf16.msra.mxu1 %v7682_v5 }
 0x6e9   :  { %7940 = vmatprep.subr.bf16.mxu1 %v7689_v27 }
 0x6eb   :  { %7145 = vmatpush1.bf16.msra.mxu0 %v11137_v61 }
 0x6ec   :  { %7146 = vmatprep.subr.bf16.mxu0 %v11145_v48  ;;  %7941 = vmatpush1.bf16.msra.mxu1 %v7688_v21  ;;  %v11201_v21 = vcombine.high %v4636_v57, %v4640_v45 }
 0x6ed   :  { %7942 = vmatprep.subr.bf16.mxu1 %v7695_v0 }
 0x6ef   :  { %7147 = vmatpush1.bf16.msra.mxu0 %v11144_v11 }
 0x6f0   :  { %7157 = vmatprep.subr.bf16.mxu0 %v11152_v63  ;;  %7943 = vmatpush1.bf16.msra.mxu1 %v7694_v32  ;;  %v7508_v63 = vld [vmem:[%s17092_s12 + $0x180] sm:$0xff]  ;;  %v11200_v32 = vcombine.low %v4636_v57, %v4640_v45  ;;  %v7527_v45 = vld [vmem:[%s17092_s12 + $0x218] sm:$0xff] }
 0x6f1   :  { %7944 = vmatprep.subr.bf16.mxu1 %v7701_v60  ;;  %v11208_v60 = vcombine.high %v4644_v25, %v4644_v25  ;;  %v7712_v54 = vunpack.c.h.s8.bf16 %v7508_v63 }
 0x6f2   :  { %7149 = vmatmul.mubr.bf16.vlgmr.msra.gmra.mrb[28].mxu0 %v14442_v40  ;;  %v4616_v40 = vunpack.c.l.s8.bf16 %v15145_v26  ;;  %v4632_v26 = vunpack.c.l.s8.bf16 %v15175_v43 }
 0x6f3   :  { %7158 = vmatpush1.bf16.msra.mxu0 %v11151_v52  ;;  %11215 = vmatprep.mubr.msk.bf16.mxu0 %vm6680_vm0, %v14452_v53  ;;  %v11207_v52 = vcombine.low %v4644_v25, %v4644_v25 }
 0x6f4   :  { %7159 = vmatprep.subr.bf16.mxu0 %v11159_v8  ;;  %7945 = vmatpush1.bf16.msra.mxu1 %v7700_v2  ;;  %v11180_v53 = vcombine.high %v4612_v12, %v4616_v40  ;;  %v11179_v15 = vcombine.low %v4612_v12, %v4616_v40  ;;  %v11194_v43 = vcombine.high %v4628_v23, %v4632_v26  ;;  %v7706_v8 = vunpack.c.l.s8.bf16 %v7508_v63 }
 0x6f5   :  { %7955 = vmatprep.subr.bf16.mxu1 %v7707_v4  ;;  %v11193_v9 = vcombine.low %v4628_v23, %v4632_v26  ;;  %v7713_v2 = vunpack.c.h.s8.bf16 %v15295_v42  ;;  %v7462_v42 = vld [vmem:[%s17092_s12 + $0x10] sm:$0xff]  ;;  %v7619_v40 = vunpack.c.h.s8.bf16 %v7463_v49  ;;  %v7468_v23 = vld [vmem:[%s17092_s12 + $0x40] sm:$0xff] }
 0x6f6   :  { %v7612_v12 = vunpack.c.l.s8.bf16 %v7462_v42  ;;  %v7618_v46 = vunpack.c.h.s8.bf16 %v7462_v42  ;;  %v7630_v57 = vunpack.c.h.s8.bf16 %v7468_v23 }
 0x6f7   :  { %7160 = vmatpush1.bf16.msra.mxu0 %v11158_v39  ;;  %v7515_v39 = vld [vmem:[%s17092_s12 + $0x1b8] sm:$0xff] }
 0x6f8   :  { %7161 = vmatprep.subr.bf16.mxu0 %v11166_v24  ;;  %v6698_v24 = vsel %vm6684_vm1, %v11207_v52, 0  ;;  %v7725_v20 = vunpack.c.h.s8.bf16 %v7515_v39 }
 0x6fb   :  { %7162 = vmatpush1.bf16.msra.mxu0 %v11165_v58  ;;  %v7719_v58 = vunpack.c.l.s8.bf16 %v7515_v39  ;;  %v7539_v39 = vld [vmem:[%s17092_s12 + $0x278] sm:$0xff] }
 0x6fc   :  { %7163 = vmatprep.subr.bf16.mxu0 %v11173_v30  ;;  %v7514_v30 = vld [vmem:[%s17092_s12 + $0x1b0] sm:$0xff] }
 0x6fd   :  { %v7724_v26 = vunpack.c.h.s8.bf16 %v7514_v30 }
 0x6ff   :  { %7164 = vmatpush1.bf16.msra.mxu0 %v11172_v33  ;;  %v7718_v33 = vunpack.c.l.s8.bf16 %v7514_v30 }
 0x700   :  { %7165 = vmatprep.subr.bf16.mxu0 %v11180_v53  ;;  %v7469_v53 = vld [vmem:[%s17092_s12 + $0x48] sm:$0xff] }
 0x703   :  { %7166 = vmatpush1.bf16.msra.mxu0 %v11179_v15  ;;  %v7521_v15 = vld [vmem:[%s17092_s12 + $0x1e8] sm:$0xff] }
 0x704   :  { %7167 = vmatprep.subr.bf16.mxu0 %v11187_v44  ;;  %v7625_v44 = vunpack.c.l.s8.bf16 %v7469_v53 }
 0x705   :  { %v6863_v22 = vpop.f32.mrb[24].mxu0  ;;  %v15331_v13 = vpop.f32.mrb[24].mxu1 }
 0x706   :  { %v7395_v6 = vmul.f32 %v7363_v62, %v6863_v22  ;;  %v6865_v14 = vpop.f32.mrb[25].mxu0  ;;  %v7029_v38 = vpop.f32.mrb[25].mxu1  ;;  %v7520_v62 = vld [vmem:[%s17092_s12 + $0x1e0] sm:$0xff] }
 0x707   :  { %v7396_v5 = vmul.f32 %v7367_v16, %v6865_v14  ;;  %v7398_v27 = vmul.f32 %v7375_v19, %v7029_v38  ;;  %v6867_v31 = vpop.f32.mrb[26].mxu0  ;;  %v7031_v61 = vpop.f32.mrb[26].mxu1  ;;  %7168 = vmatpush1.bf16.msra.mxu0 %v11186_v59  ;;  %v7624_v16 = vunpack.c.l.s8.bf16 %v7468_v23  ;;  %v7631_v19 = vunpack.c.h.s8.bf16 %v7469_v53  ;;  %v7526_v14 = vld [vmem:[%s17092_s12 + $0x210] sm:$0xff] }
 0x708   :  { %v7439_v48 = vadd.f32 %v7407_v17, %v7395_v6  ;;  %v6868_v10 = vpop.f32.mrb[27].mxu0  ;;  %v7032_v50 = vpop.f32.mrb[27].mxu1  ;;  %7169 = vmatprep.subr.bf16.mxu0 %v11194_v43  ;;  %v7730_v59 = vunpack.c.l.s8.bf16 %v7520_v62  ;;  %v7475_v17 = vld [vmem:[%s17092_s12 + $0x78] sm:$0xff]  ;;  %v7737_v43 = vunpack.c.h.s8.bf16 %v7521_v15  ;;  %v7743_v6 = vunpack.c.l.s8.bf16 %v7527_v45  ;;  %v7481_v31 = vld [vmem:[%s17092_s12 + $0xa8] sm:$0xff] }
 0x709   :  { %v7440_v0 = vadd.f32 %v7411_v34, %v7396_v5  ;;  %v7442_v29 = vadd.f32 %v7419_v3, %v7398_v27  ;;  %v7637_v22 = vunpack.c.l.s8.bf16 %v7475_v17  ;;  %v7474_v34 = vld [vmem:[%s17092_s12 + $0x70] sm:$0xff]  ;;  %v7736_v3 = vunpack.c.h.s8.bf16 %v7520_v62  ;;  %v7533_v10 = vld [vmem:[%s17092_s12 + $0x248] sm:$0xff] }
 0x70a   :  { %v7446_v11 = vmax.f32 %v7439_v48, 0.0  ;;  %v7636_v38 = vunpack.c.l.s8.bf16 %v7474_v34  ;;  %v7643_v5 = vunpack.c.h.s8.bf16 %v7475_v17  ;;  %v7742_v27 = vunpack.c.l.s8.bf16 %v7526_v14  ;;  %v17172_v17 = vld [vmem:[#allocation6_spill] sm:$0xff] }
 0x70b   :  { %v7447_v36 = vmax.f32 %v7440_v0, 0.0  ;;  %v7449_v47 = vmax.f32 %v7442_v29, 0.0  ;;  %7170 = vmatpush1.bf16.msra.mxu0 %v11193_v9  ;;  %v7749_v9 = vunpack.c.h.s8.bf16 %v7527_v45  ;;  %v7642_v48 = vunpack.c.h.s8.bf16 %v7474_v34  ;;  %v7480_v29 = vld [vmem:[%s17092_s12 + $0xa0] sm:$0xff] }
 0x70c   :  { %7171 = vmatprep.subr.bf16.mxu0 %v11201_v21  ;;  %v15346_v55 = vpack.c.bf16 %v7446_v11, %v7446_v11  ;;  %v7649_v0 = vunpack.c.l.s8.bf16 %v7481_v31  ;;  %v7748_v63 = vunpack.c.h.s8.bf16 %v7526_v14  ;;  %v7761_v49 = vunpack.c.h.s8.bf16 %v7533_v10 }
 0x70d   :  { %v15341_v35 = vpack.c.bf16 %v7447_v36, %v7447_v36  ;;  %v15349_v4 = vpack.c.bf16 %v7449_v47, %v7449_v47  ;;  %v7755_v36 = vunpack.c.l.s8.bf16 %v7533_v10  ;;  %v7532_v47 = vld [vmem:[%s17092_s12 + $0x240] sm:$0xff]  ;;  %v7773_v53 = vunpack.c.h.s8.bf16 %v7539_v39 }
 0x70e   :  { %v7754_v52 = vunpack.c.l.s8.bf16 %v7532_v47  ;;  %v7760_v42 = vunpack.c.h.s8.bf16 %v7532_v47  ;;  %v7504_v47 = vld [vmem:[%s17092_s12 + $0x160] sm:$0xff] }
 0x70f   :  { %7172 = vmatpush1.bf16.msra.mxu0 %v11200_v32  ;;  %7946 = vmatprep.mubr.bf16.mxu1 %v15341_v35  ;;  %v7648_v32 = vunpack.c.l.s8.bf16 %v7480_v29 }
 0x710   :  { %7947 = vmatmul.mubr.bf16.vlgmr.msra.gmra.mrb[44].mxu1 %v15346_v55  ;;  %11214 = vmatprep.subr.msk.bf16.mxu0 %vm6684_vm1, %v11208_v60  ;;  %v7655_v60 = vunpack.c.h.s8.bf16 %v7481_v31 }
 0x711   :  { %7956 = vmatpush1.bf16.msra.mxu1 %v7706_v8  ;;  %7987 = vmatprep.mubr.bf16.mxu1 %v15349_v4  ;;  %v7487_v8 = vld [vmem:[%s17092_s12 + $0xd8] sm:$0xff] }
 0x712   :  { %7957 = vmatprep.subr.bf16.mxu1 %v7713_v2  ;;  %v7654_v2 = vunpack.c.h.s8.bf16 %v7480_v29  ;;  %v7557_v29 = vld [vmem:[%s17092_s12 + $0x308] sm:$0xff] }
 0x713   :  { %7174 = vmatpush1.bf16.msra.mxu0 %v6698_v24  ;;  %v7661_v24 = vunpack.c.l.s8.bf16 %v7487_v8 }
 0x714   :  { %8078 = vmatprep.subr.bf16.mxu0 %v7613_v28  ;;  %v7486_v28 = vld [vmem:[%s17092_s12 + $0xd0] sm:$0xff] }
 0x715   :  { %7958 = vmatpush1.bf16.msra.mxu1 %v7712_v54  ;;  %v7767_v54 = vunpack.c.l.s8.bf16 %v7539_v39  ;;  %v7660_v30 = vunpack.c.l.s8.bf16 %v7486_v28  ;;  %v7696_v39 = vunpack.c.l.s8.bf16 %v7504_v47 }
 0x716   :  { %7190 = vmatmul.mubr.bf16.vlgmr.msra.gmra.mrb[28].mxu0 %v14564_v1  ;;  %7959 = vmatprep.subr.bf16.mxu1 %v7719_v58  ;;  %v7731_v1 = vunpack.c.l.s8.bf16 %v7521_v15  ;;  %v7538_v58 = vld [vmem:[%s17092_s12 + $0x270] sm:$0xff] }
 0x717   :  { %8079 = vmatpush1.bf16.msra.mxu0 %v7612_v12  ;;  %8110 = vmatprep.mubr.bf16.mxu0 %v15341_v35  ;;  %v7667_v12 = vunpack.c.h.s8.bf16 %v7487_v8  ;;  %v7772_v23 = vunpack.c.h.s8.bf16 %v7538_v58 }
 0x718   :  { %8080 = vmatprep.subr.bf16.mxu0 %v7619_v40  ;;  %v7766_v40 = vunpack.c.l.s8.bf16 %v7538_v58  ;;  %v7702_v58 = vunpack.c.h.s8.bf16 %v7504_v47 }
 0x719   :  { %7960 = vmatpush1.bf16.msra.mxu1 %v7718_v33  ;;  %v7493_v33 = vld [vmem:[%s17092_s12 + $0x108] sm:$0xff] }
 0x71a   :  { %7961 = vmatprep.subr.bf16.mxu1 %v7725_v20  ;;  %v7666_v20 = vunpack.c.h.s8.bf16 %v7486_v28  ;;  %v7673_v15 = vunpack.c.l.s8.bf16 %v7493_v33  ;;  %v7511_v28 = vld [vmem:[%s17092_s12 + $0x198] sm:$0xff] }
 0x71b   :  { %8081 = vmatpush1.bf16.msra.mxu0 %v7618_v46  ;;  %v7545_v46 = vld [vmem:[%s17092_s12 + $0x2a8] sm:$0xff] }
 0x71c   :  { %8082 = vmatprep.subr.bf16.mxu0 %v7625_v44  ;;  %v7492_v44 = vld [vmem:[%s17092_s12 + $0x100] sm:$0xff] }
 0x71d   :  { %7962 = vmatpush1.bf16.msra.mxu1 %v7724_v26  ;;  %v7779_v26 = vunpack.c.l.s8.bf16 %v7545_v46  ;;  %v7672_v62 = vunpack.c.l.s8.bf16 %v7492_v44  ;;  %v7678_v45 = vunpack.c.h.s8.bf16 %v7492_v44  ;;  %v7517_v44 = vld [vmem:[%s17092_s12 + $0x1c8] sm:$0xff] }
 0x71e   :  { %7963 = vmatprep.subr.bf16.mxu1 %v7731_v1  ;;  %v7544_v1 = vld [vmem:[%s17092_s12 + $0x2a0] sm:$0xff] }
 0x71f   :  { %8083 = vmatpush1.bf16.msra.mxu0 %v7624_v16  ;;  %v7679_v16 = vunpack.c.h.s8.bf16 %v7493_v33 }
 0x720   :  { %8084 = vmatprep.subr.bf16.mxu0 %v7631_v19  ;;  %v7778_v19 = vunpack.c.l.s8.bf16 %v7544_v1 }
 0x721   :  { %7964 = vmatpush1.bf16.msra.mxu1 %v7730_v59  ;;  %v7499_v59 = vld [vmem:[%s17092_s12 + $0x138] sm:$0xff] }
 0x722   :  { %7965 = vmatprep.subr.bf16.mxu1 %v7737_v43  ;;  %v7371_v43 = vrot.slane %v15312_v56, %v17172_v17  ;;  %v7685_v34 = vunpack.c.l.s8.bf16 %v7499_v59 }
 0x723   :  { %8085 = vmatpush1.bf16.msra.mxu0 %v7630_v57  ;;  %v7785_v57 = vunpack.c.h.s8.bf16 %v7545_v46 }
 0x724   :  { %8086 = vmatprep.subr.bf16.mxu0 %v7637_v22  ;;  %v7551_v22 = vld [vmem:[%s17092_s12 + $0x2d8] sm:$0xff]  ;;  %v7397_v14 = vmul.f32 %v7371_v43, %v15331_v13 }
 0x725   :  { %7966 = vmatpush1.bf16.msra.mxu1 %v7736_v3  ;;  %v7498_v3 = vld [vmem:[%s17092_s12 + $0x130] sm:$0xff]  ;;  %v7797_v10 = vunpack.c.h.s8.bf16 %v7551_v22 }
 0x726   :  { %v11416_v61 = vpop.f32.mrb[28].mxu1  ;;  %7967 = vmatprep.subr.bf16.mxu1 %v7743_v6  ;;  %v7784_v6 = vunpack.c.h.s8.bf16 %v7544_v1  ;;  %v7684_v31 = vunpack.c.l.s8.bf16 %v7498_v3 }
 0x727   :  { %v11417_v25 = vpop.f32.mrb[29].mxu1  ;;  %8087 = vmatpush1.bf16.msra.mxu0 %v7636_v38  ;;  %v7415_v38 = vrot.slane %v15319_v41, %v17172_v17 }
 0x728   :  { %v15397_v50 = vadd.f32 %v11417_v25, %v11416_v61  ;;  %v11419_v21 = vpop.f32.mrb[30].mxu1  ;;  %8088 = vmatprep.subr.bf16.mxu0 %v7643_v5  ;;  %v7791_v5 = vunpack.c.l.s8.bf16 %v7551_v22  ;;  %v7691_v61 = vunpack.c.h.s8.bf16 %v7499_v59  ;;  %v7505_v25 = vld [vmem:[%s17092_s12 + $0x168] sm:$0xff]  ;;  %v7727_v22 = vunpack.c.h.s8.bf16 %v7517_v44 }
 0x729   :  { %v11420_v11 = vpop.f32.mrb[31].mxu1  ;;  %7968 = vmatpush1.bf16.msra.mxu1 %v7742_v27  ;;  %v7550_v27 = vld [vmem:[%s17092_s12 + $0x2d0] sm:$0xff]  ;;  %v7441_v13 = vadd.f32 %v7415_v38, %v7397_v14  ;;  %v7575_v38 = vld [vmem:[%s17092_s12 + $0x398] sm:$0xff] }
 0x72a   :  { %7969 = vmatprep.subr.bf16.mxu1 %v7749_v9  ;;  %v7790_v9 = vunpack.c.l.s8.bf16 %v7550_v27 }
 0x72b   :  { %8089 = vmatpush1.bf16.msra.mxu0 %v7642_v48 }
 0x72c   :  { %8090 = vmatprep.subr.bf16.mxu0 %v7649_v0  ;;  %v7690_v0 = vunpack.c.h.s8.bf16 %v7498_v3 }
 0x72d   :  { %7970 = vmatpush1.bf16.msra.mxu1 %v7748_v63 }
 0x72e   :  { %7971 = vmatprep.subr.bf16.mxu1 %v7755_v36  ;;  %v7697_v36 = vunpack.c.l.s8.bf16 %v7505_v25 }
 0x72f   :  { %8091 = vmatpush1.bf16.msra.mxu0 %v7648_v32 }
 0x730   :  { %8092 = vmatprep.subr.bf16.mxu0 %v7655_v60  ;;  %v7796_v60 = vunpack.c.h.s8.bf16 %v7550_v27  ;;  %v7522_v27 = vld [vmem:[%s17092_s12 + $0x1f0] sm:$0xff] }
 0x731   :  { %7972 = vmatpush1.bf16.msra.mxu1 %v7754_v52  ;;  %v7448_v52 = vmax.f32 %v7441_v13, 0.0 }
 0x732   :  { %7973 = vmatprep.subr.bf16.mxu1 %v7761_v49  ;;  %v7803_v49 = vunpack.c.l.s8.bf16 %v7557_v29 }
 0x733   :  { %8093 = vmatpush1.bf16.msra.mxu0 %v7654_v2  ;;  %v7556_v2 = vld [vmem:[%s17092_s12 + $0x300] sm:$0xff] }
 0x734   :  { %8094 = vmatprep.subr.bf16.mxu0 %v7661_v24  ;;  %v7703_v24 = vunpack.c.h.s8.bf16 %v7505_v25  ;;  %v7808_v33 = vunpack.c.h.s8.bf16 %v7556_v2  ;;  %v7732_v25 = vunpack.c.l.s8.bf16 %v7522_v27 }
 0x735   :  { %7974 = vmatpush1.bf16.msra.mxu1 %v7760_v42  ;;  %v7802_v42 = vunpack.c.l.s8.bf16 %v7556_v2 }
 0x736   :  { %7975 = vmatprep.subr.bf16.mxu1 %v7767_v54  ;;  %v15464_v54 = vpack.c.bf16 %v7448_v52, %v7448_v52 }
 0x737   :  { %8095 = vmatpush1.bf16.msra.mxu0 %v7660_v30  ;;  %v7563_v30 = vld [vmem:[%s17092_s12 + $0x338] sm:$0xff] }
 0x738   :  { %8096 = vmatprep.subr.bf16.mxu0 %v7667_v12  ;;  %v7709_v12 = vunpack.c.l.s8.bf16 %v7511_v28 }
 0x739   :  { %7976 = vmatpush1.bf16.msra.mxu1 %v7766_v40  ;;  %v7510_v40 = vld [vmem:[%s17092_s12 + $0x190] sm:$0xff] }
 0x73a   :  { %7977 = vmatprep.subr.bf16.mxu1 %v7773_v53  ;;  %v7815_v53 = vunpack.c.l.s8.bf16 %v7563_v30  ;;  %v7708_v46 = vunpack.c.l.s8.bf16 %v7510_v40  ;;  %v7714_v1 = vunpack.c.h.s8.bf16 %v7510_v40 }
 0x73b   :  { %8097 = vmatpush1.bf16.msra.mxu0 %v7666_v20  ;;  %v7562_v20 = vld [vmem:[%s17092_s12 + $0x330] sm:$0xff] }
 0x73c   :  { %8098 = vmatprep.subr.bf16.mxu0 %v7673_v15  ;;  %v7715_v15 = vunpack.c.h.s8.bf16 %v7511_v28  ;;  %v7820_v59 = vunpack.c.h.s8.bf16 %v7562_v20 }
 0x73d   :  { %7978 = vmatpush1.bf16.msra.mxu1 %v7772_v23  ;;  %v7814_v23 = vunpack.c.l.s8.bf16 %v7562_v20 }
 0x73e   :  { %7979 = vmatprep.subr.bf16.mxu1 %v7779_v26  ;;  %v7821_v26 = vunpack.c.h.s8.bf16 %v7563_v30 }
 0x73f   :  { %8099 = vmatpush1.bf16.msra.mxu0 %v7672_v62  ;;  %v7569_v62 = vld [vmem:[%s17092_s12 + $0x368] sm:$0xff] }
 0x740   :  { %8100 = vmatprep.subr.bf16.mxu0 %v7679_v16  ;;  %v7721_v16 = vunpack.c.l.s8.bf16 %v7517_v44  ;;  %v7827_v43 = vunpack.c.l.s8.bf16 %v7569_v62 }
 0x741   :  { %7980 = vmatpush1.bf16.msra.mxu1 %v7778_v19  ;;  %v7516_v19 = vld [vmem:[%s17092_s12 + $0x1c0] sm:$0xff] }
 0x742   :  { %7981 = vmatprep.subr.bf16.mxu1 %v7785_v57  ;;  %v7568_v57 = vld [vmem:[%s17092_s12 + $0x360] sm:$0xff]  ;;  %v7726_v14 = vunpack.c.h.s8.bf16 %v7516_v19 }
 0x743   :  { %8101 = vmatpush1.bf16.msra.mxu0 %v7678_v45  ;;  %v7720_v45 = vunpack.c.l.s8.bf16 %v7516_v19  ;;  %v7826_v3 = vunpack.c.l.s8.bf16 %v7568_v57 }
 0x744   :  { %8102 = vmatprep.subr.bf16.mxu0 %v7685_v34  ;;  %v7523_v34 = vld [vmem:[%s17092_s12 + $0x1f8] sm:$0xff] }
 0x745   :  { %7982 = vmatpush1.bf16.msra.mxu1 %v7784_v6  ;;  %v7833_v6 = vunpack.c.h.s8.bf16 %v7569_v62  ;;  %v7739_v13 = vunpack.c.h.s8.bf16 %v7523_v34 }
 0x746   :  { %v11438_v48 = vpop.f32.mrb[32].mxu1  ;;  %7983 = vmatprep.subr.bf16.mxu1 %v7791_v5  ;;  %v7733_v5 = vunpack.c.l.s8.bf16 %v7523_v34 }
 0x747   :  { %v11439_v21 = vpop.f32.mrb[33].mxu1  ;;  %8103 = vmatpush1.bf16.msra.mxu0 %v7684_v31  ;;  %v7832_v31 = vunpack.c.h.s8.bf16 %v7568_v57 }
 0x748   :  { %v11440_v11 = vadd.f32 %v11439_v21, %v11438_v48  ;;  %v11441_v63 = vpop.f32.mrb[34].mxu1  ;;  %8104 = vmatprep.subr.bf16.mxu0 %v7691_v61  ;;  %v7839_v61 = vunpack.c.l.s8.bf16 %v7575_v38  ;;  %v7529_v48 = vld [vmem:[%s17092_s12 + $0x228] sm:$0xff] }
 0x749   :  { %v11442_v32 = vpop.f32.mrb[35].mxu1  ;;  %7984 = vmatpush1.bf16.msra.mxu1 %v7790_v9  ;;  %v7574_v9 = vld [vmem:[%s17092_s12 + $0x390] sm:$0xff]  ;;  %v7581_v63 = vld [vmem:[%s17092_s12 + $0x3c8] sm:$0xff] }
 0x74a   :  { %v15456_v8 = vadd.f32 %v11440_v11, %v15397_v50  ;;  %7985 = vmatprep.subr.bf16.mxu1 %v7797_v10  ;;  %v7809_v50 = vunpack.c.h.s8.bf16 %v7557_v29  ;;  %v7838_v10 = vunpack.c.l.s8.bf16 %v7574_v9  ;;  %v7738_v11 = vunpack.c.h.s8.bf16 %v7522_v27 }
 0x74b   :  { %8105 = vmatpush1.bf16.msra.mxu0 %v7690_v0  ;;  %v7845_v0 = vunpack.c.h.s8.bf16 %v7575_v38  ;;  %v7745_v32 = vunpack.c.l.s8.bf16 %v7529_v48  ;;  %v7857_v30 = vunpack.c.h.s8.bf16 %v7581_v63 }
 0x74c   :  { %8106 = vmatprep.subr.bf16.mxu0 %v7697_v36 }
 0x74d   :  { %7986 = vmatpush1.bf16.msra.mxu1 %v7796_v60  ;;  %v7528_v60 = vld [vmem:[%s17092_s12 + $0x220] sm:$0xff] }
 0x74e   :  { %7996 = vmatprep.subr.bf16.mxu1 %v7803_v49  ;;  %v7844_v49 = vunpack.c.h.s8.bf16 %v7574_v9  ;;  %v7744_v28 = vunpack.c.l.s8.bf16 %v7528_v60 }
 0x74f   :  { %8107 = vmatpush1.bf16.msra.mxu0 %v7696_v39  ;;  %v7851_v39 = vunpack.c.l.s8.bf16 %v7581_v63 }
 0x750   :  { %7988 = vmatmul.mubr.bf16.vlgmr.msra.gmra.mrb[44].mxu1 %v15464_v54  ;;  %8108 = vmatprep.subr.bf16.mxu0 %v7703_v24  ;;  %v7580_v24 = vld [vmem:[%s17092_s12 + $0x3c0] sm:$0xff] }
 0x751   :  { %7997 = vmatpush1.bf16.msra.mxu1 %v7802_v42  ;;  %v7751_v42 = vunpack.c.h.s8.bf16 %v7529_v48 }
 0x752   :  { %7998 = vmatprep.subr.bf16.mxu1 %v7809_v50  ;;  %v7535_v50 = vld [vmem:[%s17092_s12 + $0x258] sm:$0xff] }
 0x753   :  { %8109 = vmatpush1.bf16.msra.mxu0 %v7702_v58  ;;  %v7850_v58 = vunpack.c.l.s8.bf16 %v7580_v24  ;;  %v7757_v40 = vunpack.c.l.s8.bf16 %v7535_v50  ;;  %v7763_v44 = vunpack.c.h.s8.bf16 %v7535_v50  ;;  %v7559_v50 = vld [vmem:[%s17092_s12 + $0x318] sm:$0xff] }
 0x754   :  { %8119 = vmatprep.subr.bf16.mxu0 %v7709_v12  ;;  %v7587_v12 = vld [vmem:[%s17092_s12 + $0x3f8] sm:$0xff] }
 0x755   :  { %7999 = vmatpush1.bf16.msra.mxu1 %v7808_v33  ;;  %v7534_v33 = vld [vmem:[%s17092_s12 + $0x250] sm:$0xff]  ;;  %v7863_v20 = vunpack.c.l.s8.bf16 %v7587_v12 }
 0x756   :  { %8111 = vmatmul.mubr.bf16.vlgmr.msra.gmra.mrb[32].mxu0 %v15346_v55  ;;  %8000 = vmatprep.subr.bf16.mxu1 %v7815_v53  ;;  %v7856_v53 = vunpack.c.h.s8.bf16 %v7580_v24  ;;  %v7762_v62 = vunpack.c.h.s8.bf16 %v7534_v33 }
 0x757   :  { %8120 = vmatpush1.bf16.msra.mxu0 %v7708_v46  ;;  %8151 = vmatprep.mubr.bf16.mxu0 %v15349_v4  ;;  %v7586_v46 = vld [vmem:[%s17092_s12 + $0x3f0] sm:$0xff] }
 0x758   :  { %8121 = vmatprep.subr.bf16.mxu0 %v7715_v15  ;;  %v7756_v15 = vunpack.c.l.s8.bf16 %v7534_v33 }
 0x759   :  { %8001 = vmatpush1.bf16.msra.mxu1 %v7814_v23  ;;  %v7541_v23 = vld [vmem:[%s17092_s12 + $0x288] sm:$0xff] }
 0x75a   :  { %8002 = vmatprep.subr.bf16.mxu1 %v7821_v26  ;;  %v7862_v26 = vunpack.c.l.s8.bf16 %v7586_v46  ;;  %v7769_v19 = vunpack.c.l.s8.bf16 %v7541_v23  ;;  %v7775_v34 = vunpack.c.h.s8.bf16 %v7541_v23 }
 0x75b   :  { %8122 = vmatpush1.bf16.msra.mxu0 %v7714_v1  ;;  %v7869_v1 = vunpack.c.h.s8.bf16 %v7587_v12  ;;  %v7811_v12 = vunpack.c.h.s8.bf16 %v7559_v50 }
 0x75c   :  { %8123 = vmatprep.subr.bf16.mxu0 %v7721_v16  ;;  %v7593_v16 = vld [vmem:[%s17092_s12 + $0x428] sm:$0xff] }
 0x75d   :  { %8003 = vmatpush1.bf16.msra.mxu1 %v7820_v59  ;;  %v7540_v59 = vld [vmem:[%s17092_s12 + $0x280] sm:$0xff]  ;;  %v7875_v57 = vunpack.c.l.s8.bf16 %v7593_v16 }
 0x75e   :  { %8004 = vmatprep.subr.bf16.mxu1 %v7827_v43  ;;  %v7868_v43 = vunpack.c.h.s8.bf16 %v7586_v46  ;;  %v7774_v38 = vunpack.c.h.s8.bf16 %v7540_v59 }
 0x75f   :  { %8124 = vmatpush1.bf16.msra.mxu0 %v7720_v45  ;;  %v7592_v45 = vld [vmem:[%s17092_s12 + $0x420] sm:$0xff] }
 0x760   :  { %8125 = vmatprep.subr.bf16.mxu0 %v7727_v22  ;;  %v7768_v22 = vunpack.c.l.s8.bf16 %v7540_v59 }
 0x761   :  { %8005 = vmatpush1.bf16.msra.mxu1 %v7826_v3  ;;  %v7547_v3 = vld [vmem:[%s17092_s12 + $0x2b8] sm:$0xff] }
 0x762   :  { %8006 = vmatprep.subr.bf16.mxu1 %v7833_v6  ;;  %v7874_v6 = vunpack.c.l.s8.bf16 %v7592_v45  ;;  %v7781_v27 = vunpack.c.l.s8.bf16 %v7547_v3  ;;  %v7787_v48 = vunpack.c.h.s8.bf16 %v7547_v3 }
 0x763   :  { %8126 = vmatpush1.bf16.msra.mxu0 %v7726_v14  ;;  %v7881_v14 = vunpack.c.h.s8.bf16 %v7593_v16 }
 0x764   :  { %8127 = vmatprep.subr.bf16.mxu0 %v7733_v5  ;;  %v7599_v5 = vld [vmem:[%s17092_s12 + $0x458] sm:$0xff] }
 0x765   :  { %8007 = vmatpush1.bf16.msra.mxu1 %v7832_v31  ;;  %v7546_v31 = vld [vmem:[%s17092_s12 + $0x2b0] sm:$0xff]  ;;  %v7887_v9 = vunpack.c.l.s8.bf16 %v7599_v5 }
 0x766   :  { %v11460_v21 = vpop.f32.mrb[36].mxu1  ;;  %8008 = vmatprep.subr.bf16.mxu1 %v7839_v61  ;;  %v7880_v61 = vunpack.c.h.s8.bf16 %v7592_v45 }
 0x767   :  { %v11461_v29 = vpop.f32.mrb[37].mxu1  ;;  %8128 = vmatpush1.bf16.msra.mxu0 %v7732_v25  ;;  %v7598_v25 = vld [vmem:[%s17092_s12 + $0x450] sm:$0xff] }
 0x768   :  { %v11462_v36 = vadd.f32 %v11461_v29, %v11460_v21  ;;  %v11463_v47 = vpop.f32.mrb[38].mxu1  ;;  %8129 = vmatprep.subr.bf16.mxu0 %v7739_v13  ;;  %v7780_v13 = vunpack.c.l.s8.bf16 %v7546_v31  ;;  %v7886_v21 = vunpack.c.l.s8.bf16 %v7598_v25  ;;  %v7786_v29 = vunpack.c.h.s8.bf16 %v7546_v31 }
 0x769   :  { %v11464_v52 = vpop.f32.mrb[39].mxu1  ;;  %8009 = vmatpush1.bf16.msra.mxu1 %v7838_v10  ;;  %v7553_v10 = vld [vmem:[%s17092_s12 + $0x2e8] sm:$0xff]  ;;  %v7892_v47 = vunpack.c.h.s8.bf16 %v7598_v25 }
 0x76a   :  { %v15512_v2 = vadd.f32 %v11462_v36, %v15456_v8  ;;  %8010 = vmatprep.subr.bf16.mxu1 %v7845_v0  ;;  %v7750_v8 = vunpack.c.h.s8.bf16 %v7528_v60  ;;  %v7893_v0 = vunpack.c.h.s8.bf16 %v7599_v5  ;;  %v7793_v63 = vunpack.c.l.s8.bf16 %v7553_v10  ;;  %v7552_v36 = vld [vmem:[%s17092_s12 + $0x2e0] sm:$0xff] }
 0x76b   :  { %8130 = vmatpush1.bf16.msra.mxu0 %v7738_v11  ;;  %v15559_v11 = vld [vmem:[%s17092_s12 + $0x488] sm:$0xff] }
 0x76c   :  { %8131 = vmatprep.subr.bf16.mxu0 %v7745_v32  ;;  %v7899_v60 = vunpack.c.l.s8.bf16 %v15559_v11 }
 0x76d   :  { %8011 = vmatpush1.bf16.msra.mxu1 %v7844_v49 }
 0x76e   :  { %8012 = vmatprep.subr.bf16.mxu1 %v7851_v39  ;;  %v7792_v39 = vunpack.c.l.s8.bf16 %v7552_v36 }
 0x76f   :  { %8132 = vmatpush1.bf16.msra.mxu0 %v7744_v28  ;;  %v7799_v28 = vunpack.c.h.s8.bf16 %v7553_v10 }
 0x770   :  { %8133 = vmatprep.subr.bf16.mxu0 %v7751_v42 }
 0x771   :  { %8013 = vmatpush1.bf16.msra.mxu1 %v7850_v58  ;;  %v7798_v58 = vunpack.c.h.s8.bf16 %v7552_v36  ;;  %v7601_v36 = vld [vmem:[%s17092_s12 + $0x468] sm:$0xff] }
 0x772   :  { %8014 = vmatprep.subr.bf16.mxu1 %v7857_v30  ;;  %v7805_v30 = vunpack.c.l.s8.bf16 %v7559_v50  ;;  %v17173_v50 = vld [vmem:[#allocation9_spill] sm:$0xff] }
 0x773   :  { %8134 = vmatpush1.bf16.msra.mxu0 %v7750_v8 }
 0x774   :  { %8135 = vmatprep.subr.bf16.mxu0 %v7757_v40  ;;  %v7565_v40 = vld [vmem:[%s17092_s12 + $0x348] sm:$0xff] }
 0x775   :  { %8015 = vmatpush1.bf16.msra.mxu1 %v7856_v53  ;;  %v7817_v53 = vunpack.c.l.s8.bf16 %v7565_v40 }
 0x776   :  { %8016 = vmatprep.subr.bf16.mxu1 %v7863_v20  ;;  %v7564_v20 = vld [vmem:[%s17092_s12 + $0x340] sm:$0xff] }
 0x777   :  { %8136 = vmatpush1.bf16.msra.mxu0 %v7756_v15  ;;  %v7816_v46 = vunpack.c.l.s8.bf16 %v7564_v20  ;;  %v7823_v15 = vunpack.c.h.s8.bf16 %v7565_v40  ;;  %v7822_v23 = vunpack.c.h.s8.bf16 %v7564_v20 }
 0x778   :  { %8137 = vmatprep.subr.bf16.mxu0 %v7763_v44  ;;  %v7571_v44 = vld [vmem:[%s17092_s12 + $0x378] sm:$0xff] }
 0x779   :  { %8017 = vmatpush1.bf16.msra.mxu1 %v7862_v26  ;;  %v7829_v26 = vunpack.c.l.s8.bf16 %v7571_v44  ;;  %v7835_v16 = vunpack.c.h.s8.bf16 %v7571_v44 }
 0x77a   :  { %8018 = vmatprep.subr.bf16.mxu1 %v7869_v1  ;;  %v7570_v1 = vld [vmem:[%s17092_s12 + $0x370] sm:$0xff] }
 0x77b   :  { %8138 = vmatpush1.bf16.msra.mxu0 %v7762_v62  ;;  %v7828_v62 = vunpack.c.l.s8.bf16 %v7570_v1  ;;  %v7834_v59 = vunpack.c.h.s8.bf16 %v7570_v1 }
 0x77c   :  { %8139 = vmatprep.subr.bf16.mxu0 %v7769_v19  ;;  %v7577_v19 = vld [vmem:[%s17092_s12 + $0x3a8] sm:$0xff] }
 0x77d   :  { %8019 = vmatpush1.bf16.msra.mxu1 %v7868_v43  ;;  %v7841_v43 = vunpack.c.l.s8.bf16 %v7577_v19 }
 0x77e   :  { %8020 = vmatprep.subr.bf16.mxu1 %v7875_v57  ;;  %v7576_v57 = vld [vmem:[%s17092_s12 + $0x3a0] sm:$0xff] }
 0x77f   :  { %8140 = vmatpush1.bf16.msra.mxu0 %v7768_v22  ;;  %v7840_v45 = vunpack.c.l.s8.bf16 %v7576_v57  ;;  %v7847_v22 = vunpack.c.h.s8.bf16 %v7577_v19  ;;  %v7846_v3 = vunpack.c.h.s8.bf16 %v7576_v57  ;;  %v7606_v19 = vld [vmem:[%s17092_s12 + $0x490] sm:$0xff] }
 0x780   :  { %8141 = vmatprep.subr.bf16.mxu0 %v7775_v34  ;;  %v7583_v34 = vld [vmem:[%s17092_s12 + $0x3d8] sm:$0xff] }
 0x781   :  { %8021 = vmatpush1.bf16.msra.mxu1 %v7874_v6  ;;  %v7853_v6 = vunpack.c.l.s8.bf16 %v7583_v34  ;;  %v7859_v5 = vunpack.c.h.s8.bf16 %v7583_v34 }
 0x782   :  { %8022 = vmatprep.subr.bf16.mxu1 %v7881_v14  ;;  %v7582_v14 = vld [vmem:[%s17092_s12 + $0x3d0] sm:$0xff] }
 0x783   :  { %8142 = vmatpush1.bf16.msra.mxu0 %v7774_v38  ;;  %v7852_v38 = vunpack.c.l.s8.bf16 %v7582_v14  ;;  %v7858_v31 = vunpack.c.h.s8.bf16 %v7582_v14  ;;  %v7465_v14 = vld [vmem:[%s17092_s12 + $0x28] sm:$0xff] }
 0x784   :  { %8143 = vmatprep.subr.bf16.mxu0 %v7781_v27  ;;  %v7589_v27 = vld [vmem:[%s17092_s12 + $0x408] sm:$0xff] }
 0x785   :  { %8023 = vmatpush1.bf16.msra.mxu1 %v7880_v61  ;;  %v7865_v61 = vunpack.c.l.s8.bf16 %v7589_v27 }
 0x786   :  { %8024 = vmatprep.subr.bf16.mxu1 %v7887_v9  ;;  %v7588_v9 = vld [vmem:[%s17092_s12 + $0x400] sm:$0xff] }
 0x787   :  { %8144 = vmatpush1.bf16.msra.mxu0 %v7780_v13  ;;  %v7864_v25 = vunpack.c.l.s8.bf16 %v7588_v9  ;;  %v7871_v13 = vunpack.c.h.s8.bf16 %v7589_v27  ;;  %v7870_v10 = vunpack.c.h.s8.bf16 %v7588_v9  ;;  %v7464_v27 = vld [vmem:[%s17092_s12 + $0x20] sm:$0xff]  ;;  %v7621_v9 = vunpack.c.h.s8.bf16 %v7465_v14 }
 0x788   :  { %8145 = vmatprep.subr.bf16.mxu0 %v7787_v48  ;;  %v7595_v48 = vld [vmem:[%s17092_s12 + $0x438] sm:$0xff] }
 0x789   :  { %8025 = vmatpush1.bf16.msra.mxu1 %v7886_v21  ;;  %v7877_v21 = vunpack.c.l.s8.bf16 %v7595_v48 }
 0x78a   :  { %v7352_v32 = vpop.f32.mrb[40].mxu1  ;;  %8026 = vmatprep.subr.bf16.mxu1 %v7893_v0  ;;  %v7594_v0 = vld [vmem:[%s17092_s12 + $0x430] sm:$0xff] }
 0x78b   :  { %v15566_v52 = vadd.f32 %v7352_v32, %v15512_v2  ;;  %v7354_v49 = vpop.f32.mrb[41].mxu1  ;;  %8146 = vmatpush1.bf16.msra.mxu0 %v7786_v29  ;;  %v7558_v2 = vld [vmem:[%s17092_s12 + $0x310] sm:$0xff]  ;;  %v7876_v29 = vunpack.c.l.s8.bf16 %v7594_v0  ;;  %v7889_v32 = vunpack.c.l.s8.bf16 %v7601_v36 }
 0x78c   :  { %v7355_v24 = vpop.f32.mrb[42].mxu1  ;;  %8147 = vmatprep.subr.bf16.mxu0 %v7793_v63  ;;  %v7804_v8 = vunpack.c.l.s8.bf16 %v7558_v2  ;;  %v7810_v33 = vunpack.c.h.s8.bf16 %v7558_v2  ;;  %v7883_v63 = vunpack.c.h.s8.bf16 %v7595_v48 }
 0x78d   :  { %v7356_v42 = vpop.f32.mrb[43].mxu1  ;;  %8027 = vmatpush1.bf16.msra.mxu1 %v7892_v47  ;;  %v7882_v47 = vunpack.c.h.s8.bf16 %v7594_v0  ;;  %v7607_v24 = vld [vmem:[%s17092_s12 + $0x498] sm:$0xff] }
 0x78e   :  { %8037 = vmatprep.subr.bf16.mxu1 %v7899_v60  ;;  %v7600_v60 = vld [vmem:[%s17092_s12 + $0x460] sm:$0xff]  ;;  %v7901_v42 = vunpack.c.l.s8.bf16 %v7607_v24 }
 0x78f   :  { %8148 = vmatpush1.bf16.msra.mxu0 %v7792_v39  ;;  %v7888_v49 = vunpack.c.l.s8.bf16 %v7600_v60  ;;  %v7895_v39 = vunpack.c.h.s8.bf16 %v7601_v36 }
 0x790   :  { %8149 = vmatprep.subr.bf16.mxu0 %v7799_v28  ;;  %v7894_v28 = vunpack.c.h.s8.bf16 %v7600_v60  ;;  %v7483_v60 = vld [vmem:[%s17092_s12 + $0xb8] sm:$0xff] }
 0x793   :  { %8150 = vmatpush1.bf16.msra.mxu0 %v7798_v58  ;;  %v7379_v58 = vrot.slane %v15312_v56, %v17173_v50 }
 0x794   :  { %8160 = vmatprep.subr.bf16.mxu0 %v7805_v30  ;;  %v17174_v30 = vld [vmem:[#allocation11_spill] sm:$0xff] }
 0x795   :  { %v7383_v2 = vrot.slane %v15312_v56, %v17174_v30  ;;  %v7427_v40 = vrot.slane %v15319_v41, %v17174_v30 }
 0x796   :  { %8152 = vmatmul.mubr.bf16.vlgmr.msra.gmra.mrb[32].mxu0 %v15464_v54 }
 0x797   :  { %8161 = vmatpush1.bf16.msra.mxu0 %v7804_v8  ;;  %v7423_v8 = vrot.slane %v15319_v41, %v17173_v50 }
 0x798   :  { %8162 = vmatprep.subr.bf16.mxu0 %v7811_v12 }
 0x79b   :  { %8163 = vmatpush1.bf16.msra.mxu0 %v7810_v33 }
 0x79c   :  { %8164 = vmatprep.subr.bf16.mxu0 %v7817_v53 }
 0x79f   :  { %8165 = vmatpush1.bf16.msra.mxu0 %v7816_v46 }
 0x7a0   :  { %8166 = vmatprep.subr.bf16.mxu0 %v7823_v15 }
 0x7a3   :  { %8167 = vmatpush1.bf16.msra.mxu0 %v7822_v23 }
 0x7a4   :  { %8168 = vmatprep.subr.bf16.mxu0 %v7829_v26  ;;  %v17175_v26 = vld [vmem:[#allocation10_spill] sm:$0xff] }
 0x7a5   :  { %v7387_v1 = vrot.slane %v15312_v56, %v17175_v26 }
 0x7a7   :  { %8169 = vmatpush1.bf16.msra.mxu0 %v7828_v62  ;;  %v7401_v34 = vmul.f32 %v7387_v1, %v15566_v52  ;;  %v7906_v52 = vunpack.c.h.s8.bf16 %v7606_v19  ;;  %v15702_v1 = vld [vmem:[%s17095_s15 + $0x10] sm:$0xff] }
 0x7a8   :  { %8170 = vmatprep.subr.bf16.mxu0 %v7835_v16  ;;  %v7604_v16 = vld [vmem:[%s17092_s12 + $0x480] sm:$0xff] }
 0x7ab   :  { %8171 = vmatpush1.bf16.msra.mxu0 %v7834_v59 }
 0x7ac   :  { %8172 = vmatprep.subr.bf16.mxu0 %v7841_v43  ;;  %v7431_v43 = vrot.slane %v15319_v41, %v17175_v26  ;;  %v7904_v41 = vunpack.c.h.s8.bf16 %v7604_v16 }
 0x7af   :  { %8173 = vmatpush1.bf16.msra.mxu0 %v7840_v45  ;;  %v7898_v45 = vunpack.c.l.s8.bf16 %v7604_v16  ;;  %v7495_v16 = vld [vmem:[%s17092_s12 + $0x118] sm:$0xff] }
 0x7b0   :  { %8174 = vmatprep.subr.bf16.mxu0 %v7847_v22  ;;  %v7900_v22 = vunpack.c.l.s8.bf16 %v7606_v19  ;;  %v8586_v19 = vunpack.c.l.s8.bf16 %v15702_v1 }
 0x7b3   :  { %8175 = vmatpush1.bf16.msra.mxu0 %v7846_v3  ;;  %v7905_v3 = vunpack.c.h.s8.bf16 %v15559_v11  ;;  %v7615_v11 = vunpack.c.l.s8.bf16 %v7465_v14  ;;  %v15725_v14 = vld [vmem:[%s17095_s15 + $0x28] sm:$0xff] }
 0x7b4   :  { %8176 = vmatprep.subr.bf16.mxu0 %v7853_v6  ;;  %v7907_v6 = vunpack.c.h.s8.bf16 %v7607_v24  ;;  %v7482_v24 = vld [vmem:[%s17092_s12 + $0xb0] sm:$0xff] }
 0x7b7   :  { %8177 = vmatpush1.bf16.msra.mxu0 %v7852_v38  ;;  %v7445_v38 = vadd.f32 %v7431_v43, %v7401_v34  ;;  %v7675_v34 = vunpack.c.l.s8.bf16 %v7495_v16 }
 0x7b8   :  { %8178 = vmatprep.subr.bf16.mxu0 %v7859_v5 }
 0x7b9   :  { %v7452_v5 = vmax.f32 %v7445_v38, 0.0 }
 0x7bb   :  { %8179 = vmatpush1.bf16.msra.mxu0 %v7858_v31  ;;  %v7614_v31 = vunpack.c.l.s8.bf16 %v7464_v27 }
 0x7bc   :  { %8180 = vmatprep.subr.bf16.mxu0 %v7865_v61  ;;  %v15656_v61 = vpack.c.bf16 %v7452_v5, %v7452_v5 }
 0x7bf   :  { %8181 = vmatpush1.bf16.msra.mxu0 %v7864_v25  ;;  %v7471_v25 = vld [vmem:[%s17092_s12 + $0x58] sm:$0xff] }
 0x7c0   :  { %8182 = vmatprep.subr.bf16.mxu0 %v7871_v13  ;;  %v7620_v13 = vunpack.c.h.s8.bf16 %v7464_v27  ;;  %v7627_v48 = vunpack.c.l.s8.bf16 %v7471_v25  ;;  %v7633_v0 = vunpack.c.h.s8.bf16 %v7471_v25  ;;  %v7681_v27 = vunpack.c.h.s8.bf16 %v7495_v16  ;;  %v7501_v25 = vld [vmem:[%s17092_s12 + $0x148] sm:$0xff] }
 0x7c3   :  { %8183 = vmatpush1.bf16.msra.mxu0 %v7870_v10  ;;  %v7470_v10 = vld [vmem:[%s17092_s12 + $0x50] sm:$0xff] }
 0x7c4   :  { %8184 = vmatprep.subr.bf16.mxu0 %v7877_v21  ;;  %v7626_v21 = vunpack.c.l.s8.bf16 %v7470_v10 }
 0x7c7   :  { %8185 = vmatpush1.bf16.msra.mxu0 %v7876_v29  ;;  %v7477_v29 = vld [vmem:[%s17092_s12 + $0x88] sm:$0xff] }
 0x7c8   :  { %8186 = vmatprep.subr.bf16.mxu0 %v7883_v63  ;;  %v7632_v63 = vunpack.c.h.s8.bf16 %v7470_v10  ;;  %v7639_v36 = vunpack.c.l.s8.bf16 %v7477_v29 }
 0x7cb   :  { %8187 = vmatpush1.bf16.msra.mxu0 %v7882_v47 }
 0x7cc   :  { %8188 = vmatprep.subr.bf16.mxu0 %v7889_v32  ;;  %v7645_v32 = vunpack.c.h.s8.bf16 %v7477_v29  ;;  %v7687_v29 = vunpack.c.l.s8.bf16 %v7501_v25 }
 0x7cf   :  { %8189 = vmatpush1.bf16.msra.mxu0 %v7888_v49 }
 0x7d0   :  { %8190 = vmatprep.subr.bf16.mxu0 %v7895_v39  ;;  %v7651_v39 = vunpack.c.l.s8.bf16 %v7483_v60 }
 0x7d3   :  { %8191 = vmatpush1.bf16.msra.mxu0 %v7894_v28  ;;  %v7650_v28 = vunpack.c.l.s8.bf16 %v7482_v24 }
 0x7d4   :  { %8201 = vmatprep.subr.bf16.mxu0 %v7901_v42  ;;  %v7657_v42 = vunpack.c.h.s8.bf16 %v7483_v60 }
 0x7e9   :  { %v7191_v12 = vpop.f32.mrb[28].mxu0 }
 0x7ea   :  { %v7399_v33 = vmul.f32 %v7379_v58, %v7191_v12  ;;  %v7193_v53 = vpop.f32.mrb[29].mxu0  ;;  %v7489_v58 = vld [vmem:[%s17092_s12 + $0xe8] sm:$0xff]  ;;  %v7488_v12 = vld [vmem:[%s17092_s12 + $0xe0] sm:$0xff] }
 0x7eb   :  { %v7400_v20 = vmul.f32 %v7383_v2, %v7193_v53  ;;  %v7195_v46 = vpop.f32.mrb[30].mxu0  ;;  %v7656_v2 = vunpack.c.h.s8.bf16 %v7482_v24  ;;  %v7668_v43 = vunpack.c.h.s8.bf16 %v7488_v12  ;;  %v7693_v24 = vunpack.c.h.s8.bf16 %v7501_v25 }
 0x7ec   :  { %v7443_v15 = vadd.f32 %v7423_v8, %v7399_v33  ;;  %v7196_v44 = vpop.f32.mrb[31].mxu0  ;;  %v7663_v8 = vunpack.c.l.s8.bf16 %v7489_v58  ;;  %v15695_v33 = vld [vmem:[%s17095_s15 + $0x8] sm:$0xff]  ;;  %v7662_v46 = vunpack.c.l.s8.bf16 %v7488_v12 }
 0x7ed   :  { %v7444_v23 = vadd.f32 %v7427_v40, %v7400_v20  ;;  %v15690_v40 = vld [vmem:[%s17095_s15] sm:$0xff]  ;;  %v8584_v20 = vunpack.c.l.s8.bf16 %v15695_v33 }
 0x7ee   :  { %v7450_v62 = vmax.f32 %v7443_v15, 0.0  ;;  %v8582_v53 = vunpack.c.l.s8.bf16 %v15690_v40 }
 0x7ef   :  { %v7451_v59 = vmax.f32 %v7444_v23, 0.0  ;;  %v7669_v23 = vunpack.c.h.s8.bf16 %v7489_v58  ;;  %v7507_v58 = vld [vmem:[%s17092_s12 + $0x178] sm:$0xff] }
 0x7f0   :  { %v15641_v56 = vpack.c.bf16 %v7450_v62, %v7450_v62  ;;  %v11221_v15 = vcombine.high %v8582_v53, %v8584_v20  ;;  %v11220_v44 = vcombine.low %v8582_v53, %v8584_v20  ;;  %v15707_v62 = vld [vmem:[%s17095_s15 + $0x18] sm:$0xff] }
 0x7f1   :  { %v15638_v57 = vpack.c.bf16 %v7451_v59, %v7451_v59  ;;  %v8588_v59 = vunpack.c.l.s8.bf16 %v15707_v62 }
 0x7f3   :  { %8028 = vmatprep.mubr.bf16.mxu1 %v15638_v57  ;;  %8192 = vmatprep.mubr.bf16.mxu0 %v15638_v57 }
 0x7f4   :  { %8029 = vmatmul.mubr.bf16.vlgmr.msra.gmra.mrb[44].mxu1 %v15641_v56  ;;  %8193 = vmatmul.mubr.bf16.vlgmr.msra.gmra.mrb[32].mxu0 %v15641_v56 }
 0x7f5   :  { %8038 = vmatpush1.bf16.msra.mxu1 %v7898_v45  ;;  %8202 = vmatpush1.bf16.msra.mxu0 %v7900_v22  ;;  %v11225_v45 = vcombine.high %v8586_v19, %v8588_v59  ;;  %v11224_v22 = vcombine.low %v8586_v19, %v8588_v59 }
 0x7f6   :  { %8039 = vmatprep.subr.bf16.mxu1 %v7905_v3  ;;  %8203 = vmatprep.subr.bf16.mxu0 %v7907_v6  ;;  %v7494_v3 = vld [vmem:[%s17092_s12 + $0x110] sm:$0xff]  ;;  %v15720_v6 = vld [vmem:[%s17095_s15 + $0x20] sm:$0xff] }
 0x7f7   :  { %8069 = vmatprep.mubr.bf16.mxu1 %v11721_v51  ;;  %8233 = vmatprep.mubr.bf16.mxu0 %v11721_v51  ;;  %v7674_v38 = vunpack.c.l.s8.bf16 %v7494_v3  ;;  %v7680_v10 = vunpack.c.h.s8.bf16 %v7494_v3  ;;  %v15797_v3 = vld [vmem:[%s17095_s15 + $0x78] sm:$0xff] }
 0x7f9   :  { %8040 = vmatpush1.bf16.msra.mxu1 %v7904_v41  ;;  %8204 = vmatpush1.bf16.msra.mxu0 %v7906_v52  ;;  %v8590_v41 = vunpack.c.l.s8.bf16 %v15720_v6  ;;  %v8592_v52 = vunpack.c.l.s8.bf16 %v15725_v14 }
 0x7fa   :  { %8242 = vmatprep.subr.bf16.mxu1 %v7615_v11  ;;  %9651 = vmatprep.subr.bf16.mxu0 %v11221_v15  ;;  %v7506_v15 = vld [vmem:[%s17092_s12 + $0x170] sm:$0xff] }
 0x7fb   :  { %v11229_v11 = vcombine.high %v8590_v41, %v8592_v52  ;;  %v11228_v5 = vcombine.low %v8590_v41, %v8592_v52  ;;  %v7698_v59 = vunpack.c.l.s8.bf16 %v7506_v15  ;;  %v7513_v41 = vld [vmem:[%s17092_s12 + $0x1a8] sm:$0xff] }
 0x7fc   :  { %v7711_v25 = vunpack.c.l.s8.bf16 %v7513_v41 }
 0x800   :  { %11217 = vmatmul.mubr.msk.bf16.vlgmr.msra.gmra.mrb[44].mxu1 %vm7910_vm2, %v15656_v61  ;;  %11218 = vmatmul.mubr.msk.bf16.vlgmr.msra.gmra.mrb[32].mxu0 %vm7910_vm2, %v15656_v61 }
 0x801   :  { %8243 = vmatpush1.bf16.msra.mxu1 %v7614_v31  ;;  %8274 = vmatprep.mubr.bf16.mxu1 %v15341_v35  ;;  %v7476_v35 = vld [vmem:[%s17092_s12 + $0x80] sm:$0xff]  ;;  %v15732_v31 = vld [vmem:[%s17095_s15 + $0x30] sm:$0xff] }
 0x802   :  { %8244 = vmatprep.subr.bf16.mxu1 %v7621_v9  ;;  %v7638_v47 = vunpack.c.l.s8.bf16 %v7476_v35  ;;  %v7644_v49 = vunpack.c.h.s8.bf16 %v7476_v35  ;;  %9652 = vmatpush1.bf16.msra.mxu0 %v11220_v44  ;;  %v15737_v9 = vld [vmem:[%s17095_s15 + $0x38] sm:$0xff]  ;;  %v15755_v35 = vld [vmem:[%s17095_s15 + $0x48] sm:$0xff]  ;;  %v15780_v44 = vld [vmem:[%s17095_s15 + $0x60] sm:$0xff] }
 0x803   :  { %9653 = vmatprep.subr.bf16.mxu0 %v11225_v45  ;;  %v8606_v16 = vunpack.c.l.s8.bf16 %v15780_v44 }
 0x805   :  { %8245 = vmatpush1.bf16.msra.mxu1 %v7620_v13  ;;  %v8594_v13 = vunpack.c.l.s8.bf16 %v15732_v31 }
 0x806   :  { %8246 = vmatprep.subr.bf16.mxu1 %v7627_v48  ;;  %9654 = vmatpush1.bf16.msra.mxu0 %v11224_v22  ;;  %v8596_v48 = vunpack.c.l.s8.bf16 %v15737_v9  ;;  %v7705_v22 = vunpack.c.h.s8.bf16 %v7507_v58 }
 0x807   :  { %9655 = vmatprep.subr.bf16.mxu0 %v11229_v11  ;;  %v7704_v11 = vunpack.c.h.s8.bf16 %v7506_v15 }
 0x809   :  { %8247 = vmatpush1.bf16.msra.mxu1 %v7626_v21  ;;  %v11233_v21 = vcombine.high %v8594_v13, %v8596_v48 }
 0x80a   :  { %8248 = vmatprep.subr.bf16.mxu1 %v7633_v0  ;;  %9656 = vmatpush1.bf16.msra.mxu0 %v11228_v5  ;;  %v11232_v0 = vcombine.low %v8594_v13, %v8596_v48  ;;  %v7512_v13 = vld [vmem:[%s17092_s12 + $0x1a0] sm:$0xff] }
 0x80b   :  { %9657 = vmatprep.subr.bf16.mxu0 %v11233_v21  ;;  %v15810_v48 = vld [vmem:[%s17095_s15 + $0x80] sm:$0xff] }
 0x80c   :  { %v8614_v21 = vunpack.c.l.s8.bf16 %v15810_v48 }
 0x80d   :  { %8249 = vmatpush1.bf16.msra.mxu1 %v7632_v63  ;;  %v7500_v63 = vld [vmem:[%s17092_s12 + $0x140] sm:$0xff] }
 0x80e   :  { %8250 = vmatprep.subr.bf16.mxu1 %v7639_v36  ;;  %v15750_v36 = vld [vmem:[%s17095_s15 + $0x40] sm:$0xff]  ;;  %9658 = vmatpush1.bf16.msra.mxu0 %v11232_v0  ;;  %v7686_v60 = vunpack.c.l.s8.bf16 %v7500_v63  ;;  %v7692_v12 = vunpack.c.h.s8.bf16 %v7500_v63 }
 0x811   :  { %8251 = vmatpush1.bf16.msra.mxu1 %v7638_v47  ;;  %v8598_v47 = vunpack.c.l.s8.bf16 %v15750_v36 }
 0x812   :  { %8252 = vmatprep.subr.bf16.mxu1 %v7645_v32  ;;  %v8600_v32 = vunpack.c.l.s8.bf16 %v15755_v35 }
 0x815   :  { %8253 = vmatpush1.bf16.msra.mxu1 %v7644_v49  ;;  %v11237_v49 = vcombine.high %v8598_v47, %v8600_v32 }
 0x816   :  { %8254 = vmatprep.subr.bf16.mxu1 %v7651_v39  ;;  %v11236_v39 = vcombine.low %v8598_v47, %v8600_v32  ;;  %v7717_v32 = vunpack.c.h.s8.bf16 %v7513_v41  ;;  %v8585_v41 = vunpack.c.h.s8.bf16 %v15695_v33 }
 0x817   :  { %9659 = vmatprep.subr.bf16.mxu0 %v11237_v49  ;;  %v15827_v49 = vld [vmem:[%s17095_s15 + $0x98] sm:$0xff] }
 0x818   :  { %9660 = vmatpush1.bf16.msra.mxu0 %v11236_v39  ;;  %v7519_v39 = vld [vmem:[%s17092_s12 + $0x1d8] sm:$0xff] }
 0x819   :  { %8255 = vmatpush1.bf16.msra.mxu1 %v7650_v28  ;;  %v15762_v28 = vld [vmem:[%s17095_s15 + $0x50] sm:$0xff] }
 0x81a   :  { %8256 = vmatprep.subr.bf16.mxu1 %v7657_v42  ;;  %v15767_v42 = vld [vmem:[%s17095_s15 + $0x58] sm:$0xff] }
 0x81d   :  { %8257 = vmatpush1.bf16.msra.mxu1 %v7656_v2  ;;  %v8602_v2 = vunpack.c.l.s8.bf16 %v15762_v28 }
 0x81e   :  { %8258 = vmatprep.subr.bf16.mxu1 %v7663_v8  ;;  %v8604_v8 = vunpack.c.l.s8.bf16 %v15767_v42 }
 0x820   :  { %v11241_v53 = vcombine.high %v8602_v2, %v8604_v8  ;;  %v11240_v20 = vcombine.low %v8602_v2, %v8604_v8  ;;  %v7716_v2 = vunpack.c.h.s8.bf16 %v7512_v13  ;;  %v7518_v8 = vld [vmem:[%s17092_s12 + $0x1d0] sm:$0xff] }
 0x821   :  { %8259 = vmatpush1.bf16.msra.mxu1 %v7662_v46  ;;  %v7699_v46 = vunpack.c.l.s8.bf16 %v7507_v58  ;;  %v8620_v58 = vunpack.c.l.s8.bf16 %v15827_v49 }
 0x822   :  { %8260 = vmatprep.subr.bf16.mxu1 %v7669_v23  ;;  %v15785_v23 = vld [vmem:[%s17095_s15 + $0x68] sm:$0xff]  ;;  %9661 = vmatprep.subr.bf16.mxu0 %v11241_v53 }
 0x823   :  { %v8608_v19 = vunpack.c.l.s8.bf16 %v15785_v23  ;;  %9662 = vmatpush1.bf16.msra.mxu0 %v11240_v20  ;;  %v7723_v20 = vunpack.c.l.s8.bf16 %v7519_v39 }
 0x825   :  { %8261 = vmatpush1.bf16.msra.mxu1 %v7668_v43  ;;  %v11245_v43 = vcombine.high %v8606_v16, %v8608_v19  ;;  %v11244_v45 = vcombine.low %v8606_v16, %v8608_v19  ;;  %v7722_v16 = vunpack.c.l.s8.bf16 %v7518_v8 }
 0x826   :  { %8262 = vmatprep.subr.bf16.mxu1 %v7675_v34  ;;  %v15792_v34 = vld [vmem:[%s17095_s15 + $0x70] sm:$0xff] }
 0x827   :  { %9663 = vmatprep.subr.bf16.mxu0 %v11245_v43  ;;  %v8610_v52 = vunpack.c.l.s8.bf16 %v15792_v34  ;;  %v15854_v43 = vld [vmem:[%s17095_s15 + $0xb0] sm:$0xff] }
 0x828   :  { %9664 = vmatpush1.bf16.msra.mxu0 %v11244_v45  ;;  %v15859_v45 = vld [vmem:[%s17095_s15 + $0xb8] sm:$0xff] }
 0x829   :  { %8263 = vmatpush1.bf16.msra.mxu1 %v7674_v38  ;;  %v8612_v38 = vunpack.c.l.s8.bf16 %v15797_v3 }
 0x82a   :  { %8264 = vmatprep.subr.bf16.mxu1 %v7681_v27 }
 0x82b   :  { %v11249_v5 = vcombine.high %v8610_v52, %v8612_v38  ;;  %v11248_v27 = vcombine.low %v8610_v52, %v8612_v38  ;;  %v7729_v52 = vunpack.c.h.s8.bf16 %v7519_v39  ;;  %v8626_v38 = vunpack.c.l.s8.bf16 %v15854_v43 }
 0x82c   :  { %v8587_v39 = vunpack.c.h.s8.bf16 %v15702_v1  ;;  %v15901_v1 = vld [vmem:[%s17095_s15 + $0xd8] sm:$0xff] }
 0x82d   :  { %8265 = vmatpush1.bf16.msra.mxu1 %v7680_v10  ;;  %v15815_v10 = vld [vmem:[%s17095_s15 + $0x88] sm:$0xff]  ;;  %9665 = vmatprep.subr.bf16.mxu0 %v11249_v5 }
 0x82e   :  { %8266 = vmatprep.subr.bf16.mxu1 %v7687_v29  ;;  %v8616_v0 = vunpack.c.l.s8.bf16 %v15815_v10  ;;  %9666 = vmatpush1.bf16.msra.mxu0 %v11248_v27  ;;  %v7710_v29 = vunpack.c.l.s8.bf16 %v7512_v13  ;;  %v7525_v5 = vld [vmem:[%s17092_s12 + $0x208] sm:$0xff] }
 0x82f   :  { %v7735_v33 = vunpack.c.l.s8.bf16 %v7525_v5 }
 0x830   :  { %v11253_v63 = vcombine.high %v8614_v21, %v8616_v0  ;;  %v11252_v47 = vcombine.low %v8614_v21, %v8616_v0  ;;  %v7524_v21 = vld [vmem:[%s17092_s12 + $0x200] sm:$0xff] }
 0x831   :  { %8267 = vmatpush1.bf16.msra.mxu1 %v7686_v60  ;;  %v15822_v60 = vld [vmem:[%s17095_s15 + $0x90] sm:$0xff]  ;;  %v15876_v0 = vld [vmem:[%s17095_s15 + $0xc0] sm:$0xff] }
 0x832   :  { %8268 = vmatprep.subr.bf16.mxu1 %v7693_v24  ;;  %9667 = vmatprep.subr.bf16.mxu0 %v11253_v63  ;;  %v8618_v24 = vunpack.c.l.s8.bf16 %v15822_v60 }
 0x833   :  { %9668 = vmatpush1.bf16.msra.mxu0 %v11252_v47  ;;  %v8630_v47 = vunpack.c.l.s8.bf16 %v15876_v0 }
 0x834   :  { %v11256_v53 = vcombine.low %v8618_v24, %v8620_v58 }
 0x835   :  { %8269 = vmatpush1.bf16.msra.mxu1 %v7692_v12  ;;  %v11257_v12 = vcombine.high %v8618_v24, %v8620_v58  ;;  %v8589_v24 = vunpack.c.h.s8.bf16 %v15707_v62  ;;  %v7734_v58 = vunpack.c.l.s8.bf16 %v7524_v21  ;;  %v7531_v62 = vld [vmem:[%s17092_s12 + $0x238] sm:$0xff] }
 0x836   :  { %8270 = vmatprep.subr.bf16.mxu1 %v7699_v46  ;;  %v15842_v46 = vld [vmem:[%s17095_s15 + $0xa0] sm:$0xff] }
 0x837   :  { %9669 = vmatprep.subr.bf16.mxu0 %v11257_v12  ;;  %v7741_v12 = vunpack.c.h.s8.bf16 %v7525_v5 }
 0x838   :  { %9670 = vmatpush1.bf16.msra.mxu0 %v11256_v53  ;;  %v15889_v53 = vcombine.high %v8587_v39, %v8589_v24 }
 0x839   :  { %8271 = vmatpush1.bf16.msra.mxu1 %v7698_v59 }
 0x83a   :  { %8272 = vmatprep.subr.bf16.mxu1 %v7705_v22  ;;  %v8583_v22 = vunpack.c.h.s8.bf16 %v15690_v40  ;;  %v7728_v40 = vunpack.c.h.s8.bf16 %v7518_v8 }
 0x83c   :  { %v15868_v27 = vcombine.high %v8583_v22, %v8585_v41  ;;  %v15883_v63 = vcombine.low %v8583_v22, %v8585_v41  ;;  %v7740_v22 = vunpack.c.h.s8.bf16 %v7524_v21  ;;  %v8597_v21 = vunpack.c.h.s8.bf16 %v15737_v9 }
 0x83d   :  { %8273 = vmatpush1.bf16.msra.mxu1 %v7704_v11  ;;  %v8628_v11 = vunpack.c.l.s8.bf16 %v15859_v45 }
 0x83e   :  { %8283 = vmatprep.subr.bf16.mxu1 %v7711_v25 }
 0x83f   :  { %v11265_v25 = vcombine.high %v8626_v38, %v8628_v11  ;;  %v11264_v13 = vcombine.low %v8626_v38, %v8628_v11  ;;  %v7747_v38 = vunpack.c.l.s8.bf16 %v7531_v62  ;;  %v7530_v11 = vld [vmem:[%s17092_s12 + $0x230] sm:$0xff] }
 0x840   :  { %8275 = vmatmul.mubr.bf16.vlgmr.msra.gmra.mrb[48].mxu1 %v15346_v55  ;;  %v15847_v55 = vld [vmem:[%s17095_s15 + $0xa8] sm:$0xff] }
 0x841   :  { %8284 = vmatpush1.bf16.msra.mxu1 %v7710_v29  ;;  %8315 = vmatprep.mubr.bf16.mxu1 %v15349_v4  ;;  %v8622_v4 = vunpack.c.l.s8.bf16 %v15842_v46  ;;  %v8624_v15 = vunpack.c.l.s8.bf16 %v15847_v55  ;;  %v15881_v29 = vld [vmem:[%s17095_s15 + $0xc8] sm:$0xff] }
 0x842   :  { %8285 = vmatprep.subr.bf16.mxu1 %v7717_v32  ;;  %v8632_v32 = vunpack.c.l.s8.bf16 %v15881_v29 }
 0x843   :  { %v11261_v19 = vcombine.high %v8622_v4, %v8624_v15  ;;  %v11260_v59 = vcombine.low %v8622_v4, %v8624_v15  ;;  %v15896_v4 = vld [vmem:[%s17095_s15 + $0xd0] sm:$0xff] }
 0x844   :  { %v11268_v8 = vcombine.low %v8630_v47, %v8632_v32  ;;  %v8634_v15 = vunpack.c.l.s8.bf16 %v15896_v4 }
 0x845   :  { %8286 = vmatpush1.bf16.msra.mxu1 %v7716_v2  ;;  %9671 = vmatprep.subr.bf16.mxu0 %v11261_v19  ;;  %v11269_v2 = vcombine.high %v8630_v47, %v8632_v32  ;;  %v8591_v19 = vunpack.c.h.s8.bf16 %v15720_v6  ;;  %v15923_v6 = vld [vmem:[%s17095_s15 + $0xe8] sm:$0xff]  ;;  %v7746_v47 = vunpack.c.l.s8.bf16 %v7530_v11 }
 0x846   :  { %8287 = vmatprep.subr.bf16.mxu1 %v7723_v20  ;;  %9672 = vmatpush1.bf16.msra.mxu0 %v11260_v59  ;;  %v15891_v20 = vcombine.low %v8587_v39, %v8589_v24  ;;  %v8593_v59 = vunpack.c.h.s8.bf16 %v15725_v14  ;;  %v7753_v39 = vunpack.c.h.s8.bf16 %v7531_v62 }
 0x847   :  { %9673 = vmatprep.subr.bf16.mxu0 %v11265_v25  ;;  %v15918_v25 = vld [vmem:[%s17095_s15 + $0xe0] sm:$0xff] }
 0x848   :  { %v15913_v5 = vcombine.high %v8591_v19, %v8593_v59  ;;  %v15925_v14 = vcombine.low %v8591_v19, %v8593_v59  ;;  %v7752_v19 = vunpack.c.h.s8.bf16 %v7530_v11 }
 0x849   :  { %8288 = vmatpush1.bf16.msra.mxu1 %v7722_v16  ;;  %v8636_v16 = vunpack.c.l.s8.bf16 %v15901_v1 }
 0x84a   :  { %8289 = vmatprep.subr.bf16.mxu1 %v7729_v52  ;;  %9674 = vmatpush1.bf16.msra.mxu0 %v11264_v13  ;;  %v8638_v13 = vunpack.c.l.s8.bf16 %v15918_v25 }
 0x84b   :  { %9675 = vmatprep.subr.bf16.mxu0 %v11269_v2  ;;  %v11273_v41 = vcombine.high %v8634_v15, %v8636_v16  ;;  %v11272_v52 = vcombine.low %v8634_v15, %v8636_v16  ;;  %v15936_v2 = vld [vmem:[%s17095_s15 + $0xf0] sm:$0xff]  ;;  %v8599_v15 = vunpack.c.h.s8.bf16 %v15750_v36  ;;  %v8601_v16 = vunpack.c.h.s8.bf16 %v15755_v35  ;;  %v15965_v36 = vld [vmem:[%s17095_s15 + $0x108] sm:$0xff] }
 0x84d   :  { %8290 = vmatpush1.bf16.msra.mxu1 %v7728_v40  ;;  %v8640_v40 = vunpack.c.l.s8.bf16 %v15923_v6  ;;  %v15967_v35 = vcombine.low %v8599_v15, %v8601_v16 }
 0x84e   :  { %8291 = vmatprep.subr.bf16.mxu1 %v7735_v33  ;;  %9676 = vmatpush1.bf16.msra.mxu0 %v11268_v8  ;;  %v8595_v33 = vunpack.c.h.s8.bf16 %v15732_v31  ;;  %v15941_v8 = vld [vmem:[%s17095_s15 + $0xf8] sm:$0xff]  ;;  %v7537_v31 = vld [vmem:[%s17092_s12 + $0x268] sm:$0xff] }
 0x84f   :  { %9677 = vmatprep.subr.bf16.mxu0 %v11273_v41  ;;  %v11277_v32 = vcombine.high %v8638_v13, %v8640_v40  ;;  %v11276_v24 = vcombine.low %v8638_v13, %v8640_v40  ;;  %v8644_v62 = vunpack.c.l.s8.bf16 %v15941_v8  ;;  %v7759_v59 = vunpack.c.l.s8.bf16 %v7537_v31  ;;  %v15960_v13 = vld [vmem:[%s17095_s15 + $0x100] sm:$0xff] }
 0x850   :  { %v15946_v9 = vcombine.low %v8595_v33, %v8597_v21  ;;  %v8646_v11 = vunpack.c.l.s8.bf16 %v15960_v13  ;;  %v8648_v40 = vunpack.c.l.s8.bf16 %v15965_v36 }
 0x851   :  { %8292 = vmatpush1.bf16.msra.mxu1 %v7734_v58  ;;  %v15931_v58 = vcombine.high %v8595_v33, %v8597_v21  ;;  %v8603_v33 = vunpack.c.h.s8.bf16 %v15762_v28  ;;  %v8605_v21 = vunpack.c.h.s8.bf16 %v15767_v42  ;;  %v8607_v28 = vunpack.c.h.s8.bf16 %v15780_v44 }
 0x852   :  { %8293 = vmatprep.subr.bf16.mxu1 %v7741_v12  ;;  %9678 = vmatpush1.bf16.msra.mxu0 %v11272_v52  ;;  %v8642_v12 = vunpack.c.l.s8.bf16 %v15936_v2  ;;  %v8609_v42 = vunpack.c.h.s8.bf16 %v15785_v23 }
 0x853   :  { %9679 = vmatprep.subr.bf16.mxu0 %v11277_v32  ;;  %v11285_v32 = vcombine.high %v8646_v11, %v8648_v40 }
 0x854   :  { %v11281_v41 = vcombine.high %v8642_v12, %v8644_v62  ;;  %v11280_v52 = vcombine.low %v8642_v12, %v8644_v62  ;;  %v15975_v12 = vcombine.high %v8603_v33, %v8605_v21  ;;  %v7543_v62 = vld [vmem:[%s17092_s12 + $0x298] sm:$0xff] }
 0x855   :  { %8294 = vmatpush1.bf16.msra.mxu1 %v7740_v22  ;;  %v7536_v22 = vld [vmem:[%s17092_s12 + $0x260] sm:$0xff]  ;;  %v7777_v23 = vunpack.c.h.s8.bf16 %v7543_v62 }
 0x856   :  { %8295 = vmatprep.subr.bf16.mxu1 %v7747_v38  ;;  %9680 = vmatpush1.bf16.msra.mxu0 %v11276_v24  ;;  %v15955_v38 = vcombine.high %v8599_v15, %v8601_v16  ;;  %v15973_v24 = vcombine.low %v8646_v11, %v8648_v40  ;;  %v15980_v15 = vcombine.low %v8603_v33, %v8605_v21  ;;  %v7764_v16 = vunpack.c.h.s8.bf16 %v7536_v22 }
 0x857   :  { %9681 = vmatprep.subr.bf16.mxu0 %v11281_v41  ;;  %v15989_v41 = vcombine.low %v8607_v28, %v8609_v42  ;;  %v8613_v11 = vunpack.c.h.s8.bf16 %v15797_v3  ;;  %v8615_v21 = vunpack.c.h.s8.bf16 %v15810_v48 }
 0x859   :  { %8296 = vmatpush1.bf16.msra.mxu1 %v7746_v47  ;;  %v7758_v47 = vunpack.c.l.s8.bf16 %v7536_v22  ;;  %v7549_v22 = vld [vmem:[%s17092_s12 + $0x2c8] sm:$0xff] }
 0x85a   :  { %8297 = vmatprep.subr.bf16.mxu1 %v7753_v39  ;;  %9682 = vmatpush1.bf16.msra.mxu0 %v11280_v52  ;;  %v7765_v39 = vunpack.c.h.s8.bf16 %v7537_v31  ;;  %v7542_v31 = vld [vmem:[%s17092_s12 + $0x290] sm:$0xff]  ;;  %v8611_v52 = vunpack.c.h.s8.bf16 %v15792_v34  ;;  %v7783_v3 = vunpack.c.l.s8.bf16 %v7549_v22 }
 0x85b   :  { %9692 = vmatprep.subr.bf16.mxu0 %v11285_v32  ;;  %v7770_v44 = vunpack.c.l.s8.bf16 %v7542_v31  ;;  %v7776_v34 = vunpack.c.h.s8.bf16 %v7542_v31  ;;  %v7548_v32 = vld [vmem:[%s17092_s12 + $0x2c0] sm:$0xff] }
 0x85c   :  { %v15993_v40 = vcombine.high %v8611_v52, %v8613_v11  ;;  %v15998_v33 = vcombine.low %v8611_v52, %v8613_v11  ;;  %v7782_v48 = vunpack.c.l.s8.bf16 %v7548_v32  ;;  %v8623_v52 = vunpack.c.h.s8.bf16 %v15842_v46 }
 0x85d   :  { %8298 = vmatpush1.bf16.msra.mxu1 %v7752_v19  ;;  %v7771_v19 = vunpack.c.l.s8.bf16 %v7543_v62  ;;  %v8625_v11 = vunpack.c.h.s8.bf16 %v15847_v55 }
 0x85e   :  { %8299 = vmatprep.subr.bf16.mxu1 %v7759_v59  ;;  %v15987_v59 = vcombine.high %v8607_v28, %v8609_v42  ;;  %v8619_v28 = vunpack.c.h.s8.bf16 %v15822_v60  ;;  %v8621_v42 = vunpack.c.h.s8.bf16 %v15827_v49  ;;  %v7788_v60 = vunpack.c.h.s8.bf16 %v7548_v32 }
 0x860   :  { %v16016_v31 = vcombine.low %v8619_v28, %v8621_v42 }
 0x861   :  { %8300 = vmatpush1.bf16.msra.mxu1 %v7758_v47  ;;  %v8617_v47 = vunpack.c.h.s8.bf16 %v15815_v10  ;;  %v7789_v10 = vunpack.c.h.s8.bf16 %v7549_v22  ;;  %v16025_v22 = vcombine.low %v8623_v52, %v8625_v11 }
 0x862   :  { %8301 = vmatprep.subr.bf16.mxu1 %v7765_v39 }
 0x863   :  { %v16005_v39 = vcombine.high %v8615_v21, %v8617_v47  ;;  %v16007_v62 = vcombine.low %v8615_v21, %v8617_v47  ;;  %v8627_v21 = vunpack.c.h.s8.bf16 %v15854_v43  ;;  %v8629_v47 = vunpack.c.h.s8.bf16 %v15859_v45 }
 0x865   :  { %8302 = vmatpush1.bf16.msra.mxu1 %v7764_v16  ;;  %v16011_v16 = vcombine.high %v8619_v28, %v8621_v42  ;;  %v16034_v32 = vcombine.low %v8627_v21, %v8629_v47  ;;  %v8631_v28 = vunpack.c.h.s8.bf16 %v15876_v0  ;;  %v8633_v42 = vunpack.c.h.s8.bf16 %v15881_v29 }
 0x866   :  { %8303 = vmatprep.subr.bf16.mxu1 %v7771_v19  ;;  %v7555_v19 = vld [vmem:[%s17092_s12 + $0x2f8] sm:$0xff] }
 0x867   :  { %v7795_v49 = vunpack.c.l.s8.bf16 %v7555_v19  ;;  %v7801_v55 = vunpack.c.h.s8.bf16 %v7555_v19  ;;  %v16043_v19 = vcombine.low %v8631_v28, %v8633_v42 }
 0x869   :  { %8304 = vmatpush1.bf16.msra.mxu1 %v7770_v44  ;;  %v7554_v44 = vld [vmem:[%s17092_s12 + $0x2f0] sm:$0xff] }
 0x86a   :  { %8305 = vmatprep.subr.bf16.mxu1 %v7777_v23  ;;  %v16023_v23 = vcombine.high %v8623_v52, %v8625_v11  ;;  %v7794_v46 = vunpack.c.l.s8.bf16 %v7554_v44  ;;  %v7800_v43 = vunpack.c.h.s8.bf16 %v7554_v44  ;;  %v8635_v52 = vunpack.c.h.s8.bf16 %v15896_v4 }
 0x86b   :  { %v8637_v11 = vunpack.c.h.s8.bf16 %v15901_v1  ;;  %v8641_v4 = vunpack.c.h.s8.bf16 %v15923_v6 }
 0x86d   :  { %8306 = vmatpush1.bf16.msra.mxu1 %v7776_v34  ;;  %v16029_v34 = vcombine.high %v8627_v21, %v8629_v47  ;;  %v16052_v44 = vcombine.low %v8635_v52, %v8637_v11  ;;  %v8639_v21 = vunpack.c.h.s8.bf16 %v15918_v25  ;;  %v8645_v25 = vunpack.c.h.s8.bf16 %v15941_v8 }
 0x86e   :  { %8307 = vmatprep.subr.bf16.mxu1 %v7783_v3  ;;  %v7561_v3 = vld [vmem:[%s17092_s12 + $0x328] sm:$0xff] }
 0x86f   :  { %v7807_v45 = vunpack.c.l.s8.bf16 %v7561_v3  ;;  %v7813_v29 = vunpack.c.h.s8.bf16 %v7561_v3  ;;  %v16063_v3 = vcombine.low %v8639_v21, %v8641_v4 }
 0x871   :  { %8308 = vmatpush1.bf16.msra.mxu1 %v7782_v48  ;;  %v7560_v48 = vld [vmem:[%s17092_s12 + $0x320] sm:$0xff] }
 0x872   :  { %8309 = vmatprep.subr.bf16.mxu1 %v7789_v10  ;;  %v16041_v10 = vcombine.high %v8631_v28, %v8633_v42  ;;  %v7806_v0 = vunpack.c.l.s8.bf16 %v7560_v48  ;;  %v7812_v1 = vunpack.c.h.s8.bf16 %v7560_v48  ;;  %v7573_v42 = vld [vmem:[%s17092_s12 + $0x388] sm:$0xff]  ;;  %v8649_v48 = vunpack.c.h.s8.bf16 %v15965_v36 }
 0x873   :  { %v7831_v8 = vunpack.c.l.s8.bf16 %v7573_v42 }
 0x875   :  { %8310 = vmatpush1.bf16.msra.mxu1 %v7788_v60  ;;  %v16047_v60 = vcombine.high %v8635_v52, %v8637_v11  ;;  %v7572_v52 = vld [vmem:[%s17092_s12 + $0x380] sm:$0xff] }
 0x876   :  { %8311 = vmatprep.subr.bf16.mxu1 %v7795_v49  ;;  %v7567_v49 = vld [vmem:[%s17092_s12 + $0x358] sm:$0xff]  ;;  %v7836_v36 = vunpack.c.h.s8.bf16 %v7572_v52 }
 0x877   :  { %v7819_v47 = vunpack.c.l.s8.bf16 %v7567_v49  ;;  %v7825_v28 = vunpack.c.h.s8.bf16 %v7567_v49  ;;  %v7837_v49 = vunpack.c.h.s8.bf16 %v7573_v42 }
 0x879   :  { %8312 = vmatpush1.bf16.msra.mxu1 %v7794_v46  ;;  %v7566_v46 = vld [vmem:[%s17092_s12 + $0x350] sm:$0xff] }
 0x87a   :  { %8313 = vmatprep.subr.bf16.mxu1 %v7801_v55  ;;  %v16061_v55 = vcombine.high %v8639_v21, %v8641_v4  ;;  %v7818_v6 = vunpack.c.l.s8.bf16 %v7566_v46  ;;  %v7578_v4 = vld [vmem:[%s17092_s12 + $0x3b0] sm:$0xff] }
 0x87d   :  { %8314 = vmatpush1.bf16.msra.mxu1 %v7800_v43 }
 0x87e   :  { %8324 = vmatprep.subr.bf16.mxu1 %v7807_v45  ;;  %v8647_v45 = vunpack.c.h.s8.bf16 %v15960_v13  ;;  %v7579_v13 = vld [vmem:[%s17092_s12 + $0x3b8] sm:$0xff] }
 0x87f   :  { %v7843_v21 = vunpack.c.l.s8.bf16 %v7579_v13 }
 0x880   :  { %8316 = vmatmul.mubr.bf16.vlgmr.msra.gmra.mrb[48].mxu1 %v15464_v54  ;;  %v8643_v54 = vunpack.c.h.s8.bf16 %v15936_v2  ;;  %v7824_v2 = vunpack.c.h.s8.bf16 %v7566_v46  ;;  %v16079_v11 = vcombine.high %v8647_v45, %v8649_v48  ;;  %v7585_v46 = vld [vmem:[%s17092_s12 + $0x3e8] sm:$0xff] }
 0x881   :  { %8325 = vmatpush1.bf16.msra.mxu1 %v7806_v0  ;;  %8356 = vmatprep.mubr.bf16.mxu1 %v15638_v57  ;;  %v16081_v0 = vcombine.low %v8647_v45, %v8649_v48  ;;  %v7861_v42 = vunpack.c.h.s8.bf16 %v7585_v46  ;;  %v7591_v45 = vld [vmem:[%s17092_s12 + $0x418] sm:$0xff] }
 0x882   :  { %8326 = vmatprep.subr.bf16.mxu1 %v7813_v29  ;;  %v16067_v57 = vcombine.high %v8643_v54, %v8645_v25  ;;  %v16072_v43 = vcombine.low %v8643_v54, %v8645_v25  ;;  %v7830_v29 = vunpack.c.l.s8.bf16 %v7572_v52  ;;  %v7848_v54 = vunpack.c.h.s8.bf16 %v7578_v4 }
 0x883   :  { %v7855_v25 = vunpack.c.l.s8.bf16 %v7585_v46 }
 0x885   :  { %8327 = vmatpush1.bf16.msra.mxu1 %v7812_v1  ;;  %v7842_v1 = vunpack.c.l.s8.bf16 %v7578_v4 }
 0x886   :  { %8328 = vmatprep.subr.bf16.mxu1 %v7819_v47  ;;  %v7849_v47 = vunpack.c.h.s8.bf16 %v7579_v13 }
 0x889   :  { %8329 = vmatpush1.bf16.msra.mxu1 %v7818_v6  ;;  %v7584_v6 = vld [vmem:[%s17092_s12 + $0x3e0] sm:$0xff] }
 0x88a   :  { %8330 = vmatprep.subr.bf16.mxu1 %v7825_v28  ;;  %v7854_v28 = vunpack.c.l.s8.bf16 %v7584_v6  ;;  %v7860_v48 = vunpack.c.h.s8.bf16 %v7584_v6 }
 0x88d   :  { %8331 = vmatpush1.bf16.msra.mxu1 %v7824_v2  ;;  %v7867_v2 = vunpack.c.l.s8.bf16 %v7591_v45 }
 0x88e   :  { %8332 = vmatprep.subr.bf16.mxu1 %v7831_v8  ;;  %v7590_v8 = vld [vmem:[%s17092_s12 + $0x410] sm:$0xff] }
 0x88f   :  { %v7866_v52 = vunpack.c.l.s8.bf16 %v7590_v8  ;;  %v7872_v13 = vunpack.c.h.s8.bf16 %v7590_v8 }
 0x891   :  { %8333 = vmatpush1.bf16.msra.mxu1 %v7830_v29  ;;  %v7873_v29 = vunpack.c.h.s8.bf16 %v7591_v45 }
 0x892   :  { %8334 = vmatprep.subr.bf16.mxu1 %v7837_v49  ;;  %v7597_v49 = vld [vmem:[%s17092_s12 + $0x448] sm:$0xff] }
 0x895   :  { %8335 = vmatpush1.bf16.msra.mxu1 %v7836_v36  ;;  %v7879_v36 = vunpack.c.l.s8.bf16 %v7597_v49 }
 0x896   :  { %8336 = vmatprep.subr.bf16.mxu1 %v7843_v21  ;;  %v7596_v21 = vld [vmem:[%s17092_s12 + $0x440] sm:$0xff] }
 0x897   :  { %v7878_v4 = vunpack.c.l.s8.bf16 %v7596_v21  ;;  %v7884_v46 = vunpack.c.h.s8.bf16 %v7596_v21 }
 0x899   :  { %8337 = vmatpush1.bf16.msra.mxu1 %v7842_v1  ;;  %v7885_v1 = vunpack.c.h.s8.bf16 %v7597_v49  ;;  %v16128_v49 = vld [vmem:[%s17093_s13] sm:$0x3f] }
 0x89a   :  { %8338 = vmatprep.subr.bf16.mxu1 %v7849_v47  ;;  %v7603_v47 = vld [vmem:[%s17092_s12 + $0x478] sm:$0xff] }
 0x89d   :  { %8339 = vmatpush1.bf16.msra.mxu1 %v7848_v54  ;;  %v7891_v54 = vunpack.c.l.s8.bf16 %v7603_v47 }
 0x89e   :  { %8340 = vmatprep.subr.bf16.mxu1 %v7855_v25  ;;  %v7602_v25 = vld [vmem:[%s17092_s12 + $0x470] sm:$0xff] }
 0x89f   :  { %v7890_v6 = vunpack.c.l.s8.bf16 %v7602_v25  ;;  %v7896_v45 = vunpack.c.h.s8.bf16 %v7602_v25  ;;  %v16156_v25 = vld [vmem:[%s17095_s15 + $0x110] sm:$0xff] }
 0x8a1   :  { %8341 = vmatpush1.bf16.msra.mxu1 %v7854_v28  ;;  %v7897_v28 = vunpack.c.h.s8.bf16 %v7603_v47 }
 0x8a2   :  { %8342 = vmatprep.subr.bf16.mxu1 %v7861_v42  ;;  %v7609_v42 = vld [vmem:[%s17092_s12 + $0x4a8] sm:$0xff] }
 0x8a5   :  { %8343 = vmatpush1.bf16.msra.mxu1 %v7860_v48  ;;  %v7903_v48 = vunpack.c.l.s8.bf16 %v7609_v42 }
 0x8a6   :  { %8344 = vmatprep.subr.bf16.mxu1 %v7867_v2  ;;  %v7608_v2 = vld [vmem:[%s17092_s12 + $0x4a0] sm:$0xff] }
 0x8a7   :  { %v7902_v8 = vunpack.c.l.s8.bf16 %v7608_v2 }
 0x8a9   :  { %8345 = vmatpush1.bf16.msra.mxu1 %v7866_v52  ;;  %v7909_v52 = vunpack.c.h.s8.bf16 %v7609_v42 }
 0x8aa   :  { %8346 = vmatprep.subr.bf16.mxu1 %v7873_v29  ;;  %v7908_v29 = vunpack.c.h.s8.bf16 %v7608_v2 }
 0x8ad   :  { %8347 = vmatpush1.bf16.msra.mxu1 %v7872_v13 }
 0x8ae   :  { %8348 = vmatprep.subr.bf16.mxu1 %v7879_v36 }
 0x8b1   :  { %8349 = vmatpush1.bf16.msra.mxu1 %v7878_v4 }
 0x8b2   :  { %8350 = vmatprep.subr.bf16.mxu1 %v7885_v1 }
 0x8b5   :  { %8351 = vmatpush1.bf16.msra.mxu1 %v7884_v46 }
 0x8b6   :  { %8352 = vmatprep.subr.bf16.mxu1 %v7891_v54 }
 0x8b9   :  { %8353 = vmatpush1.bf16.msra.mxu1 %v7890_v6  ;;  %v16161_v6 = vld [vmem:[%s17095_s15 + $0x118] sm:$0xff] }
 0x8ba   :  { %8354 = vmatprep.subr.bf16.mxu1 %v7897_v28 }
 0x8bd   :  { %8355 = vmatpush1.bf16.msra.mxu1 %v7896_v45 }
 0x8be   :  { %8365 = vmatprep.subr.bf16.mxu1 %v7903_v48 }
 0x8c0   :  { %8357 = vmatmul.mubr.bf16.vlgmr.msra.gmra.mrb[48].mxu1 %v15641_v56  ;;  %v8411_v56 = vrot.slane %v16128_v49, %v17169_v7 }
 0x8c1   :  { %8366 = vmatpush1.bf16.msra.mxu1 %v7902_v8  ;;  %8397 = vmatprep.mubr.bf16.mxu1 %v11721_v51  ;;  %v16134_v51 = vld [vmem:[%s17094_s14] sm:$0x3f]  ;;  %v8650_v8 = vunpack.c.l.s8.bf16 %v16156_v25 }
 0x8c2   :  { %8367 = vmatprep.subr.bf16.mxu1 %v7909_v52  ;;  %v8453_v36 = vrot.slane %v16134_v51, %v17170_v18  ;;  %v8652_v52 = vunpack.c.l.s8.bf16 %v16161_v6 }
 0x8c5   :  { %8368 = vmatpush1.bf16.msra.mxu1 %v7908_v29 }
 0x8c6   :  { %9774 = vmatprep.subr.bf16.mxu1 %v15868_v27  ;;  %v8423_v27 = vrot.slane %v16128_v49, %v17171_v37 }
 0x8cc   :  { %11219 = vmatmul.mubr.msk.bf16.vlgmr.msra.gmra.mrb[48].mxu1 %vm7910_vm2, %v15656_v61  ;;  %v8415_v61 = vrot.slane %v16128_v49, %v17170_v18 }
 0x8cd   :  { %9775 = vmatpush1.bf16.msra.mxu1 %v15883_v63  ;;  %v8449_v63 = vrot.slane %v16134_v51, %v17169_v7 }
 0x8ce   :  { %9776 = vmatprep.subr.bf16.mxu1 %v15889_v53 }
 0x8d1   :  { %9777 = vmatpush1.bf16.msra.mxu1 %v15891_v20  ;;  %v8461_v20 = vrot.slane %v16134_v51, %v17171_v37 }
 0x8d2   :  { %9778 = vmatprep.subr.bf16.mxu1 %v15913_v5 }
 0x8d3   :  { %v8071_v53 = vpop.f32.mrb[44].mxu1  ;;  %v16146_v13 = vpop.f32.mrb[32].mxu0 }
 0x8d4   :  { %v8438_v21 = vmul.f32 %v8411_v56, %v8071_v53  ;;  %v8073_v4 = vpop.f32.mrb[45].mxu1  ;;  %v8237_v1 = vpop.f32.mrb[33].mxu0  ;;  %v16170_v56 = vld [vmem:[%s17095_s15 + $0x120] sm:$0xff]  ;;  %v11289_v53 = vcombine.high %v8650_v8, %v8652_v52 }
 0x8d5   :  { %9779 = vmatpush1.bf16.msra.mxu1 %v15925_v14  ;;  %v8439_v47 = vmul.f32 %v8415_v61, %v8073_v4  ;;  %v8441_v46 = vmul.f32 %v8423_v27, %v8237_v1  ;;  %v8075_v5 = vpop.f32.mrb[46].mxu1  ;;  %v8239_v54 = vpop.f32.mrb[34].mxu0  ;;  %v16175_v61 = vld [vmem:[%s17095_s15 + $0x128] sm:$0xff] }
 0x8d6   :  { %v8476_v28 = vadd.f32 %v8449_v63, %v8438_v21  ;;  %v8076_v42 = vpop.f32.mrb[47].mxu1  ;;  %v8240_v45 = vpop.f32.mrb[35].mxu0  ;;  %9780 = vmatprep.subr.bf16.mxu1 %v15931_v58 }
 0x8d7   :  { %v8477_v14 = vadd.f32 %v8453_v36, %v8439_v47  ;;  %v8479_v48 = vadd.f32 %v8461_v20, %v8441_v46  ;;  %v8654_v36 = vunpack.c.l.s8.bf16 %v16170_v56  ;;  %v16186_v20 = vld [vmem:[%s17095_s15 + $0x130] sm:$0xff]  ;;  %v16205_v46 = vld [vmem:[%s17095_s15 + $0x140] sm:$0xff]  ;;  %v16224_v42 = vld [vmem:[%s17095_s15 + $0x158] sm:$0xff] }
 0x8d8   :  { %v8482_v2 = vmax.f32 %v8476_v28, 0.0  ;;  %v8658_v1 = vunpack.c.l.s8.bf16 %v16186_v20  ;;  %v8662_v54 = vunpack.c.l.s8.bf16 %v16205_v46  ;;  %v16219_v28 = vld [vmem:[%s17095_s15 + $0x150] sm:$0xff] }
 0x8d9   :  { %v8483_v29 = vmax.f32 %v8477_v14, 0.0  ;;  %9781 = vmatpush1.bf16.msra.mxu1 %v15946_v9  ;;  %v8485_v58 = vmax.f32 %v8479_v48, 0.0  ;;  %v8656_v9 = vunpack.c.l.s8.bf16 %v16175_v61  ;;  %v8666_v14 = vunpack.c.l.s8.bf16 %v16219_v28  ;;  %v16233_v48 = vld [vmem:[%s17095_s15 + $0x160] sm:$0xff] }
 0x8da   :  { %9782 = vmatprep.subr.bf16.mxu1 %v15955_v38  ;;  %v16178_v63 = vpack.c.bf16 %v8482_v2, %v8482_v2  ;;  %v16191_v38 = vld [vmem:[%s17095_s15 + $0x138] sm:$0xff]  ;;  %v16238_v2 = vld [vmem:[%s17095_s15 + $0x168] sm:$0xff] }
 0x8db   :  { %v8489_v27 = vpack.c.bf16 %v8483_v29, %v8483_v29  ;;  %v16193_v21 = vpack.c.bf16 %v8485_v58, %v8485_v58  ;;  %v11293_v4 = vcombine.high %v8654_v36, %v8656_v9  ;;  %v8660_v47 = vunpack.c.l.s8.bf16 %v16191_v38  ;;  %v16247_v29 = vld [vmem:[%s17095_s15 + $0x170] sm:$0xff]  ;;  %v16252_v58 = vld [vmem:[%s17095_s15 + $0x178] sm:$0xff] }
 0x8dd   :  { %9783 = vmatpush1.bf16.msra.mxu1 %v15967_v35  ;;  %9683 = vmatprep.mubr.bf16.mxu0 %v8489_v27  ;;  %v11288_v35 = vcombine.low %v8650_v8, %v8652_v52  ;;  %v11297_v5 = vcombine.high %v8658_v1, %v8660_v47  ;;  %v8670_v52 = vunpack.c.l.s8.bf16 %v16233_v48 }
 0x8de   :  { %9806 = vmatprep.mubr.bf16.mxu1 %v8489_v27  ;;  %9684 = vmatmul.mubr.bf16.vlgmr.msra.gmra.mrb[36].mxu0 %v16178_v63 }
 0x8df   :  { %9693 = vmatpush1.bf16.msra.mxu0 %v15973_v24  ;;  %9784 = vmatprep.subr.bf16.mxu1 %v15975_v12  ;;  %v16210_v24 = vld [vmem:[%s17095_s15 + $0x148] sm:$0xff]  ;;  %v11292_v12 = vcombine.low %v8654_v36, %v8656_v9  ;;  %v16261_v36 = vld [vmem:[%s17095_s15 + $0x180] sm:$0xff] }
 0x8e0   :  { %9724 = vmatprep.mubr.bf16.mxu0 %v16193_v21  ;;  %9694 = vmatprep.subr.bf16.mxu0 %v11289_v53  ;;  %v8674_v53 = vunpack.c.l.s8.bf16 %v16247_v29  ;;  %v16266_v9 = vld [vmem:[%s17095_s15 + $0x188] sm:$0xff] }
 0x8e1   :  { %9785 = vmatpush1.bf16.msra.mxu1 %v15980_v15  ;;  %v8664_v15 = vunpack.c.l.s8.bf16 %v16210_v24 }
 0x8e2   :  { %9786 = vmatprep.subr.bf16.mxu1 %v15987_v59  ;;  %v11296_v59 = vcombine.low %v8658_v1, %v8660_v47  ;;  %v16275_v1 = vld [vmem:[%s17095_s15 + $0x190] sm:$0xff]  ;;  %v16280_v47 = vld [vmem:[%s17095_s15 + $0x198] sm:$0xff] }
 0x8e3   :  { %9695 = vmatpush1.bf16.msra.mxu0 %v11288_v35  ;;  %v11301_v45 = vcombine.high %v8662_v54, %v8664_v15 }
 0x8e4   :  { %9696 = vmatprep.subr.bf16.mxu0 %v11293_v4  ;;  %v8678_v4 = vunpack.c.l.s8.bf16 %v16261_v36 }
 0x8e5   :  { %9787 = vmatpush1.bf16.msra.mxu1 %v15989_v41  ;;  %v8668_v41 = vunpack.c.l.s8.bf16 %v16224_v42 }
 0x8e6   :  { %9788 = vmatprep.subr.bf16.mxu1 %v15993_v40  ;;  %v11300_v40 = vcombine.low %v8662_v54, %v8664_v15  ;;  %v16289_v54 = vld [vmem:[%s17095_s15 + $0x1a0] sm:$0xff]  ;;  %v16294_v15 = vld [vmem:[%s17095_s15 + $0x1a8] sm:$0xff] }
 0x8e7   :  { %9697 = vmatpush1.bf16.msra.mxu0 %v11292_v12  ;;  %v11305_v8 = vcombine.high %v8666_v14, %v8668_v41 }
 0x8e8   :  { %9698 = vmatprep.subr.bf16.mxu0 %v11297_v5  ;;  %v8682_v5 = vunpack.c.l.s8.bf16 %v16275_v1 }
 0x8e9   :  { %9789 = vmatpush1.bf16.msra.mxu1 %v15998_v33  ;;  %v8672_v33 = vunpack.c.l.s8.bf16 %v16238_v2 }
 0x8ea   :  { %9790 = vmatprep.subr.bf16.mxu1 %v16005_v39  ;;  %v11304_v39 = vcombine.low %v8666_v14, %v8668_v41  ;;  %v16303_v14 = vld [vmem:[%s17095_s15 + $0x1b0] sm:$0xff]  ;;  %v16308_v41 = vld [vmem:[%s17095_s15 + $0x1b8] sm:$0xff] }
 0x8eb   :  { %9699 = vmatpush1.bf16.msra.mxu0 %v11296_v59  ;;  %v11309_v27 = vcombine.high %v8670_v52, %v8672_v33 }
 0x8ec   :  { %9700 = vmatprep.subr.bf16.mxu0 %v11301_v45  ;;  %v8686_v45 = vunpack.c.l.s8.bf16 %v16289_v54 }
 0x8ed   :  { %9791 = vmatpush1.bf16.msra.mxu1 %v16007_v62  ;;  %v8676_v62 = vunpack.c.l.s8.bf16 %v16252_v58 }
 0x8ee   :  { %9792 = vmatprep.subr.bf16.mxu1 %v16011_v16  ;;  %v11308_v16 = vcombine.low %v8670_v52, %v8672_v33  ;;  %v16317_v52 = vld [vmem:[%s17095_s15 + $0x1c0] sm:$0xff]  ;;  %v16322_v33 = vld [vmem:[%s17095_s15 + $0x1c8] sm:$0xff] }
 0x8ef   :  { %9701 = vmatpush1.bf16.msra.mxu0 %v11300_v40  ;;  %v11313_v35 = vcombine.high %v8674_v53, %v8676_v62 }
 0x8f0   :  { %9702 = vmatprep.subr.bf16.mxu0 %v11305_v8  ;;  %v8690_v8 = vunpack.c.l.s8.bf16 %v16303_v14 }
 0x8f1   :  { %9793 = vmatpush1.bf16.msra.mxu1 %v16016_v31  ;;  %v8680_v31 = vunpack.c.l.s8.bf16 %v16266_v9 }
 0x8f2   :  { %9794 = vmatprep.subr.bf16.mxu1 %v16023_v23  ;;  %v11312_v23 = vcombine.low %v8674_v53, %v8676_v62  ;;  %v16331_v53 = vld [vmem:[%s17095_s15 + $0x1d0] sm:$0xff]  ;;  %v16336_v62 = vld [vmem:[%s17095_s15 + $0x1d8] sm:$0xff] }
 0x8f3   :  { %9703 = vmatpush1.bf16.msra.mxu0 %v11304_v39  ;;  %v11317_v12 = vcombine.high %v8678_v4, %v8680_v31 }
 0x8f4   :  { %9704 = vmatprep.subr.bf16.mxu0 %v11309_v27  ;;  %v8694_v27 = vunpack.c.l.s8.bf16 %v16317_v52 }
 0x8f5   :  { %9795 = vmatpush1.bf16.msra.mxu1 %v16025_v22  ;;  %v8684_v22 = vunpack.c.l.s8.bf16 %v16280_v47 }
 0x8f6   :  { %9796 = vmatprep.subr.bf16.mxu1 %v16029_v34  ;;  %v11316_v34 = vcombine.low %v8678_v4, %v8680_v31  ;;  %v8698_v4 = vunpack.c.l.s8.bf16 %v16331_v53  ;;  %v8700_v31 = vunpack.c.l.s8.bf16 %v16336_v62 }
 0x8f7   :  { %9705 = vmatpush1.bf16.msra.mxu0 %v11308_v16  ;;  %v11321_v59 = vcombine.high %v8682_v5, %v8684_v22  ;;  %v8653_v16 = vunpack.c.h.s8.bf16 %v16161_v6  ;;  %v8655_v6 = vunpack.c.h.s8.bf16 %v16170_v56  ;;  %v16367_v56 = vld [vmem:[%s17095_s15 + $0x1f0] sm:$0xff] }
 0x8f8   :  { %9706 = vmatprep.subr.bf16.mxu0 %v11313_v35 }
 0x8f9   :  { %9797 = vmatpush1.bf16.msra.mxu1 %v16034_v32  ;;  %v8688_v32 = vunpack.c.l.s8.bf16 %v16294_v15 }
 0x8fa   :  { %9798 = vmatprep.subr.bf16.mxu1 %v16041_v10  ;;  %v11320_v10 = vcombine.low %v8682_v5, %v8684_v22  ;;  %v11337_v22 = vcombine.high %v8698_v4, %v8700_v31 }
 0x8fb   :  { %9707 = vmatpush1.bf16.msra.mxu0 %v11312_v23  ;;  %v11325_v40 = vcombine.high %v8686_v45, %v8688_v32  ;;  %v16347_v23 = vld [vmem:[%s17095_s15 + $0x1e0] sm:$0xff] }
 0x8fc   :  { %9708 = vmatprep.subr.bf16.mxu0 %v11317_v12  ;;  %v8657_v12 = vunpack.c.h.s8.bf16 %v16175_v61  ;;  %v16372_v61 = vld [vmem:[%s17095_s15 + $0x1f8] sm:$0xff] }
 0x8fd   :  { %9799 = vmatpush1.bf16.msra.mxu1 %v16043_v19  ;;  %v8692_v19 = vunpack.c.l.s8.bf16 %v16308_v41 }
 0x8fe   :  { %9800 = vmatprep.subr.bf16.mxu1 %v16047_v60  ;;  %v11324_v60 = vcombine.low %v8686_v45, %v8688_v32  ;;  %v8659_v45 = vunpack.c.h.s8.bf16 %v16186_v20  ;;  %v8661_v32 = vunpack.c.h.s8.bf16 %v16191_v38  ;;  %v16384_v20 = vld [vmem:[%s17095_s15 + $0x200] sm:$0xff]  ;;  %v16389_v38 = vld [vmem:[%s17095_s15 + $0x208] sm:$0xff] }
 0x8ff   :  { %9709 = vmatpush1.bf16.msra.mxu0 %v11316_v34  ;;  %v11329_v39 = vcombine.high %v8690_v8, %v8692_v19  ;;  %v11328_v35 = vcombine.low %v8690_v8, %v8692_v19  ;;  %v8702_v34 = vunpack.c.l.s8.bf16 %v16347_v23  ;;  %v8706_v8 = vunpack.c.l.s8.bf16 %v16367_v56 }
 0x900   :  { %9710 = vmatprep.subr.bf16.mxu0 %v11321_v59  ;;  %v8708_v19 = vunpack.c.l.s8.bf16 %v16372_v61 }
 0x901   :  { %9801 = vmatpush1.bf16.msra.mxu1 %v16052_v44  ;;  %v8696_v44 = vunpack.c.l.s8.bf16 %v16322_v33 }
 0x902   :  { %9802 = vmatprep.subr.bf16.mxu1 %v16061_v55  ;;  %v8651_v55 = vunpack.c.h.s8.bf16 %v16156_v25 }
 0x903   :  { %9711 = vmatpush1.bf16.msra.mxu0 %v11320_v10  ;;  %v11332_v5 = vcombine.low %v8694_v27, %v8696_v44 }
 0x904   :  { %9712 = vmatprep.subr.bf16.mxu0 %v11325_v40  ;;  %v11291_v25 = vcombine.high %v8651_v55, %v8653_v16 }
 0x905   :  { %9803 = vmatpush1.bf16.msra.mxu1 %v16063_v3  ;;  %v11333_v3 = vcombine.high %v8694_v27, %v8696_v44  ;;  %v8665_v27 = vunpack.c.h.s8.bf16 %v16210_v24 }
 0x906   :  { %9804 = vmatprep.subr.bf16.mxu1 %v16067_v57  ;;  %v16352_v57 = vld [vmem:[%s17095_s15 + $0x1e8] sm:$0xff] }
 0x907   :  { %9713 = vmatpush1.bf16.msra.mxu0 %v11324_v60  ;;  %v8704_v59 = vunpack.c.l.s8.bf16 %v16352_v57  ;;  %v11294_v60 = vcombine.low %v8655_v6, %v8657_v12 }
 0x908   :  { %9714 = vmatprep.subr.bf16.mxu0 %v11329_v39  ;;  %v8663_v39 = vunpack.c.h.s8.bf16 %v16205_v46  ;;  %v16403_v46 = vld [vmem:[%s17095_s15 + $0x218] sm:$0xff] }
 0x909   :  { %9805 = vmatpush1.bf16.msra.mxu1 %v16072_v43  ;;  %v8419_v43 = vrot.slane %v16128_v49, %v17172_v17  ;;  %v11341_v40 = vcombine.high %v8702_v34, %v8704_v59  ;;  %v11340_v44 = vcombine.low %v8702_v34, %v8704_v59  ;;  %v8716_v34 = vunpack.c.l.s8.bf16 %v16403_v46 }
 0x90a   :  { %9815 = vmatprep.subr.bf16.mxu1 %v16079_v11  ;;  %v11290_v11 = vcombine.low %v8651_v55, %v8653_v16  ;;  %v11345_v16 = vcombine.high %v8706_v8, %v8708_v19  ;;  %v11303_v24 = vcombine.high %v8663_v39, %v8665_v27  ;;  %v11302_v59 = vcombine.low %v8663_v39, %v8665_v27 }
 0x90b   :  { %9715 = vmatpush1.bf16.msra.mxu0 %v11328_v35  ;;  %v8440_v10 = vmul.f32 %v8419_v43, %v16146_v13  ;;  %v11299_v13 = vcombine.high %v8659_v45, %v8661_v32  ;;  %v8710_v35 = vunpack.c.l.s8.bf16 %v16384_v20 }
 0x90c   :  { %9807 = vmatmul.mubr.bf16.vlgmr.msra.gmra.mrb[52].mxu1 %v16178_v63  ;;  %9716 = vmatprep.subr.bf16.mxu0 %v11333_v3  ;;  %v11295_v63 = vcombine.high %v8655_v6, %v8657_v12  ;;  %v8712_v3 = vunpack.c.l.s8.bf16 %v16389_v38  ;;  %v8669_v6 = vunpack.c.h.s8.bf16 %v16224_v42  ;;  %v11344_v12 = vcombine.low %v8706_v8, %v8708_v19  ;;  %v16428_v19 = vld [vmem:[%s17095_s15 + $0x230] sm:$0xff] }
 0x90d   :  { %9816 = vmatpush1.bf16.msra.mxu1 %v16081_v0  ;;  %9847 = vmatprep.mubr.bf16.mxu1 %v16193_v21  ;;  %v8457_v0 = vrot.slane %v16134_v51, %v17172_v17  ;;  %v11336_v21 = vcombine.low %v8698_v4, %v8700_v31  ;;  %v11298_v4 = vcombine.low %v8659_v45, %v8661_v32  ;;  %v16398_v31 = vld [vmem:[%s17095_s15 + $0x210] sm:$0xff]  ;;  %v8673_v45 = vunpack.c.h.s8.bf16 %v16238_v2 }
 0x90e   :  { %9817 = vmatprep.subr.bf16.mxu1 %v11291_v25  ;;  %v8667_v25 = vunpack.c.h.s8.bf16 %v16219_v28  ;;  %v11349_v43 = vcombine.high %v8710_v35, %v8712_v3  ;;  %v16417_v28 = vld [vmem:[%s17095_s15 + $0x228] sm:$0xff]  ;;  %v11348_v32 = vcombine.low %v8710_v35, %v8712_v3  ;;  %v8679_v35 = vunpack.c.h.s8.bf16 %v16261_v36 }
 0x90f   :  { %9717 = vmatpush1.bf16.msra.mxu0 %v11332_v5  ;;  %v8478_v55 = vadd.f32 %v8457_v0, %v8440_v10  ;;  %v8681_v3 = vunpack.c.h.s8.bf16 %v16266_v9 }
 0x910   :  { %9718 = vmatprep.subr.bf16.mxu0 %v11337_v22  ;;  %v8714_v22 = vunpack.c.l.s8.bf16 %v16398_v31  ;;  %v11307_v42 = vcombine.high %v8667_v25, %v8669_v6  ;;  %v11306_v8 = vcombine.low %v8667_v25, %v8669_v6 }
 0x911   :  { %9818 = vmatpush1.bf16.msra.mxu1 %v11290_v11  ;;  %v8484_v5 = vmax.f32 %v8478_v55, 0.0  ;;  %v16412_v11 = vld [vmem:[%s17095_s15 + $0x220] sm:$0xff] }
 0x912   :  { %9819 = vmatprep.subr.bf16.mxu1 %v11295_v63  ;;  %v8671_v63 = vunpack.c.h.s8.bf16 %v16233_v48  ;;  %v8718_v10 = vunpack.c.l.s8.bf16 %v16412_v11  ;;  %v16433_v48 = vld [vmem:[%s17095_s15 + $0x238] sm:$0xff]  ;;  %v11352_v39 = vcombine.low %v8714_v22, %v8716_v34 }
 0x913   :  { %9719 = vmatpush1.bf16.msra.mxu0 %v11336_v21  ;;  %v16421_v0 = vpack.c.bf16 %v8484_v5, %v8484_v5  ;;  %v11353_v21 = vcombine.high %v8714_v22, %v8716_v34  ;;  %v8724_v55 = vunpack.c.l.s8.bf16 %v16433_v48  ;;  %v16457_v5 = vld [vmem:[%s17095_s15 + $0x250] sm:$0xff]  ;;  %v8683_v22 = vunpack.c.h.s8.bf16 %v16275_v1  ;;  %v16473_v1 = vld [vmem:[%s17095_s15 + $0x260] sm:$0xff] }
 0x914   :  { %9720 = vmatprep.subr.bf16.mxu0 %v11341_v40  ;;  %v8720_v40 = vunpack.c.l.s8.bf16 %v16417_v28  ;;  %v11311_v2 = vcombine.high %v8671_v63, %v8673_v45  ;;  %v8685_v34 = vunpack.c.h.s8.bf16 %v16280_v47  ;;  %v16478_v47 = vld [vmem:[%s17095_s15 + $0x268] sm:$0xff] }
 0x915   :  { %9820 = vmatpush1.bf16.msra.mxu1 %v11294_v60  ;;  %v8675_v60 = vunpack.c.h.s8.bf16 %v16247_v29  ;;  %v16445_v29 = vld [vmem:[%s17095_s15 + $0x240] sm:$0xff] }
 0x916   :  { %9821 = vmatprep.subr.bf16.mxu1 %v11299_v13  ;;  %v8677_v13 = vunpack.c.h.s8.bf16 %v16252_v58  ;;  %v11357_v27 = vcombine.high %v8718_v10, %v8720_v40  ;;  %v16450_v58 = vld [vmem:[%s17095_s15 + $0x248] sm:$0xff]  ;;  %v8726_v36 = vunpack.c.l.s8.bf16 %v16445_v29 }
 0x917   :  { %9721 = vmatpush1.bf16.msra.mxu0 %v11340_v44  ;;  %v8722_v44 = vunpack.c.l.s8.bf16 %v16428_v19  ;;  %v8728_v9 = vunpack.c.l.s8.bf16 %v16450_v58 }
 0x918   :  { %9722 = vmatprep.subr.bf16.mxu0 %v11345_v16  ;;  %v11310_v16 = vcombine.low %v8671_v63, %v8673_v45  ;;  %v11314_v6 = vcombine.low %v8675_v60, %v8677_v13 }
 0x919   :  { %9822 = vmatpush1.bf16.msra.mxu1 %v11298_v4  ;;  %v11315_v4 = vcombine.high %v8675_v60, %v8677_v13  ;;  %v11361_v25 = vcombine.high %v8722_v44, %v8724_v55  ;;  %v11360_v63 = vcombine.low %v8722_v44, %v8724_v55  ;;  %v11365_v45 = vcombine.high %v8726_v36, %v8728_v9 }
 0x91a   :  { %9823 = vmatprep.subr.bf16.mxu1 %v11303_v24  ;;  %v11356_v24 = vcombine.low %v8718_v10, %v8720_v40  ;;  %v11318_v10 = vcombine.low %v8679_v35, %v8681_v3  ;;  %v8689_v60 = vunpack.c.h.s8.bf16 %v16294_v15  ;;  %v11364_v13 = vcombine.low %v8726_v36, %v8728_v9 }
 0x91b   :  { %9723 = vmatpush1.bf16.msra.mxu0 %v11344_v12  ;;  %v11319_v12 = vcombine.high %v8679_v35, %v8681_v3  ;;  %v8736_v44 = vunpack.c.l.s8.bf16 %v16478_v47  ;;  %v11322_v55 = vcombine.low %v8683_v22, %v8685_v34  ;;  %v8691_v35 = vunpack.c.h.s8.bf16 %v16303_v14  ;;  %v16512_v14 = vld [vmem:[%s17095_s15 + $0x288] sm:$0xff] }
 0x91c   :  { %9733 = vmatprep.subr.bf16.mxu0 %v11349_v43  ;;  %v16462_v43 = vld [vmem:[%s17095_s15 + $0x258] sm:$0xff]  ;;  %v8693_v3 = vunpack.c.h.s8.bf16 %v16308_v41 }
 0x91d   :  { %9824 = vmatpush1.bf16.msra.mxu1 %v11302_v59  ;;  %v8711_v59 = vunpack.c.h.s8.bf16 %v16384_v20  ;;  %v8427_v20 = vrot.slane %v16128_v49, %v17173_v50 }
 0x91e   :  { %9725 = vmatmul.mubr.bf16.vlgmr.msra.gmra.mrb[36].mxu0 %v16421_v0  ;;  %9825 = vmatprep.subr.bf16.mxu1 %v11307_v42  ;;  %v8713_v42 = vunpack.c.h.s8.bf16 %v16389_v38  ;;  %v11331_v41 = vcombine.high %v8691_v35, %v8693_v3  ;;  %v8431_v38 = vrot.slane %v16128_v49, %v17174_v30  ;;  %v8715_v49 = vunpack.c.h.s8.bf16 %v16398_v31 }
 0x91f   :  { %9734 = vmatpush1.bf16.msra.mxu0 %v11348_v32  ;;  %v8730_v32 = vunpack.c.l.s8.bf16 %v16457_v5 }
 0x920   :  { %9735 = vmatprep.subr.bf16.mxu0 %v11353_v21  ;;  %v8732_v21 = vunpack.c.l.s8.bf16 %v16462_v43  ;;  %v16484_v40 = vcombine.low %v8711_v59, %v8713_v42 }
 0x921   :  { %9826 = vmatpush1.bf16.msra.mxu1 %v11306_v8  ;;  %v11323_v8 = vcombine.high %v8683_v22, %v8685_v34  ;;  %v8697_v22 = vunpack.c.h.s8.bf16 %v16322_v33 }
 0x922   :  { %9827 = vmatprep.subr.bf16.mxu1 %v11311_v2  ;;  %v8687_v2 = vunpack.c.h.s8.bf16 %v16289_v54  ;;  %v16498_v54 = vld [vmem:[%s17095_s15 + $0x278] sm:$0xff] }
 0x923   :  { %9736 = vmatpush1.bf16.msra.mxu0 %v11352_v39  ;;  %v11369_v39 = vcombine.high %v8730_v32, %v8732_v21  ;;  %v8740_v36 = vunpack.c.l.s8.bf16 %v16498_v54 }
 0x924   :  { %9737 = vmatprep.subr.bf16.mxu0 %v11357_v27  ;;  %v8734_v27 = vunpack.c.l.s8.bf16 %v16473_v1  ;;  %v11327_v15 = vcombine.high %v8687_v2, %v8689_v60  ;;  %v11326_v9 = vcombine.low %v8687_v2, %v8689_v60  ;;  %v8701_v2 = vunpack.c.h.s8.bf16 %v16336_v62 }
 0x925   :  { %9828 = vmatpush1.bf16.msra.mxu1 %v11310_v16  ;;  %v16493_v16 = vld [vmem:[%s17095_s15 + $0x270] sm:$0xff] }
 0x926   :  { %9829 = vmatprep.subr.bf16.mxu1 %v11315_v4  ;;  %v11368_v4 = vcombine.low %v8730_v32, %v8732_v21  ;;  %v11372_v34 = vcombine.low %v8734_v27, %v8736_v44  ;;  %v8744_v32 = vunpack.c.l.s8.bf16 %v16512_v14  ;;  %v11330_v21 = vcombine.low %v8691_v35, %v8693_v3 }
 0x927   :  { %9738 = vmatpush1.bf16.msra.mxu0 %v11356_v24  ;;  %v11373_v24 = vcombine.high %v8734_v27, %v8736_v44  ;;  %v8705_v35 = vunpack.c.h.s8.bf16 %v16352_v57  ;;  %v8707_v57 = vunpack.c.h.s8.bf16 %v16367_v56 }
 0x928   :  { %9739 = vmatprep.subr.bf16.mxu0 %v11361_v25  ;;  %v8738_v25 = vunpack.c.l.s8.bf16 %v16493_v16 }
 0x929   :  { %9830 = vmatpush1.bf16.msra.mxu1 %v11314_v6  ;;  %v16507_v6 = vld [vmem:[%s17095_s15 + $0x280] sm:$0xff] }
 0x92a   :  { %9831 = vmatprep.subr.bf16.mxu1 %v11319_v12  ;;  %v8695_v12 = vunpack.c.h.s8.bf16 %v16317_v52  ;;  %v16526_v52 = vld [vmem:[%s17095_s15 + $0x298] sm:$0xff]  ;;  %v11376_v60 = vcombine.low %v8738_v25, %v8740_v36 }
 0x92b   :  { %9740 = vmatpush1.bf16.msra.mxu0 %v11360_v63  ;;  %v11377_v63 = vcombine.high %v8738_v25, %v8740_v36  ;;  %v8748_v27 = vunpack.c.l.s8.bf16 %v16526_v52 }
 0x92c   :  { %9741 = vmatprep.subr.bf16.mxu0 %v11365_v45  ;;  %v8742_v45 = vunpack.c.l.s8.bf16 %v16507_v6  ;;  %v11335_v33 = vcombine.high %v8695_v12, %v8697_v22  ;;  %v11334_v44 = vcombine.low %v8695_v12, %v8697_v22  ;;  %v8709_v12 = vunpack.c.h.s8.bf16 %v16372_v61 }
 0x92d   :  { %9832 = vmatpush1.bf16.msra.mxu1 %v11318_v10  ;;  %v16521_v10 = vld [vmem:[%s17095_s15 + $0x290] sm:$0xff]  ;;  %v11351_v61 = vcombine.high %v8711_v59, %v8713_v42  ;;  %v8469_v42 = vrot.slane %v16134_v51, %v17174_v30 }
 0x92e   :  { %9833 = vmatprep.subr.bf16.mxu1 %v11323_v8  ;;  %v8699_v8 = vunpack.c.h.s8.bf16 %v16331_v53  ;;  %v8579_v53 = vld [vmem:[%s17095_s15 + $0x2a8] sm:$0xff]  ;;  %v11380_v3 = vcombine.low %v8742_v45, %v8744_v32 }
 0x92f   :  { %9742 = vmatpush1.bf16.msra.mxu0 %v11364_v13  ;;  %v11381_v13 = vcombine.high %v8742_v45, %v8744_v32  ;;  %v8752_v25 = vunpack.c.l.s8.bf16 %v8579_v53 }
 0x930   :  { %9743 = vmatprep.subr.bf16.mxu0 %v11369_v39  ;;  %v8746_v39 = vunpack.c.l.s8.bf16 %v16521_v10  ;;  %v11339_v62 = vcombine.high %v8699_v8, %v8701_v2  ;;  %v11338_v36 = vcombine.low %v8699_v8, %v8701_v2 }
 0x931   :  { %9834 = vmatpush1.bf16.msra.mxu1 %v11322_v55  ;;  %v8578_v55 = vld [vmem:[%s17095_s15 + $0x2a0] sm:$0xff] }
 0x932   :  { %9835 = vmatprep.subr.bf16.mxu1 %v11327_v15  ;;  %v8703_v15 = vunpack.c.h.s8.bf16 %v16347_v23  ;;  %v11384_v22 = vcombine.low %v8746_v39, %v8748_v27 }
 0x933   :  { %9744 = vmatpush1.bf16.msra.mxu0 %v11368_v4  ;;  %v11385_v4 = vcombine.high %v8746_v39, %v8748_v27  ;;  %v8753_v39 = vunpack.c.h.s8.bf16 %v8579_v53 }
 0x934   :  { %9745 = vmatprep.subr.bf16.mxu0 %v11373_v24  ;;  %v8750_v24 = vunpack.c.l.s8.bf16 %v8578_v55  ;;  %v11343_v23 = vcombine.high %v8703_v15, %v8705_v35  ;;  %v11342_v32 = vcombine.low %v8703_v15, %v8705_v35 }
 0x935   :  { %9836 = vmatpush1.bf16.msra.mxu1 %v11326_v9  ;;  %v8580_v9 = vld [vmem:[%s17095_s15 + $0x2b0] sm:$0xff] }
 0x936   :  { %9837 = vmatprep.subr.bf16.mxu1 %v11331_v41  ;;  %v8581_v41 = vld [vmem:[%s17095_s15 + $0x2b8] sm:$0x55] }
 0x937   :  { %9746 = vmatpush1.bf16.msra.mxu0 %v11372_v34  ;;  %v11389_v34 = vcombine.high %v8750_v24, %v8752_v25  ;;  %v8756_v45 = vunpack.c.l.s8.bf16 %v8581_v41  ;;  %v8757_v15 = vunpack.c.h.s8.bf16 %v8581_v41 }
 0x938   :  { %9747 = vmatprep.subr.bf16.mxu0 %v11377_v63  ;;  %v8754_v63 = vunpack.c.l.s8.bf16 %v8580_v9 }
 0x939   :  { %9838 = vmatpush1.bf16.msra.mxu1 %v11330_v21  ;;  %v11347_v21 = vcombine.high %v8707_v57, %v8709_v12 }
 0x93a   :  { %9839 = vmatprep.subr.bf16.mxu1 %v11335_v33  ;;  %v11388_v33 = vcombine.low %v8750_v24, %v8752_v25  ;;  %v11393_v8 = vcombine.high %v8754_v63, %v8756_v45  ;;  %v11392_v2 = vcombine.low %v8754_v63, %v8756_v45  ;;  %v9968_v45 = vld [vmem:[%s17098_s18 + $0x58] sm:$0xff] }
 0x93b   :  { %9748 = vmatpush1.bf16.msra.mxu0 %v11376_v60  ;;  %v11346_v60 = vcombine.low %v8707_v57, %v8709_v12 }
 0x93c   :  { %9749 = vmatprep.subr.bf16.mxu0 %v11381_v13  ;;  %v9640_v56 = vsel %vm9638_vm3, %v11392_v2, 0  ;;  %v8751_v13 = vunpack.c.h.s8.bf16 %v8578_v55  ;;  %v8721_v2 = vunpack.c.h.s8.bf16 %v16417_v28  ;;  %v9976_v28 = vld [vmem:[%s17098_s18 + $0x98] sm:$0xff] }
 0x93d   :  { %9840 = vmatpush1.bf16.msra.mxu1 %v11334_v44 }
 0x93e   :  { %9841 = vmatprep.subr.bf16.mxu1 %v11339_v62  ;;  %v16555_v27 = vcombine.high %v8751_v13, %v8753_v39  ;;  %v16557_v44 = vcombine.low %v8751_v13, %v8753_v39  ;;  %v8755_v62 = vunpack.c.h.s8.bf16 %v8580_v9  ;;  %v9960_v9 = vld [vmem:[%s17098_s18 + $0x18] sm:$0xff]  ;;  %v10112_v13 = vunpack.c.h.s8.bf16 %v9968_v45 }
 0x93f   :  { %9750 = vmatpush1.bf16.msra.mxu0 %v11380_v3  ;;  %v10088_v57 = vunpack.c.l.s8.bf16 %v9960_v9 }
 0x940   :  { %9751 = vmatprep.subr.bf16.mxu0 %v11385_v4  ;;  %v16559_v35 = vcombine.high %v8755_v62, %v8757_v15  ;;  %v16561_v3 = vcombine.low %v8755_v62, %v8757_v15  ;;  %v8723_v62 = vunpack.c.h.s8.bf16 %v16428_v19  ;;  %v8727_v19 = vunpack.c.h.s8.bf16 %v16445_v29 }
 0x941   :  { %9842 = vmatpush1.bf16.msra.mxu1 %v11338_v36 }
 0x942   :  { %9843 = vmatprep.subr.bf16.mxu1 %v11343_v23  ;;  %v8717_v23 = vunpack.c.h.s8.bf16 %v16403_v46  ;;  %v9967_v46 = vld [vmem:[%s17098_s18 + $0x50] sm:$0xff] }
 0x943   :  { %9752 = vmatpush1.bf16.msra.mxu0 %v11384_v22  ;;  %v10111_v15 = vunpack.c.h.s8.bf16 %v9967_v46 }
 0x944   :  { %9753 = vmatprep.subr.bf16.mxu0 %v11389_v34  ;;  %v10096_v34 = vunpack.c.h.s8.bf16 %v9960_v9  ;;  %v9983_v9 = vld [vmem:[%s17098_s18 + $0xd0] sm:$0xff] }
 0x945   :  { %9844 = vmatpush1.bf16.msra.mxu1 %v11342_v32 }
 0x946   :  { %9845 = vmatprep.subr.bf16.mxu1 %v11347_v21  ;;  %v11355_v21 = vcombine.high %v8715_v49, %v8717_v23 }
 0x947   :  { %9754 = vmatpush1.bf16.msra.mxu0 %v11388_v33 }
 0x948   :  { %11396 = vmatprep.subr.msk.bf16.mxu0 %vm9638_vm3, %v11393_v8  ;;  %v8719_v8 = vunpack.c.h.s8.bf16 %v16412_v11  ;;  %v8725_v11 = vunpack.c.h.s8.bf16 %v16433_v48  ;;  %v8729_v48 = vunpack.c.h.s8.bf16 %v16450_v58 }
 0x949   :  { %9846 = vmatpush1.bf16.msra.mxu1 %v11346_v60  ;;  %v10104_v60 = vunpack.c.l.s8.bf16 %v9968_v45  ;;  %v9991_v45 = vld [vmem:[%s17098_s18 + $0x110] sm:$0xff] }
 0x94a   :  { %10423 = vmatprep.subr.bf16.mxu1 %v10088_v57  ;;  %v11359_v39 = vcombine.high %v8719_v8, %v8721_v2  ;;  %v11366_v58 = vcombine.low %v8727_v19, %v8729_v48 }
 0x94b   :  { %9756 = vmatpush1.bf16.msra.mxu0 %v9640_v56  ;;  %v10103_v56 = vunpack.c.l.s8.bf16 %v9967_v46 }
 0x94c   :  { %9848 = vmatmul.mubr.bf16.vlgmr.msra.gmra.mrb[52].mxu1 %v16421_v0  ;;  %9856 = vmatprep.subr.bf16.mxu0 %v11351_v61  ;;  %v8465_v0 = vrot.slane %v16134_v51, %v17173_v50  ;;  %v9959_v51 = vld [vmem:[%s17098_s18 + $0x10] sm:$0xff]  ;;  %v11354_v61 = vcombine.low %v8715_v49, %v8717_v23  ;;  %v10135_v49 = vunpack.c.l.s8.bf16 %v9983_v9 }
 0x94d   :  { %v10087_v22 = vunpack.c.l.s8.bf16 %v9959_v51  ;;  %v10095_v32 = vunpack.c.h.s8.bf16 %v9959_v51 }
 0x94f   :  { %10424 = vmatpush1.bf16.msra.mxu1 %v10087_v22  ;;  %v8741_v22 = vunpack.c.h.s8.bf16 %v16498_v54  ;;  %v8745_v54 = vunpack.c.h.s8.bf16 %v16512_v14 }
 0x950   :  { %10425 = vmatprep.subr.bf16.mxu1 %v10096_v34  ;;  %v9992_v34 = vld [vmem:[%s17098_s18 + $0x118] sm:$0xff] }
 0x951   :  { %v10160_v46 = vunpack.c.h.s8.bf16 %v9992_v34 }
 0x953   :  { %10426 = vmatpush1.bf16.msra.mxu1 %v10095_v32 }
 0x954   :  { %10427 = vmatprep.subr.bf16.mxu1 %v10104_v60  ;;  %v8749_v60 = vunpack.c.h.s8.bf16 %v16526_v52 }
 0x957   :  { %10428 = vmatpush1.bf16.msra.mxu1 %v10103_v56  ;;  %v10000_v56 = vld [vmem:[%s17098_s18 + $0x158] sm:$0xff] }
 0x958   :  { %10429 = vmatprep.subr.bf16.mxu1 %v10112_v13  ;;  %v9999_v13 = vld [vmem:[%s17098_s18 + $0x150] sm:$0xff] }
 0x95b   :  { %10430 = vmatpush1.bf16.msra.mxu1 %v10111_v15 }
 0x99f   :  { %v8399_v59 = vpop.f32.mrb[48].mxu1 }
 0x9a0   :  { %v8442_v55 = vmul.f32 %v8427_v20, %v8399_v59  ;;  %v8401_v53 = vpop.f32.mrb[49].mxu1  ;;  %v11358_v20 = vcombine.low %v8719_v8, %v8721_v2  ;;  %v8747_v2 = vunpack.c.h.s8.bf16 %v16521_v10  ;;  %v10167_v10 = vunpack.c.l.s8.bf16 %v9999_v13 }
 0x9a1   :  { %v8443_v4 = vmul.f32 %v8431_v38, %v8401_v53  ;;  %v8403_v24 = vpop.f32.mrb[50].mxu1  ;;  %v9975_v38 = vld [vmem:[%s17098_s18 + $0x90] sm:$0xff]  ;;  %v11367_v53 = vcombine.high %v8727_v19, %v8729_v48  ;;  %v9646_v19 = vsel %vm9638_vm3, %v16561_v3, 0 }
 0x9a2   :  { %v8480_v25 = vadd.f32 %v8465_v0, %v8442_v55  ;;  %v8404_v36 = vpop.f32.mrb[51].mxu1  ;;  %v11363_v0 = vcombine.high %v8723_v62, %v8725_v11  ;;  %v10119_v59 = vunpack.c.l.s8.bf16 %v9975_v38  ;;  %v10128_v55 = vunpack.c.h.s8.bf16 %v9976_v28 }
 0x9a3   :  { %v8481_v41 = vadd.f32 %v8469_v42, %v8443_v4  ;;  %v11362_v42 = vcombine.low %v8723_v62, %v8725_v11  ;;  %v8731_v4 = vunpack.c.h.s8.bf16 %v16457_v5  ;;  %v8733_v24 = vunpack.c.h.s8.bf16 %v16462_v43  ;;  %v10008_v11 = vld [vmem:[%s17098_s18 + $0x198] sm:$0xff] }
 0x9a4   :  { %v8486_v12 = vmax.f32 %v8480_v25, 0.0  ;;  %v9984_v25 = vld [vmem:[%s17098_s18 + $0xd8] sm:$0xff]  ;;  %v10127_v29 = vunpack.c.h.s8.bf16 %v9975_v38  ;;  %v8735_v5 = vunpack.c.h.s8.bf16 %v16473_v1  ;;  %v8737_v43 = vunpack.c.h.s8.bf16 %v16478_v47 }
 0x9a5   :  { %v8487_v63 = vmax.f32 %v8481_v41, 0.0  ;;  %v10136_v36 = vunpack.c.l.s8.bf16 %v9984_v25  ;;  %v11371_v41 = vcombine.high %v8731_v4, %v8733_v24  ;;  %v11370_v23 = vcombine.low %v8731_v4, %v8733_v24 }
 0x9a6   :  { %v16585_v33 = vpack.c.bf16 %v8486_v12, %v8486_v12  ;;  %v10144_v57 = vunpack.c.h.s8.bf16 %v9984_v25  ;;  %v11375_v51 = vcombine.high %v8735_v5, %v8737_v43  ;;  %v8739_v12 = vunpack.c.h.s8.bf16 %v16493_v16  ;;  %v9974_v25 = vld [vmem:[%s17098_s18 + $0x88] sm:$0xff] }
 0x9a7   :  { %v8493_v31 = vpack.c.bf16 %v8487_v63, %v8487_v63  ;;  %v10143_v1 = vunpack.c.h.s8.bf16 %v9983_v9  ;;  %v11374_v47 = vcombine.low %v8735_v5, %v8737_v43  ;;  %v10152_v63 = vunpack.c.l.s8.bf16 %v9992_v34  ;;  %v9989_v34 = vld [vmem:[%s17098_s18 + $0x100] sm:$0xff] }
 0x9a8   :  { %v11379_v32 = vcombine.high %v8739_v12, %v8741_v22  ;;  %v8743_v16 = vunpack.c.h.s8.bf16 %v16507_v6  ;;  %v10159_v6 = vunpack.c.h.s8.bf16 %v9991_v45  ;;  %v11386_v52 = vcombine.low %v8747_v2, %v8749_v60 }
 0x9a9   :  { %11397 = vmatprep.mubr.msk.bf16.mxu0 %vm9634_vm4, %v8493_v31  ;;  %v10176_v62 = vunpack.c.h.s8.bf16 %v10000_v56  ;;  %v10184_v15 = vunpack.c.l.s8.bf16 %v10008_v11  ;;  %v10126_v9 = vunpack.c.h.s8.bf16 %v9974_v25 }
 0x9aa   :  { %9766 = vmatmul.mubr.bf16.vlgmr.msra.gmra.mrb[36].mxu0 %v16585_v33  ;;  %v11383_v8 = vcombine.high %v8743_v16, %v8745_v54  ;;  %v11382_v14 = vcombine.low %v8743_v16, %v8745_v54  ;;  %v9997_v16 = vld [vmem:[%s17098_s18 + $0x140] sm:$0xff]  ;;  %v10016_v54 = vld [vmem:[%s17098_s18 + $0x1d8] sm:$0xff] }
 0x9ab   :  { %9857 = vmatpush1.bf16.msra.mxu0 %v16484_v40  ;;  %11399 = vmatprep.mubr.msk.bf16.mxu0 %vm9634_vm4, %v8493_v31  ;;  %v10120_v40 = vunpack.c.l.s8.bf16 %v9976_v28  ;;  %v10151_v31 = vunpack.c.l.s8.bf16 %v9991_v45  ;;  %v10175_v28 = vunpack.c.h.s8.bf16 %v9999_v13  ;;  %v10157_v45 = vunpack.c.h.s8.bf16 %v9989_v34  ;;  %v10005_v13 = vld [vmem:[%s17098_s18 + $0x180] sm:$0xff] }
 0x9ac   :  { %9858 = vmatprep.subr.bf16.mxu0 %v11355_v21  ;;  %v11378_v21 = vcombine.low %v8739_v12, %v8741_v22 }
 0x9ad   :  { %10431 = vmatprep.subr.bf16.mxu1 %v10120_v40  ;;  %v9958_v40 = vld [vmem:[%s17098_s18 + $0x8] sm:$0xff] }
 0x9ae   :  { %10432 = vmatpush1.bf16.msra.mxu1 %v10119_v59  ;;  %v10086_v48 = vunpack.c.l.s8.bf16 %v9958_v40 }
 0x9af   :  { %9859 = vmatpush1.bf16.msra.mxu0 %v11354_v61  ;;  %10433 = vmatprep.subr.bf16.mxu1 %v10128_v55  ;;  %v10168_v61 = vunpack.c.l.s8.bf16 %v10000_v56  ;;  %v9966_v55 = vld [vmem:[%s17098_s18 + $0x48] sm:$0xff]  ;;  %v10208_v56 = vunpack.c.h.s8.bf16 %v10016_v54 }
 0x9b0   :  { %9860 = vmatprep.subr.bf16.mxu0 %v11359_v39  ;;  %v11387_v39 = vcombine.high %v8747_v2, %v8749_v60  ;;  %v10102_v3 = vunpack.c.l.s8.bf16 %v9966_v55  ;;  %v10110_v24 = vunpack.c.h.s8.bf16 %v9966_v55  ;;  %v10006_v60 = vld [vmem:[%s17098_s18 + $0x188] sm:$0xff]  ;;  %v16714_v55 = vld [vmem:[%s17096_s16] sm:$0xf] }
 0x9b2   :  { %10434 = vmatpush1.bf16.msra.mxu1 %v10127_v29 }
 0x9b3   :  { %9861 = vmatpush1.bf16.msra.mxu0 %v11358_v20  ;;  %10435 = vmatprep.subr.bf16.mxu1 %v10136_v36  ;;  %v10007_v20 = vld [vmem:[%s17098_s18 + $0x190] sm:$0xff] }
 0x9b4   :  { %9862 = vmatprep.subr.bf16.mxu0 %v11363_v0  ;;  %v10183_v38 = vunpack.c.l.s8.bf16 %v10007_v20  ;;  %v10192_v0 = vunpack.c.h.s8.bf16 %v10008_v11  ;;  %v10191_v59 = vunpack.c.h.s8.bf16 %v10007_v20  ;;  %v10014_v11 = vld [vmem:[%s17098_s18 + $0x1c8] sm:$0xff]  ;;  %v10013_v20 = vld [vmem:[%s17098_s18 + $0x1c0] sm:$0xff] }
 0x9b6   :  { %10436 = vmatpush1.bf16.msra.mxu1 %v10135_v49  ;;  %v9981_v49 = vld [vmem:[%s17098_s18 + $0xc0] sm:$0xff] }
 0x9b7   :  { %9863 = vmatpush1.bf16.msra.mxu0 %v11362_v42  ;;  %10437 = vmatprep.subr.bf16.mxu1 %v10144_v57  ;;  %v10141_v12 = vunpack.c.h.s8.bf16 %v9981_v49 }
 0x9b8   :  { %9864 = vmatprep.subr.bf16.mxu0 %v11367_v53  ;;  %v9965_v53 = vld [vmem:[%s17098_s18 + $0x40] sm:$0xff] }
 0x9b9   :  { %v10101_v4 = vunpack.c.l.s8.bf16 %v9965_v53  ;;  %v10109_v29 = vunpack.c.h.s8.bf16 %v9965_v53  ;;  %v9906_v53 = vrot.slane %v16714_v55, %v17170_v18 }
 0x9ba   :  { %10438 = vmatpush1.bf16.msra.mxu1 %v10143_v1  ;;  %v10149_v1 = vunpack.c.l.s8.bf16 %v9989_v34 }
 0x9bb   :  { %9865 = vmatpush1.bf16.msra.mxu0 %v11366_v58  ;;  %10439 = vmatprep.subr.bf16.mxu1 %v10152_v63  ;;  %v9973_v58 = vld [vmem:[%s17098_s18 + $0x80] sm:$0xff]  ;;  %v9998_v63 = vld [vmem:[%s17098_s18 + $0x148] sm:$0xff] }
 0x9bc   :  { %9866 = vmatprep.subr.bf16.mxu0 %v11371_v41  ;;  %v10117_v36 = vunpack.c.l.s8.bf16 %v9973_v58  ;;  %v9982_v41 = vld [vmem:[%s17098_s18 + $0xc8] sm:$0xff]  ;;  %v10125_v5 = vunpack.c.h.s8.bf16 %v9973_v58  ;;  %v10174_v2 = vunpack.c.h.s8.bf16 %v9998_v63 }
 0x9bd   :  { %v10134_v43 = vunpack.c.l.s8.bf16 %v9982_v41  ;;  %v10142_v57 = vunpack.c.h.s8.bf16 %v9982_v41 }
 0x9be   :  { %10440 = vmatpush1.bf16.msra.mxu1 %v10151_v31  ;;  %v10200_v31 = vunpack.c.l.s8.bf16 %v10016_v54 }
 0x9bf   :  { %9867 = vmatpush1.bf16.msra.mxu0 %v11370_v23  ;;  %10441 = vmatprep.subr.bf16.mxu1 %v10160_v46  ;;  %v10133_v23 = vunpack.c.l.s8.bf16 %v9981_v49  ;;  %v10165_v46 = vunpack.c.l.s8.bf16 %v9997_v16  ;;  %v10021_v49 = vld [vmem:[%s17098_s18 + $0x200] sm:$0xff] }
 0x9c0   :  { %9868 = vmatprep.subr.bf16.mxu0 %v11375_v51  ;;  %v9990_v51 = vld [vmem:[%s17098_s18 + $0x108] sm:$0xff] }
 0x9c1   :  { %v10150_v22 = vunpack.c.l.s8.bf16 %v9990_v51 }
 0x9c2   :  { %10442 = vmatpush1.bf16.msra.mxu1 %v10159_v6  ;;  %v10173_v6 = vunpack.c.h.s8.bf16 %v9997_v16 }
 0x9c3   :  { %9869 = vmatpush1.bf16.msra.mxu0 %v11374_v47  ;;  %10443 = vmatprep.subr.bf16.mxu1 %v10168_v61  ;;  %v10158_v47 = vunpack.c.h.s8.bf16 %v9990_v51  ;;  %v10182_v61 = vunpack.c.l.s8.bf16 %v10006_v60 }
 0x9c4   :  { %9870 = vmatprep.subr.bf16.mxu0 %v11379_v32  ;;  %v10166_v32 = vunpack.c.l.s8.bf16 %v9998_v63  ;;  %v10030_v63 = vld [vmem:[%s17098_s18 + $0x248] sm:$0xff] }
 0x9c5   :  { %v10230_v54 = vunpack.c.l.s8.bf16 %v10030_v63 }
 0x9c6   :  { %10444 = vmatpush1.bf16.msra.mxu1 %v10167_v10 }
 0x9c7   :  { %9871 = vmatpush1.bf16.msra.mxu0 %v11378_v21  ;;  %10445 = vmatprep.subr.bf16.mxu1 %v10176_v62  ;;  %v10015_v21 = vld [vmem:[%s17098_s18 + $0x1d0] sm:$0xff]  ;;  %v10190_v62 = vunpack.c.h.s8.bf16 %v10006_v60  ;;  %v10238_v60 = vunpack.c.h.s8.bf16 %v10030_v63 }
 0x9c8   :  { %9872 = vmatprep.subr.bf16.mxu0 %v11383_v8  ;;  %v10199_v8 = vunpack.c.l.s8.bf16 %v10015_v21 }
 0x9ca   :  { %10446 = vmatpush1.bf16.msra.mxu1 %v10175_v28  ;;  %v10189_v28 = vunpack.c.h.s8.bf16 %v10005_v13 }
 0x9cb   :  { %9873 = vmatpush1.bf16.msra.mxu0 %v11382_v14  ;;  %10447 = vmatprep.subr.bf16.mxu1 %v10184_v15  ;;  %v10207_v14 = vunpack.c.h.s8.bf16 %v10015_v21  ;;  %v10198_v15 = vunpack.c.l.s8.bf16 %v10014_v11  ;;  %v10029_v21 = vld [vmem:[%s17098_s18 + $0x240] sm:$0xff] }
 0x9cc   :  { %9874 = vmatprep.subr.bf16.mxu0 %v11387_v39  ;;  %v16695_v39 = vld [vmem:[%s17098_s18 + $0x218] sm:$0xff] }
 0x9cd   :  { %v10216_v10 = vunpack.c.l.s8.bf16 %v16695_v39 }
 0x9ce   :  { %10448 = vmatpush1.bf16.msra.mxu1 %v10183_v38  ;;  %v10206_v38 = vunpack.c.h.s8.bf16 %v10014_v11 }
 0x9cf   :  { %9875 = vmatpush1.bf16.msra.mxu0 %v11386_v52  ;;  %10449 = vmatprep.subr.bf16.mxu1 %v10192_v0  ;;  %v10181_v52 = vunpack.c.l.s8.bf16 %v10005_v13  ;;  %v10022_v0 = vld [vmem:[%s17098_s18 + $0x208] sm:$0xff] }
 0x9d0   :  { %9876 = vmatprep.subr.bf16.mxu0 %v16555_v27  ;;  %v9957_v27 = vld [vmem:[%s17098_s18] sm:$0xff] }
 0x9d1   :  { %v10085_v42 = vunpack.c.l.s8.bf16 %v9957_v27 }
 0x9d2   :  { %10450 = vmatpush1.bf16.msra.mxu1 %v10191_v59 }
 0x9d3   :  { %9877 = vmatpush1.bf16.msra.mxu0 %v16557_v44  ;;  %v10094_v44 = vunpack.c.h.s8.bf16 %v9958_v40  ;;  %10451 = vmatprep.subr.bf16.mxu1 %v10200_v31  ;;  %v10197_v40 = vunpack.c.l.s8.bf16 %v10013_v20 }
 0x9d4   :  { %11398 = vmatprep.subr.msk.bf16.mxu0 %vm9638_vm3, %v16559_v35  ;;  %v10093_v35 = vunpack.c.h.s8.bf16 %v9957_v27 }
 0x9d6   :  { %10452 = vmatpush1.bf16.msra.mxu1 %v10199_v8  ;;  %v10229_v8 = vunpack.c.l.s8.bf16 %v10029_v21 }
 0x9d7   :  { %9879 = vmatpush1.bf16.msra.mxu0 %v9646_v19  ;;  %10453 = vmatprep.subr.bf16.mxu1 %v10208_v56  ;;  %v10205_v19 = vunpack.c.h.s8.bf16 %v10013_v20 }
 0x9d8   :  { %10341 = vmatprep.subr.bf16.mxu0 %v10086_v48  ;;  %v10214_v48 = vunpack.c.l.s8.bf16 %v10022_v0 }
 0x9da   :  { %9889 = vmatmul.mubr.bf16.vlgmr.msra.gmra.mrb[40].mxu0 %v16585_v33  ;;  %v10118_v33 = vunpack.c.l.s8.bf16 %v9974_v25  ;;  %10454 = vmatpush1.bf16.msra.mxu1 %v10207_v14  ;;  %v10040_v14 = vld [vmem:[%s17098_s18 + $0x298] sm:$0xff] }
 0x9db   :  { %10342 = vmatpush1.bf16.msra.mxu0 %v10085_v42  ;;  %10464 = vmatprep.subr.bf16.mxu1 %v10216_v10  ;;  %v10248_v10 = vunpack.c.l.s8.bf16 %v10040_v14  ;;  %v10256_v20 = vunpack.c.h.s8.bf16 %v10040_v14 }
 0x9dc   :  { %10343 = vmatprep.subr.bf16.mxu0 %v10094_v44 }
 0x9df   :  { %10344 = vmatpush1.bf16.msra.mxu0 %v10093_v35  ;;  %v16719_v35 = vld [vmem:[%s17097_s17] sm:$0xf] }
 0x9e0   :  { %10345 = vmatprep.subr.bf16.mxu0 %v10102_v3  ;;  %v9902_v3 = vrot.slane %v16714_v55, %v17169_v7  ;;  %v9932_v25 = vrot.slane %v16719_v35, %v17170_v18 }
 0x9e3   :  { %10346 = vmatpush1.bf16.msra.mxu0 %v10101_v4  ;;  %v9928_v4 = vrot.slane %v16719_v35, %v17169_v7 }
 0x9e4   :  { %10347 = vmatprep.subr.bf16.mxu0 %v10110_v24 }
 0x9e7   :  { %10348 = vmatpush1.bf16.msra.mxu0 %v10109_v29 }
 0x9e8   :  { %10349 = vmatprep.subr.bf16.mxu0 %v10118_v33 }
 0x9eb   :  { %10350 = vmatpush1.bf16.msra.mxu0 %v10117_v36 }
 0x9ec   :  { %10351 = vmatprep.subr.bf16.mxu0 %v10126_v9 }
 0x9ef   :  { %10352 = vmatpush1.bf16.msra.mxu0 %v10125_v5 }
 0x9f0   :  { %10353 = vmatprep.subr.bf16.mxu0 %v10134_v43 }
 0x9f3   :  { %10354 = vmatpush1.bf16.msra.mxu0 %v10133_v23  ;;  %v10023_v23 = vld [vmem:[%s17098_s18 + $0x210] sm:$0xff] }
 0x9f4   :  { %10355 = vmatprep.subr.bf16.mxu0 %v10142_v57  ;;  %v10223_v16 = vunpack.c.h.s8.bf16 %v10023_v23 }
 0x9f7   :  { %10356 = vmatpush1.bf16.msra.mxu0 %v10141_v12  ;;  %v10213_v12 = vunpack.c.l.s8.bf16 %v10021_v49 }
 0x9f8   :  { %10357 = vmatprep.subr.bf16.mxu0 %v10150_v22  ;;  %v10215_v22 = vunpack.c.l.s8.bf16 %v10023_v23 }
 0x9fb   :  { %10358 = vmatpush1.bf16.msra.mxu0 %v10149_v1  ;;  %v10222_v1 = vunpack.c.h.s8.bf16 %v10022_v0 }
 0x9fc   :  { %10359 = vmatprep.subr.bf16.mxu0 %v10158_v47  ;;  %v10224_v47 = vunpack.c.h.s8.bf16 %v16695_v39 }
 0x9ff   :  { %10360 = vmatpush1.bf16.msra.mxu0 %v10157_v45  ;;  %v10032_v45 = vld [vmem:[%s17098_s18 + $0x258] sm:$0xff] }
 0xa00   :  { %10361 = vmatprep.subr.bf16.mxu0 %v10166_v32  ;;  %v10221_v32 = vunpack.c.h.s8.bf16 %v10021_v49  ;;  %v10232_v31 = vunpack.c.l.s8.bf16 %v10032_v45  ;;  %v10240_v56 = vunpack.c.h.s8.bf16 %v10032_v45 }
 0xa03   :  { %10362 = vmatpush1.bf16.msra.mxu0 %v10165_v46  ;;  %v10031_v46 = vld [vmem:[%s17098_s18 + $0x250] sm:$0xff] }
 0xa04   :  { %10363 = vmatprep.subr.bf16.mxu0 %v10174_v2  ;;  %v10231_v2 = vunpack.c.l.s8.bf16 %v10031_v46  ;;  %v10239_v13 = vunpack.c.h.s8.bf16 %v10031_v46  ;;  %v9914_v46 = vrot.slane %v16714_v55, %v17171_v37 }
 0xa07   :  { %10364 = vmatpush1.bf16.msra.mxu0 %v10173_v6  ;;  %v10038_v6 = vld [vmem:[%s17098_s18 + $0x288] sm:$0xff] }
 0xa08   :  { %10365 = vmatprep.subr.bf16.mxu0 %v10182_v61  ;;  %v10237_v61 = vunpack.c.h.s8.bf16 %v10029_v21  ;;  %v10246_v39 = vunpack.c.l.s8.bf16 %v10038_v6 }
 0xa0b   :  { %10366 = vmatpush1.bf16.msra.mxu0 %v10181_v52  ;;  %v10037_v52 = vld [vmem:[%s17098_s18 + $0x280] sm:$0xff] }
 0xa0c   :  { %10367 = vmatprep.subr.bf16.mxu0 %v10190_v62  ;;  %v10039_v62 = vld [vmem:[%s17098_s18 + $0x290] sm:$0xff]  ;;  %v10245_v11 = vunpack.c.l.s8.bf16 %v10037_v52  ;;  %v10253_v0 = vunpack.c.h.s8.bf16 %v10037_v52 }
 0xa0f   :  { %10368 = vmatpush1.bf16.msra.mxu0 %v10189_v28  ;;  %v10247_v28 = vunpack.c.l.s8.bf16 %v10039_v62 }
 0xa10   :  { %10369 = vmatprep.subr.bf16.mxu0 %v10198_v15  ;;  %v10254_v15 = vunpack.c.h.s8.bf16 %v10038_v6 }
 0xa13   :  { %10370 = vmatpush1.bf16.msra.mxu0 %v10197_v40  ;;  %v10046_v40 = vld [vmem:[%s17098_s18 + $0x2c8] sm:$0xff] }
 0xa14   :  { %10371 = vmatprep.subr.bf16.mxu0 %v10206_v38  ;;  %v10048_v38 = vld [vmem:[%s17098_s18 + $0x2d8] sm:$0xff] }
 0xa17   :  { %10372 = vmatpush1.bf16.msra.mxu0 %v10205_v19  ;;  %v10255_v19 = vunpack.c.h.s8.bf16 %v10039_v62 }
 0xa18   :  { %10382 = vmatprep.subr.bf16.mxu0 %v10214_v48  ;;  %v10262_v48 = vunpack.c.l.s8.bf16 %v10046_v40 }
 0xa1f   :  { %v16707_v27 = vpop.f32.mrb[52].mxu1 }
 0xa20   :  { %v16709_v59 = vpop.f32.mrb[53].mxu1 }
 0xa21   :  { %v9853_v42 = vpop.f32.mrb[54].mxu1 }
 0xa22   :  { %v9854_v44 = vpop.f32.mrb[55].mxu1  ;;  %v10264_v42 = vunpack.c.l.s8.bf16 %v10048_v38 }
 0xa23   :  { %v10045_v44 = vld [vmem:[%s17098_s18 + $0x2c0] sm:$0xff] }
 0xa7d   :  { %v9767_v24 = vpop.f32.mrb[36].mxu0 }
 0xa7e   :  { %v9919_v29 = vmul.f32 %v9902_v3, %v9767_v24  ;;  %v9769_v33 = vpop.f32.mrb[37].mxu0  ;;  %v10047_v3 = vld [vmem:[%s17098_s18 + $0x2d0] sm:$0xff]  ;;  %v10270_v24 = vunpack.c.h.s8.bf16 %v10046_v40  ;;  %v10069_v40 = vld [vmem:[%s17098_s18 + $0x380] sm:$0xff] }
 0xa7f   :  { %v9920_v58 = vmul.f32 %v9906_v53, %v9769_v33  ;;  %v9771_v36 = vpop.f32.mrb[38].mxu0  ;;  %v10261_v53 = vunpack.c.l.s8.bf16 %v10045_v44  ;;  %v10056_v33 = vld [vmem:[%s17098_s18 + $0x318] sm:$0xff] }
 0xa80   :  { %v9945_v9 = vadd.f32 %v9928_v4, %v9919_v29  ;;  %v9772_v41 = vpop.f32.mrb[39].mxu0  ;;  %v10263_v4 = vunpack.c.l.s8.bf16 %v10047_v3  ;;  %v10054_v29 = vld [vmem:[%s17098_s18 + $0x308] sm:$0xff]  ;;  %v10271_v36 = vunpack.c.h.s8.bf16 %v10047_v3 }
 0xa81   :  { %v9946_v5 = vadd.f32 %v9932_v25, %v9920_v58  ;;  %v10272_v25 = vunpack.c.h.s8.bf16 %v10048_v38  ;;  %v10269_v58 = vunpack.c.h.s8.bf16 %v10045_v44  ;;  %v10280_v41 = vunpack.c.l.s8.bf16 %v10056_v33 }
 0xa82   :  { %v9949_v43 = vmax.f32 %v9945_v9, 0.0  ;;  %v10278_v9 = vunpack.c.l.s8.bf16 %v10054_v29 }
 0xa83   :  { %v9950_v57 = vmax.f32 %v9946_v5, 0.0  ;;  %v10053_v5 = vld [vmem:[%s17098_s18 + $0x300] sm:$0xff] }
 0xa84   :  { %v16737_v34 = vpack.c.bf16 %v9949_v43, %v9949_v43  ;;  %v10055_v43 = vld [vmem:[%s17098_s18 + $0x310] sm:$0xff]  ;;  %v10277_v49 = vunpack.c.l.s8.bf16 %v10053_v5 }
 0xa85   :  { %v16735_v51 = vpack.c.bf16 %v9950_v57, %v9950_v57  ;;  %v10279_v23 = vunpack.c.l.s8.bf16 %v10055_v43  ;;  %v10286_v57 = vunpack.c.h.s8.bf16 %v10054_v29  ;;  %v10287_v63 = vunpack.c.h.s8.bf16 %v10055_v43 }
 0xa87   :  { %10373 = vmatprep.mubr.bf16.mxu0 %v16735_v51  ;;  %10455 = vmatprep.mubr.bf16.mxu1 %v16735_v51 }
 0xa88   :  { %10374 = vmatmul.mubr.bf16.vlgmr.msra.gmra.mrb[44].mxu0 %v16737_v34  ;;  %10456 = vmatmul.mubr.bf16.vlgmr.msra.gmra.mrb[56].mxu1 %v16737_v34 }
 0xa89   :  { %10383 = vmatpush1.bf16.msra.mxu0 %v10213_v12  ;;  %10465 = vmatpush1.bf16.msra.mxu1 %v10215_v22  ;;  %v10288_v12 = vunpack.c.h.s8.bf16 %v10056_v33  ;;  %v10062_v22 = vld [vmem:[%s17098_s18 + $0x348] sm:$0xff] }
 0xa8a   :  { %10384 = vmatprep.subr.bf16.mxu0 %v10222_v1  ;;  %10466 = vmatprep.subr.bf16.mxu1 %v10224_v47  ;;  %v10064_v1 = vld [vmem:[%s17098_s18 + $0x358] sm:$0xff]  ;;  %v10285_v47 = vunpack.c.h.s8.bf16 %v10053_v5  ;;  %v10294_v45 = vunpack.c.l.s8.bf16 %v10062_v22  ;;  %v10302_v14 = vunpack.c.h.s8.bf16 %v10062_v22 }
 0xa8d   :  { %10385 = vmatpush1.bf16.msra.mxu0 %v10221_v32  ;;  %10467 = vmatpush1.bf16.msra.mxu1 %v10223_v16  ;;  %v10296_v32 = vunpack.c.l.s8.bf16 %v10064_v1  ;;  %v10061_v16 = vld [vmem:[%s17098_s18 + $0x340] sm:$0xff] }
 0xa8e   :  { %10386 = vmatprep.subr.bf16.mxu0 %v10230_v54  ;;  %10468 = vmatprep.subr.bf16.mxu1 %v10232_v31  ;;  %v10063_v54 = vld [vmem:[%s17098_s18 + $0x350] sm:$0xff]  ;;  %v9910_v31 = vrot.slane %v16714_v55, %v17172_v17  ;;  %v10070_v55 = vld [vmem:[%s17098_s18 + $0x388] sm:$0xff] }
 0xa8f   :  { %v10318_v3 = vunpack.c.h.s8.bf16 %v10070_v55 }
 0xa91   :  { %10387 = vmatpush1.bf16.msra.mxu0 %v10229_v8  ;;  %10469 = vmatpush1.bf16.msra.mxu1 %v10231_v2  ;;  %v10293_v8 = vunpack.c.l.s8.bf16 %v10061_v16  ;;  %v10295_v2 = vunpack.c.l.s8.bf16 %v10063_v54 }
 0xa92   :  { %10388 = vmatprep.subr.bf16.mxu0 %v10238_v60  ;;  %10470 = vmatprep.subr.bf16.mxu1 %v10240_v56  ;;  %v9936_v56 = vrot.slane %v16719_v35, %v17172_v17 }
 0xa95   :  { %10389 = vmatpush1.bf16.msra.mxu0 %v10237_v61  ;;  %10471 = vmatpush1.bf16.msra.mxu1 %v10239_v13  ;;  %v10304_v61 = vunpack.c.h.s8.bf16 %v10064_v1 }
 0xa96   :  { %10390 = vmatprep.subr.bf16.mxu0 %v10246_v39  ;;  %10472 = vmatprep.subr.bf16.mxu1 %v10248_v10  ;;  %v9940_v39 = vrot.slane %v16719_v35, %v17171_v37  ;;  %v10310_v35 = vunpack.c.l.s8.bf16 %v10070_v55 }
 0xa99   :  { %10391 = vmatpush1.bf16.msra.mxu0 %v10245_v11  ;;  %10473 = vmatpush1.bf16.msra.mxu1 %v10247_v28  ;;  %v10301_v28 = vunpack.c.h.s8.bf16 %v10061_v16 }
 0xa9a   :  { %10392 = vmatprep.subr.bf16.mxu0 %v10254_v15  ;;  %10474 = vmatprep.subr.bf16.mxu1 %v10256_v20  ;;  %v10303_v15 = vunpack.c.h.s8.bf16 %v10063_v54 }
 0xa9d   :  { %10393 = vmatpush1.bf16.msra.mxu0 %v10253_v0  ;;  %10475 = vmatpush1.bf16.msra.mxu1 %v10255_v19  ;;  %v10071_v0 = vld [vmem:[%s17098_s18 + $0x390] sm:$0xff] }
 0xa9e   :  { %10394 = vmatprep.subr.bf16.mxu0 %v10262_v48  ;;  %10476 = vmatprep.subr.bf16.mxu1 %v10264_v42  ;;  %v10309_v48 = vunpack.c.l.s8.bf16 %v10069_v40  ;;  %v10311_v42 = vunpack.c.l.s8.bf16 %v10071_v0  ;;  %v10319_v29 = vunpack.c.h.s8.bf16 %v10071_v0 }
 0xaa1   :  { %10395 = vmatpush1.bf16.msra.mxu0 %v10261_v53  ;;  %10477 = vmatpush1.bf16.msra.mxu1 %v10263_v4  ;;  %v10078_v4 = vld [vmem:[%s17098_s18 + $0x3c8] sm:$0xff] }
 0xaa2   :  { %10396 = vmatprep.subr.bf16.mxu0 %v10270_v24  ;;  %10478 = vmatprep.subr.bf16.mxu1 %v10272_v25  ;;  %v10080_v24 = vld [vmem:[%s17098_s18 + $0x3d8] sm:$0xff]  ;;  %v10317_v25 = vunpack.c.h.s8.bf16 %v10069_v40  ;;  %v10326_v33 = vunpack.c.l.s8.bf16 %v10078_v4  ;;  %v10334_v43 = vunpack.c.h.s8.bf16 %v10078_v4  ;;  %v9985_v4 = vld [vmem:[%s17098_s18 + $0xe0] sm:$0xff] }
 0xaa5   :  { %10397 = vmatpush1.bf16.msra.mxu0 %v10269_v58  ;;  %10479 = vmatpush1.bf16.msra.mxu1 %v10271_v36  ;;  %v10077_v58 = vld [vmem:[%s17098_s18 + $0x3c0] sm:$0xff]  ;;  %v10328_v36 = vunpack.c.l.s8.bf16 %v10080_v24 }
 0xaa6   :  { %10398 = vmatprep.subr.bf16.mxu0 %v10278_v9  ;;  %10480 = vmatprep.subr.bf16.mxu1 %v10280_v41  ;;  %v10079_v9 = vld [vmem:[%s17098_s18 + $0x3d0] sm:$0xff]  ;;  %v10325_v41 = vunpack.c.l.s8.bf16 %v10077_v58 }
 0xaa7   :  { %v10327_v5 = vunpack.c.l.s8.bf16 %v10079_v9  ;;  %v10335_v1 = vunpack.c.h.s8.bf16 %v10079_v9  ;;  %v9994_v9 = vld [vmem:[%s17098_s18 + $0x128] sm:$0xff] }
 0xaa9   :  { %10399 = vmatpush1.bf16.msra.mxu0 %v10277_v49  ;;  %10481 = vmatpush1.bf16.msra.mxu1 %v10279_v23  ;;  %v10336_v49 = vunpack.c.h.s8.bf16 %v10080_v24  ;;  %v9962_v23 = vld [vmem:[%s17098_s18 + $0x28] sm:$0xff] }
 0xaaa   :  { %10400 = vmatprep.subr.bf16.mxu0 %v10286_v57  ;;  %10482 = vmatprep.subr.bf16.mxu1 %v10288_v12  ;;  %v9964_v57 = vld [vmem:[%s17098_s18 + $0x38] sm:$0xff]  ;;  %v10333_v12 = vunpack.c.h.s8.bf16 %v10077_v58 }
 0xaad   :  { %v9890_v21 = vpop.f32.mrb[40].mxu0  ;;  %10401 = vmatpush1.bf16.msra.mxu0 %v10285_v47  ;;  %10483 = vmatpush1.bf16.msra.mxu1 %v10287_v63  ;;  %v10090_v47 = vunpack.c.l.s8.bf16 %v9962_v23  ;;  %v9961_v63 = vld [vmem:[%s17098_s18 + $0x20] sm:$0xff] }
 0xaae   :  { %v11466_v60 = vadd.f32 %v9890_v21, %v16707_v27  ;;  %v9892_v6 = vpop.f32.mrb[41].mxu0  ;;  %10402 = vmatprep.subr.bf16.mxu0 %v10294_v45  ;;  %10484 = vmatprep.subr.bf16.mxu1 %v10296_v32  ;;  %v10072_v27 = vld [vmem:[%s17098_s18 + $0x398] sm:$0xff]  ;;  %v10092_v45 = vunpack.c.l.s8.bf16 %v9964_v57  ;;  %v9963_v32 = vld [vmem:[%s17098_s18 + $0x30] sm:$0xff]  ;;  %v10089_v16 = vunpack.c.l.s8.bf16 %v9961_v63  ;;  %v10098_v21 = vunpack.c.h.s8.bf16 %v9962_v23  ;;  %v9993_v23 = vld [vmem:[%s17098_s18 + $0x120] sm:$0xff] }
 0xaaf   :  { %v11467_v13 = vadd.f32 %v9892_v6, %v16709_v59  ;;  %v9894_v10 = vpop.f32.mrb[42].mxu0  ;;  %v10312_v20 = vunpack.c.l.s8.bf16 %v10072_v27  ;;  %v10320_v53 = vunpack.c.h.s8.bf16 %v10072_v27 }
 0xab0   :  { %v9921_v52 = vmul.f32 %v11466_v60, %v9910_v31  ;;  %v9895_v62 = vpop.f32.mrb[43].mxu0  ;;  %v10091_v31 = vunpack.c.l.s8.bf16 %v9963_v32  ;;  %v10097_v60 = vunpack.c.h.s8.bf16 %v9961_v63 }
 0xab1   :  { %v9922_v11 = vmul.f32 %v11467_v13, %v9914_v46  ;;  %10403 = vmatpush1.bf16.msra.mxu0 %v10293_v8  ;;  %10485 = vmatpush1.bf16.msra.mxu1 %v10295_v2  ;;  %v9970_v46 = vld [vmem:[%s17098_s18 + $0x68] sm:$0xff]  ;;  %v10100_v8 = vunpack.c.h.s8.bf16 %v9964_v57  ;;  %v9972_v2 = vld [vmem:[%s17098_s18 + $0x78] sm:$0xff]  ;;  %v9971_v13 = vld [vmem:[%s17098_s18 + $0x70] sm:$0xff] }
 0xab2   :  { %v9947_v59 = vadd.f32 %v9936_v56, %v9921_v52  ;;  %10404 = vmatprep.subr.bf16.mxu0 %v10302_v14  ;;  %10486 = vmatprep.subr.bf16.mxu1 %v10304_v61  ;;  %v10099_v56 = vunpack.c.h.s8.bf16 %v9963_v32  ;;  %v10106_v6 = vunpack.c.l.s8.bf16 %v9970_v46  ;;  %v9969_v14 = vld [vmem:[%s17098_s18 + $0x60] sm:$0xff]  ;;  %v10108_v61 = vunpack.c.l.s8.bf16 %v9972_v2  ;;  %v9978_v52 = vld [vmem:[%s17098_s18 + $0xa8] sm:$0xff]  ;;  %v10004_v32 = vld [vmem:[%s17098_s18 + $0x178] sm:$0xff] }
 0xab3   :  { %v9948_v38 = vadd.f32 %v9940_v39, %v9922_v11  ;;  %v10105_v39 = vunpack.c.l.s8.bf16 %v9969_v14  ;;  %v10107_v10 = vunpack.c.l.s8.bf16 %v9971_v13  ;;  %v10114_v55 = vunpack.c.h.s8.bf16 %v9970_v46  ;;  %v10001_v46 = vld [vmem:[%s17098_s18 + $0x160] sm:$0xff] }
 0xab4   :  { %v9951_v22 = vmax.f32 %v9947_v59, 0.0  ;;  %v10116_v27 = vunpack.c.h.s8.bf16 %v9972_v2  ;;  %v10113_v62 = vunpack.c.h.s8.bf16 %v9969_v14  ;;  %v10115_v11 = vunpack.c.h.s8.bf16 %v9971_v13  ;;  %v10003_v2 = vld [vmem:[%s17098_s18 + $0x170] sm:$0xff]  ;;  %v10012_v13 = vld [vmem:[%s17098_s18 + $0x1b8] sm:$0xff] }
 0xab5   :  { %v9952_v19 = vmax.f32 %v9948_v38, 0.0  ;;  %10405 = vmatpush1.bf16.msra.mxu0 %v10301_v28  ;;  %10487 = vmatpush1.bf16.msra.mxu1 %v10303_v15  ;;  %v10122_v28 = vunpack.c.l.s8.bf16 %v9978_v52  ;;  %v9977_v15 = vld [vmem:[%s17098_s18 + $0xa0] sm:$0xff]  ;;  %v10130_v38 = vunpack.c.h.s8.bf16 %v9978_v52  ;;  %v10180_v14 = vunpack.c.h.s8.bf16 %v10004_v32 }
 0xab6   :  { %10406 = vmatprep.subr.bf16.mxu0 %v10310_v35  ;;  %10488 = vmatprep.subr.bf16.mxu1 %v10312_v20  ;;  %v16854_v54 = vpack.c.bf16 %v9951_v22, %v9951_v22  ;;  %v9979_v35 = vld [vmem:[%s17098_s18 + $0xb0] sm:$0xff]  ;;  %v10121_v20 = vunpack.c.l.s8.bf16 %v9977_v15  ;;  %v10153_v22 = vunpack.c.l.s8.bf16 %v9993_v23  ;;  %v10188_v52 = vunpack.c.l.s8.bf16 %v10012_v13 }
 0xab7   :  { %v16826_v44 = vpack.c.bf16 %v9952_v19, %v9952_v19  ;;  %v10123_v40 = vunpack.c.l.s8.bf16 %v9979_v35  ;;  %v9986_v19 = vld [vmem:[%s17098_s18 + $0xe8] sm:$0xff] }
 0xab8   :  { %v10146_v58 = vunpack.c.h.s8.bf16 %v9986_v19 }
 0xab9   :  { %10407 = vmatpush1.bf16.msra.mxu0 %v10309_v48  ;;  %10414 = vmatprep.mubr.bf16.mxu0 %v16826_v44  ;;  %v9988_v48 = vld [vmem:[%s17098_s18 + $0xf8] sm:$0xff] }
 0xaba   :  { %10489 = vmatpush1.bf16.msra.mxu1 %v10311_v42  ;;  %10496 = vmatprep.mubr.bf16.mxu1 %v16826_v44  ;;  %v10129_v42 = vunpack.c.h.s8.bf16 %v9977_v15  ;;  %v10140_v24 = vunpack.c.l.s8.bf16 %v9988_v48  ;;  %v10196_v15 = vunpack.c.h.s8.bf16 %v10012_v13 }
 0xabb   :  { %10408 = vmatprep.subr.bf16.mxu0 %v10318_v3  ;;  %10490 = vmatprep.subr.bf16.mxu1 %v10320_v53  ;;  %v10131_v3 = vunpack.c.h.s8.bf16 %v9979_v35  ;;  %v10138_v53 = vunpack.c.l.s8.bf16 %v9986_v19  ;;  %v10020_v35 = vld [vmem:[%s17098_s18 + $0x1f8] sm:$0xff] }
 0xabc   :  { %v10204_v19 = vunpack.c.l.s8.bf16 %v10020_v35 }
 0xabd   :  { %10409 = vmatpush1.bf16.msra.mxu0 %v10317_v25  ;;  %v9987_v25 = vld [vmem:[%s17098_s18 + $0xf0] sm:$0xff] }
 0xabe   :  { %10491 = vmatpush1.bf16.msra.mxu1 %v10319_v29  ;;  %10410 = vmatprep.subr.bf16.mxu0 %v10326_v33  ;;  %v10137_v29 = vunpack.c.l.s8.bf16 %v9985_v4  ;;  %v10139_v33 = vunpack.c.l.s8.bf16 %v9987_v25 }
 0xabf   :  { %10492 = vmatprep.subr.bf16.mxu1 %v10328_v36  ;;  %v10148_v36 = vunpack.c.h.s8.bf16 %v9988_v48  ;;  %v10019_v48 = vld [vmem:[%s17098_s18 + $0x1f0] sm:$0xff] }
 0xac1   :  { %10411 = vmatpush1.bf16.msra.mxu0 %v10325_v41  ;;  %v9996_v41 = vld [vmem:[%s17098_s18 + $0x138] sm:$0xff] }
 0xac2   :  { %10493 = vmatpush1.bf16.msra.mxu1 %v10327_v5  ;;  %10412 = vmatprep.subr.bf16.mxu0 %v10334_v43  ;;  %v10145_v5 = vunpack.c.h.s8.bf16 %v9985_v4  ;;  %v10147_v43 = vunpack.c.h.s8.bf16 %v9987_v25  ;;  %v10156_v57 = vunpack.c.l.s8.bf16 %v9996_v41  ;;  %v10164_v63 = vunpack.c.h.s8.bf16 %v9996_v41  ;;  %v10028_v25 = vld [vmem:[%s17098_s18 + $0x238] sm:$0xff]  ;;  %v10027_v41 = vld [vmem:[%s17098_s18 + $0x230] sm:$0xff] }
 0xac3   :  { %10494 = vmatprep.subr.bf16.mxu1 %v10336_v49  ;;  %v10154_v49 = vunpack.c.l.s8.bf16 %v9994_v9  ;;  %v10212_v4 = vunpack.c.h.s8.bf16 %v10020_v35 }
 0xac5   :  { %10413 = vmatpush1.bf16.msra.mxu0 %v10333_v12  ;;  %v9995_v12 = vld [vmem:[%s17098_s18 + $0x130] sm:$0xff] }
 0xac6   :  { %10495 = vmatpush1.bf16.msra.mxu1 %v10335_v1  ;;  %10505 = vmatprep.subr.bf16.mxu0 %v10090_v47  ;;  %v10155_v1 = vunpack.c.l.s8.bf16 %v9995_v12  ;;  %v10162_v47 = vunpack.c.h.s8.bf16 %v9994_v9  ;;  %v10220_v9 = vunpack.c.l.s8.bf16 %v10028_v25 }
 0xac7   :  { %10587 = vmatprep.subr.bf16.mxu1 %v10092_v45  ;;  %v10002_v45 = vld [vmem:[%s17098_s18 + $0x168] sm:$0xff] }
 0xac8   :  { %10415 = vmatmul.mubr.bf16.vlgmr.msra.gmra.mrb[44].mxu0 %v16854_v54 }
 0xac9   :  { %10497 = vmatmul.mubr.bf16.vlgmr.msra.gmra.mrb[56].mxu1 %v16854_v54  ;;  %10506 = vmatpush1.bf16.msra.mxu0 %v10089_v16  ;;  %v10161_v16 = vunpack.c.h.s8.bf16 %v9993_v23  ;;  %v10034_v23 = vld [vmem:[%s17098_s18 + $0x268] sm:$0xff] }
 0xaca   :  { %10537 = vmatprep.mubr.bf16.mxu0 %v16735_v51  ;;  %10588 = vmatpush1.bf16.msra.mxu1 %v10091_v31  ;;  %v10163_v31 = vunpack.c.h.s8.bf16 %v9995_v12  ;;  %v10036_v12 = vld [vmem:[%s17098_s18 + $0x278] sm:$0xff] }
 0xacb   :  { %10619 = vmatprep.mubr.bf16.mxu1 %v16735_v51  ;;  %10507 = vmatprep.subr.bf16.mxu0 %v10098_v21  ;;  %v9980_v51 = vld [vmem:[%s17098_s18 + $0xb8] sm:$0xff]  ;;  %v10170_v21 = vunpack.c.l.s8.bf16 %v10002_v45 }
 0xacc   :  { %10589 = vmatprep.subr.bf16.mxu1 %v10100_v8  ;;  %v10124_v59 = vunpack.c.l.s8.bf16 %v9980_v51  ;;  %v10132_v0 = vunpack.c.h.s8.bf16 %v9980_v51  ;;  %v10172_v8 = vunpack.c.l.s8.bf16 %v10004_v32  ;;  %v10011_v51 = vld [vmem:[%s17098_s18 + $0x1b0] sm:$0xff] }
 0xacd   :  { %10508 = vmatpush1.bf16.msra.mxu0 %v10097_v60  ;;  %v10169_v60 = vunpack.c.l.s8.bf16 %v10001_v46  ;;  %v10035_v32 = vld [vmem:[%s17098_s18 + $0x270] sm:$0xff] }
 0xace   :  { %10590 = vmatpush1.bf16.msra.mxu1 %v10099_v56  ;;  %10509 = vmatprep.subr.bf16.mxu0 %v10106_v6  ;;  %v10171_v56 = vunpack.c.l.s8.bf16 %v10003_v2  ;;  %v10178_v6 = vunpack.c.h.s8.bf16 %v10002_v45  ;;  %v10236_v45 = vunpack.c.l.s8.bf16 %v10036_v12 }
 0xacf   :  { %10591 = vmatprep.subr.bf16.mxu1 %v10108_v61  ;;  %v10010_v61 = vld [vmem:[%s17098_s18 + $0x1a8] sm:$0xff] }
 0xad1   :  { %10510 = vmatpush1.bf16.msra.mxu0 %v10105_v39  ;;  %v10177_v39 = vunpack.c.h.s8.bf16 %v10001_v46  ;;  %v10042_v46 = vld [vmem:[%s17098_s18 + $0x2a8] sm:$0xff] }
 0xad2   :  { %10592 = vmatpush1.bf16.msra.mxu1 %v10107_v10  ;;  %10511 = vmatprep.subr.bf16.mxu0 %v10114_v55  ;;  %v10179_v10 = vunpack.c.h.s8.bf16 %v10003_v2  ;;  %v10186_v55 = vunpack.c.l.s8.bf16 %v10010_v61  ;;  %v10243_v2 = vunpack.c.h.s8.bf16 %v10035_v32 }
 0xad3   :  { %10593 = vmatprep.subr.bf16.mxu1 %v10116_v27  ;;  %v10009_v27 = vld [vmem:[%s17098_s18 + $0x1a0] sm:$0xff] }
 0xad5   :  { %10512 = vmatpush1.bf16.msra.mxu0 %v10113_v62  ;;  %v10185_v62 = vunpack.c.l.s8.bf16 %v10009_v27 }
 0xad6   :  { %10594 = vmatpush1.bf16.msra.mxu1 %v10115_v11  ;;  %10513 = vmatprep.subr.bf16.mxu0 %v10122_v28  ;;  %v10187_v11 = vunpack.c.l.s8.bf16 %v10011_v51  ;;  %v10194_v28 = vunpack.c.h.s8.bf16 %v10010_v61 }
 0xad7   :  { %10595 = vmatprep.subr.bf16.mxu1 %v10124_v59  ;;  %v10018_v59 = vld [vmem:[%s17098_s18 + $0x1e8] sm:$0xff] }
 0xad9   :  { %10514 = vmatpush1.bf16.msra.mxu0 %v10121_v20  ;;  %v10193_v20 = vunpack.c.h.s8.bf16 %v10009_v27  ;;  %v10052_v27 = vld [vmem:[%s17098_s18 + $0x2f8] sm:$0xff] }
 0xada   :  { %10596 = vmatpush1.bf16.msra.mxu1 %v10123_v40  ;;  %10515 = vmatprep.subr.bf16.mxu0 %v10130_v38  ;;  %v10195_v40 = vunpack.c.h.s8.bf16 %v10011_v51  ;;  %v10202_v38 = vunpack.c.l.s8.bf16 %v10018_v59 }
 0xadb   :  { %10597 = vmatprep.subr.bf16.mxu1 %v10132_v0  ;;  %v10017_v0 = vld [vmem:[%s17098_s18 + $0x1e0] sm:$0xff] }
 0xadd   :  { %10516 = vmatpush1.bf16.msra.mxu0 %v10129_v42  ;;  %v10201_v42 = vunpack.c.l.s8.bf16 %v10017_v0 }
 0xade   :  { %10598 = vmatpush1.bf16.msra.mxu1 %v10131_v3  ;;  %10517 = vmatprep.subr.bf16.mxu0 %v10138_v53  ;;  %v10203_v3 = vunpack.c.l.s8.bf16 %v10019_v48  ;;  %v10210_v53 = vunpack.c.h.s8.bf16 %v10018_v59 }
 0xadf   :  { %10599 = vmatprep.subr.bf16.mxu1 %v10140_v24  ;;  %v10026_v24 = vld [vmem:[%s17098_s18 + $0x228] sm:$0xff] }
 0xae1   :  { %10518 = vmatpush1.bf16.msra.mxu0 %v10137_v29  ;;  %v10209_v29 = vunpack.c.h.s8.bf16 %v10017_v0  ;;  %v10060_v0 = vld [vmem:[%s17098_s18 + $0x338] sm:$0xff] }
 0xae2   :  { %10600 = vmatpush1.bf16.msra.mxu1 %v10139_v33  ;;  %10519 = vmatprep.subr.bf16.mxu0 %v10146_v58  ;;  %v10211_v33 = vunpack.c.h.s8.bf16 %v10019_v48  ;;  %v10218_v58 = vunpack.c.l.s8.bf16 %v10026_v24 }
 0xae3   :  { %10601 = vmatprep.subr.bf16.mxu1 %v10148_v36  ;;  %v10025_v36 = vld [vmem:[%s17098_s18 + $0x220] sm:$0xff] }
 0xae5   :  { %10520 = vmatpush1.bf16.msra.mxu0 %v10145_v5  ;;  %v10217_v5 = vunpack.c.l.s8.bf16 %v10025_v36 }
 0xae6   :  { %10602 = vmatpush1.bf16.msra.mxu1 %v10147_v43  ;;  %10521 = vmatprep.subr.bf16.mxu0 %v10154_v49  ;;  %v10219_v43 = vunpack.c.l.s8.bf16 %v10027_v41  ;;  %v10226_v49 = vunpack.c.h.s8.bf16 %v10026_v24 }
 0xae7   :  { %10603 = vmatprep.subr.bf16.mxu1 %v10156_v57  ;;  %v10228_v57 = vunpack.c.h.s8.bf16 %v10028_v25 }
 0xae9   :  { %10522 = vmatpush1.bf16.msra.mxu0 %v10153_v22  ;;  %v10225_v22 = vunpack.c.h.s8.bf16 %v10025_v36  ;;  %v10068_v36 = vld [vmem:[%s17098_s18 + $0x378] sm:$0xff] }
 0xaea   :  { %10604 = vmatpush1.bf16.msra.mxu1 %v10155_v1  ;;  %10523 = vmatprep.subr.bf16.mxu0 %v10162_v47  ;;  %v10227_v1 = vunpack.c.h.s8.bf16 %v10027_v41  ;;  %v10234_v47 = vunpack.c.l.s8.bf16 %v10034_v23 }
 0xaeb   :  { %10605 = vmatprep.subr.bf16.mxu1 %v10164_v63  ;;  %v10033_v63 = vld [vmem:[%s17098_s18 + $0x260] sm:$0xff] }
 0xaed   :  { %10524 = vmatpush1.bf16.msra.mxu0 %v10161_v16  ;;  %v10235_v16 = vunpack.c.l.s8.bf16 %v10035_v32 }
 0xaee   :  { %10606 = vmatpush1.bf16.msra.mxu1 %v10163_v31  ;;  %10525 = vmatprep.subr.bf16.mxu0 %v10170_v21  ;;  %v10242_v31 = vunpack.c.h.s8.bf16 %v10034_v23  ;;  %v10244_v21 = vunpack.c.h.s8.bf16 %v10036_v12  ;;  %v10067_v23 = vld [vmem:[%s17098_s18 + $0x370] sm:$0xff] }
 0xaef   :  { %10607 = vmatprep.subr.bf16.mxu1 %v10172_v8  ;;  %v10241_v8 = vunpack.c.h.s8.bf16 %v10033_v63  ;;  %v10299_v12 = vunpack.c.l.s8.bf16 %v10067_v23  ;;  %v10307_v32 = vunpack.c.h.s8.bf16 %v10067_v23 }
 0xaf1   :  { %10526 = vmatpush1.bf16.msra.mxu0 %v10169_v60  ;;  %v10250_v60 = vunpack.c.l.s8.bf16 %v10042_v46 }
 0xaf2   :  { %10608 = vmatpush1.bf16.msra.mxu1 %v10171_v56  ;;  %10527 = vmatprep.subr.bf16.mxu0 %v10178_v6  ;;  %v10041_v56 = vld [vmem:[%s17098_s18 + $0x2a0] sm:$0xff] }
 0xaf3   :  { %10609 = vmatprep.subr.bf16.mxu1 %v10180_v14  ;;  %v10043_v14 = vld [vmem:[%s17098_s18 + $0x2b0] sm:$0xff]  ;;  %v10249_v61 = vunpack.c.l.s8.bf16 %v10041_v56 }
 0xaf4   :  { %v10251_v13 = vunpack.c.l.s8.bf16 %v10043_v14  ;;  %v10259_v51 = vunpack.c.h.s8.bf16 %v10043_v14 }
 0xaf5   :  { %10528 = vmatpush1.bf16.msra.mxu0 %v10177_v39  ;;  %v10258_v39 = vunpack.c.h.s8.bf16 %v10042_v46 }
 0xaf6   :  { %10610 = vmatpush1.bf16.msra.mxu1 %v10179_v10  ;;  %10529 = vmatprep.subr.bf16.mxu0 %v10186_v55  ;;  %v10050_v55 = vld [vmem:[%s17098_s18 + $0x2e8] sm:$0xff] }
 0xaf7   :  { %10611 = vmatprep.subr.bf16.mxu1 %v10188_v52  ;;  %v10257_v52 = vunpack.c.h.s8.bf16 %v10041_v56  ;;  %v10084_v56 = vld [vmem:[%s17098_s18 + $0x3f8] sm:$0xff] }
 0xaf9   :  { %10530 = vmatpush1.bf16.msra.mxu0 %v10185_v62  ;;  %v10266_v62 = vunpack.c.l.s8.bf16 %v10050_v55 }
 0xafa   :  { %10612 = vmatpush1.bf16.msra.mxu1 %v10187_v11  ;;  %10531 = vmatprep.subr.bf16.mxu0 %v10194_v28  ;;  %v10049_v11 = vld [vmem:[%s17098_s18 + $0x2e0] sm:$0xff]  ;;  %v10268_v28 = vunpack.c.l.s8.bf16 %v10052_v27 }
 0xafb   :  { %10613 = vmatprep.subr.bf16.mxu1 %v10196_v15  ;;  %v10051_v15 = vld [vmem:[%s17098_s18 + $0x2f0] sm:$0xff]  ;;  %v10265_v59 = vunpack.c.l.s8.bf16 %v10049_v11 }
 0xafc   :  { %v10267_v35 = vunpack.c.l.s8.bf16 %v10051_v15  ;;  %v10275_v48 = vunpack.c.h.s8.bf16 %v10051_v15  ;;  %v10719_v15 = vld [vmem:[%s17100_s20] sm:$0xff] }
 0xafd   :  { %10532 = vmatpush1.bf16.msra.mxu0 %v10193_v20  ;;  %v10274_v20 = vunpack.c.h.s8.bf16 %v10050_v55 }
 0xafe   :  { %10614 = vmatpush1.bf16.msra.mxu1 %v10195_v40  ;;  %10533 = vmatprep.subr.bf16.mxu0 %v10202_v38  ;;  %v10276_v40 = vunpack.c.h.s8.bf16 %v10052_v27  ;;  %v10058_v38 = vld [vmem:[%s17098_s18 + $0x328] sm:$0xff] }
 0xaff   :  { %10615 = vmatprep.subr.bf16.mxu1 %v10204_v19  ;;  %v10273_v19 = vunpack.c.h.s8.bf16 %v10049_v11 }
 0xb01   :  { %10534 = vmatpush1.bf16.msra.mxu0 %v10201_v42  ;;  %v10282_v42 = vunpack.c.l.s8.bf16 %v10058_v38 }
 0xb02   :  { %10616 = vmatpush1.bf16.msra.mxu1 %v10203_v3  ;;  %10535 = vmatprep.subr.bf16.mxu0 %v10210_v53  ;;  %v10057_v3 = vld [vmem:[%s17098_s18 + $0x320] sm:$0xff]  ;;  %v10284_v53 = vunpack.c.l.s8.bf16 %v10060_v0 }
 0xb03   :  { %10617 = vmatprep.subr.bf16.mxu1 %v10212_v4  ;;  %v10059_v4 = vld [vmem:[%s17098_s18 + $0x330] sm:$0xff]  ;;  %v10281_v24 = vunpack.c.l.s8.bf16 %v10057_v3 }
 0xb04   :  { %v10283_v25 = vunpack.c.l.s8.bf16 %v10059_v4  ;;  %v10291_v41 = vunpack.c.h.s8.bf16 %v10059_v4 }
 0xb05   :  { %10536 = vmatpush1.bf16.msra.mxu0 %v10209_v29  ;;  %v10290_v29 = vunpack.c.h.s8.bf16 %v10058_v38 }
 0xb06   :  { %10618 = vmatpush1.bf16.msra.mxu1 %v10211_v33  ;;  %10546 = vmatprep.subr.bf16.mxu0 %v10218_v58  ;;  %v10292_v33 = vunpack.c.h.s8.bf16 %v10060_v0  ;;  %v10066_v58 = vld [vmem:[%s17098_s18 + $0x368] sm:$0xff] }
 0xb07   :  { %10628 = vmatprep.subr.bf16.mxu1 %v10220_v9  ;;  %v10289_v9 = vunpack.c.h.s8.bf16 %v10057_v3 }
 0xb08   :  { %10538 = vmatmul.mubr.bf16.vlgmr.msra.gmra.mrb[48].mxu0 %v16737_v34 }
 0xb09   :  { %10620 = vmatmul.mubr.bf16.vlgmr.msra.gmra.mrb[60].mxu1 %v16737_v34  ;;  %10547 = vmatpush1.bf16.msra.mxu0 %v10217_v5  ;;  %v10233_v34 = vunpack.c.l.s8.bf16 %v10033_v63  ;;  %v10298_v5 = vunpack.c.l.s8.bf16 %v10066_v58  ;;  %v10076_v63 = vld [vmem:[%s17098_s18 + $0x3b8] sm:$0xff] }
 0xb0a   :  { %10578 = vmatprep.mubr.bf16.mxu0 %v16826_v44  ;;  %10629 = vmatpush1.bf16.msra.mxu1 %v10219_v43  ;;  %v10065_v43 = vld [vmem:[%s17098_s18 + $0x360] sm:$0xff] }
 0xb0b   :  { %10660 = vmatprep.mubr.bf16.mxu1 %v16826_v44  ;;  %10548 = vmatprep.subr.bf16.mxu0 %v10226_v49  ;;  %v10044_v44 = vld [vmem:[%s17098_s18 + $0x2b8] sm:$0xff]  ;;  %v10300_v49 = vunpack.c.l.s8.bf16 %v10068_v36 }
 0xb0c   :  { %10630 = vmatprep.subr.bf16.mxu1 %v10228_v57  ;;  %v10252_v6 = vunpack.c.l.s8.bf16 %v10044_v44  ;;  %v10260_v10 = vunpack.c.h.s8.bf16 %v10044_v44  ;;  %v10297_v57 = vunpack.c.l.s8.bf16 %v10065_v43 }
 0xb0d   :  { %10549 = vmatpush1.bf16.msra.mxu0 %v10225_v22  ;;  %v10306_v22 = vunpack.c.h.s8.bf16 %v10066_v58 }
 0xb0e   :  { %10631 = vmatpush1.bf16.msra.mxu1 %v10227_v1  ;;  %10550 = vmatprep.subr.bf16.mxu0 %v10234_v47  ;;  %v10308_v1 = vunpack.c.h.s8.bf16 %v10068_v36  ;;  %v10074_v47 = vld [vmem:[%s17098_s18 + $0x3a8] sm:$0xff] }
 0xb0f   :  { %10632 = vmatprep.subr.bf16.mxu1 %v10236_v45  ;;  %v10305_v45 = vunpack.c.h.s8.bf16 %v10065_v43 }
 0xb11   :  { %10551 = vmatpush1.bf16.msra.mxu0 %v10233_v34  ;;  %v10314_v34 = vunpack.c.l.s8.bf16 %v10074_v47 }
 0xb12   :  { %10633 = vmatpush1.bf16.msra.mxu1 %v10235_v16  ;;  %10552 = vmatprep.subr.bf16.mxu0 %v10242_v31  ;;  %v10073_v16 = vld [vmem:[%s17098_s18 + $0x3a0] sm:$0xff]  ;;  %v10316_v31 = vunpack.c.l.s8.bf16 %v10076_v63 }
 0xb13   :  { %10634 = vmatprep.subr.bf16.mxu1 %v10244_v21  ;;  %v10075_v21 = vld [vmem:[%s17098_s18 + $0x3b0] sm:$0xff]  ;;  %v10313_v46 = vunpack.c.l.s8.bf16 %v10073_v16 }
 0xb14   :  { %v10315_v44 = vunpack.c.l.s8.bf16 %v10075_v21  ;;  %v10323_v14 = vunpack.c.h.s8.bf16 %v10075_v21 }
 0xb15   :  { %10553 = vmatpush1.bf16.msra.mxu0 %v10241_v8  ;;  %v10322_v8 = vunpack.c.h.s8.bf16 %v10074_v47 }
 0xb16   :  { %10635 = vmatpush1.bf16.msra.mxu1 %v10243_v2  ;;  %10554 = vmatprep.subr.bf16.mxu0 %v10250_v60  ;;  %v10324_v2 = vunpack.c.h.s8.bf16 %v10076_v63  ;;  %v10082_v60 = vld [vmem:[%s17098_s18 + $0x3e8] sm:$0xff] }
 0xb17   :  { %10636 = vmatprep.subr.bf16.mxu1 %v10252_v6  ;;  %v10321_v6 = vunpack.c.h.s8.bf16 %v10073_v16 }
 0xb19   :  { %10555 = vmatpush1.bf16.msra.mxu0 %v10249_v61  ;;  %v10330_v61 = vunpack.c.l.s8.bf16 %v10082_v60 }
 0xb1a   :  { %10637 = vmatpush1.bf16.msra.mxu1 %v10251_v13  ;;  %10556 = vmatprep.subr.bf16.mxu0 %v10258_v39  ;;  %v10081_v13 = vld [vmem:[%s17098_s18 + $0x3e0] sm:$0xff]  ;;  %v10332_v39 = vunpack.c.l.s8.bf16 %v10084_v56 }
 0xb1b   :  { %10638 = vmatprep.subr.bf16.mxu1 %v10260_v10  ;;  %v10083_v10 = vld [vmem:[%s17098_s18 + $0x3f0] sm:$0xff]  ;;  %v10329_v55 = vunpack.c.l.s8.bf16 %v10081_v13 }
 0xb1c   :  { %v10331_v27 = vunpack.c.l.s8.bf16 %v10083_v10  ;;  %v10339_v11 = vunpack.c.h.s8.bf16 %v10083_v10 }
 0xb1d   :  { %10557 = vmatpush1.bf16.msra.mxu0 %v10257_v52  ;;  %v10338_v52 = vunpack.c.h.s8.bf16 %v10082_v60 }
 0xb1e   :  { %10639 = vmatpush1.bf16.msra.mxu1 %v10259_v51  ;;  %10558 = vmatprep.subr.bf16.mxu0 %v10266_v62  ;;  %v10340_v51 = vunpack.c.h.s8.bf16 %v10084_v56  ;;  %v10337_v62 = vunpack.c.h.s8.bf16 %v10081_v13 }
 0xb1f   :  { %10640 = vmatprep.subr.bf16.mxu1 %v10268_v28  ;;  %v10669_v28 = vld [vmem:[%s17099_s19] sm:$0xff]  ;;  %s11722_s19 = smov [#allocation2]  }
 0xb20   :  { %v10686_v38 = vrot.slane %v10669_v28, %v17171_v37  ;;  %s10791_s20 = sshll.u32 %s11722_s19, 4  ;;  %s10792_s20 = int_to_ptr.vmem [resolvable:$true] %s10791_s20 }
 0xb21   :  { %10559 = vmatpush1.bf16.msra.mxu0 %v10265_v59  ;;  %v10674_v59 = vrot.slane %v10669_v28, %v17169_v7  ;;  %s11697_s22 = scalar_lea.vmem %s10792_s20, 1024  ;;  %p11702_p1 = scmp.lt.s32.totalorder %s10792_s20, %s10792_s20 }
 0xb22   :  { %10641 = vmatpush1.bf16.msra.mxu1 %v10267_v35  ;;  %10560 = vmatprep.subr.bf16.mxu0 %v10274_v20  ;;  %v10682_v35 = vrot.slane %v10669_v28, %v17172_v17  ;;  %v10678_v20 = vrot.slane %v10669_v28, %v17170_v18  ;;  %p11698_p0 = scmp.ne.s32.totalorder %s10792_s20, %s11697_s22  ;;  %p11703_p2 = scmp.lt.s32.totalorder %s11697_s22, %s11697_s22 }
 0xb23   :  { %10642 = vmatprep.subr.bf16.mxu1 %v10276_v40  ;;  %v10724_v40 = vrot.slane %v10719_v15, %v17169_v7 }
 0xb24   :  { %p11704_p3 = por %p11703_p2, %p11702_p1 }
 0xb25   :  { %10561 = vmatpush1.bf16.msra.mxu0 %v10273_v19  ;;  %v10728_v19 = vrot.slane %v10719_v15, %v17170_v18 }
 0xb26   :  { %10643 = vmatpush1.bf16.msra.mxu1 %v10275_v48  ;;  %10562 = vmatprep.subr.bf16.mxu0 %v10282_v42  ;;  %p11705_p4 = pnand %p11704_p3, %p11698_p0 }
 0xb27   :  { %10644 = vmatprep.subr.bf16.mxu1 %v10284_v53  ;;  %v10736_v53 = vrot.slane %v10719_v15, %v17171_v37  ;;  %v10690_v37 = vrot.slane %v10669_v28, %v17173_v50 }
 0xb29   :  { %10563 = vmatpush1.bf16.msra.mxu0 %v10281_v24 }
 0xb2a   :  { %10645 = vmatpush1.bf16.msra.mxu1 %v10283_v25  ;;  %10564 = vmatprep.subr.bf16.mxu0 %v10290_v29 }
 0xb2b   :  { %10646 = vmatprep.subr.bf16.mxu1 %v10292_v33 }
 0xb2d   :  { %10565 = vmatpush1.bf16.msra.mxu0 %v10289_v9 }
 0xb2e   :  { %10647 = vmatpush1.bf16.msra.mxu1 %v10291_v41  ;;  %10566 = vmatprep.subr.bf16.mxu0 %v10298_v5 }
 0xb2f   :  { %10648 = vmatprep.subr.bf16.mxu1 %v10300_v49 }
 0xb31   :  { %10567 = vmatpush1.bf16.msra.mxu0 %v10297_v57  ;;  %v10698_v57 = vrot.slane %v10669_v28, %v17175_v26 }
 0xb32   :  { %10649 = vmatpush1.bf16.msra.mxu1 %v10299_v12  ;;  %10568 = vmatprep.subr.bf16.mxu0 %v10306_v22  ;;  %v10694_v12 = vrot.slane %v10669_v28, %v17174_v30  ;;  %v10740_v22 = vrot.slane %v10719_v15, %v17173_v50 }
 0xb33   :  { %10650 = vmatprep.subr.bf16.mxu1 %v10308_v1  ;;  %v17176_v1 = vld [vmem:[#allocation12_spill] sm:$0xff] }
 0xb34   :  { %v10702_v47 = vrot.slane %v10669_v28, %v17176_v1  ;;  %v10752_v21 = vrot.slane %v10719_v15, %v17176_v1 }
 0xb35   :  { %10569 = vmatpush1.bf16.msra.mxu0 %v10305_v45  ;;  %v10748_v45 = vrot.slane %v10719_v15, %v17175_v26 }
 0xb36   :  { %10651 = vmatpush1.bf16.msra.mxu1 %v10307_v32  ;;  %10570 = vmatprep.subr.bf16.mxu0 %v10314_v34  ;;  %v10744_v32 = vrot.slane %v10719_v15, %v17174_v30 }
 0xb37   :  { %10652 = vmatprep.subr.bf16.mxu1 %v10316_v31 }
 0xb39   :  { %10571 = vmatpush1.bf16.msra.mxu0 %v10313_v46 }
 0xb3a   :  { %10653 = vmatpush1.bf16.msra.mxu1 %v10315_v44  ;;  %10572 = vmatprep.subr.bf16.mxu0 %v10322_v8 }
 0xb3b   :  { %10654 = vmatprep.subr.bf16.mxu1 %v10324_v2 }
 0xb3d   :  { %10573 = vmatpush1.bf16.msra.mxu0 %v10321_v6 }
 0xb3e   :  { %10655 = vmatpush1.bf16.msra.mxu1 %v10323_v14  ;;  %10574 = vmatprep.subr.bf16.mxu0 %v10330_v61 }
 0xb3f   :  { %10656 = vmatprep.subr.bf16.mxu1 %v10332_v39 }
 0xb41   :  { %10575 = vmatpush1.bf16.msra.mxu0 %v10329_v55 }
 0xb42   :  { %10657 = vmatpush1.bf16.msra.mxu1 %v10331_v27  ;;  %10576 = vmatprep.subr.bf16.mxu0 %v10338_v52 }
 0xb43   :  { %10658 = vmatprep.subr.bf16.mxu1 %v10340_v51 }
 0xb45   :  { %10577 = vmatpush1.bf16.msra.mxu0 %v10337_v62 }
 0xb46   :  { %10659 = vmatpush1.bf16.msra.mxu1 %v10339_v11 }
 0xb48   :  { %10579 = vmatmul.mubr.bf16.vlgmr.msra.gmra.mrb[48].mxu0 %v16854_v54 }
 0xb49   :  { %10661 = vmatmul.mubr.bf16.vlgmr.msra.gmra.mrb[60].mxu1 %v16854_v54  ;;  %v10732_v54 = vrot.slane %v10719_v15, %v17172_v17 }
 0xb9b   :  { %v10416_v0 = vpop.f32.mrb[44].mxu0 }
 0xb9c   :  { %v10711_v48 = vmul.f32 %v10674_v59, %v10416_v0  ;;  %v10498_v42 = vpop.f32.mrb[56].mxu1  ;;  %v10418_v3 = vpop.f32.mrb[45].mxu0 }
 0xb9d   :  { %v10713_v4 = vmul.f32 %v10682_v35, %v10498_v42  ;;  %v10712_v24 = vmul.f32 %v10678_v20, %v10418_v3  ;;  %v10500_v25 = vpop.f32.mrb[57].mxu1  ;;  %v10420_v29 = vpop.f32.mrb[46].mxu0 }
 0xb9e   :  { %v10761_v33 = vadd.f32 %v10724_v40, %v10711_v48  ;;  %v10714_v58 = vmul.f32 %v10686_v38, %v10500_v25  ;;  %v10502_v36 = vpop.f32.mrb[58].mxu1  ;;  %v10421_v7 = vpop.f32.mrb[47].mxu0 }
 0xb9f   :  { %v10763_v9 = vadd.f32 %v10732_v54, %v10713_v4  ;;  %v10762_v41 = vadd.f32 %v10728_v19, %v10712_v24  ;;  %v10503_v5 = vpop.f32.mrb[59].mxu1 }
 0xba0   :  { %v10769_v43 = vmax.f32 %v10761_v33, 0.0  ;;  %v10764_v17 = vadd.f32 %v10736_v53, %v10714_v58 }
 0xba1   :  { %v10771_v49 = vmax.f32 %v10763_v9, 0.0  ;;  %v10770_v18 = vmax.f32 %v10762_v41, 0.0 }
 0xba2   :  { %10777 = vst [vmem:[#allocation2] sm:$0xff] %v10769_v43  ;;  %v10772_v23 = vmax.f32 %v10764_v17, 0.0 }
 0xba3   :  { %10779 = vst [vmem:[#allocation2 + $0x10] sm:$0xff] %v10771_v49  ;;  %10778 = vst [vmem:[#allocation2 + $0x8] sm:$0xff] %v10770_v18 }
 0xba4   :  { %10780 = vst [vmem:[#allocation2 + $0x18] sm:$0xff] %v10772_v23 }
 0xc1b   :  { %v10580_v63 = vpop.f32.mrb[48].mxu0 }
 0xc1c   :  { %v10715_v34 = vmul.f32 %v10690_v37, %v10580_v63  ;;  %v10662_v16 = vpop.f32.mrb[60].mxu1  ;;  %v10582_v31 = vpop.f32.mrb[49].mxu0 }
 0xc1d   :  { %v10717_v46 = vmul.f32 %v10698_v57, %v10662_v16  ;;  %v10716_v44 = vmul.f32 %v10694_v12, %v10582_v31  ;;  %v10664_v8 = vpop.f32.mrb[61].mxu1  ;;  %v10584_v2 = vpop.f32.mrb[50].mxu0 }
 0xc1e   :  { %v10765_v60 = vadd.f32 %v10740_v22, %v10715_v34  ;;  %v10718_v56 = vmul.f32 %v10702_v47, %v10664_v8  ;;  %v10666_v6 = vpop.f32.mrb[62].mxu1  ;;  %v10585_v50 = vpop.f32.mrb[51].mxu0 }
 0xc1f   :  { %v10767_v14 = vadd.f32 %v10748_v45, %v10717_v46  ;;  %v10766_v61 = vadd.f32 %v10744_v32, %v10716_v44  ;;  %v10667_v13 = vpop.f32.mrb[63].mxu1 }
 0xc20   :  { %v10773_v26 = vmax.f32 %v10765_v60, 0.0  ;;  %v10768_v30 = vadd.f32 %v10752_v21, %v10718_v56 }
 0xc21   :  { %v10775_v39 = vmax.f32 %v10767_v14, 0.0  ;;  %v10774_v10 = vmax.f32 %v10766_v61, 0.0 }
 0xc22   :  { %10781 = vst [vmem:[#allocation2 + $0x20] sm:$0xff] %v10773_v26  ;;  %v10776_v55 = vmax.f32 %v10768_v30, 0.0 }
 0xc23   :  { %10783 = vst [vmem:[#allocation2 + $0x30] sm:$0xff] %v10775_v39  ;;  %10782 = vst [vmem:[#allocation2 + $0x28] sm:$0xff] %v10774_v10 }
 0xc24   :  { %10784 = vst [vmem:[#allocation2 + $0x38] sm:$0xff] %v10776_v55 }
 0xc25   :  { %11708 = shalt.err (!%p11705_p4)
}
 0xc26   :  { %s11709_s15 = scalar_lea.hbm %s17101_s21, 1024 }
 0xc27   :  { %p11710_p5 = scmp.ne.s32.totalorder %s17101_s21, %s11709_s15  ;;  %p11713_p6 = scmp.lt.u32.totalorder %s11709_s15, %s17101_s21 }
 0xc29   :  { %p11715_p7 = pnand %p11713_p6, %p11710_p5 }
 0xc2b   :  { %11718 = shalt.err (!%p11715_p7)
}
 0xc2c   :  { %10794 = dma.vmem_to_hbm [thread:$0]  %s10792_s20, 1024, %s17101_s21, [#allocation3]  }
 0xc2d   :  { %11719 = dma.done.wait [#allocation3], 1024  }
 0xc2e   :  { %11720 = vsyncadd [#allocation3], 4294966272 }
 0xc2f   :  { %10798 = vsyncpa [#allocation3], 1 }

</bundles_post_ra>
